<compile_context>
chip_gen: v7x
topology: tpu7x:2x2x1
jax: 0.10.0
libtpu: 0.0.40
codegen_flags: <defaults>
</compile_context>

<pallas_src>
import jax
import jax.numpy as jnp
from jax.experimental import pallas as pl
from jax.experimental.pallas import tpu as pltpu

D_IN = 28 * 28          # 784
D_IN_PAD = 896          # 7 * 128 -> lane-aligned K for the first matmul
H1 = 1024
H2 = 512
EMB_DIM = 2
OUT_PAD = 128           # lane-dense output slab; real columns are [:EMB_DIM]
DEFAULT_TB = 1024       # batch tile (multiple of 256); ~18-20 MiB residency
TB_ALIGN = 16           # bf16 sublane packing: 16 rows per sublane group
VMEM_LIMIT_BYTES = 48 * 1024 * 1024   # < 64 MiB (v7x), > scoped default (v5e/v6e)

# Flipped to False once (and cached) if pipeline_mode=pl.Buffered(1) is
# rejected by the installed Pallas/Mosaic version.
_SINGLE_BUFFER_WEIGHTS = True


def _round_up(n, m):
    return pl.cdiv(n, m) * m


def mlp_kernel(x_ref, w1_ref, b1_ref, w2_ref, b2_ref, w3_ref, b3_ref, o_ref):
    """One batch tile: (Linear+ReLU) x2 -> Linear -> Sigmoid.

    x_ref:  (TB, 896)   bf16 (zero-padded features)
    w*_ref: (in, out)   bf16 (w3 zero-padded to 128 output lanes)
    b*_ref: (1, out)    fp32
    o_ref:  (TB, 128)   bf16 (only [:, :EMB_DIM] is meaningful)
    """
    x = x_ref[...]                                    # bf16

    h1 = jnp.dot(x, w1_ref[...], preferred_element_type=jnp.float32)
    h1 = jnp.maximum(h1 + b1_ref[...], 0.0)           # fp32 bias + ReLU

    h2 = jnp.dot(h1.astype(jnp.bfloat16), w2_ref[...],
                 preferred_element_type=jnp.float32)
    h2 = jnp.maximum(h2 + b2_ref[...], 0.0)           # fp32 bias + ReLU

    z = jnp.dot(h2.astype(jnp.bfloat16), w3_ref[...],
                preferred_element_type=jnp.float32) + b3_ref[...]
    # sigmoid: exp and approx reciprocal both live on the EUP slot
    o_ref[...] = pl.reciprocal(1.0 + jnp.exp(-z), approx=True).astype(o_ref.dtype)


def init_params(key, emb_dim=EMB_DIM):
    """Deterministic init matching nn.Linear default (uniform +-1/sqrt(fan_in)).

    Weights are stored PyTorch-style as (out_features, in_features), fp32.
    """
    dims = [(H1, D_IN), (H2, H1), (emb_dim, H2)]
    params = []
    for out_f, in_f in dims:
        key, kw, kb = jax.random.split(key, 3)
        bound = 1.0 / jnp.sqrt(jnp.float32(in_f))
        w = jax.random.uniform(kw, (out_f, in_f), jnp.float32, -bound, bound)
        b = jax.random.uniform(kb, (out_f,), jnp.float32, -bound, bound)
        params += [w, b]
    return tuple(params)


def pack_params(params):
    """One-time packing: (out,in) fp32 -> (in,out) bf16, lane-padded; fp32 biases.

    Hoisted out of the forward path so the transpose/pad/cast traffic is not
    paid on every call.
    """
    w1, b1, w2, b2, w3, b3 = params
    emb = w3.shape[0]
    assert emb <= OUT_PAD

    w1p = jnp.pad(w1.T.astype(jnp.bfloat16), ((0, D_IN_PAD - D_IN), (0, 0)))
    b1p = b1.reshape(1, H1).astype(jnp.float32)
    w2p = w2.T.astype(jnp.bfloat16)
    b2p = b2.reshape(1, H2).astype(jnp.float32)
    w3p = jnp.pad(w3.T.astype(jnp.bfloat16), ((0, 0), (0, OUT_PAD - emb)))
    b3p = jnp.pad(b3.reshape(1, emb).astype(jnp.float32),
                  ((0, 0), (0, OUT_PAD - emb)))
    return (w1p, b1p, w2p, b2p, w3p, b3p)


def _build_in_specs(tb, single_buffer_weights):
    if single_buffer_weights:
        def wspec(shape):
            # Constant index_map -> the block never changes; single-buffer it.
            return pl.BlockSpec(shape, lambda i: (0, 0),
                                pipeline_mode=pl.Buffered(1))
    else:
        def wspec(shape):
            return pl.BlockSpec(shape, lambda i: (0, 0))
    return [
        pl.BlockSpec((tb, D_IN_PAD), lambda i: (i, 0)),   # x: tiled on batch
        wspec((D_IN_PAD, H1)), wspec((1, H1)),            # weights/biases: resident
        wspec((H1, H2)), wspec((1, H2)),
        wspec((H2, OUT_PAD)), wspec((1, OUT_PAD)),
    ]


def _run_pallas(xp, packed, tb, B_pad, single_buffer_weights):
    return pl.pallas_call(
        mlp_kernel,
        out_shape=jax.ShapeDtypeStruct((B_pad, OUT_PAD), jnp.bfloat16),
        grid=(B_pad // tb,),
        in_specs=_build_in_specs(tb, single_buffer_weights),
        out_specs=pl.BlockSpec((tb, OUT_PAD), lambda i: (i, 0)),
        compiler_params=pltpu.CompilerParams(
            dimension_semantics=("parallel",),   # megacore-shardable batch axis
            vmem_limit_bytes=VMEM_LIMIT_BYTES,
        ),
    )(xp, *packed)


def linear_network_forward(x, packed_params, *, tb=DEFAULT_TB, emb_dim=EMB_DIM):
    """x: (B, C, H, W) NCHW (or already (B, 784)); returns (B, emb_dim) fp32."""
    global _SINGLE_BUFFER_WEIGHTS
    B = x.shape[0]
    x2 = x.reshape(B, -1).astype(jnp.float32)            # nn.Flatten()
    assert x2.shape[1] == D_IN

    # Batch tile: multiple of 16 (bf16 sublane packing).  Small batches run a
    # single grid step (tb = padded batch); larger ones tile at `tb`.
    tb = max(TB_ALIGN, (int(tb) // TB_ALIGN) * TB_ALIGN)
    B_pad_min = int(_round_up(B, TB_ALIGN))
    if B_pad_min <= tb:
        tb = B_pad_min
        B_pad = B_pad_min
    else:
        B_pad = int(_round_up(B, tb))

    # Fused pad: batch -> B_pad, features -> 896, cast to bf16.
    xp = jnp.pad(x2.astype(jnp.bfloat16),
                 ((0, B_pad - B), (0, D_IN_PAD - D_IN)))

    if _SINGLE_BUFFER_WEIGHTS:
        try:
            out = _run_pallas(xp, packed_params, tb, B_pad, True)
        except Exception:
            # pipeline_mode=pl.Buffered(1) unavailable in this Pallas build;
            # fall back to default double-buffering (correctness identical).
            _SINGLE_BUFFER_WEIGHTS = False
            out = _run_pallas(xp, packed_params, tb, B_pad, False)
    else:
        out = _run_pallas(xp, packed_params, tb, B_pad, False)

    # Drop batch padding and the lane padding of the last layer; upcast.
    return out[:B, :emb_dim].astype(jnp.float32)


def reference_forward(x, params):
    """Plain-JAX fp32 reference mirroring the PyTorch module."""
    w1, b1, w2, b2, w3, b3 = params
    h = x.reshape(x.shape[0], -1).astype(jnp.float32)
    h = jnp.maximum(h @ w1.T + b1, 0.0)
    h = jnp.maximum(h @ w2.T + b2, 0.0)
    return jax.nn.sigmoid(h @ w3.T + b3)


if __name__ == "__main__":
    key = jax.random.PRNGKey(0)
    k_param, k_x1, k_x2 = jax.random.split(key, 3)

    params = init_params(k_param, EMB_DIM)
    packed = pack_params(params)          # one-time transpose/pad/bf16 cast

    # Primary: small MNIST-like batch, NCHW as in PyTorch -> single grid step.
    x = jax.random.normal(k_x1, (2, 1, 28, 28), dtype=jnp.float32)
    out = jax.block_until_ready(linear_network_forward(x, packed))
    ref = reference_forward(x, params)
    assert out.shape == (2, EMB_DIM)
    # bf16 matmul inputs/output + approx reciprocal loosen tolerance vs fp32 ref.
    assert jnp.allclose(out, ref, atol=2e-2, rtol=2e-2), "mismatch vs reference"

    # Secondary: exercise the multi-step grid + batch-padding path
    # (tb=16 -> B_pad=32 -> grid=(2,)).
    xb = jax.random.normal(k_x2, (20, 1, 28, 28), dtype=jnp.float32)
    outb = jax.block_until_ready(linear_network_forward(xb, packed, tb=16))
    refb = reference_forward(xb, params)
    assert outb.shape == (20, EMB_DIM)
    assert jnp.allclose(outb, refb, atol=2e-2, rtol=2e-2), "mismatch vs reference (tiled)"

    print("KERNEL_OK")
</pallas_src>

<mosaic_0001>
module attributes {stable_mosaic.version = 11 : i64} {
  func.func @mlp_kernel(%arg0: i32, %arg1: memref<16x896xbf16, #tpu.memory_space<vmem>>, %arg2: memref<896x1024xbf16, #tpu.memory_space<vmem>>, %arg3: memref<1x1024xf32, #tpu.memory_space<vmem>>, %arg4: memref<1024x512xbf16, #tpu.memory_space<vmem>>, %arg5: memref<1x512xf32, #tpu.memory_space<vmem>>, %arg6: memref<512x128xbf16, #tpu.memory_space<vmem>>, %arg7: memref<1x128xf32, #tpu.memory_space<vmem>>, %arg8: memref<16x128xbf16, #tpu.memory_space<vmem>>) attributes {dimension_semantics = [#tpu.dimension_semantics<parallel>], iteration_bounds = array<i64: 1>, scalar_prefetch = 0 : i64, scratch_operands = 0 : i64, tpu.core_type = #tpu.core_type<tc>, window_params = [{transform_indices = @transform_0, window_bounds = array<i64: 16, 896>}, {pipeline_mode = #tpu.pipeline_mode<synchronous>, transform_indices = @transform_1, window_bounds = array<i64: 896, 1024>}, {pipeline_mode = #tpu.pipeline_mode<synchronous>, transform_indices = @transform_2, window_bounds = array<i64: 1, 1024>}, {pipeline_mode = #tpu.pipeline_mode<synchronous>, transform_indices = @transform_3, window_bounds = array<i64: 1024, 512>}, {pipeline_mode = #tpu.pipeline_mode<synchronous>, transform_indices = @transform_4, window_bounds = array<i64: 1, 512>}, {pipeline_mode = #tpu.pipeline_mode<synchronous>, transform_indices = @transform_5, window_bounds = array<i64: 512, 128>}, {pipeline_mode = #tpu.pipeline_mode<synchronous>, transform_indices = @transform_6, window_bounds = array<i64: 1, 128>}, {transform_indices = @transform_7, window_bounds = array<i64: 16, 128>}]} {
    %c0 = arith.constant 0 : index
    %c0_0 = arith.constant 0 : index
    %0 = vector.load %arg1[%c0, %c0_0] : memref<16x896xbf16, #tpu.memory_space<vmem>>, vector<16x896xbf16>
    %c0_1 = arith.constant 0 : index
    %c0_2 = arith.constant 0 : index
    %1 = vector.load %arg2[%c0_1, %c0_2] : memref<896x1024xbf16, #tpu.memory_space<vmem>>, vector<896x1024xbf16>
    %cst = arith.constant dense<0.000000e+00> : vector<16x1024xf32>
    %2 = tpu.matmul %0, %1, %cst {dimension_numbers = #tpu.dot_dimension_numbers<[1], [0], [0], [1], [0, 0, 1, 1], [], []>} : vector<16x896xbf16>, vector<896x1024xbf16>, vector<16x1024xf32> -> vector<16x1024xf32>
    %c0_3 = arith.constant 0 : index
    %c0_4 = arith.constant 0 : index
    %3 = vector.load %arg3[%c0_3, %c0_4] : memref<1x1024xf32, #tpu.memory_space<vmem>>, vector<1x1024xf32>
    %4 = vector.broadcast %3 : vector<1x1024xf32> to vector<16x1024xf32>
    %5 = arith.addf %2, %4 : vector<16x1024xf32>
    %cst_5 = arith.constant 0.000000e+00 : f32
    %6 = vector.broadcast %cst_5 : f32 to vector<16x1024xf32>
    %7 = arith.maximumf %5, %6 : vector<16x1024xf32>
    %8 = arith.truncf %7 : vector<16x1024xf32> to vector<16x1024xbf16>
    %c0_6 = arith.constant 0 : index
    %c0_7 = arith.constant 0 : index
    %9 = vector.load %arg4[%c0_6, %c0_7] : memref<1024x512xbf16, #tpu.memory_space<vmem>>, vector<1024x512xbf16>
    %cst_8 = arith.constant dense<0.000000e+00> : vector<16x512xf32>
    %10 = tpu.matmul %8, %9, %cst_8 {dimension_numbers = #tpu.dot_dimension_numbers<[1], [0], [0], [1], [0, 0, 1, 1], [], []>} : vector<16x1024xbf16>, vector<1024x512xbf16>, vector<16x512xf32> -> vector<16x512xf32>
    %c0_9 = arith.constant 0 : index
    %c0_10 = arith.constant 0 : index
    %11 = vector.load %arg5[%c0_9, %c0_10] : memref<1x512xf32, #tpu.memory_space<vmem>>, vector<1x512xf32>
    %12 = vector.broadcast %11 : vector<1x512xf32> to vector<16x512xf32>
    %13 = arith.addf %10, %12 : vector<16x512xf32>
    %cst_11 = arith.constant 0.000000e+00 : f32
    %14 = vector.broadcast %cst_11 : f32 to vector<16x512xf32>
    %15 = arith.maximumf %13, %14 : vector<16x512xf32>
    %16 = arith.truncf %15 : vector<16x512xf32> to vector<16x512xbf16>
    %c0_12 = arith.constant 0 : index
    %c0_13 = arith.constant 0 : index
    %17 = vector.load %arg6[%c0_12, %c0_13] : memref<512x128xbf16, #tpu.memory_space<vmem>>, vector<512x128xbf16>
    %cst_14 = arith.constant dense<0.000000e+00> : vector<16x128xf32>
    %18 = tpu.matmul %16, %17, %cst_14 {dimension_numbers = #tpu.dot_dimension_numbers<[1], [0], [0], [1], [0, 0, 1, 1], [], []>} : vector<16x512xbf16>, vector<512x128xbf16>, vector<16x128xf32> -> vector<16x128xf32>
    %c0_15 = arith.constant 0 : index
    %c0_16 = arith.constant 0 : index
    %19 = vector.load %arg7[%c0_15, %c0_16] : memref<1x128xf32, #tpu.memory_space<vmem>>, vector<1x128xf32>
    %20 = vector.broadcast %19 : vector<1x128xf32> to vector<16x128xf32>
    %21 = arith.addf %18, %20 : vector<16x128xf32>
    %cst_17 = arith.constant 0.000000e+00 : f32
    %22 = vector.broadcast %cst_17 : f32 to vector<16x128xf32>
    %23 = arith.subf %22, %21 : vector<16x128xf32>
    %24 = math.exp %23 : vector<16x128xf32>
    %cst_18 = arith.constant 1.000000e+00 : f32
    %25 = vector.broadcast %cst_18 : f32 to vector<16x128xf32>
    %26 = arith.addf %25, %24 : vector<16x128xf32>
    %27 = tpu.reciprocal %26 {approx = true} : vector<16x128xf32> -> vector<16x128xf32>
    %28 = arith.truncf %27 : vector<16x128xf32> to vector<16x128xbf16>
    %c0_19 = arith.constant 0 : index
    %c0_20 = arith.constant 0 : index
    %29 = vector.load %arg8[%c0_19, %c0_20] : memref<16x128xbf16, #tpu.memory_space<vmem>>, vector<16x128xbf16>
    tpu.vector_store %arg8[%c0_19, %c0_20], %28 {strides = array<i32>} : memref<16x128xbf16, #tpu.memory_space<vmem>>, vector<16x128xbf16>,
    return
  }
  func.func @transform_0(%arg0: i32) -> (i32, i32) {
    %c0_i32 = arith.constant 0 : i32
    %c0_i32_0 = arith.constant 0 : i32
    return %arg0, %c0_i32 : i32, i32
  }
  func.func @transform_1(%arg0: i32) -> (i32, i32) {
    %c0_i32 = arith.constant 0 : i32
    %c0_i32_0 = arith.constant 0 : i32
    %c0_i32_1 = arith.constant 0 : i32
    return %c0_i32, %c0_i32_0 : i32, i32
  }
  func.func @transform_2(%arg0: i32) -> (i32, i32) {
    %c0_i32 = arith.constant 0 : i32
    %c0_i32_0 = arith.constant 0 : i32
    %c0_i32_1 = arith.constant 0 : i32
    return %c0_i32, %c0_i32_0 : i32, i32
  }
  func.func @transform_3(%arg0: i32) -> (i32, i32) {
    %c0_i32 = arith.constant 0 : i32
    %c0_i32_0 = arith.constant 0 : i32
    %c0_i32_1 = arith.constant 0 : i32
    return %c0_i32, %c0_i32_0 : i32, i32
  }
  func.func @transform_4(%arg0: i32) -> (i32, i32) {
    %c0_i32 = arith.constant 0 : i32
    %c0_i32_0 = arith.constant 0 : i32
    %c0_i32_1 = arith.constant 0 : i32
    return %c0_i32, %c0_i32_0 : i32, i32
  }
  func.func @transform_5(%arg0: i32) -> (i32, i32) {
    %c0_i32 = arith.constant 0 : i32
    %c0_i32_0 = arith.constant 0 : i32
    %c0_i32_1 = arith.constant 0 : i32
    return %c0_i32, %c0_i32_0 : i32, i32
  }
  func.func @transform_6(%arg0: i32) -> (i32, i32) {
    %c0_i32 = arith.constant 0 : i32
    %c0_i32_0 = arith.constant 0 : i32
    %c0_i32_1 = arith.constant 0 : i32
    return %c0_i32, %c0_i32_0 : i32, i32
  }
  func.func @transform_7(%arg0: i32) -> (i32, i32) {
    %c0_i32 = arith.constant 0 : i32
    %c0_i32_0 = arith.constant 0 : i32
    return %arg0, %c0_i32 : i32, i32
  }
}

module attributes {stable_mosaic.version = 11 : i64} {
  func.func @mlp_kernel(%arg0: i32, %arg1: memref<16x896xbf16, #tpu.memory_space<vmem>>, %arg2: memref<896x1024xbf16, #tpu.memory_space<vmem>>, %arg3: memref<1x1024xf32, #tpu.memory_space<vmem>>, %arg4: memref<1024x512xbf16, #tpu.memory_space<vmem>>, %arg5: memref<1x512xf32, #tpu.memory_space<vmem>>, %arg6: memref<512x128xbf16, #tpu.memory_space<vmem>>, %arg7: memref<1x128xf32, #tpu.memory_space<vmem>>, %arg8: memref<16x128xbf16, #tpu.memory_space<vmem>>) attributes {dimension_semantics = [#tpu.dimension_semantics<parallel>], iteration_bounds = array<i64: 1>, scalar_prefetch = 0 : i64, scratch_operands = 0 : i64, tpu.core_type = #tpu.core_type<tc>, window_params = [{transform_indices = @transform_0, window_bounds = array<i64: 16, 896>}, {pipeline_mode = #tpu.pipeline_mode<synchronous>, transform_indices = @transform_1, window_bounds = array<i64: 896, 1024>}, {pipeline_mode = #tpu.pipeline_mode<synchronous>, transform_indices = @transform_2, window_bounds = array<i64: 1, 1024>}, {pipeline_mode = #tpu.pipeline_mode<synchronous>, transform_indices = @transform_3, window_bounds = array<i64: 1024, 512>}, {pipeline_mode = #tpu.pipeline_mode<synchronous>, transform_indices = @transform_4, window_bounds = array<i64: 1, 512>}, {pipeline_mode = #tpu.pipeline_mode<synchronous>, transform_indices = @transform_5, window_bounds = array<i64: 512, 128>}, {pipeline_mode = #tpu.pipeline_mode<synchronous>, transform_indices = @transform_6, window_bounds = array<i64: 1, 128>}, {transform_indices = @transform_7, window_bounds = array<i64: 16, 128>}]} {
    %c0 = arith.constant 0 : index
    %c0_0 = arith.constant 0 : index
    %0 = vector.load %arg1[%c0, %c0_0] : memref<16x896xbf16, #tpu.memory_space<vmem>>, vector<16x896xbf16>
    %c0_1 = arith.constant 0 : index
    %c0_2 = arith.constant 0 : index
    %1 = vector.load %arg2[%c0_1, %c0_2] : memref<896x1024xbf16, #tpu.memory_space<vmem>>, vector<896x1024xbf16>
    %cst = arith.constant dense<0.000000e+00> : vector<16x1024xf32>
    %2 = tpu.matmul %0, %1, %cst {dimension_numbers = #tpu.dot_dimension_numbers<[1], [0], [0], [1], [0, 0, 1, 1], [], []>} : vector<16x896xbf16>, vector<896x1024xbf16>, vector<16x1024xf32> -> vector<16x1024xf32>
    %c0_3 = arith.constant 0 : index
    %c0_4 = arith.constant 0 : index
    %3 = vector.load %arg3[%c0_3, %c0_4] : memref<1x1024xf32, #tpu.memory_space<vmem>>, vector<1x1024xf32>
    %4 = vector.broadcast %3 : vector<1x1024xf32> to vector<16x1024xf32>
    %5 = arith.addf %2, %4 : vector<16x1024xf32>
    %cst_5 = arith.constant 0.000000e+00 : f32
    %6 = vector.broadcast %cst_5 : f32 to vector<16x1024xf32>
    %7 = arith.maximumf %5, %6 : vector<16x1024xf32>
    %8 = arith.truncf %7 : vector<16x1024xf32> to vector<16x1024xbf16>
    %c0_6 = arith.constant 0 : index
    %c0_7 = arith.constant 0 : index
    %9 = vector.load %arg4[%c0_6, %c0_7] : memref<1024x512xbf16, #tpu.memory_space<vmem>>, vector<1024x512xbf16>
    %cst_8 = arith.constant dense<0.000000e+00> : vector<16x512xf32>
    %10 = tpu.matmul %8, %9, %cst_8 {dimension_numbers = #tpu.dot_dimension_numbers<[1], [0], [0], [1], [0, 0, 1, 1], [], []>} : vector<16x1024xbf16>, vector<1024x512xbf16>, vector<16x512xf32> -> vector<16x512xf32>
    %c0_9 = arith.constant 0 : index
    %c0_10 = arith.constant 0 : index
    %11 = vector.load %arg5[%c0_9, %c0_10] : memref<1x512xf32, #tpu.memory_space<vmem>>, vector<1x512xf32>
    %12 = vector.broadcast %11 : vector<1x512xf32> to vector<16x512xf32>
    %13 = arith.addf %10, %12 : vector<16x512xf32>
    %cst_11 = arith.constant 0.000000e+00 : f32
    %14 = vector.broadcast %cst_11 : f32 to vector<16x512xf32>
    %15 = arith.maximumf %13, %14 : vector<16x512xf32>
    %16 = arith.truncf %15 : vector<16x512xf32> to vector<16x512xbf16>
    %c0_12 = arith.constant 0 : index
    %c0_13 = arith.constant 0 : index
    %17 = vector.load %arg6[%c0_12, %c0_13] : memref<512x128xbf16, #tpu.memory_space<vmem>>, vector<512x128xbf16>
    %cst_14 = arith.constant dense<0.000000e+00> : vector<16x128xf32>
    %18 = tpu.matmul %16, %17, %cst_14 {dimension_numbers = #tpu.dot_dimension_numbers<[1], [0], [0], [1], [0, 0, 1, 1], [], []>} : vector<16x512xbf16>, vector<512x128xbf16>, vector<16x128xf32> -> vector<16x128xf32>
    %c0_15 = arith.constant 0 : index
    %c0_16 = arith.constant 0 : index
    %19 = vector.load %arg7[%c0_15, %c0_16] : memref<1x128xf32, #tpu.memory_space<vmem>>, vector<1x128xf32>
    %20 = vector.broadcast %19 : vector<1x128xf32> to vector<16x128xf32>
    %21 = arith.addf %18, %20 : vector<16x128xf32>
    %cst_17 = arith.constant 0.000000e+00 : f32
    %22 = vector.broadcast %cst_17 : f32 to vector<16x128xf32>
    %23 = arith.subf %22, %21 : vector<16x128xf32>
    %24 = math.exp %23 : vector<16x128xf32>
    %cst_18 = arith.constant 1.000000e+00 : f32
    %25 = vector.broadcast %cst_18 : f32 to vector<16x128xf32>
    %26 = arith.addf %25, %24 : vector<16x128xf32>
    %27 = tpu.reciprocal %26 {approx = true} : vector<16x128xf32> -> vector<16x128xf32>
    %28 = arith.truncf %27 : vector<16x128xf32> to vector<16x128xbf16>
    %c0_19 = arith.constant 0 : index
    %c0_20 = arith.constant 0 : index
    %29 = vector.load %arg8[%c0_19, %c0_20] : memref<16x128xbf16, #tpu.memory_space<vmem>>, vector<16x128xbf16>
    tpu.vector_store %arg8[%c0_19, %c0_20], %28 {strides = array<i32>} : memref<16x128xbf16, #tpu.memory_space<vmem>>, vector<16x128xbf16>,
    return
  }
  func.func @transform_0(%arg0: i32) -> (i32, i32) {
    %c0_i32 = arith.constant 0 : i32
    %c0_i32_0 = arith.constant 0 : i32
    return %arg0, %c0_i32 : i32, i32
  }
  func.func @transform_1(%arg0: i32) -> (i32, i32) {
    %c0_i32 = arith.constant 0 : i32
    %c0_i32_0 = arith.constant 0 : i32
    %c0_i32_1 = arith.constant 0 : i32
    return %c0_i32, %c0_i32_0 : i32, i32
  }
  func.func @transform_2(%arg0: i32) -> (i32, i32) {
    %c0_i32 = arith.constant 0 : i32
    %c0_i32_0 = arith.constant 0 : i32
    %c0_i32_1 = arith.constant 0 : i32
    return %c0_i32, %c0_i32_0 : i32, i32
  }
  func.func @transform_3(%arg0: i32) -> (i32, i32) {
    %c0_i32 = arith.constant 0 : i32
    %c0_i32_0 = arith.constant 0 : i32
    %c0_i32_1 = arith.constant 0 : i32
    return %c0_i32, %c0_i32_0 : i32, i32
  }
  func.func @transform_4(%arg0: i32) -> (i32, i32) {
    %c0_i32 = arith.constant 0 : i32
    %c0_i32_0 = arith.constant 0 : i32
    %c0_i32_1 = arith.constant 0 : i32
    return %c0_i32, %c0_i32_0 : i32, i32
  }
  func.func @transform_5(%arg0: i32) -> (i32, i32) {
    %c0_i32 = arith.constant 0 : i32
    %c0_i32_0 = arith.constant 0 : i32
    %c0_i32_1 = arith.constant 0 : i32
    return %c0_i32, %c0_i32_0 : i32, i32
  }
  func.func @transform_6(%arg0: i32) -> (i32, i32) {
    %c0_i32 = arith.constant 0 : i32
    %c0_i32_0 = arith.constant 0 : i32
    %c0_i32_1 = arith.constant 0 : i32
    return %c0_i32, %c0_i32_0 : i32, i32
  }
  func.func @transform_7(%arg0: i32) -> (i32, i32) {
    %c0_i32 = arith.constant 0 : i32
    %c0_i32_0 = arith.constant 0 : i32
    return %arg0, %c0_i32 : i32, i32
  }
}

</mosaic_0001>

<bundles_post_ra>
// kernel: tpu_custom_call.1
= control target key start
LH: loop header
LB: loop body
LE: loop exit
PB: predicated region body
PF: predicated region fallthrough
CT: control target
= control target key end

     0   :  { %12 = vsyncpa [#allocation3], 0  ;;  %s7654_s0 = inlined_call_operand.hbm [shape: bf16[16,896], index: 0, kind: input, shape index: {}]   ;;  %s7655_s1 = inlined_call_operand.hbm [shape: bf16[896,1024], index: 1, kind: input, shape index: {}]   ;;  %s7656_s2 = inlined_call_operand.hbm [shape: f32[1,1024], index: 2, kind: input, shape index: {}]   ;;  %s7657_s3 = inlined_call_operand.hbm [shape: bf16[1024,512], index: 3, kind: input, shape index: {}]   ;;  %s7658_s4 = inlined_call_operand.hbm [shape: f32[1,512], index: 4, kind: input, shape index: {}]   ;;  %s7659_s5 = inlined_call_operand.hbm [shape: bf16[512,128], index: 5, kind: input, shape index: {}]   ;;  %s7660_s6 = inlined_call_operand.hbm [shape: f32[1,128], index: 6, kind: input, shape index: {}]   ;;  %s7661_s7 = inlined_call_operand.hbm [shape: bf16[16,128], index: 7, kind: output, shape index: {}]  }
   0x1   :  { %13 = vsyncpa [#allocation6], 0 }
   0x2   :  { %14 = vsyncpa [#allocation9], 0 }
   0x3   :  { %15 = vsyncpa [#allocation12], 0 }
   0x4   :  { %16 = vsyncpa [#allocation4], 0  ;;  %s7439_s24 = smov [#allocation5]   ;;  %s7253_s28 = scalar_lea.hbm %s7655_s1, 57344 }
   0x5   :  { %s34_s25 = sshll.u32 %s7439_s24, 4  ;;  %p7254_p0 = scmp.ne.s32.totalorder %s7655_s1, %s7253_s28  ;;  %s35_s25 = int_to_ptr.vmem [resolvable:$true] %s34_s25 }
   0x6   :  { %p7257_p1 = scmp.lt.u32.totalorder %s7253_s28, %s7655_s1 }
   0x8   :  { %p7259_p2 = pnand %p7257_p1, %p7254_p0 }
   0xa   :  { %7262 = shalt.err (!%p7259_p2)
}
   0xb   :  { %s7263_s10 = scalar_lea.vmem %s35_s25, 57344  ;;  %p7268_p4 = scmp.lt.s32.totalorder %s35_s25, %s35_s25 }
   0xc   :  { %p7264_p3 = scmp.ne.s32.totalorder %s35_s25, %s7263_s10  ;;  %p7269_p5 = scmp.lt.s32.totalorder %s7263_s10, %s7263_s10 }
   0xe   :  { %p7270_p6 = por %p7269_p5, %p7268_p4 }
  0x10   :  { %p7271_p7 = pnand %p7270_p6, %p7264_p3 }
  0x12   :  { %7274 = shalt.err (!%p7271_p7)
}
  0x13   :  { %s7440_s11 = smov 512   ;;  %s7441_s12 = smov 32  }
  0x14   :  { %40 = dma.hbm_to_vmem [thread:$0]  %s7655_s1, 57344, %s35_s25, [#allocation6], %s7440_s11, %s7440_s11, %s7441_s12  }
  0x15   :  { %s7442_s15 = smov [#allocation8]   ;;  %s7275_s19 = scalar_lea.hbm %s7657_s3, 32768 }
  0x16   :  { %s56_s16 = sshll.u32 %s7442_s15, 4  ;;  %p7276_p8 = scmp.ne.s32.totalorder %s7657_s3, %s7275_s19  ;;  %s57_s16 = int_to_ptr.vmem [resolvable:$true] %s56_s16 }
  0x17   :  { %p7279_p9 = scmp.lt.u32.totalorder %s7275_s19, %s7657_s3 }
  0x19   :  { %p7281_p10 = pnand %p7279_p9, %p7276_p8 }
  0x1b   :  { %7284 = shalt.err (!%p7281_p10)
}
  0x1c   :  { %s7285_s24 = scalar_lea.vmem %s57_s16, 32768  ;;  %p7290_p12 = scmp.lt.s32.totalorder %s57_s16, %s57_s16 }
  0x1d   :  { %p7286_p11 = scmp.ne.s32.totalorder %s57_s16, %s7285_s24  ;;  %p7291_p13 = scmp.lt.s32.totalorder %s7285_s24, %s7285_s24 }
  0x1f   :  { %p7292_p0 = por %p7291_p13, %p7290_p12 }
  0x21   :  { %p7293_p1 = pnand %p7292_p0, %p7286_p11 }
  0x23   :  { %7296 = shalt.err (!%p7293_p1)
}
  0x24   :  { %s7443_s1 = smov 256   ;;  %s7444_s25 = smov 16  }
  0x25   :  { %62 = dma.hbm_to_vmem [thread:$0]  %s7657_s3, 32768, %s57_s16, [#allocation9], %s7443_s1, %s7443_s1, %s7444_s25  }
  0x26   :  { %s7445_s28 = smov [#allocation11]   ;;  %s7297_s9 = scalar_lea.hbm %s7659_s5, 4096 }
  0x27   :  { %s78_s29 = sshll.u32 %s7445_s28, 4  ;;  %p7298_p2 = scmp.ne.s32.totalorder %s7659_s5, %s7297_s9  ;;  %s79_s29 = int_to_ptr.vmem [resolvable:$true] %s78_s29 }
  0x28   :  { %p7301_p3 = scmp.lt.u32.totalorder %s7297_s9, %s7659_s5 }
  0x2a   :  { %p7303_p4 = pnand %p7301_p3, %p7298_p2 }
  0x2c   :  { %7306 = shalt.err (!%p7303_p4)
}
  0x2d   :  { %s7307_s14 = scalar_lea.vmem %s79_s29, 4096  ;;  %p7312_p6 = scmp.lt.s32.totalorder %s79_s29, %s79_s29 }
  0x2e   :  { %p7308_p5 = scmp.ne.s32.totalorder %s79_s29, %s7307_s14  ;;  %p7313_p7 = scmp.lt.s32.totalorder %s7307_s14, %s7307_s14 }
  0x30   :  { %p7314_p8 = por %p7313_p7, %p7312_p6 }
  0x32   :  { %p7315_p9 = pnand %p7314_p8, %p7308_p5 }
  0x34   :  { %7318 = shalt.err (!%p7315_p9)
}
  0x35   :  { %s7446_s3 = smov 64   ;;  %s7447_s15 = smov 4  }
  0x36   :  { %84 = dma.hbm_to_vmem [thread:$0]  %s7659_s5, 4096, %s79_s29, [#allocation12], %s7446_s3, %s7446_s3, %s7447_s15  }
  0x37   :  { %s7448_s18 = smov [#allocation2]   ;;  %s7319_s22 = scalar_lea.hbm %s7654_s0, 896 }
  0x38   :  { %s22_s19 = sshll.u32 %s7448_s18, 4  ;;  %p7320_p10 = scmp.ne.s32.totalorder %s7654_s0, %s7319_s22  ;;  %s23_s19 = int_to_ptr.vmem [resolvable:$true] %s22_s19 }
  0x39   :  { %p7323_p11 = scmp.lt.u32.totalorder %s7319_s22, %s7654_s0 }
  0x3b   :  { %p7325_p12 = pnand %p7323_p11, %p7320_p10 }
  0x3d   :  { %7328 = shalt.err (!%p7325_p12)
}
  0x3e   :  { %s7329_s26 = scalar_lea.vmem %s23_s19, 896  ;;  %p7334_p0 = scmp.lt.s32.totalorder %s23_s19, %s23_s19 }
  0x3f   :  { %p7330_p13 = scmp.ne.s32.totalorder %s23_s19, %s7329_s26  ;;  %p7335_p1 = scmp.lt.s32.totalorder %s7329_s26, %s7329_s26 }
  0x41   :  { %p7336_p2 = por %p7335_p1, %p7334_p0 }
  0x43   :  { %p7337_p3 = pnand %p7336_p2, %p7330_p13 }
  0x45   :  { %7340 = shalt.err (!%p7337_p3)
}
  0x46   :  { %s7449_s5 = smov 448   ;;  %s7450_s27 = smov 28  }
  0x47   :  { %28 = dma.hbm_to_vmem [thread:$0]  %s7654_s0, 896, %s23_s19, [#allocation3], %s7449_s5, %s7449_s5, %s7450_s27  }
  0x48   :  { %s7451_s30 = smov [#allocation7]   ;;  %s7452_s9 = smov [#allocation10]  }
  0x49   :  { %s47_s8 = sshll.u32 %s7451_s30, 4  ;;  %s69_s10 = sshll.u32 %s7452_s9, 4  ;;  %s48_s8 = int_to_ptr.vmem [resolvable:$true] %s47_s8  ;;  %s70_s10 = int_to_ptr.vmem [resolvable:$true] %s69_s10 }
  0x4a   :  { %s7341_s13 = scalar_lea.hbm %s7656_s2, 128 }
  0x4b   :  { %p7342_p4 = scmp.ne.s32.totalorder %s7656_s2, %s7341_s13  ;;  %p7345_p5 = scmp.lt.u32.totalorder %s7341_s13, %s7656_s2 }
  0x4d   :  { %p7347_p6 = pnand %p7345_p5, %p7342_p4 }
  0x4f   :  { %7350 = shalt.err (!%p7347_p6)
}
  0x50   :  { %s7351_s0 = scalar_lea.vmem %s48_s8, 128  ;;  %p7356_p8 = scmp.lt.s32.totalorder %s48_s8, %s48_s8 }
  0x51   :  { %p7352_p7 = scmp.ne.s32.totalorder %s48_s8, %s7351_s0  ;;  %p7357_p9 = scmp.lt.s32.totalorder %s7351_s0, %s7351_s0 }
  0x53   :  { %p7358_p10 = por %p7357_p9, %p7356_p8 }
  0x55   :  { %p7359_p11 = pnand %p7358_p10, %p7352_p7 }
  0x57   :  { %7362 = shalt.err (!%p7359_p11)
}
  0x58   :  { %50 = dma.hbm_to_vmem [thread:$0]  %s7656_s2, 128, %s48_s8, [#allocation6]  }
  0x59   :  { %s7363_s23 = scalar_lea.hbm %s7658_s4, 64 }
  0x5a   :  { %p7364_p12 = scmp.ne.s32.totalorder %s7658_s4, %s7363_s23  ;;  %p7367_p13 = scmp.lt.u32.totalorder %s7363_s23, %s7658_s4 }
  0x5c   :  { %p7369_p0 = pnand %p7367_p13, %p7364_p12 }
  0x5e   :  { %7372 = shalt.err (!%p7369_p0)
}
  0x5f   :  { %s7373_s5 = scalar_lea.vmem %s70_s10, 64  ;;  %p7378_p2 = scmp.lt.s32.totalorder %s70_s10, %s70_s10 }
  0x60   :  { %p7374_p1 = scmp.ne.s32.totalorder %s70_s10, %s7373_s5  ;;  %p7379_p3 = scmp.lt.s32.totalorder %s7373_s5, %s7373_s5 }
  0x62   :  { %p7380_p4 = por %p7379_p3, %p7378_p2 }
  0x64   :  { %p7381_p5 = pnand %p7380_p4, %p7374_p1 }
  0x66   :  { %7384 = shalt.err (!%p7381_p5)
}
  0x67   :  { %72 = dma.hbm_to_vmem [thread:$0]  %s7658_s4, 64, %s70_s10, [#allocation9]  }
  0x68   :  { %s7453_s28 = smov [#allocation13]   ;;  %s7385_s9 = scalar_lea.hbm %s7660_s6, 16 }
  0x69   :  { %s91_s29 = sshll.u32 %s7453_s28, 4  ;;  %p7386_p6 = scmp.ne.s32.totalorder %s7660_s6, %s7385_s9  ;;  %s92_s29 = int_to_ptr.vmem [resolvable:$true] %s91_s29 }
  0x6a   :  { %p7389_p7 = scmp.lt.u32.totalorder %s7385_s9, %s7660_s6 }
  0x6c   :  { %p7391_p8 = pnand %p7389_p7, %p7386_p6 }
  0x6e   :  { %7394 = shalt.err (!%p7391_p8)
}
  0x6f   :  { %s7395_s16 = scalar_lea.vmem %s92_s29, 16  ;;  %s7399_s4 = scalar_lea.vmem %s92_s29, 32 }
  0x70   :  { %p7396_p9 = scmp.ne.s32.totalorder %s92_s29, %s7395_s16  ;;  %p7400_p10 = scmp.lt.s32.totalorder %s92_s29, %s92_s29 }
  0x71   :  { %p7401_p11 = scmp.lt.s32.totalorder %s7399_s4, %s7395_s16 }
  0x73   :  { %p7402_p12 = por %p7401_p11, %p7400_p10 }
  0x75   :  { %p7403_p13 = pnand %p7402_p12, %p7396_p9 }
  0x77   :  { %7406 = shalt.err (!%p7403_p13)
}
  0x78   :  { %94 = dma.hbm_to_vmem [thread:$0]  %s7660_s6, 16, %s92_s29, [#allocation12]  }
  0x79   :  { %7429 = dma.done.wait [#allocation3], 896  }
  0x7a   :  { %7430 = vsyncadd [#allocation3], 4294966400 }
  0x7b   :  { %7431 = dma.done.wait [#allocation6], 57472  }
  0x7c   :  { %7432 = vsyncadd [#allocation6], 4294909824 }
  0x7d   :  { %7433 = dma.done.wait [#allocation9], 32832  }
  0x7e   :  { %7434 = vsyncadd [#allocation9], 4294934464 }
  0x7f   :  { %7435 = dma.done.wait [#allocation12], 4112  }
  0x80   :  { %7436 = vsyncadd [#allocation12], 4294963184  ;;  %v125_v0 = vld [vmem:[#allocation5] sm:$0xff]  ;;  %v126_v2 = vld [vmem:[#allocation5 + $0x8] sm:$0xff]  ;;  %s7455_s6 = smov [#allocation14]  }
  0x81   :  { %v129_v1 = vld [vmem:[#allocation5 + $0x20] sm:$0xff]  ;;  %v130_v4 = vld [vmem:[#allocation5 + $0x28] sm:$0xff]  ;;  %s5887_s18 = sshll.u32 %s7455_s6, 4  ;;  %s5888_s18 = int_to_ptr.vmem [resolvable:$true] %s5887_s18 }
  0x82   :  { %v5910_v3 = vcombine.high %v125_v0, %v129_v1  ;;  %v5909_v5 = vcombine.low %v125_v0, %v129_v1  ;;  %v133_v6 = vld [vmem:[#allocation5 + $0x40] sm:$0xff]  ;;  %v5912_v8 = vcombine.high %v126_v2, %v130_v4  ;;  %v5911_v9 = vcombine.low %v126_v2, %v130_v4  ;;  %v134_v11 = vld [vmem:[#allocation5 + $0x48] sm:$0xff]  ;;  %s7407_s0 = scalar_lea.vmem %s5888_s18, 128  ;;  %p7412_p1 = scmp.lt.s32.totalorder %s5888_s18, %s5888_s18 }
  0x83   :  { %v137_v7 = vld [vmem:[#allocation5 + $0x60] sm:$0xff]  ;;  %v138_v12 = vld [vmem:[#allocation5 + $0x68] sm:$0xff]  ;;  %p7408_p0 = scmp.ne.s32.totalorder %s5888_s18, %s7407_s0  ;;  %p7413_p2 = scmp.lt.s32.totalorder %s7407_s0, %s7407_s0 }
  0x84   :  { %v5918_v10 = vcombine.high %v133_v6, %v137_v7  ;;  %v141_v13 = vld [vmem:[#allocation5 + $0x80] sm:$0xff]  ;;  %2891 = vmatprep.subr.bf16.mxu0 %v5910_v3  ;;  %v5920_v14 = vcombine.high %v134_v11, %v138_v12  ;;  %v142_v16 = vld [vmem:[#allocation5 + $0x88] sm:$0xff]  ;;  %3063 = vmatprep.subr.bf16.mxu1 %v5912_v8  ;;  %v5917_v18 = vcombine.low %v133_v6, %v137_v7 }
  0x85   :  { %v145_v15 = vld [vmem:[#allocation5 + $0xa0] sm:$0xff]  ;;  %v146_v17 = vld [vmem:[#allocation5 + $0xa8] sm:$0xff]  ;;  %2892 = vmatpush1.bf16.msra.mxu0 %v5909_v5  ;;  %3064 = vmatpush1.bf16.msra.mxu1 %v5911_v9  ;;  %v5919_v19 = vcombine.low %v134_v11, %v138_v12  ;;  %p7414_p3 = por %p7413_p2, %p7412_p1 }
  0x86   :  { %2893 = vmatprep.subr.bf16.mxu0 %v5918_v10  ;;  %v5926_v20 = vcombine.high %v141_v13, %v145_v15  ;;  %3065 = vmatprep.subr.bf16.mxu1 %v5920_v14  ;;  %v5928_v21 = vcombine.high %v142_v16, %v146_v17  ;;  %v149_v22 = vld [vmem:[#allocation5 + $0xc0] sm:$0xff]  ;;  %v150_v24 = vld [vmem:[#allocation5 + $0xc8] sm:$0xff]  ;;  %v5925_v26 = vcombine.low %v141_v13, %v145_v15 }
  0x87   :  { %v153_v23 = vld [vmem:[#allocation5 + $0xe0] sm:$0xff]  ;;  %v154_v25 = vld [vmem:[#allocation5 + $0xe8] sm:$0xff]  ;;  %v5927_v27 = vcombine.low %v142_v16, %v146_v17  ;;  %p7415_p4 = pnand %p7414_p3, %p7408_p0 }
  0x88   :  { %v5934_v28 = vcombine.high %v149_v22, %v153_v23  ;;  %v5936_v29 = vcombine.high %v150_v24, %v154_v25  ;;  %v157_v30 = vld [vmem:[#allocation5 + $0x100] sm:$0xff]  ;;  %v158_v32 = vld [vmem:[#allocation5 + $0x108] sm:$0xff]  ;;  %v5933_v34 = vcombine.low %v149_v22, %v153_v23  ;;  %v5935_v35 = vcombine.low %v150_v24, %v154_v25 }
  0x89   :  { %2894 = vmatpush1.bf16.msra.mxu0 %v5917_v18  ;;  %3066 = vmatpush1.bf16.msra.mxu1 %v5919_v19  ;;  %v161_v31 = vld [vmem:[#allocation5 + $0x120] sm:$0xff]  ;;  %v162_v33 = vld [vmem:[#allocation5 + $0x128] sm:$0xff] }
  0x8a   :  { %2895 = vmatprep.subr.bf16.mxu0 %v5926_v20  ;;  %3067 = vmatprep.subr.bf16.mxu1 %v5928_v21  ;;  %v5942_v36 = vcombine.high %v157_v30, %v161_v31  ;;  %v5944_v37 = vcombine.high %v158_v32, %v162_v33  ;;  %v165_v38 = vld [vmem:[#allocation5 + $0x140] sm:$0xff]  ;;  %v166_v40 = vld [vmem:[#allocation5 + $0x148] sm:$0xff]  ;;  %v5941_v42 = vcombine.low %v157_v30, %v161_v31 }
  0x8b   :  { %v169_v39 = vld [vmem:[#allocation5 + $0x160] sm:$0xff]  ;;  %v170_v41 = vld [vmem:[#allocation5 + $0x168] sm:$0xff]  ;;  %v5943_v43 = vcombine.low %v158_v32, %v162_v33 }
  0x8c   :  { %v5950_v44 = vcombine.high %v165_v38, %v169_v39  ;;  %v5952_v45 = vcombine.high %v166_v40, %v170_v41  ;;  %v173_v46 = vld [vmem:[#allocation5 + $0x180] sm:$0xff]  ;;  %v174_v48 = vld [vmem:[#allocation5 + $0x188] sm:$0xff]  ;;  %v5949_v50 = vcombine.low %v165_v38, %v169_v39  ;;  %v5951_v51 = vcombine.low %v166_v40, %v170_v41 }
  0x8d   :  { %2896 = vmatpush1.bf16.msra.mxu0 %v5925_v26  ;;  %3068 = vmatpush1.bf16.msra.mxu1 %v5927_v27  ;;  %v177_v47 = vld [vmem:[#allocation5 + $0x1a0] sm:$0xff]  ;;  %v178_v49 = vld [vmem:[#allocation5 + $0x1a8] sm:$0xff] }
  0x8e   :  { %2897 = vmatprep.subr.bf16.mxu0 %v5934_v28  ;;  %3069 = vmatprep.subr.bf16.mxu1 %v5936_v29  ;;  %v5958_v52 = vcombine.high %v173_v46, %v177_v47  ;;  %v5960_v53 = vcombine.high %v174_v48, %v178_v49  ;;  %v181_v54 = vld [vmem:[#allocation5 + $0x1c0] sm:$0xff]  ;;  %v6812_v56 = vld [vmem:[#allocation2 + $0x4] ss:$28 sps:$4 sm:$0xff]   ;;  %v5957_v59 = vcombine.low %v173_v46, %v177_v47 }
  0x8f   :  { %v185_v55 = vld [vmem:[#allocation5 + $0x1e0] sm:$0xff]  ;;  %v182_v57 = vld [vmem:[#allocation5 + $0x1c8] sm:$0xff]  ;;  %2923 = vmatprep.mubr.bf16.mxu0 %v6812_v56  ;;  %v5959_v60 = vcombine.low %v174_v48, %v178_v49  ;;  %3095 = vmatprep.mubr.bf16.mxu1 %v6812_v56 }
  0x90   :  { %v186_v58 = vld [vmem:[#allocation5 + $0x1e8] sm:$0xff]  ;;  %v5966_v61 = vcombine.high %v181_v54, %v185_v55  ;;  %v189_v63 = vld [vmem:[#allocation5 + $0x200] sm:$0xff]  ;;  %v5965_v3 = vcombine.low %v181_v54, %v185_v55 }
  0x91   :  { %2898 = vmatpush1.bf16.msra.mxu0 %v5933_v34  ;;  %3070 = vmatpush1.bf16.msra.mxu1 %v5935_v35  ;;  %v5968_v62 = vcombine.high %v182_v57, %v186_v58  ;;  %v193_v0 = vld [vmem:[#allocation5 + $0x220] sm:$0xff]  ;;  %v190_v1 = vld [vmem:[#allocation5 + $0x208] sm:$0xff]  ;;  %v5967_v4 = vcombine.low %v182_v57, %v186_v58 }
  0x92   :  { %2899 = vmatprep.subr.bf16.mxu0 %v5942_v36  ;;  %3071 = vmatprep.subr.bf16.mxu1 %v5944_v37  ;;  %v194_v2 = vld [vmem:[#allocation5 + $0x228] sm:$0xff]  ;;  %v5974_v5 = vcombine.high %v189_v63, %v193_v0  ;;  %v197_v7 = vld [vmem:[#allocation5 + $0x240] sm:$0xff]  ;;  %v5973_v11 = vcombine.low %v189_v63, %v193_v0 }
  0x93   :  { %v5976_v6 = vcombine.high %v190_v1, %v194_v2  ;;  %v201_v8 = vld [vmem:[#allocation5 + $0x260] sm:$0xff]  ;;  %v198_v9 = vld [vmem:[#allocation5 + $0x248] sm:$0xff]  ;;  %v5975_v12 = vcombine.low %v190_v1, %v194_v2 }
  0x94   :  { %v202_v10 = vld [vmem:[#allocation5 + $0x268] sm:$0xff]  ;;  %v5982_v13 = vcombine.high %v197_v7, %v201_v8  ;;  %v205_v15 = vld [vmem:[#allocation5 + $0x280] sm:$0xff]  ;;  %v5981_v19 = vcombine.low %v197_v7, %v201_v8 }
  0x95   :  { %2900 = vmatpush1.bf16.msra.mxu0 %v5941_v42  ;;  %3072 = vmatpush1.bf16.msra.mxu1 %v5943_v43  ;;  %v5984_v14 = vcombine.high %v198_v9, %v202_v10  ;;  %v209_v16 = vld [vmem:[#allocation5 + $0x2a0] sm:$0xff]  ;;  %v206_v17 = vld [vmem:[#allocation5 + $0x288] sm:$0xff]  ;;  %v5983_v20 = vcombine.low %v198_v9, %v202_v10 }
  0x96   :  { %2901 = vmatprep.subr.bf16.mxu0 %v5950_v44  ;;  %3073 = vmatprep.subr.bf16.mxu1 %v5952_v45  ;;  %v210_v18 = vld [vmem:[#allocation5 + $0x2a8] sm:$0xff]  ;;  %v5990_v21 = vcombine.high %v205_v15, %v209_v16  ;;  %v213_v23 = vld [vmem:[#allocation5 + $0x2c0] sm:$0xff]  ;;  %v5989_v27 = vcombine.low %v205_v15, %v209_v16 }
  0x97   :  { %v5992_v22 = vcombine.high %v206_v17, %v210_v18  ;;  %v217_v24 = vld [vmem:[#allocation5 + $0x2e0] sm:$0xff]  ;;  %v214_v25 = vld [vmem:[#allocation5 + $0x2c8] sm:$0xff]  ;;  %v5991_v28 = vcombine.low %v206_v17, %v210_v18  ;;  %v6815_v18 = vld [vmem:[#allocation2 + $0xc] ss:$28 sps:$4 sm:$0xff]  }
  0x98   :  { %v218_v26 = vld [vmem:[#allocation5 + $0x2e8] sm:$0xff]  ;;  %v5998_v29 = vcombine.high %v213_v23, %v217_v24  ;;  %v221_v31 = vld [vmem:[#allocation5 + $0x300] sm:$0xff]  ;;  %v5997_v35 = vcombine.low %v213_v23, %v217_v24 }
  0x99   :  { %2902 = vmatpush1.bf16.msra.mxu0 %v5949_v50  ;;  %3074 = vmatpush1.bf16.msra.mxu1 %v5951_v51  ;;  %v6000_v30 = vcombine.high %v214_v25, %v218_v26  ;;  %v225_v32 = vld [vmem:[#allocation5 + $0x320] sm:$0xff]  ;;  %v222_v33 = vld [vmem:[#allocation5 + $0x308] sm:$0xff]  ;;  %v5999_v36 = vcombine.low %v214_v25, %v218_v26 }
  0x9a   :  { %2903 = vmatprep.subr.bf16.mxu0 %v5958_v52  ;;  %3075 = vmatprep.subr.bf16.mxu1 %v5960_v53  ;;  %v226_v34 = vld [vmem:[#allocation5 + $0x328] sm:$0xff]  ;;  %v6006_v37 = vcombine.high %v221_v31, %v225_v32  ;;  %v229_v39 = vld [vmem:[#allocation5 + $0x340] sm:$0xff]  ;;  %v6005_v43 = vcombine.low %v221_v31, %v225_v32 }
  0x9b   :  { %v6008_v38 = vcombine.high %v222_v33, %v226_v34  ;;  %v233_v40 = vld [vmem:[#allocation5 + $0x360] sm:$0xff]  ;;  %v230_v41 = vld [vmem:[#allocation5 + $0x348] sm:$0xff]  ;;  %v6007_v44 = vcombine.low %v222_v33, %v226_v34 }
  0x9c   :  { %v234_v42 = vld [vmem:[#allocation5 + $0x368] sm:$0xff]  ;;  %v6014_v45 = vcombine.high %v229_v39, %v233_v40  ;;  %v237_v47 = vld [vmem:[#allocation5 + $0x380] sm:$0xff]  ;;  %v6013_v51 = vcombine.low %v229_v39, %v233_v40 }
  0x9d   :  { %2904 = vmatpush1.bf16.msra.mxu0 %v5957_v59  ;;  %3076 = vmatpush1.bf16.msra.mxu1 %v5959_v60  ;;  %v6016_v46 = vcombine.high %v230_v41, %v234_v42  ;;  %v241_v48 = vld [vmem:[#allocation5 + $0x3a0] sm:$0xff]  ;;  %v238_v49 = vld [vmem:[#allocation5 + $0x388] sm:$0xff]  ;;  %v6015_v52 = vcombine.low %v230_v41, %v234_v42 }
  0x9e   :  { %2905 = vmatprep.subr.bf16.mxu0 %v5966_v61  ;;  %3077 = vmatprep.subr.bf16.mxu1 %v5968_v62  ;;  %v242_v50 = vld [vmem:[#allocation5 + $0x3a8] sm:$0xff]  ;;  %v6022_v53 = vcombine.high %v237_v47, %v241_v48  ;;  %v245_v55 = vld [vmem:[#allocation5 + $0x3c0] sm:$0xff]  ;;  %v6021_v59 = vcombine.low %v237_v47, %v241_v48 }
  0x9f   :  { %v6024_v54 = vcombine.high %v238_v49, %v242_v50  ;;  %v249_v56 = vld [vmem:[#allocation5 + $0x3e0] sm:$0xff]  ;;  %v246_v57 = vld [vmem:[#allocation5 + $0x3c8] sm:$0xff]  ;;  %v6023_v60 = vcombine.low %v238_v49, %v242_v50 }
  0xa0   :  { %v250_v58 = vld [vmem:[#allocation5 + $0x3e8] sm:$0xff]  ;;  %v6030_v61 = vcombine.high %v245_v55, %v249_v56  ;;  %v253_v63 = vld [vmem:[#allocation5 + $0x400] sm:$0xff] }
  0xa1   :  { %2906 = vmatpush1.bf16.msra.mxu0 %v5965_v3  ;;  %3078 = vmatpush1.bf16.msra.mxu1 %v5967_v4  ;;  %v6032_v62 = vcombine.high %v246_v57, %v250_v58  ;;  %v257_v0 = vld [vmem:[#allocation5 + $0x420] sm:$0xff]  ;;  %v254_v1 = vld [vmem:[#allocation5 + $0x408] sm:$0xff]  ;;  %v6029_v3 = vcombine.low %v245_v55, %v249_v56  ;;  %v6031_v4 = vcombine.low %v246_v57, %v250_v58 }
  0xa2   :  { %2907 = vmatprep.subr.bf16.mxu0 %v5974_v5  ;;  %3079 = vmatprep.subr.bf16.mxu1 %v5976_v6  ;;  %v258_v2 = vld [vmem:[#allocation5 + $0x428] sm:$0xff]  ;;  %v6038_v5 = vcombine.high %v253_v63, %v257_v0  ;;  %v261_v7 = vld [vmem:[#allocation5 + $0x440] sm:$0xff] }
  0xa3   :  { %v6040_v6 = vcombine.high %v254_v1, %v258_v2  ;;  %v265_v8 = vld [vmem:[#allocation5 + $0x460] sm:$0xff]  ;;  %v262_v10 = vld [vmem:[#allocation5 + $0x448] sm:$0xff] }
  0xa4   :  { %v6814_v9 = vld [vmem:[#allocation2] ss:$28 sps:$4 sm:$0xff]  }
  0xa5   :  { %2908 = vmatpush1.bf16.msra.mxu0 %v5973_v11  ;;  %3080 = vmatpush1.bf16.msra.mxu1 %v5975_v12  ;;  %v266_v11 = vld [vmem:[#allocation5 + $0x468] sm:$0xff]  ;;  %v6037_v12 = vcombine.low %v253_v63, %v257_v0  ;;  %v269_v15 = vld [vmem:[#allocation5 + $0x480] sm:$0xff] }
  0xa6   :  { %2909 = vmatprep.subr.bf16.mxu0 %v5982_v13  ;;  %3081 = vmatprep.subr.bf16.mxu1 %v5984_v14  ;;  %v6039_v13 = vcombine.low %v254_v1, %v258_v2  ;;  %v6046_v14 = vcombine.high %v261_v7, %v265_v8  ;;  %v6048_v16 = vcombine.high %v262_v10, %v266_v11  ;;  %v273_v17 = vld [vmem:[#allocation5 + $0x4a0] sm:$0xff]  ;;  %v286_v34 = vld [vmem:[#allocation5 + $0x508] sm:$0xff] }
  0xa7   :  { %v6054_v23 = vcombine.high %v269_v15, %v273_v17  ;;  %v277_v24 = vld [vmem:[#allocation5 + $0x4c0] sm:$0xff]  ;;  %v294_v42 = vld [vmem:[#allocation5 + $0x548] sm:$0xff] }
  0xa8   :  { %v281_v25 = vld [vmem:[#allocation5 + $0x4e0] sm:$0xff]  ;;  %v302_v50 = vld [vmem:[#allocation5 + $0x588] sm:$0xff] }
  0xa9   :  { %2910 = vmatpush1.bf16.msra.mxu0 %v5981_v19  ;;  %3082 = vmatpush1.bf16.msra.mxu1 %v5983_v20  ;;  %v270_v19 = vld [vmem:[#allocation5 + $0x488] sm:$0xff]  ;;  %v6062_v31 = vcombine.high %v277_v24, %v281_v25  ;;  %v285_v32 = vld [vmem:[#allocation5 + $0x500] sm:$0xff] }
  0xaa   :  { %2911 = vmatprep.subr.bf16.mxu0 %v5990_v21  ;;  %3083 = vmatprep.subr.bf16.mxu1 %v5992_v22  ;;  %v274_v20 = vld [vmem:[#allocation5 + $0x4a8] sm:$0xff]  ;;  %v6045_v21 = vcombine.low %v261_v7, %v265_v8  ;;  %v6047_v22 = vcombine.low %v262_v10, %v266_v11  ;;  %v289_v33 = vld [vmem:[#allocation5 + $0x520] sm:$0xff] }
  0xab   :  { %v6056_v26 = vcombine.high %v270_v19, %v274_v20  ;;  %v6070_v39 = vcombine.high %v285_v32, %v289_v33  ;;  %v293_v40 = vld [vmem:[#allocation5 + $0x540] sm:$0xff]  ;;  %v310_v58 = vld [vmem:[#allocation5 + $0x5c8] sm:$0xff] }
  0xac   :  { %v297_v41 = vld [vmem:[#allocation5 + $0x560] sm:$0xff]  ;;  %v318_v2 = vld [vmem:[#allocation5 + $0x608] sm:$0xff] }
  0xad   :  { %2912 = vmatpush1.bf16.msra.mxu0 %v5989_v27  ;;  %3084 = vmatpush1.bf16.msra.mxu1 %v5991_v28  ;;  %v278_v27 = vld [vmem:[#allocation5 + $0x4c8] sm:$0xff]  ;;  %v6078_v47 = vcombine.high %v293_v40, %v297_v41  ;;  %v301_v48 = vld [vmem:[#allocation5 + $0x580] sm:$0xff] }
  0xae   :  { %2913 = vmatprep.subr.bf16.mxu0 %v5998_v29  ;;  %3085 = vmatprep.subr.bf16.mxu1 %v6000_v30  ;;  %v282_v28 = vld [vmem:[#allocation5 + $0x4e8] sm:$0xff]  ;;  %v6053_v29 = vcombine.low %v269_v15, %v273_v17  ;;  %v6055_v30 = vcombine.low %v270_v19, %v274_v20  ;;  %v305_v49 = vld [vmem:[#allocation5 + $0x5a0] sm:$0xff] }
  0xaf   :  { %v6086_v55 = vcombine.high %v301_v48, %v305_v49  ;;  %v309_v56 = vld [vmem:[#allocation5 + $0x5c0] sm:$0xff]  ;;  %v326_v10 = vld [vmem:[#allocation5 + $0x648] sm:$0xff] }
  0xb0   :  { %v313_v57 = vld [vmem:[#allocation5 + $0x5e0] sm:$0xff]  ;;  %v334_v19 = vld [vmem:[#allocation5 + $0x688] sm:$0xff] }
  0xb1   :  { %2914 = vmatpush1.bf16.msra.mxu0 %v5997_v35  ;;  %3086 = vmatpush1.bf16.msra.mxu1 %v5999_v36  ;;  %v6064_v35 = vcombine.high %v278_v27, %v282_v28  ;;  %v290_v36 = vld [vmem:[#allocation5 + $0x528] sm:$0xff]  ;;  %v6094_v63 = vcombine.high %v309_v56, %v313_v57  ;;  %v317_v0 = vld [vmem:[#allocation5 + $0x600] sm:$0xff] }
  0xb2   :  { %2915 = vmatprep.subr.bf16.mxu0 %v6006_v37  ;;  %3087 = vmatprep.subr.bf16.mxu1 %v6008_v38  ;;  %v6061_v37 = vcombine.low %v277_v24, %v281_v25  ;;  %v6063_v38 = vcombine.low %v278_v27, %v282_v28  ;;  %v321_v1 = vld [vmem:[#allocation5 + $0x620] sm:$0xff]  ;;  %v338_v20 = vld [vmem:[#allocation5 + $0x6a8] sm:$0xff] }
  0xb3   :  { %v6102_v7 = vcombine.high %v317_v0, %v321_v1  ;;  %v325_v8 = vld [vmem:[#allocation5 + $0x640] sm:$0xff]  ;;  %v6120_v27 = vcombine.high %v334_v19, %v338_v20  ;;  %v346_v28 = vld [vmem:[#allocation5 + $0x6e8] sm:$0xff] }
  0xb4   :  { %v337_v17 = vld [vmem:[#allocation5 + $0x6a0] sm:$0xff] }
  0xb5   :  { %2916 = vmatpush1.bf16.msra.mxu0 %v6005_v43  ;;  %3088 = vmatpush1.bf16.msra.mxu1 %v6007_v44  ;;  %v6072_v43 = vcombine.high %v286_v34, %v290_v36  ;;  %v298_v44 = vld [vmem:[#allocation5 + $0x568] sm:$0xff]  ;;  %v341_v24 = vld [vmem:[#allocation5 + $0x6c0] sm:$0xff] }
  0xb6   :  { %2917 = vmatprep.subr.bf16.mxu0 %v6014_v45  ;;  %3089 = vmatprep.subr.bf16.mxu1 %v6016_v46  ;;  %v6069_v45 = vcombine.low %v285_v32, %v289_v33  ;;  %v6071_v46 = vcombine.low %v286_v34, %v290_v36  ;;  %v345_v25 = vld [vmem:[#allocation5 + $0x6e0] sm:$0xff]  ;;  %v350_v34 = vld [vmem:[#allocation5 + $0x708] sm:$0xff] }
  0xb7   :  { %v349_v32 = vld [vmem:[#allocation5 + $0x700] sm:$0xff]  ;;  %v354_v36 = vld [vmem:[#allocation5 + $0x728] sm:$0xff] }
  0xb8   :  { %v353_v33 = vld [vmem:[#allocation5 + $0x720] sm:$0xff] }
  0xb9   :  { %2918 = vmatpush1.bf16.msra.mxu0 %v6013_v51  ;;  %3090 = vmatpush1.bf16.msra.mxu1 %v6015_v52  ;;  %v6080_v51 = vcombine.high %v294_v42, %v298_v44  ;;  %v306_v52 = vld [vmem:[#allocation5 + $0x5a8] sm:$0xff] }
  0xba   :  { %2919 = vmatprep.subr.bf16.mxu0 %v6022_v53  ;;  %3091 = vmatprep.subr.bf16.mxu1 %v6024_v54  ;;  %v6077_v53 = vcombine.low %v293_v40, %v297_v41  ;;  %v6079_v54 = vcombine.low %v294_v42, %v298_v44  ;;  %v357_v40 = vld [vmem:[#allocation5 + $0x740] sm:$0xff]  ;;  %v358_v42 = vld [vmem:[#allocation5 + $0x748] sm:$0xff] }
  0xbb   :  { %v361_v41 = vld [vmem:[#allocation5 + $0x760] sm:$0xff]  ;;  %v362_v44 = vld [vmem:[#allocation5 + $0x768] sm:$0xff] }
  0xbd   :  { %2920 = vmatpush1.bf16.msra.mxu0 %v6021_v59  ;;  %3092 = vmatpush1.bf16.msra.mxu1 %v6023_v60  ;;  %v6088_v59 = vcombine.high %v302_v50, %v306_v52  ;;  %v314_v60 = vld [vmem:[#allocation5 + $0x5e8] sm:$0xff] }
  0xbe   :  { %2921 = vmatprep.subr.bf16.mxu0 %v6030_v61  ;;  %3093 = vmatprep.subr.bf16.mxu1 %v6032_v62  ;;  %v6085_v61 = vcombine.low %v301_v48, %v305_v49  ;;  %v6087_v62 = vcombine.low %v302_v50, %v306_v52  ;;  %v365_v48 = vld [vmem:[#allocation5 + $0x780] sm:$0xff]  ;;  %v366_v50 = vld [vmem:[#allocation5 + $0x788] sm:$0xff] }
  0xbf   :  { %v369_v49 = vld [vmem:[#allocation5 + $0x7a0] sm:$0xff]  ;;  %v370_v52 = vld [vmem:[#allocation5 + $0x7a8] sm:$0xff] }
  0xc1   :  { %2922 = vmatpush1.bf16.msra.mxu0 %v6029_v3  ;;  %3094 = vmatpush1.bf16.msra.mxu1 %v6031_v4  ;;  %v6096_v3 = vcombine.high %v310_v58, %v314_v60  ;;  %v322_v4 = vld [vmem:[#allocation5 + $0x628] sm:$0xff] }
  0xc2   :  { %2934 = vmatprep.subr.bf16.mxu0 %v6038_v5  ;;  %3106 = vmatprep.subr.bf16.mxu1 %v6040_v6  ;;  %v6093_v5 = vcombine.low %v309_v56, %v313_v57  ;;  %v6095_v6 = vcombine.low %v310_v58, %v314_v60  ;;  %v6104_v11 = vcombine.high %v318_v2, %v322_v4  ;;  %v373_v56 = vld [vmem:[#allocation5 + $0x7c0] sm:$0xff]  ;;  %v374_v58 = vld [vmem:[#allocation5 + $0x7c8] sm:$0xff] }
  0xc3   :  { %v377_v57 = vld [vmem:[#allocation5 + $0x7e0] sm:$0xff]  ;;  %v378_v60 = vld [vmem:[#allocation5 + $0x7e8] sm:$0xff] }
  0xc4   :  { %2924 = vmatmul.mubr.bf16.vlgmr.msra.gmra.mrb[0].mxu0 %v6814_v9  ;;  %3096 = vmatmul.mubr.bf16.vlgmr.msra.gmra.mrb[0].mxu1 %v6814_v9  ;;  %v329_v9 = vld [vmem:[#allocation5 + $0x660] sm:$0xff] }
  0xc5   :  { %2935 = vmatpush1.bf16.msra.mxu0 %v6037_v12  ;;  %3107 = vmatpush1.bf16.msra.mxu1 %v6039_v13  ;;  %v330_v12 = vld [vmem:[#allocation5 + $0x668] sm:$0xff]  ;;  %v6101_v13 = vcombine.low %v317_v0, %v321_v1  ;;  %v6110_v15 = vcombine.high %v325_v8, %v329_v9  ;;  %v381_v0 = vld [vmem:[#allocation5 + $0x800] sm:$0xff] }
  0xc6   :  { %2936 = vmatprep.subr.bf16.mxu0 %v6046_v14  ;;  %3108 = vmatprep.subr.bf16.mxu1 %v6048_v16  ;;  %v6103_v14 = vcombine.low %v318_v2, %v322_v4  ;;  %v333_v16 = vld [vmem:[#allocation5 + $0x680] sm:$0xff]  ;;  %v382_v2 = vld [vmem:[#allocation5 + $0x808] sm:$0xff] }
  0xc7   :  { %2966 = vmatprep.mubr.bf16.mxu0 %v6815_v18  ;;  %3138 = vmatprep.mubr.bf16.mxu1 %v6815_v18  ;;  %v6112_v18 = vcombine.high %v326_v10, %v330_v12  ;;  %v385_v1 = vld [vmem:[#allocation5 + $0x820] sm:$0xff]  ;;  %v386_v4 = vld [vmem:[#allocation5 + $0x828] sm:$0xff] }
  0xc9   :  { %2937 = vmatpush1.bf16.msra.mxu0 %v6045_v21  ;;  %3109 = vmatpush1.bf16.msra.mxu1 %v6047_v22  ;;  %v6109_v21 = vcombine.low %v325_v8, %v329_v9  ;;  %v6111_v22 = vcombine.low %v326_v10, %v330_v12  ;;  %v6817_v8 = vld [vmem:[#allocation2 + $0x8] ss:$28 sps:$4 sm:$0xff]   ;;  %v389_v9 = vld [vmem:[#allocation5 + $0x840] sm:$0xff]  ;;  %v6168_v12 = vcombine.high %v382_v2, %v386_v4 }
  0xca   :  { %2938 = vmatprep.subr.bf16.mxu0 %v6054_v23  ;;  %3110 = vmatprep.subr.bf16.mxu1 %v6056_v26  ;;  %v6118_v23 = vcombine.high %v333_v16, %v337_v17  ;;  %v342_v26 = vld [vmem:[#allocation5 + $0x6c8] sm:$0xff]  ;;  %v393_v10 = vld [vmem:[#allocation5 + $0x860] sm:$0xff] }
  0xcd   :  { %2939 = vmatpush1.bf16.msra.mxu0 %v6053_v29  ;;  %3111 = vmatpush1.bf16.msra.mxu1 %v6055_v30  ;;  %v6117_v29 = vcombine.low %v333_v16, %v337_v17  ;;  %v6119_v30 = vcombine.low %v334_v19, %v338_v20  ;;  %v6167_v16 = vcombine.low %v382_v2, %v386_v4  ;;  %v398_v19 = vld [vmem:[#allocation5 + $0x888] sm:$0xff]  ;;  %v445_v2 = vld [vmem:[#allocation5 + $0xa00] sm:$0xff] }
  0xce   :  { %2940 = vmatprep.subr.bf16.mxu0 %v6062_v31  ;;  %3112 = vmatprep.subr.bf16.mxu1 %v6064_v35  ;;  %v6126_v31 = vcombine.high %v341_v24, %v345_v25  ;;  %v6128_v35 = vcombine.high %v342_v26, %v346_v28  ;;  %v6174_v17 = vcombine.high %v389_v9, %v393_v10  ;;  %v402_v20 = vld [vmem:[#allocation5 + $0x8a8] sm:$0xff] }
  0xcf   :  { %v446_v4 = vld [vmem:[#allocation5 + $0xa08] sm:$0xff] }
  0xd1   :  { %2941 = vmatpush1.bf16.msra.mxu0 %v6061_v37  ;;  %3113 = vmatpush1.bf16.msra.mxu1 %v6063_v38  ;;  %v6125_v37 = vcombine.low %v341_v24, %v345_v25  ;;  %v6127_v38 = vcombine.low %v342_v26, %v346_v28  ;;  %v405_v26 = vld [vmem:[#allocation5 + $0x8c0] sm:$0xff]  ;;  %v406_v28 = vld [vmem:[#allocation5 + $0x8c8] sm:$0xff] }
  0xd2   :  { %2942 = vmatprep.subr.bf16.mxu0 %v6070_v39  ;;  %3114 = vmatprep.subr.bf16.mxu1 %v6072_v43  ;;  %v6134_v39 = vcombine.high %v349_v32, %v353_v33  ;;  %v6136_v43 = vcombine.high %v350_v34, %v354_v36 }
  0xd5   :  { %2943 = vmatpush1.bf16.msra.mxu0 %v6069_v45  ;;  %3115 = vmatpush1.bf16.msra.mxu1 %v6071_v46  ;;  %v6133_v45 = vcombine.low %v349_v32, %v353_v33  ;;  %v6135_v46 = vcombine.low %v350_v34, %v354_v36  ;;  %v6183_v32 = vcombine.low %v398_v19, %v402_v20  ;;  %v413_v34 = vld [vmem:[#allocation5 + $0x900] sm:$0xff]  ;;  %v414_v36 = vld [vmem:[#allocation5 + $0x908] sm:$0xff] }
  0xd6   :  { %2944 = vmatprep.subr.bf16.mxu0 %v6078_v47  ;;  %3116 = vmatprep.subr.bf16.mxu1 %v6080_v51  ;;  %v6142_v47 = vcombine.high %v357_v40, %v361_v41  ;;  %v6144_v51 = vcombine.high %v358_v42, %v362_v44 }
  0xd9   :  { %2945 = vmatpush1.bf16.msra.mxu0 %v6077_v53  ;;  %3117 = vmatpush1.bf16.msra.mxu1 %v6079_v54  ;;  %v6141_v53 = vcombine.low %v357_v40, %v361_v41  ;;  %v6143_v54 = vcombine.low %v358_v42, %v362_v44  ;;  %v421_v42 = vld [vmem:[#allocation5 + $0x940] sm:$0xff]  ;;  %v422_v44 = vld [vmem:[#allocation5 + $0x948] sm:$0xff] }
  0xda   :  { %2946 = vmatprep.subr.bf16.mxu0 %v6086_v55  ;;  %3118 = vmatprep.subr.bf16.mxu1 %v6088_v59  ;;  %v6150_v55 = vcombine.high %v365_v48, %v369_v49  ;;  %v6152_v59 = vcombine.high %v366_v50, %v370_v52 }
  0xdd   :  { %2947 = vmatpush1.bf16.msra.mxu0 %v6085_v61  ;;  %3119 = vmatpush1.bf16.msra.mxu1 %v6087_v62  ;;  %v6149_v61 = vcombine.low %v365_v48, %v369_v49  ;;  %v6151_v62 = vcombine.low %v366_v50, %v370_v52  ;;  %v429_v50 = vld [vmem:[#allocation5 + $0x980] sm:$0xff]  ;;  %v430_v52 = vld [vmem:[#allocation5 + $0x988] sm:$0xff] }
  0xde   :  { %2948 = vmatprep.subr.bf16.mxu0 %v6094_v63  ;;  %3120 = vmatprep.subr.bf16.mxu1 %v6096_v3  ;;  %v6158_v63 = vcombine.high %v373_v56, %v377_v57  ;;  %v6160_v3 = vcombine.high %v374_v58, %v378_v60 }
  0xe1   :  { %2949 = vmatpush1.bf16.msra.mxu0 %v6093_v5  ;;  %3121 = vmatpush1.bf16.msra.mxu1 %v6095_v6  ;;  %v6157_v5 = vcombine.low %v373_v56, %v377_v57  ;;  %v6159_v6 = vcombine.low %v374_v58, %v378_v60  ;;  %v437_v58 = vld [vmem:[#allocation5 + $0x9c0] sm:$0xff]  ;;  %v438_v60 = vld [vmem:[#allocation5 + $0x9c8] sm:$0xff] }
  0xe2   :  { %2950 = vmatprep.subr.bf16.mxu0 %v6102_v7  ;;  %3122 = vmatprep.subr.bf16.mxu1 %v6104_v11  ;;  %v6166_v7 = vcombine.high %v381_v0, %v385_v1  ;;  %v390_v11 = vld [vmem:[#allocation5 + $0x848] sm:$0xff] }
  0xe5   :  { %2951 = vmatpush1.bf16.msra.mxu0 %v6101_v13  ;;  %3123 = vmatpush1.bf16.msra.mxu1 %v6103_v14  ;;  %v394_v13 = vld [vmem:[#allocation5 + $0x868] sm:$0xff]  ;;  %v6165_v14 = vcombine.low %v381_v0, %v385_v1 }
  0xe6   :  { %2952 = vmatprep.subr.bf16.mxu0 %v6110_v15  ;;  %3124 = vmatprep.subr.bf16.mxu1 %v6112_v18  ;;  %v397_v15 = vld [vmem:[#allocation5 + $0x880] sm:$0xff]  ;;  %v6175_v24 = vcombine.low %v390_v11, %v394_v13 }
  0xe7   :  { %v401_v18 = vld [vmem:[#allocation5 + $0x8a0] sm:$0xff] }
  0xe8   :  { %v6182_v25 = vcombine.high %v397_v15, %v401_v18 }
  0xe9   :  { %2953 = vmatpush1.bf16.msra.mxu0 %v6109_v21  ;;  %3125 = vmatpush1.bf16.msra.mxu1 %v6111_v22  ;;  %v6176_v21 = vcombine.high %v390_v11, %v394_v13  ;;  %v6818_v22 = vld [vmem:[#allocation2 + $0x14] ss:$28 sps:$4 sm:$0xff]   ;;  %v457_v11 = vld [vmem:[#allocation5 + $0xa60] sm:$0xff] }
  0xea   :  { %2954 = vmatprep.subr.bf16.mxu0 %v6118_v23  ;;  %3126 = vmatprep.subr.bf16.mxu1 %v6120_v27  ;;  %v6173_v23 = vcombine.low %v389_v9, %v393_v10  ;;  %v409_v27 = vld [vmem:[#allocation5 + $0x8e0] sm:$0xff] }
  0xeb   :  { %v6190_v33 = vcombine.high %v405_v26, %v409_v27  ;;  %v453_v10 = vld [vmem:[#allocation5 + $0xa40] sm:$0xff] }
  0xed   :  { %2955 = vmatpush1.bf16.msra.mxu0 %v6117_v29  ;;  %3127 = vmatpush1.bf16.msra.mxu1 %v6119_v30  ;;  %v6184_v29 = vcombine.high %v398_v19, %v402_v20  ;;  %v410_v30 = vld [vmem:[#allocation5 + $0x8e8] sm:$0xff]  ;;  %v465_v19 = vld [vmem:[#allocation5 + $0xaa0] sm:$0xff] }
  0xee   :  { %2956 = vmatprep.subr.bf16.mxu0 %v6126_v31  ;;  %3128 = vmatprep.subr.bf16.mxu1 %v6128_v35  ;;  %v6181_v31 = vcombine.low %v397_v15, %v401_v18  ;;  %v417_v35 = vld [vmem:[#allocation5 + $0x920] sm:$0xff]  ;;  %v6191_v40 = vcombine.low %v406_v28, %v410_v30  ;;  %v462_v20 = vld [vmem:[#allocation5 + $0xa88] sm:$0xff] }
  0xef   :  { %v6198_v41 = vcombine.high %v413_v34, %v417_v35  ;;  %v461_v18 = vld [vmem:[#allocation5 + $0xa80] sm:$0xff] }
  0xf1   :  { %2957 = vmatpush1.bf16.msra.mxu0 %v6125_v37  ;;  %3129 = vmatpush1.bf16.msra.mxu1 %v6127_v38  ;;  %v6192_v37 = vcombine.high %v406_v28, %v410_v30  ;;  %v418_v38 = vld [vmem:[#allocation5 + $0x928] sm:$0xff] }
  0xf2   :  { %2958 = vmatprep.subr.bf16.mxu0 %v6134_v39  ;;  %3130 = vmatprep.subr.bf16.mxu1 %v6136_v43  ;;  %v6189_v39 = vcombine.low %v405_v26, %v409_v27  ;;  %v425_v43 = vld [vmem:[#allocation5 + $0x960] sm:$0xff]  ;;  %v6199_v48 = vcombine.low %v414_v36, %v418_v38  ;;  %v470_v28 = vld [vmem:[#allocation5 + $0xac8] sm:$0xff] }
  0xf3   :  { %v6206_v49 = vcombine.high %v421_v42, %v425_v43  ;;  %v469_v26 = vld [vmem:[#allocation5 + $0xac0] sm:$0xff]  ;;  %v474_v30 = vld [vmem:[#allocation5 + $0xae8] sm:$0xff] }
  0xf4   :  { %v473_v27 = vld [vmem:[#allocation5 + $0xae0] sm:$0xff] }
  0xf5   :  { %2959 = vmatpush1.bf16.msra.mxu0 %v6133_v45  ;;  %3131 = vmatpush1.bf16.msra.mxu1 %v6135_v46  ;;  %v6200_v45 = vcombine.high %v414_v36, %v418_v38  ;;  %v426_v46 = vld [vmem:[#allocation5 + $0x968] sm:$0xff] }
  0xf6   :  { %2960 = vmatprep.subr.bf16.mxu0 %v6142_v47  ;;  %3132 = vmatprep.subr.bf16.mxu1 %v6144_v51  ;;  %v6197_v47 = vcombine.low %v413_v34, %v417_v35  ;;  %v433_v51 = vld [vmem:[#allocation5 + $0x9a0] sm:$0xff]  ;;  %v6207_v56 = vcombine.low %v422_v44, %v426_v46  ;;  %v478_v36 = vld [vmem:[#allocation5 + $0xb08] sm:$0xff] }
  0xf7   :  { %v6214_v57 = vcombine.high %v429_v50, %v433_v51  ;;  %v477_v34 = vld [vmem:[#allocation5 + $0xb00] sm:$0xff]  ;;  %v482_v38 = vld [vmem:[#allocation5 + $0xb28] sm:$0xff] }
  0xf8   :  { %v481_v35 = vld [vmem:[#allocation5 + $0xb20] sm:$0xff] }
  0xf9   :  { %2961 = vmatpush1.bf16.msra.mxu0 %v6141_v53  ;;  %3133 = vmatpush1.bf16.msra.mxu1 %v6143_v54  ;;  %v6208_v53 = vcombine.high %v422_v44, %v426_v46  ;;  %v434_v54 = vld [vmem:[#allocation5 + $0x9a8] sm:$0xff] }
  0xfa   :  { %2962 = vmatprep.subr.bf16.mxu0 %v6150_v55  ;;  %3134 = vmatprep.subr.bf16.mxu1 %v6152_v59  ;;  %v6205_v55 = vcombine.low %v421_v42, %v425_v43  ;;  %v441_v59 = vld [vmem:[#allocation5 + $0x9e0] sm:$0xff]  ;;  %v6215_v0 = vcombine.low %v430_v52, %v434_v54  ;;  %v486_v44 = vld [vmem:[#allocation5 + $0xb48] sm:$0xff] }
  0xfb   :  { %v6222_v1 = vcombine.high %v437_v58, %v441_v59  ;;  %v485_v42 = vld [vmem:[#allocation5 + $0xb40] sm:$0xff]  ;;  %v490_v46 = vld [vmem:[#allocation5 + $0xb68] sm:$0xff] }
  0xfc   :  { %v489_v43 = vld [vmem:[#allocation5 + $0xb60] sm:$0xff] }
  0xfd   :  { %2963 = vmatpush1.bf16.msra.mxu0 %v6149_v61  ;;  %3135 = vmatpush1.bf16.msra.mxu1 %v6151_v62  ;;  %v6216_v61 = vcombine.high %v430_v52, %v434_v54  ;;  %v442_v62 = vld [vmem:[#allocation5 + $0x9e8] sm:$0xff] }
  0xfe   :  { %2964 = vmatprep.subr.bf16.mxu0 %v6158_v63  ;;  %3136 = vmatprep.subr.bf16.mxu1 %v6160_v3  ;;  %v6213_v63 = vcombine.low %v429_v50, %v433_v51  ;;  %v449_v3 = vld [vmem:[#allocation5 + $0xa20] sm:$0xff]  ;;  %v494_v52 = vld [vmem:[#allocation5 + $0xb88] sm:$0xff] }
  0xff   :  { %v6230_v9 = vcombine.high %v445_v2, %v449_v3  ;;  %v6229_v15 = vcombine.low %v445_v2, %v449_v3  ;;  %v493_v50 = vld [vmem:[#allocation5 + $0xb80] sm:$0xff]  ;;  %v498_v54 = vld [vmem:[#allocation5 + $0xba8] sm:$0xff] }
 0x100   :  { %v497_v51 = vld [vmem:[#allocation5 + $0xba0] sm:$0xff] }
 0x101   :  { %2965 = vmatpush1.bf16.msra.mxu0 %v6157_v5  ;;  %3137 = vmatpush1.bf16.msra.mxu1 %v6159_v6  ;;  %v6224_v5 = vcombine.high %v438_v60, %v442_v62  ;;  %v450_v6 = vld [vmem:[#allocation5 + $0xa28] sm:$0xff]  ;;  %v509_v2 = vld [vmem:[#allocation5 + $0xc00] sm:$0xff] }
 0x102   :  { %2977 = vmatprep.subr.bf16.mxu0 %v6166_v7  ;;  %3149 = vmatprep.subr.bf16.mxu1 %v6168_v12  ;;  %v6221_v7 = vcombine.low %v437_v58, %v441_v59  ;;  %v454_v12 = vld [vmem:[#allocation5 + $0xa48] sm:$0xff]  ;;  %v6232_v13 = vcombine.high %v446_v4, %v450_v6  ;;  %v501_v58 = vld [vmem:[#allocation5 + $0xbc0] sm:$0xff] }
 0x103   :  { %v505_v59 = vld [vmem:[#allocation5 + $0xbe0] sm:$0xff] }
 0x104   :  { %2967 = vmatmul.mubr.bf16.vlgmr.msra.gmra.mrb[0].mxu0 %v6817_v8  ;;  %3139 = vmatmul.mubr.bf16.vlgmr.msra.gmra.mrb[0].mxu1 %v6817_v8  ;;  %v6223_v8 = vcombine.low %v438_v60, %v442_v62  ;;  %v502_v60 = vld [vmem:[#allocation5 + $0xbc8] sm:$0xff]  ;;  %v513_v3 = vld [vmem:[#allocation5 + $0xc20] sm:$0xff] }
 0x105   :  { %2978 = vmatpush1.bf16.msra.mxu0 %v6165_v14  ;;  %3150 = vmatpush1.bf16.msra.mxu1 %v6167_v16  ;;  %v458_v14 = vld [vmem:[#allocation5 + $0xa68] sm:$0xff]  ;;  %v6231_v16 = vcombine.low %v446_v4, %v450_v6 }
 0x106   :  { %2979 = vmatprep.subr.bf16.mxu0 %v6174_v17  ;;  %3151 = vmatprep.subr.bf16.mxu1 %v6176_v21  ;;  %v6238_v17 = vcombine.high %v453_v10, %v457_v11  ;;  %v6240_v21 = vcombine.high %v454_v12, %v458_v14  ;;  %v506_v62 = vld [vmem:[#allocation5 + $0xbe8] sm:$0xff] }
 0x107   :  { %3009 = vmatprep.mubr.bf16.mxu0 %v6818_v22  ;;  %3181 = vmatprep.mubr.bf16.mxu1 %v6818_v22  ;;  %v466_v22 = vld [vmem:[#allocation5 + $0xaa8] sm:$0xff] }
 0x108   :  { %v510_v4 = vld [vmem:[#allocation5 + $0xc08] sm:$0xff] }
 0x109   :  { %2980 = vmatpush1.bf16.msra.mxu0 %v6173_v23  ;;  %3152 = vmatpush1.bf16.msra.mxu1 %v6175_v24  ;;  %v6237_v23 = vcombine.low %v453_v10, %v457_v11  ;;  %v6239_v24 = vcombine.low %v454_v12, %v458_v14  ;;  %v514_v6 = vld [vmem:[#allocation5 + $0xc28] sm:$0xff]  ;;  %v6820_v10 = vld [vmem:[#allocation2 + $0x10] ss:$28 sps:$4 sm:$0xff]   ;;  %v517_v11 = vld [vmem:[#allocation5 + $0xc40] sm:$0xff] }
 0x10a   :  { %2981 = vmatprep.subr.bf16.mxu0 %v6182_v25  ;;  %3153 = vmatprep.subr.bf16.mxu1 %v6184_v29  ;;  %v6246_v25 = vcombine.high %v461_v18, %v465_v19  ;;  %v6248_v29 = vcombine.high %v462_v20, %v466_v22  ;;  %v521_v12 = vld [vmem:[#allocation5 + $0xc60] sm:$0xff]  ;;  %v6296_v14 = vcombine.high %v510_v4, %v514_v6 }
 0x10d   :  { %2982 = vmatpush1.bf16.msra.mxu0 %v6181_v31  ;;  %3154 = vmatpush1.bf16.msra.mxu1 %v6183_v32  ;;  %v6245_v31 = vcombine.low %v461_v18, %v465_v19  ;;  %v6247_v32 = vcombine.low %v462_v20, %v466_v22  ;;  %v6302_v18 = vcombine.high %v517_v11, %v521_v12  ;;  %v525_v19 = vld [vmem:[#allocation5 + $0xc80] sm:$0xff] }
 0x10e   :  { %2983 = vmatprep.subr.bf16.mxu0 %v6190_v33  ;;  %3155 = vmatprep.subr.bf16.mxu1 %v6192_v37  ;;  %v6254_v33 = vcombine.high %v469_v26, %v473_v27  ;;  %v6256_v37 = vcombine.high %v470_v28, %v474_v30  ;;  %v529_v20 = vld [vmem:[#allocation5 + $0xca0] sm:$0xff] }
 0x111   :  { %2984 = vmatpush1.bf16.msra.mxu0 %v6189_v39  ;;  %3156 = vmatpush1.bf16.msra.mxu1 %v6191_v40  ;;  %v6253_v39 = vcombine.low %v469_v26, %v473_v27  ;;  %v6255_v40 = vcombine.low %v470_v28, %v474_v30  ;;  %v6310_v26 = vcombine.high %v525_v19, %v529_v20  ;;  %v533_v27 = vld [vmem:[#allocation5 + $0xcc0] sm:$0xff] }
 0x112   :  { %2985 = vmatprep.subr.bf16.mxu0 %v6198_v41  ;;  %3157 = vmatprep.subr.bf16.mxu1 %v6200_v45  ;;  %v6262_v41 = vcombine.high %v477_v34, %v481_v35  ;;  %v6264_v45 = vcombine.high %v478_v36, %v482_v38  ;;  %v537_v28 = vld [vmem:[#allocation5 + $0xce0] sm:$0xff] }
 0x115   :  { %2986 = vmatpush1.bf16.msra.mxu0 %v6197_v47  ;;  %3158 = vmatpush1.bf16.msra.mxu1 %v6199_v48  ;;  %v6261_v47 = vcombine.low %v477_v34, %v481_v35  ;;  %v6263_v48 = vcombine.low %v478_v36, %v482_v38  ;;  %v6318_v35 = vcombine.high %v533_v27, %v537_v28  ;;  %v541_v36 = vld [vmem:[#allocation5 + $0xd00] sm:$0xff]  ;;  %v542_v38 = vld [vmem:[#allocation5 + $0xd08] sm:$0xff] }
 0x116   :  { %2987 = vmatprep.subr.bf16.mxu0 %v6206_v49  ;;  %3159 = vmatprep.subr.bf16.mxu1 %v6208_v53  ;;  %v6270_v49 = vcombine.high %v485_v42, %v489_v43  ;;  %v6272_v53 = vcombine.high %v486_v44, %v490_v46 }
 0x119   :  { %2988 = vmatpush1.bf16.msra.mxu0 %v6205_v55  ;;  %3160 = vmatpush1.bf16.msra.mxu1 %v6207_v56  ;;  %v6269_v55 = vcombine.low %v485_v42, %v489_v43  ;;  %v6271_v56 = vcombine.low %v486_v44, %v490_v46  ;;  %v549_v44 = vld [vmem:[#allocation5 + $0xd40] sm:$0xff]  ;;  %v550_v46 = vld [vmem:[#allocation5 + $0xd48] sm:$0xff] }
 0x11a   :  { %2989 = vmatprep.subr.bf16.mxu0 %v6214_v57  ;;  %3161 = vmatprep.subr.bf16.mxu1 %v6216_v61  ;;  %v6278_v57 = vcombine.high %v493_v50, %v497_v51  ;;  %v6280_v61 = vcombine.high %v494_v52, %v498_v54 }
 0x11d   :  { %2990 = vmatpush1.bf16.msra.mxu0 %v6213_v63  ;;  %3162 = vmatpush1.bf16.msra.mxu1 %v6215_v0  ;;  %v6277_v63 = vcombine.low %v493_v50, %v497_v51  ;;  %v6279_v0 = vcombine.low %v494_v52, %v498_v54  ;;  %v557_v52 = vld [vmem:[#allocation5 + $0xd80] sm:$0xff]  ;;  %v558_v54 = vld [vmem:[#allocation5 + $0xd88] sm:$0xff] }
 0x11e   :  { %2991 = vmatprep.subr.bf16.mxu0 %v6222_v1  ;;  %3163 = vmatprep.subr.bf16.mxu1 %v6224_v5  ;;  %v6286_v1 = vcombine.high %v501_v58, %v505_v59  ;;  %v6288_v5 = vcombine.high %v502_v60, %v506_v62 }
 0x121   :  { %2992 = vmatpush1.bf16.msra.mxu0 %v6221_v7  ;;  %3164 = vmatpush1.bf16.msra.mxu1 %v6223_v8  ;;  %v6285_v7 = vcombine.low %v501_v58, %v505_v59  ;;  %v6287_v8 = vcombine.low %v502_v60, %v506_v62  ;;  %v565_v60 = vld [vmem:[#allocation5 + $0xdc0] sm:$0xff]  ;;  %v566_v62 = vld [vmem:[#allocation5 + $0xdc8] sm:$0xff] }
 0x122   :  { %2993 = vmatprep.subr.bf16.mxu0 %v6230_v9  ;;  %3165 = vmatprep.subr.bf16.mxu1 %v6232_v13  ;;  %v6294_v9 = vcombine.high %v509_v2, %v513_v3  ;;  %v518_v13 = vld [vmem:[#allocation5 + $0xc48] sm:$0xff] }
 0x125   :  { %2994 = vmatpush1.bf16.msra.mxu0 %v6229_v15  ;;  %3166 = vmatpush1.bf16.msra.mxu1 %v6231_v16  ;;  %v522_v15 = vld [vmem:[#allocation5 + $0xc68] sm:$0xff]  ;;  %v6293_v16 = vcombine.low %v509_v2, %v513_v3 }
 0x126   :  { %2995 = vmatprep.subr.bf16.mxu0 %v6238_v17  ;;  %3167 = vmatprep.subr.bf16.mxu1 %v6240_v21  ;;  %v6295_v17 = vcombine.low %v510_v4, %v514_v6  ;;  %v526_v21 = vld [vmem:[#allocation5 + $0xc88] sm:$0xff]  ;;  %v6304_v22 = vcombine.high %v518_v13, %v522_v15  ;;  %v127_v4 = vld [vmem:[#allocation5 + $0x10] sm:$0xff]  ;;  %v128_v6 = vld [vmem:[#allocation5 + $0x18] sm:$0xff] }
 0x129   :  { %2996 = vmatpush1.bf16.msra.mxu0 %v6237_v23  ;;  %3168 = vmatpush1.bf16.msra.mxu1 %v6239_v24  ;;  %v530_v23 = vld [vmem:[#allocation5 + $0xca8] sm:$0xff]  ;;  %v6301_v24 = vcombine.low %v517_v11, %v521_v12  ;;  %v6821_v11 = vld [vmem:[#allocation2 + $0x18] ss:$28 sps:$4 sm:$0xff]  }
 0x12a   :  { %2997 = vmatprep.subr.bf16.mxu0 %v6246_v25  ;;  %3169 = vmatprep.subr.bf16.mxu1 %v6248_v29  ;;  %v6303_v25 = vcombine.low %v518_v13, %v522_v15  ;;  %v534_v29 = vld [vmem:[#allocation5 + $0xcc8] sm:$0xff]  ;;  %v6312_v30 = vcombine.high %v526_v21, %v530_v23  ;;  %v6311_v34 = vcombine.low %v526_v21, %v530_v23  ;;  %v135_v13 = vld [vmem:[#allocation5 + $0x50] sm:$0xff]  ;;  %v136_v15 = vld [vmem:[#allocation5 + $0x58] sm:$0xff] }
 0x12b   :  { %v143_v21 = vld [vmem:[#allocation5 + $0x90] sm:$0xff]  ;;  %v144_v23 = vld [vmem:[#allocation5 + $0x98] sm:$0xff] }
 0x12d   :  { %2998 = vmatpush1.bf16.msra.mxu0 %v6245_v31  ;;  %3170 = vmatpush1.bf16.msra.mxu1 %v6247_v32  ;;  %v538_v31 = vld [vmem:[#allocation5 + $0xce8] sm:$0xff]  ;;  %v7454_v32 = vmov 0  }
 0x12e   :  { %2999 = vmatprep.subr.bf16.mxu0 %v6254_v33  ;;  %3171 = vmatprep.subr.bf16.mxu1 %v6256_v37  ;;  %v6309_v33 = vcombine.low %v525_v19, %v529_v20  ;;  %v545_v37 = vld [vmem:[#allocation5 + $0xd20] sm:$0xff]  ;;  %v6319_v42 = vcombine.low %v534_v29, %v538_v31 }
 0x12f   :  { %v6326_v43 = vcombine.high %v541_v36, %v545_v37 }
 0x131   :  { %3000 = vmatpush1.bf16.msra.mxu0 %v6253_v39  ;;  %3172 = vmatpush1.bf16.msra.mxu1 %v6255_v40  ;;  %v6320_v39 = vcombine.high %v534_v29, %v538_v31  ;;  %v546_v40 = vld [vmem:[#allocation5 + $0xd28] sm:$0xff]  ;;  %v151_v29 = vld [vmem:[#allocation5 + $0xd0] sm:$0xff] }
 0x132   :  { %3001 = vmatprep.subr.bf16.mxu0 %v6262_v41  ;;  %3173 = vmatprep.subr.bf16.mxu1 %v6264_v45  ;;  %v6317_v41 = vcombine.low %v533_v27, %v537_v28  ;;  %v553_v45 = vld [vmem:[#allocation5 + $0xd60] sm:$0xff]  ;;  %v6327_v50 = vcombine.low %v542_v38, %v546_v40 }
 0x133   :  { %v6334_v51 = vcombine.high %v549_v44, %v553_v45 }
 0x135   :  { %3002 = vmatpush1.bf16.msra.mxu0 %v6261_v47  ;;  %3174 = vmatpush1.bf16.msra.mxu1 %v6263_v48  ;;  %v6328_v47 = vcombine.high %v542_v38, %v546_v40  ;;  %v554_v48 = vld [vmem:[#allocation5 + $0xd68] sm:$0xff]  ;;  %v159_v40 = vld [vmem:[#allocation5 + $0x110] sm:$0xff] }
 0x136   :  { %3003 = vmatprep.subr.bf16.mxu0 %v6270_v49  ;;  %3175 = vmatprep.subr.bf16.mxu1 %v6272_v53  ;;  %v6325_v49 = vcombine.low %v541_v36, %v545_v37  ;;  %v561_v53 = vld [vmem:[#allocation5 + $0xda0] sm:$0xff]  ;;  %v6335_v58 = vcombine.low %v550_v46, %v554_v48 }
 0x137   :  { %v6342_v59 = vcombine.high %v557_v52, %v561_v53 }
 0x139   :  { %3004 = vmatpush1.bf16.msra.mxu0 %v6269_v55  ;;  %3176 = vmatpush1.bf16.msra.mxu1 %v6271_v56  ;;  %v6336_v55 = vcombine.high %v550_v46, %v554_v48  ;;  %v562_v56 = vld [vmem:[#allocation5 + $0xda8] sm:$0xff]  ;;  %v167_v48 = vld [vmem:[#allocation5 + $0x150] sm:$0xff] }
 0x13a   :  { %3005 = vmatprep.subr.bf16.mxu0 %v6278_v57  ;;  %3177 = vmatprep.subr.bf16.mxu1 %v6280_v61  ;;  %v6333_v57 = vcombine.low %v549_v44, %v553_v45  ;;  %v569_v61 = vld [vmem:[#allocation5 + $0xde0] sm:$0xff]  ;;  %v6343_v2 = vcombine.low %v558_v54, %v562_v56 }
 0x13b   :  { %v6350_v3 = vcombine.high %v565_v60, %v569_v61 }
 0x13d   :  { %3006 = vmatpush1.bf16.msra.mxu0 %v6277_v63  ;;  %3178 = vmatpush1.bf16.msra.mxu1 %v6279_v0  ;;  %v6344_v63 = vcombine.high %v558_v54, %v562_v56  ;;  %v570_v0 = vld [vmem:[#allocation5 + $0xde8] sm:$0xff]  ;;  %v175_v56 = vld [vmem:[#allocation5 + $0x190] sm:$0xff] }
 0x13e   :  { %3007 = vmatprep.subr.bf16.mxu0 %v6286_v1  ;;  %3179 = vmatprep.subr.bf16.mxu1 %v6288_v5  ;;  %v6341_v1 = vcombine.low %v557_v52, %v561_v53  ;;  %v131_v5 = vld [vmem:[#allocation5 + $0x30] sm:$0xff] }
 0x13f   :  { %v5914_v12 = vcombine.high %v127_v4, %v131_v5 }
 0x141   :  { %3008 = vmatpush1.bf16.msra.mxu0 %v6285_v7  ;;  %3180 = vmatpush1.bf16.msra.mxu1 %v6287_v8  ;;  %v6352_v7 = vcombine.high %v566_v62, %v570_v0  ;;  %v132_v8 = vld [vmem:[#allocation5 + $0x38] sm:$0xff] }
 0x142   :  { %3020 = vmatprep.subr.bf16.mxu0 %v6294_v9  ;;  %3192 = vmatprep.subr.bf16.mxu1 %v6296_v14  ;;  %v6349_v9 = vcombine.low %v565_v60, %v569_v61  ;;  %v139_v14 = vld [vmem:[#allocation5 + $0x70] sm:$0xff]  ;;  %v5915_v19 = vcombine.low %v128_v6, %v132_v8 }
 0x143   :  { %v5922_v20 = vcombine.high %v135_v13, %v139_v14 }
 0x144   :  { %3010 = vmatmul.mubr.bf16.vlgmr.msra.gmra.mrb[0].mxu0 %v6820_v10  ;;  %3182 = vmatmul.mubr.bf16.vlgmr.msra.gmra.mrb[0].mxu1 %v6820_v10  ;;  %v6351_v10 = vcombine.low %v566_v62, %v570_v0  ;;  %v183_v0 = vld [vmem:[#allocation5 + $0x1d0] sm:$0xff] }
 0x145   :  { %3021 = vmatpush1.bf16.msra.mxu0 %v6293_v16  ;;  %3193 = vmatpush1.bf16.msra.mxu1 %v6295_v17  ;;  %v5916_v16 = vcombine.high %v128_v6, %v132_v8  ;;  %v140_v17 = vld [vmem:[#allocation5 + $0x78] sm:$0xff]  ;;  %v191_v8 = vld [vmem:[#allocation5 + $0x210] sm:$0xff] }
 0x146   :  { %3022 = vmatprep.subr.bf16.mxu0 %v6302_v18  ;;  %3194 = vmatprep.subr.bf16.mxu1 %v6304_v22  ;;  %v5913_v18 = vcombine.low %v127_v4, %v131_v5  ;;  %v147_v22 = vld [vmem:[#allocation5 + $0xb0] sm:$0xff]  ;;  %v5923_v27 = vcombine.low %v136_v15, %v140_v17 }
 0x147   :  { %3052 = vmatprep.mubr.bf16.mxu0 %v7454_v32  ;;  %3224 = vmatprep.mubr.bf16.mxu1 %v7454_v32  ;;  %v5930_v28 = vcombine.high %v143_v21, %v147_v22  ;;  %v5929_v36 = vcombine.low %v143_v21, %v147_v22 }
 0x149   :  { %3023 = vmatpush1.bf16.msra.mxu0 %v6301_v24  ;;  %3195 = vmatpush1.bf16.msra.mxu1 %v6303_v25  ;;  %v5924_v24 = vcombine.high %v136_v15, %v140_v17  ;;  %v148_v25 = vld [vmem:[#allocation5 + $0xb8] sm:$0xff]  ;;  %v203_v17 = vld [vmem:[#allocation5 + $0x270] sm:$0xff] }
 0x14a   :  { %3024 = vmatprep.subr.bf16.mxu0 %v6310_v26  ;;  %3196 = vmatprep.subr.bf16.mxu1 %v6312_v30  ;;  %v5921_v26 = vcombine.low %v135_v13, %v139_v14  ;;  %v155_v30 = vld [vmem:[#allocation5 + $0xf0] sm:$0xff]  ;;  %v5932_v31 = vcombine.high %v144_v23, %v148_v25  ;;  %v5931_v37 = vcombine.low %v144_v23, %v148_v25 }
 0x14b   :  { %v5938_v38 = vcombine.high %v151_v29, %v155_v30  ;;  %v5937_v44 = vcombine.low %v151_v29, %v155_v30  ;;  %v211_v25 = vld [vmem:[#allocation5 + $0x2b0] sm:$0xff] }
 0x14d   :  { %3025 = vmatpush1.bf16.msra.mxu0 %v6309_v33  ;;  %3197 = vmatpush1.bf16.msra.mxu1 %v6311_v34  ;;  %v152_v33 = vld [vmem:[#allocation5 + $0xd8] sm:$0xff]  ;;  %v7246_v34 = vld [vmem:[#allocation2 + $0x4] ss:$28 sps:$4 sm:$0xff]  }
 0x14e   :  { %3026 = vmatprep.subr.bf16.mxu0 %v6318_v35  ;;  %3198 = vmatprep.subr.bf16.mxu1 %v6320_v39  ;;  %v156_v35 = vld [vmem:[#allocation5 + $0xf8] sm:$0xff] }
 0x14f   :  { %v5940_v39 = vcombine.high %v152_v33, %v156_v35  ;;  %v5939_v45 = vcombine.low %v152_v33, %v156_v35  ;;  %v215_v33 = vld [vmem:[#allocation5 + $0x2d0] sm:$0xff]  ;;  %v216_v35 = vld [vmem:[#allocation5 + $0x2d8] sm:$0xff] }
 0x151   :  { %3027 = vmatpush1.bf16.msra.mxu0 %v6317_v41  ;;  %3199 = vmatpush1.bf16.msra.mxu1 %v6319_v42  ;;  %v163_v41 = vld [vmem:[#allocation5 + $0x130] sm:$0xff]  ;;  %v160_v42 = vld [vmem:[#allocation5 + $0x118] sm:$0xff] }
 0x152   :  { %3028 = vmatprep.subr.bf16.mxu0 %v6326_v43  ;;  %3200 = vmatprep.subr.bf16.mxu1 %v6328_v47  ;;  %v164_v43 = vld [vmem:[#allocation5 + $0x138] sm:$0xff]  ;;  %v5946_v46 = vcombine.high %v159_v40, %v163_v41  ;;  %v5945_v52 = vcombine.low %v159_v40, %v163_v41  ;;  %v223_v41 = vld [vmem:[#allocation5 + $0x310] sm:$0xff] }
 0x153   :  { %v5948_v47 = vcombine.high %v160_v42, %v164_v43  ;;  %v5947_v53 = vcombine.low %v160_v42, %v164_v43  ;;  %v227_v42 = vld [vmem:[#allocation5 + $0x330] sm:$0xff]  ;;  %v224_v43 = vld [vmem:[#allocation5 + $0x318] sm:$0xff] }
 0x155   :  { %3029 = vmatpush1.bf16.msra.mxu0 %v6325_v49  ;;  %3201 = vmatpush1.bf16.msra.mxu1 %v6327_v50  ;;  %v171_v49 = vld [vmem:[#allocation5 + $0x170] sm:$0xff]  ;;  %v168_v50 = vld [vmem:[#allocation5 + $0x158] sm:$0xff] }
 0x156   :  { %3030 = vmatprep.subr.bf16.mxu0 %v6334_v51  ;;  %3202 = vmatprep.subr.bf16.mxu1 %v6336_v55  ;;  %v172_v51 = vld [vmem:[#allocation5 + $0x178] sm:$0xff]  ;;  %v5954_v54 = vcombine.high %v167_v48, %v171_v49  ;;  %v5953_v60 = vcombine.low %v167_v48, %v171_v49  ;;  %v231_v49 = vld [vmem:[#allocation5 + $0x350] sm:$0xff] }
 0x157   :  { %v5956_v55 = vcombine.high %v168_v50, %v172_v51  ;;  %v5955_v61 = vcombine.low %v168_v50, %v172_v51  ;;  %v235_v50 = vld [vmem:[#allocation5 + $0x370] sm:$0xff]  ;;  %v232_v51 = vld [vmem:[#allocation5 + $0x358] sm:$0xff] }
 0x159   :  { %3031 = vmatpush1.bf16.msra.mxu0 %v6333_v57  ;;  %3203 = vmatpush1.bf16.msra.mxu1 %v6335_v58  ;;  %v179_v57 = vld [vmem:[#allocation5 + $0x1b0] sm:$0xff]  ;;  %v176_v58 = vld [vmem:[#allocation5 + $0x198] sm:$0xff] }
 0x15a   :  { %3032 = vmatprep.subr.bf16.mxu0 %v6342_v59  ;;  %3204 = vmatprep.subr.bf16.mxu1 %v6344_v63  ;;  %v180_v59 = vld [vmem:[#allocation5 + $0x1b8] sm:$0xff]  ;;  %v5962_v62 = vcombine.high %v175_v56, %v179_v57  ;;  %v5961_v4 = vcombine.low %v175_v56, %v179_v57  ;;  %v239_v57 = vld [vmem:[#allocation5 + $0x390] sm:$0xff] }
 0x15b   :  { %v5964_v63 = vcombine.high %v176_v58, %v180_v59  ;;  %v5963_v5 = vcombine.low %v176_v58, %v180_v59  ;;  %v243_v58 = vld [vmem:[#allocation5 + $0x3b0] sm:$0xff]  ;;  %v240_v59 = vld [vmem:[#allocation5 + $0x398] sm:$0xff] }
 0x15d   :  { %3033 = vmatpush1.bf16.msra.mxu0 %v6341_v1  ;;  %3205 = vmatpush1.bf16.msra.mxu1 %v6343_v2  ;;  %v187_v1 = vld [vmem:[#allocation5 + $0x1f0] sm:$0xff]  ;;  %v184_v2 = vld [vmem:[#allocation5 + $0x1d8] sm:$0xff] }
 0x15e   :  { %3034 = vmatprep.subr.bf16.mxu0 %v6350_v3  ;;  %3206 = vmatprep.subr.bf16.mxu1 %v6352_v7  ;;  %v188_v3 = vld [vmem:[#allocation5 + $0x1f8] sm:$0xff]  ;;  %v5970_v6 = vcombine.high %v183_v0, %v187_v1 }
 0x15f   :  { %v5972_v7 = vcombine.high %v184_v2, %v188_v3  ;;  %v5971_v13 = vcombine.low %v184_v2, %v188_v3  ;;  %v251_v2 = vld [vmem:[#allocation5 + $0x3f0] sm:$0xff]  ;;  %v248_v3 = vld [vmem:[#allocation5 + $0x3d8] sm:$0xff] }
 0x161   :  { %3035 = vmatpush1.bf16.msra.mxu0 %v6349_v9  ;;  %3207 = vmatpush1.bf16.msra.mxu1 %v6351_v10  ;;  %v195_v9 = vld [vmem:[#allocation5 + $0x230] sm:$0xff]  ;;  %v192_v10 = vld [vmem:[#allocation5 + $0x218] sm:$0xff] }
 0x162   :  { %3235 = vmatprep.subr.bf16.mxu0 %v5914_v12  ;;  %3407 = vmatprep.subr.bf16.mxu1 %v5916_v16  ;;  %v5969_v12 = vcombine.low %v183_v0, %v187_v1  ;;  %v5978_v14 = vcombine.high %v191_v8, %v195_v9  ;;  %v199_v16 = vld [vmem:[#allocation5 + $0x250] sm:$0xff] }
 0x163   :  { %v5986_v22 = vcombine.high %v199_v16, %v203_v17  ;;  %v247_v1 = vld [vmem:[#allocation5 + $0x3d0] sm:$0xff] }
 0x164   :  { %3053 = vmatmul.mubr.bf16.vlgmr.msra.gmra.mrb[0].mxu0 %v6821_v11  ;;  %3225 = vmatmul.mubr.bf16.vlgmr.msra.gmra.mrb[0].mxu1 %v6821_v11  ;;  %v196_v11 = vld [vmem:[#allocation5 + $0x238] sm:$0xff] }
 0x165   :  { %3236 = vmatpush1.bf16.msra.mxu0 %v5913_v18  ;;  %3408 = vmatpush1.bf16.msra.mxu1 %v5915_v19  ;;  %v5980_v15 = vcombine.high %v192_v10, %v196_v11  ;;  %v200_v18 = vld [vmem:[#allocation5 + $0x258] sm:$0xff]  ;;  %v5979_v21 = vcombine.low %v192_v10, %v196_v11  ;;  %v259_v10 = vld [vmem:[#allocation5 + $0x430] sm:$0xff] }
 0x166   :  { %3237 = vmatprep.subr.bf16.mxu0 %v5922_v20  ;;  %3409 = vmatprep.subr.bf16.mxu1 %v5924_v24  ;;  %v204_v19 = vld [vmem:[#allocation5 + $0x278] sm:$0xff]  ;;  %v5977_v20 = vcombine.low %v191_v8, %v195_v9  ;;  %v207_v24 = vld [vmem:[#allocation5 + $0x290] sm:$0xff] }
 0x167   :  { %3267 = vmatprep.mubr.bf16.mxu0 %v7246_v34  ;;  %3439 = vmatprep.mubr.bf16.mxu1 %v7246_v34  ;;  %v5988_v23 = vcombine.high %v200_v18, %v204_v19  ;;  %v5987_v29 = vcombine.low %v200_v18, %v204_v19  ;;  %v5994_v30 = vcombine.high %v207_v24, %v211_v25  ;;  %v219_v34 = vld [vmem:[#allocation5 + $0x2f0] sm:$0xff]  ;;  %v256_v11 = vld [vmem:[#allocation5 + $0x418] sm:$0xff] }
 0x168   :  { %v255_v9 = vld [vmem:[#allocation5 + $0x410] sm:$0xff]  ;;  %v264_v19 = vld [vmem:[#allocation5 + $0x458] sm:$0xff] }
 0x169   :  { %3238 = vmatpush1.bf16.msra.mxu0 %v5921_v26  ;;  %3410 = vmatpush1.bf16.msra.mxu1 %v5923_v27  ;;  %v208_v26 = vld [vmem:[#allocation5 + $0x298] sm:$0xff]  ;;  %v267_v18 = vld [vmem:[#allocation5 + $0x470] sm:$0xff] }
 0x16a   :  { %3239 = vmatprep.subr.bf16.mxu0 %v5930_v28  ;;  %3411 = vmatprep.subr.bf16.mxu1 %v5932_v31  ;;  %v212_v27 = vld [vmem:[#allocation5 + $0x2b8] sm:$0xff]  ;;  %v5985_v28 = vcombine.low %v199_v16, %v203_v17  ;;  %v263_v17 = vld [vmem:[#allocation5 + $0x450] sm:$0xff] }
 0x16b   :  { %v5996_v31 = vcombine.high %v208_v26, %v212_v27 }
 0x16d   :  { %3240 = vmatpush1.bf16.msra.mxu0 %v5929_v36  ;;  %3412 = vmatpush1.bf16.msra.mxu1 %v5931_v37  ;;  %v220_v36 = vld [vmem:[#allocation5 + $0x2f8] sm:$0xff]  ;;  %v5993_v37 = vcombine.low %v207_v24, %v211_v25  ;;  %v271_v25 = vld [vmem:[#allocation5 + $0x490] sm:$0xff] }
 0x16e   :  { %3241 = vmatprep.subr.bf16.mxu0 %v5938_v38  ;;  %3413 = vmatprep.subr.bf16.mxu1 %v5940_v39  ;;  %v5995_v38 = vcombine.low %v208_v26, %v212_v27  ;;  %v6002_v39 = vcombine.high %v215_v33, %v219_v34  ;;  %v6004_v40 = vcombine.high %v216_v35, %v220_v36  ;;  %v275_v26 = vld [vmem:[#allocation5 + $0x4b0] sm:$0xff]  ;;  %v7247_v27 = vld [vmem:[#allocation2] ss:$28 sps:$4 sm:$0xff]  }
 0x171   :  { %3242 = vmatpush1.bf16.msra.mxu0 %v5937_v44  ;;  %3414 = vmatpush1.bf16.msra.mxu1 %v5939_v45  ;;  %v228_v44 = vld [vmem:[#allocation5 + $0x338] sm:$0xff]  ;;  %v6001_v45 = vcombine.low %v215_v33, %v219_v34  ;;  %v6058_v33 = vcombine.high %v271_v25, %v275_v26 }
 0x172   :  { %3243 = vmatprep.subr.bf16.mxu0 %v5946_v46  ;;  %3415 = vmatprep.subr.bf16.mxu1 %v5948_v47  ;;  %v6003_v46 = vcombine.low %v216_v35, %v220_v36  ;;  %v6010_v47 = vcombine.high %v223_v41, %v227_v42  ;;  %v6012_v48 = vcombine.high %v224_v43, %v228_v44  ;;  %v279_v35 = vld [vmem:[#allocation5 + $0x4d0] sm:$0xff] }
 0x173   :  { %v283_v36 = vld [vmem:[#allocation5 + $0x4f0] sm:$0xff] }
 0x175   :  { %3244 = vmatpush1.bf16.msra.mxu0 %v5945_v52  ;;  %3416 = vmatpush1.bf16.msra.mxu1 %v5947_v53  ;;  %v236_v52 = vld [vmem:[#allocation5 + $0x378] sm:$0xff]  ;;  %v6009_v53 = vcombine.low %v223_v41, %v227_v42  ;;  %v6066_v42 = vcombine.high %v279_v35, %v283_v36 }
 0x176   :  { %3245 = vmatprep.subr.bf16.mxu0 %v5954_v54  ;;  %3417 = vmatprep.subr.bf16.mxu1 %v5956_v55  ;;  %v6011_v54 = vcombine.low %v224_v43, %v228_v44  ;;  %v6018_v55 = vcombine.high %v231_v49, %v235_v50  ;;  %v6020_v56 = vcombine.high %v232_v51, %v236_v52  ;;  %v287_v44 = vld [vmem:[#allocation5 + $0x510] sm:$0xff] }
 0x179   :  { %3246 = vmatpush1.bf16.msra.mxu0 %v5953_v60  ;;  %3418 = vmatpush1.bf16.msra.mxu1 %v5955_v61  ;;  %v244_v60 = vld [vmem:[#allocation5 + $0x3b8] sm:$0xff]  ;;  %v6017_v61 = vcombine.low %v231_v49, %v235_v50 }
 0x17a   :  { %3247 = vmatprep.subr.bf16.mxu0 %v5962_v62  ;;  %3419 = vmatprep.subr.bf16.mxu1 %v5964_v63  ;;  %v6019_v62 = vcombine.low %v232_v51, %v236_v52  ;;  %v6026_v63 = vcombine.high %v239_v57, %v243_v58  ;;  %v6028_v0 = vcombine.high %v240_v59, %v244_v60  ;;  %v295_v52 = vld [vmem:[#allocation5 + $0x550] sm:$0xff] }
 0x17d   :  { %3248 = vmatpush1.bf16.msra.mxu0 %v5961_v4  ;;  %3420 = vmatpush1.bf16.msra.mxu1 %v5963_v5  ;;  %v252_v4 = vld [vmem:[#allocation5 + $0x3f8] sm:$0xff]  ;;  %v6025_v5 = vcombine.low %v239_v57, %v243_v58 }
 0x17e   :  { %3249 = vmatprep.subr.bf16.mxu0 %v5970_v6  ;;  %3421 = vmatprep.subr.bf16.mxu1 %v5972_v7  ;;  %v6027_v6 = vcombine.low %v240_v59, %v244_v60  ;;  %v6034_v7 = vcombine.high %v247_v1, %v251_v2  ;;  %v6036_v8 = vcombine.high %v248_v3, %v252_v4  ;;  %v303_v60 = vld [vmem:[#allocation5 + $0x590] sm:$0xff] }
 0x181   :  { %3250 = vmatpush1.bf16.msra.mxu0 %v5969_v12  ;;  %3422 = vmatpush1.bf16.msra.mxu1 %v5971_v13  ;;  %v260_v12 = vld [vmem:[#allocation5 + $0x438] sm:$0xff]  ;;  %v6033_v13 = vcombine.low %v247_v1, %v251_v2 }
 0x182   :  { %3251 = vmatprep.subr.bf16.mxu0 %v5978_v14  ;;  %3423 = vmatprep.subr.bf16.mxu1 %v5980_v15  ;;  %v6035_v14 = vcombine.low %v248_v3, %v252_v4  ;;  %v6042_v15 = vcombine.high %v255_v9, %v259_v10  ;;  %v6044_v16 = vcombine.high %v256_v11, %v260_v12  ;;  %v311_v4 = vld [vmem:[#allocation5 + $0x5d0] sm:$0xff] }
 0x185   :  { %3252 = vmatpush1.bf16.msra.mxu0 %v5977_v20  ;;  %3424 = vmatpush1.bf16.msra.mxu1 %v5979_v21  ;;  %v268_v20 = vld [vmem:[#allocation5 + $0x478] sm:$0xff]  ;;  %v6041_v21 = vcombine.low %v255_v9, %v259_v10 }
 0x186   :  { %3253 = vmatprep.subr.bf16.mxu0 %v5986_v22  ;;  %3425 = vmatprep.subr.bf16.mxu1 %v5988_v23  ;;  %v6043_v22 = vcombine.low %v256_v11, %v260_v12  ;;  %v6050_v23 = vcombine.high %v263_v17, %v267_v18  ;;  %v6052_v24 = vcombine.high %v264_v19, %v268_v20  ;;  %v319_v12 = vld [vmem:[#allocation5 + $0x610] sm:$0xff] }
 0x189   :  { %3254 = vmatpush1.bf16.msra.mxu0 %v5985_v28  ;;  %3426 = vmatpush1.bf16.msra.mxu1 %v5987_v29  ;;  %v272_v28 = vld [vmem:[#allocation5 + $0x498] sm:$0xff] }
 0x18a   :  { %3255 = vmatprep.subr.bf16.mxu0 %v5994_v30  ;;  %3427 = vmatprep.subr.bf16.mxu1 %v5996_v31  ;;  %v276_v29 = vld [vmem:[#allocation5 + $0x4b8] sm:$0xff]  ;;  %v6049_v30 = vcombine.low %v263_v17, %v267_v18  ;;  %v6051_v31 = vcombine.low %v264_v19, %v268_v20  ;;  %v327_v20 = vld [vmem:[#allocation5 + $0x650] sm:$0xff] }
 0x18b   :  { %v6060_v34 = vcombine.high %v272_v28, %v276_v29  ;;  %v6059_v41 = vcombine.low %v272_v28, %v276_v29  ;;  %v335_v28 = vld [vmem:[#allocation5 + $0x690] sm:$0xff] }
 0x18c   :  { %v339_v29 = vld [vmem:[#allocation5 + $0x6b0] sm:$0xff] }
 0x18d   :  { %3256 = vmatpush1.bf16.msra.mxu0 %v5993_v37  ;;  %3428 = vmatpush1.bf16.msra.mxu1 %v5995_v38  ;;  %v7248_v37 = vld [vmem:[#allocation2 + $0xc] ss:$28 sps:$4 sm:$0xff]   ;;  %v280_v38 = vld [vmem:[#allocation5 + $0x4d8] sm:$0xff] }
 0x18e   :  { %3257 = vmatprep.subr.bf16.mxu0 %v6002_v39  ;;  %3429 = vmatprep.subr.bf16.mxu1 %v6004_v40  ;;  %v284_v39 = vld [vmem:[#allocation5 + $0x4f8] sm:$0xff]  ;;  %v6057_v40 = vcombine.low %v271_v25, %v275_v26 }
 0x18f   :  { %v6068_v43 = vcombine.high %v280_v38, %v284_v39  ;;  %v6067_v49 = vcombine.low %v280_v38, %v284_v39  ;;  %v347_v38 = vld [vmem:[#allocation5 + $0x6f0] sm:$0xff]  ;;  %v344_v39 = vld [vmem:[#allocation5 + $0x6d8] sm:$0xff] }
 0x191   :  { %3258 = vmatpush1.bf16.msra.mxu0 %v6001_v45  ;;  %3430 = vmatpush1.bf16.msra.mxu1 %v6003_v46  ;;  %v291_v45 = vld [vmem:[#allocation5 + $0x530] sm:$0xff]  ;;  %v288_v46 = vld [vmem:[#allocation5 + $0x518] sm:$0xff] }
 0x192   :  { %3259 = vmatprep.subr.bf16.mxu0 %v6010_v47  ;;  %3431 = vmatprep.subr.bf16.mxu1 %v6012_v48  ;;  %v292_v47 = vld [vmem:[#allocation5 + $0x538] sm:$0xff]  ;;  %v6065_v48 = vcombine.low %v279_v35, %v283_v36  ;;  %v6074_v50 = vcombine.high %v287_v44, %v291_v45  ;;  %v6122_v35 = vcombine.high %v335_v28, %v339_v29 }
 0x193   :  { %v6076_v51 = vcombine.high %v288_v46, %v292_v47  ;;  %v6075_v57 = vcombine.low %v288_v46, %v292_v47  ;;  %v355_v46 = vld [vmem:[#allocation5 + $0x730] sm:$0xff]  ;;  %v352_v47 = vld [vmem:[#allocation5 + $0x718] sm:$0xff] }
 0x195   :  { %3260 = vmatpush1.bf16.msra.mxu0 %v6009_v53  ;;  %3432 = vmatpush1.bf16.msra.mxu1 %v6011_v54  ;;  %v299_v53 = vld [vmem:[#allocation5 + $0x570] sm:$0xff]  ;;  %v296_v54 = vld [vmem:[#allocation5 + $0x558] sm:$0xff] }
 0x196   :  { %3261 = vmatprep.subr.bf16.mxu0 %v6018_v55  ;;  %3433 = vmatprep.subr.bf16.mxu1 %v6020_v56  ;;  %v300_v55 = vld [vmem:[#allocation5 + $0x578] sm:$0xff]  ;;  %v6073_v56 = vcombine.low %v287_v44, %v291_v45  ;;  %v6082_v58 = vcombine.high %v295_v52, %v299_v53  ;;  %v351_v45 = vld [vmem:[#allocation5 + $0x710] sm:$0xff] }
 0x197   :  { %v6084_v59 = vcombine.high %v296_v54, %v300_v55  ;;  %v6083_v1 = vcombine.low %v296_v54, %v300_v55  ;;  %v363_v54 = vld [vmem:[#allocation5 + $0x770] sm:$0xff]  ;;  %v360_v55 = vld [vmem:[#allocation5 + $0x758] sm:$0xff] }
 0x199   :  { %3262 = vmatpush1.bf16.msra.mxu0 %v6017_v61  ;;  %3434 = vmatpush1.bf16.msra.mxu1 %v6019_v62  ;;  %v307_v61 = vld [vmem:[#allocation5 + $0x5b0] sm:$0xff]  ;;  %v304_v62 = vld [vmem:[#allocation5 + $0x598] sm:$0xff] }
 0x19a   :  { %3263 = vmatprep.subr.bf16.mxu0 %v6026_v63  ;;  %3435 = vmatprep.subr.bf16.mxu1 %v6028_v0  ;;  %v308_v63 = vld [vmem:[#allocation5 + $0x5b8] sm:$0xff]  ;;  %v6081_v0 = vcombine.low %v295_v52, %v299_v53  ;;  %v6090_v2 = vcombine.high %v303_v60, %v307_v61  ;;  %v359_v53 = vld [vmem:[#allocation5 + $0x750] sm:$0xff] }
 0x19b   :  { %v6092_v3 = vcombine.high %v304_v62, %v308_v63  ;;  %v6091_v9 = vcombine.low %v304_v62, %v308_v63  ;;  %v371_v62 = vld [vmem:[#allocation5 + $0x7b0] sm:$0xff]  ;;  %v368_v63 = vld [vmem:[#allocation5 + $0x798] sm:$0xff] }
 0x19d   :  { %3264 = vmatpush1.bf16.msra.mxu0 %v6025_v5  ;;  %3436 = vmatpush1.bf16.msra.mxu1 %v6027_v6  ;;  %v315_v5 = vld [vmem:[#allocation5 + $0x5f0] sm:$0xff]  ;;  %v312_v6 = vld [vmem:[#allocation5 + $0x5d8] sm:$0xff] }
 0x19e   :  { %3265 = vmatprep.subr.bf16.mxu0 %v6034_v7  ;;  %3437 = vmatprep.subr.bf16.mxu1 %v6036_v8  ;;  %v316_v7 = vld [vmem:[#allocation5 + $0x5f8] sm:$0xff]  ;;  %v6089_v8 = vcombine.low %v303_v60, %v307_v61  ;;  %v6098_v10 = vcombine.high %v311_v4, %v315_v5  ;;  %v367_v61 = vld [vmem:[#allocation5 + $0x790] sm:$0xff] }
 0x19f   :  { %v6100_v11 = vcombine.high %v312_v6, %v316_v7  ;;  %v6099_v17 = vcombine.low %v312_v6, %v316_v7  ;;  %v379_v6 = vld [vmem:[#allocation5 + $0x7f0] sm:$0xff]  ;;  %v376_v7 = vld [vmem:[#allocation5 + $0x7d8] sm:$0xff] }
 0x1a1   :  { %3266 = vmatpush1.bf16.msra.mxu0 %v6033_v13  ;;  %3438 = vmatpush1.bf16.msra.mxu1 %v6035_v14  ;;  %v323_v13 = vld [vmem:[#allocation5 + $0x630] sm:$0xff]  ;;  %v320_v14 = vld [vmem:[#allocation5 + $0x618] sm:$0xff] }
 0x1a2   :  { %3278 = vmatprep.subr.bf16.mxu0 %v6042_v15  ;;  %3450 = vmatprep.subr.bf16.mxu1 %v6044_v16  ;;  %v324_v15 = vld [vmem:[#allocation5 + $0x638] sm:$0xff]  ;;  %v6097_v16 = vcombine.low %v311_v4, %v315_v5  ;;  %v6106_v18 = vcombine.high %v319_v12, %v323_v13  ;;  %v375_v5 = vld [vmem:[#allocation5 + $0x7d0] sm:$0xff] }
 0x1a3   :  { %v6108_v19 = vcombine.high %v320_v14, %v324_v15  ;;  %v6107_v25 = vcombine.low %v320_v14, %v324_v15  ;;  %v387_v14 = vld [vmem:[#allocation5 + $0x830] sm:$0xff]  ;;  %v384_v15 = vld [vmem:[#allocation5 + $0x818] sm:$0xff] }
 0x1a4   :  { %3268 = vmatmul.mubr.bf16.vlgmr.msra.gmra.mrb[4].mxu0 %v7247_v27  ;;  %3440 = vmatmul.mubr.bf16.vlgmr.msra.gmra.mrb[4].mxu1 %v7247_v27 }
 0x1a5   :  { %3279 = vmatpush1.bf16.msra.mxu0 %v6041_v21  ;;  %3451 = vmatpush1.bf16.msra.mxu1 %v6043_v22  ;;  %v331_v21 = vld [vmem:[#allocation5 + $0x670] sm:$0xff]  ;;  %v328_v22 = vld [vmem:[#allocation5 + $0x658] sm:$0xff] }
 0x1a6   :  { %3280 = vmatprep.subr.bf16.mxu0 %v6050_v23  ;;  %3452 = vmatprep.subr.bf16.mxu1 %v6052_v24  ;;  %v332_v23 = vld [vmem:[#allocation5 + $0x678] sm:$0xff]  ;;  %v6105_v24 = vcombine.low %v319_v12, %v323_v13  ;;  %v6114_v26 = vcombine.high %v327_v20, %v331_v21  ;;  %v383_v13 = vld [vmem:[#allocation5 + $0x810] sm:$0xff] }
 0x1a7   :  { %3310 = vmatprep.mubr.bf16.mxu0 %v7248_v37  ;;  %3482 = vmatprep.mubr.bf16.mxu1 %v7248_v37  ;;  %v6116_v27 = vcombine.high %v328_v22, %v332_v23  ;;  %v343_v37 = vld [vmem:[#allocation5 + $0x6d0] sm:$0xff] }
 0x1a9   :  { %3281 = vmatpush1.bf16.msra.mxu0 %v6049_v30  ;;  %3453 = vmatpush1.bf16.msra.mxu1 %v6051_v31  ;;  %v336_v30 = vld [vmem:[#allocation5 + $0x698] sm:$0xff] }
 0x1aa   :  { %3282 = vmatprep.subr.bf16.mxu0 %v6058_v33  ;;  %3454 = vmatprep.subr.bf16.mxu1 %v6060_v34  ;;  %v340_v31 = vld [vmem:[#allocation5 + $0x6b8] sm:$0xff]  ;;  %v6113_v33 = vcombine.low %v327_v20, %v331_v21  ;;  %v6115_v34 = vcombine.low %v328_v22, %v332_v23  ;;  %v391_v21 = vld [vmem:[#allocation5 + $0x850] sm:$0xff] }
 0x1ab   :  { %v6124_v36 = vcombine.high %v336_v30, %v340_v31  ;;  %v395_v22 = vld [vmem:[#allocation5 + $0x870] sm:$0xff]  ;;  %v392_v23 = vld [vmem:[#allocation5 + $0x858] sm:$0xff] }
 0x1ad   :  { %3283 = vmatpush1.bf16.msra.mxu0 %v6057_v40  ;;  %3455 = vmatpush1.bf16.msra.mxu1 %v6059_v41  ;;  %v348_v40 = vld [vmem:[#allocation5 + $0x6f8] sm:$0xff]  ;;  %v6121_v41 = vcombine.low %v335_v28, %v339_v29  ;;  %v399_v29 = vld [vmem:[#allocation5 + $0x890] sm:$0xff] }
 0x1ae   :  { %3284 = vmatprep.subr.bf16.mxu0 %v6066_v42  ;;  %3456 = vmatprep.subr.bf16.mxu1 %v6068_v43  ;;  %v6123_v42 = vcombine.low %v336_v30, %v340_v31  ;;  %v6130_v43 = vcombine.high %v343_v37, %v347_v38  ;;  %v6132_v44 = vcombine.high %v344_v39, %v348_v40  ;;  %v403_v30 = vld [vmem:[#allocation5 + $0x8b0] sm:$0xff] }
 0x1af   :  { %v7249_v31 = vld [vmem:[#allocation2 + $0x8] ss:$28 sps:$4 sm:$0xff]  }
 0x1b1   :  { %3285 = vmatpush1.bf16.msra.mxu0 %v6065_v48  ;;  %3457 = vmatpush1.bf16.msra.mxu1 %v6067_v49  ;;  %v356_v48 = vld [vmem:[#allocation5 + $0x738] sm:$0xff]  ;;  %v6129_v49 = vcombine.low %v343_v37, %v347_v38  ;;  %v6186_v37 = vcombine.high %v399_v29, %v403_v30 }
 0x1b2   :  { %3286 = vmatprep.subr.bf16.mxu0 %v6074_v50  ;;  %3458 = vmatprep.subr.bf16.mxu1 %v6076_v51  ;;  %v6131_v50 = vcombine.low %v344_v39, %v348_v40  ;;  %v6138_v51 = vcombine.high %v351_v45, %v355_v46  ;;  %v6140_v52 = vcombine.high %v352_v47, %v356_v48  ;;  %v407_v39 = vld [vmem:[#allocation5 + $0x8d0] sm:$0xff] }
 0x1b3   :  { %v411_v40 = vld [vmem:[#allocation5 + $0x8f0] sm:$0xff] }
 0x1b5   :  { %3287 = vmatpush1.bf16.msra.mxu0 %v6073_v56  ;;  %3459 = vmatpush1.bf16.msra.mxu1 %v6075_v57  ;;  %v364_v56 = vld [vmem:[#allocation5 + $0x778] sm:$0xff]  ;;  %v6137_v57 = vcombine.low %v351_v45, %v355_v46  ;;  %v6194_v46 = vcombine.high %v407_v39, %v411_v40 }
 0x1b6   :  { %3288 = vmatprep.subr.bf16.mxu0 %v6082_v58  ;;  %3460 = vmatprep.subr.bf16.mxu1 %v6084_v59  ;;  %v6139_v58 = vcombine.low %v352_v47, %v356_v48  ;;  %v6146_v59 = vcombine.high %v359_v53, %v363_v54  ;;  %v6148_v60 = vcombine.high %v360_v55, %v364_v56  ;;  %v415_v48 = vld [vmem:[#allocation5 + $0x910] sm:$0xff] }
 0x1b9   :  { %3289 = vmatpush1.bf16.msra.mxu0 %v6081_v0  ;;  %3461 = vmatpush1.bf16.msra.mxu1 %v6083_v1  ;;  %v372_v0 = vld [vmem:[#allocation5 + $0x7b8] sm:$0xff]  ;;  %v6145_v1 = vcombine.low %v359_v53, %v363_v54 }
 0x1ba   :  { %3290 = vmatprep.subr.bf16.mxu0 %v6090_v2  ;;  %3462 = vmatprep.subr.bf16.mxu1 %v6092_v3  ;;  %v6147_v2 = vcombine.low %v360_v55, %v364_v56  ;;  %v6154_v3 = vcombine.high %v367_v61, %v371_v62  ;;  %v6156_v4 = vcombine.high %v368_v63, %v372_v0  ;;  %v423_v56 = vld [vmem:[#allocation5 + $0x950] sm:$0xff] }
 0x1bd   :  { %3291 = vmatpush1.bf16.msra.mxu0 %v6089_v8  ;;  %3463 = vmatpush1.bf16.msra.mxu1 %v6091_v9  ;;  %v380_v8 = vld [vmem:[#allocation5 + $0x7f8] sm:$0xff]  ;;  %v6153_v9 = vcombine.low %v367_v61, %v371_v62 }
 0x1be   :  { %3292 = vmatprep.subr.bf16.mxu0 %v6098_v10  ;;  %3464 = vmatprep.subr.bf16.mxu1 %v6100_v11  ;;  %v6155_v10 = vcombine.low %v368_v63, %v372_v0  ;;  %v6162_v11 = vcombine.high %v375_v5, %v379_v6  ;;  %v6164_v12 = vcombine.high %v376_v7, %v380_v8  ;;  %v431_v0 = vld [vmem:[#allocation5 + $0x990] sm:$0xff] }
 0x1c1   :  { %3293 = vmatpush1.bf16.msra.mxu0 %v6097_v16  ;;  %3465 = vmatpush1.bf16.msra.mxu1 %v6099_v17  ;;  %v388_v16 = vld [vmem:[#allocation5 + $0x838] sm:$0xff]  ;;  %v6161_v17 = vcombine.low %v375_v5, %v379_v6 }
 0x1c2   :  { %3294 = vmatprep.subr.bf16.mxu0 %v6106_v18  ;;  %3466 = vmatprep.subr.bf16.mxu1 %v6108_v19  ;;  %v6163_v18 = vcombine.low %v376_v7, %v380_v8  ;;  %v6170_v19 = vcombine.high %v383_v13, %v387_v14  ;;  %v6172_v20 = vcombine.high %v384_v15, %v388_v16  ;;  %v439_v8 = vld [vmem:[#allocation5 + $0x9d0] sm:$0xff] }
 0x1c5   :  { %3295 = vmatpush1.bf16.msra.mxu0 %v6105_v24  ;;  %3467 = vmatpush1.bf16.msra.mxu1 %v6107_v25  ;;  %v396_v24 = vld [vmem:[#allocation5 + $0x878] sm:$0xff]  ;;  %v6169_v25 = vcombine.low %v383_v13, %v387_v14 }
 0x1c6   :  { %3296 = vmatprep.subr.bf16.mxu0 %v6114_v26  ;;  %3468 = vmatprep.subr.bf16.mxu1 %v6116_v27  ;;  %v6171_v26 = vcombine.low %v384_v15, %v388_v16  ;;  %v6178_v27 = vcombine.high %v391_v21, %v395_v22  ;;  %v6180_v28 = vcombine.high %v392_v23, %v396_v24  ;;  %v447_v16 = vld [vmem:[#allocation5 + $0xa10] sm:$0xff] }
 0x1c9   :  { %3297 = vmatpush1.bf16.msra.mxu0 %v6113_v33  ;;  %3469 = vmatpush1.bf16.msra.mxu1 %v6115_v34  ;;  %v400_v33 = vld [vmem:[#allocation5 + $0x898] sm:$0xff] }
 0x1ca   :  { %3298 = vmatprep.subr.bf16.mxu0 %v6122_v35  ;;  %3470 = vmatprep.subr.bf16.mxu1 %v6124_v36  ;;  %v404_v34 = vld [vmem:[#allocation5 + $0x8b8] sm:$0xff]  ;;  %v6177_v35 = vcombine.low %v391_v21, %v395_v22  ;;  %v6179_v36 = vcombine.low %v392_v23, %v396_v24  ;;  %v455_v24 = vld [vmem:[#allocation5 + $0xa50] sm:$0xff] }
 0x1cb   :  { %v6188_v38 = vcombine.high %v400_v33, %v404_v34  ;;  %v6187_v45 = vcombine.low %v400_v33, %v404_v34  ;;  %v463_v33 = vld [vmem:[#allocation5 + $0xa90] sm:$0xff] }
 0x1cc   :  { %v467_v34 = vld [vmem:[#allocation5 + $0xab0] sm:$0xff] }
 0x1cd   :  { %3299 = vmatpush1.bf16.msra.mxu0 %v6121_v41  ;;  %3471 = vmatpush1.bf16.msra.mxu1 %v6123_v42  ;;  %v7250_v41 = vld [vmem:[#allocation2 + $0x14] ss:$28 sps:$4 sm:$0xff]  }
 0x1ce   :  { %3300 = vmatprep.subr.bf16.mxu0 %v6130_v43  ;;  %3472 = vmatprep.subr.bf16.mxu1 %v6132_v44  ;;  %v408_v42 = vld [vmem:[#allocation5 + $0x8d8] sm:$0xff]  ;;  %v6185_v44 = vcombine.low %v399_v29, %v403_v30 }
 0x1cf   :  { %v412_v43 = vld [vmem:[#allocation5 + $0x8f8] sm:$0xff] }
 0x1d0   :  { %v6196_v47 = vcombine.high %v408_v42, %v412_v43  ;;  %v6195_v53 = vcombine.low %v408_v42, %v412_v43  ;;  %v475_v42 = vld [vmem:[#allocation5 + $0xaf0] sm:$0xff]  ;;  %v472_v43 = vld [vmem:[#allocation5 + $0xad8] sm:$0xff] }
 0x1d1   :  { %3301 = vmatpush1.bf16.msra.mxu0 %v6129_v49  ;;  %3473 = vmatpush1.bf16.msra.mxu1 %v6131_v50  ;;  %v419_v49 = vld [vmem:[#allocation5 + $0x930] sm:$0xff]  ;;  %v416_v50 = vld [vmem:[#allocation5 + $0x918] sm:$0xff] }
 0x1d2   :  { %3302 = vmatprep.subr.bf16.mxu0 %v6138_v51  ;;  %3474 = vmatprep.subr.bf16.mxu1 %v6140_v52  ;;  %v420_v51 = vld [vmem:[#allocation5 + $0x938] sm:$0xff]  ;;  %v6193_v52 = vcombine.low %v407_v39, %v411_v40  ;;  %v6202_v54 = vcombine.high %v415_v48, %v419_v49  ;;  %v6250_v39 = vcombine.high %v463_v33, %v467_v34 }
 0x1d3   :  { %v6204_v55 = vcombine.high %v416_v50, %v420_v51  ;;  %v6203_v61 = vcombine.low %v416_v50, %v420_v51  ;;  %v483_v50 = vld [vmem:[#allocation5 + $0xb30] sm:$0xff]  ;;  %v480_v51 = vld [vmem:[#allocation5 + $0xb18] sm:$0xff] }
 0x1d5   :  { %3303 = vmatpush1.bf16.msra.mxu0 %v6137_v57  ;;  %3475 = vmatpush1.bf16.msra.mxu1 %v6139_v58  ;;  %v427_v57 = vld [vmem:[#allocation5 + $0x970] sm:$0xff]  ;;  %v424_v58 = vld [vmem:[#allocation5 + $0x958] sm:$0xff] }
 0x1d6   :  { %3304 = vmatprep.subr.bf16.mxu0 %v6146_v59  ;;  %3476 = vmatprep.subr.bf16.mxu1 %v6148_v60  ;;  %v428_v59 = vld [vmem:[#allocation5 + $0x978] sm:$0xff]  ;;  %v6201_v60 = vcombine.low %v415_v48, %v419_v49  ;;  %v6210_v62 = vcombine.high %v423_v56, %v427_v57  ;;  %v479_v49 = vld [vmem:[#allocation5 + $0xb10] sm:$0xff] }
 0x1d7   :  { %v6212_v63 = vcombine.high %v424_v58, %v428_v59  ;;  %v6211_v5 = vcombine.low %v424_v58, %v428_v59  ;;  %v491_v58 = vld [vmem:[#allocation5 + $0xb70] sm:$0xff]  ;;  %v488_v59 = vld [vmem:[#allocation5 + $0xb58] sm:$0xff] }
 0x1d9   :  { %3305 = vmatpush1.bf16.msra.mxu0 %v6145_v1  ;;  %3477 = vmatpush1.bf16.msra.mxu1 %v6147_v2  ;;  %v435_v1 = vld [vmem:[#allocation5 + $0x9b0] sm:$0xff]  ;;  %v432_v2 = vld [vmem:[#allocation5 + $0x998] sm:$0xff] }
 0x1da   :  { %3306 = vmatprep.subr.bf16.mxu0 %v6154_v3  ;;  %3478 = vmatprep.subr.bf16.mxu1 %v6156_v4  ;;  %v436_v3 = vld [vmem:[#allocation5 + $0x9b8] sm:$0xff]  ;;  %v6209_v4 = vcombine.low %v423_v56, %v427_v57  ;;  %v6218_v6 = vcombine.high %v431_v0, %v435_v1  ;;  %v487_v57 = vld [vmem:[#allocation5 + $0xb50] sm:$0xff] }
 0x1db   :  { %v6220_v7 = vcombine.high %v432_v2, %v436_v3  ;;  %v6219_v13 = vcombine.low %v432_v2, %v436_v3  ;;  %v499_v2 = vld [vmem:[#allocation5 + $0xbb0] sm:$0xff]  ;;  %v496_v3 = vld [vmem:[#allocation5 + $0xb98] sm:$0xff] }
 0x1dd   :  { %3307 = vmatpush1.bf16.msra.mxu0 %v6153_v9  ;;  %3479 = vmatpush1.bf16.msra.mxu1 %v6155_v10  ;;  %v443_v9 = vld [vmem:[#allocation5 + $0x9f0] sm:$0xff]  ;;  %v440_v10 = vld [vmem:[#allocation5 + $0x9d8] sm:$0xff] }
 0x1de   :  { %3308 = vmatprep.subr.bf16.mxu0 %v6162_v11  ;;  %3480 = vmatprep.subr.bf16.mxu1 %v6164_v12  ;;  %v444_v11 = vld [vmem:[#allocation5 + $0x9f8] sm:$0xff]  ;;  %v6217_v12 = vcombine.low %v431_v0, %v435_v1  ;;  %v6226_v14 = vcombine.high %v439_v8, %v443_v9  ;;  %v495_v1 = vld [vmem:[#allocation5 + $0xb90] sm:$0xff] }
 0x1df   :  { %v6228_v15 = vcombine.high %v440_v10, %v444_v11  ;;  %v6227_v21 = vcombine.low %v440_v10, %v444_v11  ;;  %v507_v10 = vld [vmem:[#allocation5 + $0xbf0] sm:$0xff]  ;;  %v504_v11 = vld [vmem:[#allocation5 + $0xbd8] sm:$0xff] }
 0x1e1   :  { %3309 = vmatpush1.bf16.msra.mxu0 %v6161_v17  ;;  %3481 = vmatpush1.bf16.msra.mxu1 %v6163_v18  ;;  %v451_v17 = vld [vmem:[#allocation5 + $0xa30] sm:$0xff]  ;;  %v448_v18 = vld [vmem:[#allocation5 + $0xa18] sm:$0xff] }
 0x1e2   :  { %3321 = vmatprep.subr.bf16.mxu0 %v6170_v19  ;;  %3493 = vmatprep.subr.bf16.mxu1 %v6172_v20  ;;  %v452_v19 = vld [vmem:[#allocation5 + $0xa38] sm:$0xff]  ;;  %v6225_v20 = vcombine.low %v439_v8, %v443_v9  ;;  %v6234_v22 = vcombine.high %v447_v16, %v451_v17  ;;  %v503_v9 = vld [vmem:[#allocation5 + $0xbd0] sm:$0xff] }
 0x1e3   :  { %v6236_v23 = vcombine.high %v448_v18, %v452_v19  ;;  %v6235_v29 = vcombine.low %v448_v18, %v452_v19  ;;  %v515_v18 = vld [vmem:[#allocation5 + $0xc30] sm:$0xff]  ;;  %v512_v19 = vld [vmem:[#allocation5 + $0xc18] sm:$0xff] }
 0x1e4   :  { %3311 = vmatmul.mubr.bf16.vlgmr.msra.gmra.mrb[4].mxu0 %v7249_v31  ;;  %3483 = vmatmul.mubr.bf16.vlgmr.msra.gmra.mrb[4].mxu1 %v7249_v31 }
 0x1e5   :  { %3322 = vmatpush1.bf16.msra.mxu0 %v6169_v25  ;;  %3494 = vmatpush1.bf16.msra.mxu1 %v6171_v26  ;;  %v459_v25 = vld [vmem:[#allocation5 + $0xa70] sm:$0xff]  ;;  %v456_v26 = vld [vmem:[#allocation5 + $0xa58] sm:$0xff] }
 0x1e6   :  { %3323 = vmatprep.subr.bf16.mxu0 %v6178_v27  ;;  %3495 = vmatprep.subr.bf16.mxu1 %v6180_v28  ;;  %v460_v27 = vld [vmem:[#allocation5 + $0xa78] sm:$0xff]  ;;  %v6233_v28 = vcombine.low %v447_v16, %v451_v17  ;;  %v6242_v30 = vcombine.high %v455_v24, %v459_v25  ;;  %v511_v17 = vld [vmem:[#allocation5 + $0xc10] sm:$0xff] }
 0x1e7   :  { %3353 = vmatprep.mubr.bf16.mxu0 %v7250_v41  ;;  %3525 = vmatprep.mubr.bf16.mxu1 %v7250_v41  ;;  %v6244_v31 = vcombine.high %v456_v26, %v460_v27  ;;  %v471_v41 = vld [vmem:[#allocation5 + $0xad0] sm:$0xff] }
 0x1e9   :  { %3324 = vmatpush1.bf16.msra.mxu0 %v6177_v35  ;;  %3496 = vmatpush1.bf16.msra.mxu1 %v6179_v36  ;;  %v464_v35 = vld [vmem:[#allocation5 + $0xa98] sm:$0xff] }
 0x1ea   :  { %3325 = vmatprep.subr.bf16.mxu0 %v6186_v37  ;;  %3497 = vmatprep.subr.bf16.mxu1 %v6188_v38  ;;  %v468_v36 = vld [vmem:[#allocation5 + $0xab8] sm:$0xff]  ;;  %v6241_v37 = vcombine.low %v455_v24, %v459_v25  ;;  %v6243_v38 = vcombine.low %v456_v26, %v460_v27  ;;  %v519_v25 = vld [vmem:[#allocation5 + $0xc50] sm:$0xff] }
 0x1eb   :  { %v6252_v40 = vcombine.high %v464_v35, %v468_v36  ;;  %v523_v26 = vld [vmem:[#allocation5 + $0xc70] sm:$0xff]  ;;  %v520_v27 = vld [vmem:[#allocation5 + $0xc58] sm:$0xff] }
 0x1ed   :  { %3326 = vmatpush1.bf16.msra.mxu0 %v6185_v44  ;;  %3498 = vmatpush1.bf16.msra.mxu1 %v6187_v45  ;;  %v476_v44 = vld [vmem:[#allocation5 + $0xaf8] sm:$0xff]  ;;  %v6249_v45 = vcombine.low %v463_v33, %v467_v34  ;;  %v527_v34 = vld [vmem:[#allocation5 + $0xc90] sm:$0xff] }
 0x1ee   :  { %3327 = vmatprep.subr.bf16.mxu0 %v6194_v46  ;;  %3499 = vmatprep.subr.bf16.mxu1 %v6196_v47  ;;  %v6251_v46 = vcombine.low %v464_v35, %v468_v36  ;;  %v6258_v47 = vcombine.high %v471_v41, %v475_v42  ;;  %v6260_v48 = vcombine.high %v472_v43, %v476_v44  ;;  %v531_v35 = vld [vmem:[#allocation5 + $0xcb0] sm:$0xff] }
 0x1ef   :  { %v7251_v36 = vld [vmem:[#allocation2 + $0x10] ss:$28 sps:$4 sm:$0xff]  }
 0x1f1   :  { %3328 = vmatpush1.bf16.msra.mxu0 %v6193_v52  ;;  %3500 = vmatpush1.bf16.msra.mxu1 %v6195_v53  ;;  %v484_v52 = vld [vmem:[#allocation5 + $0xb38] sm:$0xff]  ;;  %v6257_v53 = vcombine.low %v471_v41, %v475_v42  ;;  %v6314_v41 = vcombine.high %v527_v34, %v531_v35 }
 0x1f2   :  { %3329 = vmatprep.subr.bf16.mxu0 %v6202_v54  ;;  %3501 = vmatprep.subr.bf16.mxu1 %v6204_v55  ;;  %v6259_v54 = vcombine.low %v472_v43, %v476_v44  ;;  %v6266_v55 = vcombine.high %v479_v49, %v483_v50  ;;  %v6268_v56 = vcombine.high %v480_v51, %v484_v52  ;;  %v535_v43 = vld [vmem:[#allocation5 + $0xcd0] sm:$0xff] }
 0x1f3   :  { %v539_v44 = vld [vmem:[#allocation5 + $0xcf0] sm:$0xff] }
 0x1f5   :  { %3330 = vmatpush1.bf16.msra.mxu0 %v6201_v60  ;;  %3502 = vmatpush1.bf16.msra.mxu1 %v6203_v61  ;;  %v492_v60 = vld [vmem:[#allocation5 + $0xb78] sm:$0xff]  ;;  %v6265_v61 = vcombine.low %v479_v49, %v483_v50  ;;  %v6322_v50 = vcombine.high %v535_v43, %v539_v44 }
 0x1f6   :  { %3331 = vmatprep.subr.bf16.mxu0 %v6210_v62  ;;  %3503 = vmatprep.subr.bf16.mxu1 %v6212_v63  ;;  %v6267_v62 = vcombine.low %v480_v51, %v484_v52  ;;  %v6274_v63 = vcombine.high %v487_v57, %v491_v58  ;;  %v6276_v0 = vcombine.high %v488_v59, %v492_v60  ;;  %v543_v52 = vld [vmem:[#allocation5 + $0xd10] sm:$0xff] }
 0x1f9   :  { %3332 = vmatpush1.bf16.msra.mxu0 %v6209_v4  ;;  %3504 = vmatpush1.bf16.msra.mxu1 %v6211_v5  ;;  %v500_v4 = vld [vmem:[#allocation5 + $0xbb8] sm:$0xff]  ;;  %v6273_v5 = vcombine.low %v487_v57, %v491_v58  ;;  %v6321_v57 = vcombine.low %v535_v43, %v539_v44 }
 0x1fa   :  { %3333 = vmatprep.subr.bf16.mxu0 %v6218_v6  ;;  %3505 = vmatprep.subr.bf16.mxu1 %v6220_v7  ;;  %v6275_v6 = vcombine.low %v488_v59, %v492_v60  ;;  %v6282_v7 = vcombine.high %v495_v1, %v499_v2  ;;  %v6284_v8 = vcombine.high %v496_v3, %v500_v4  ;;  %v551_v60 = vld [vmem:[#allocation5 + $0xd50] sm:$0xff] }
 0x1fd   :  { %3334 = vmatpush1.bf16.msra.mxu0 %v6217_v12  ;;  %3506 = vmatpush1.bf16.msra.mxu1 %v6219_v13  ;;  %v508_v12 = vld [vmem:[#allocation5 + $0xbf8] sm:$0xff]  ;;  %v6281_v13 = vcombine.low %v495_v1, %v499_v2  ;;  %v7590_v2 = vld [vmem:[#allocation7] sm:$0xff] }
 0x1fe   :  { %3335 = vmatprep.subr.bf16.mxu0 %v6226_v14  ;;  %3507 = vmatprep.subr.bf16.mxu1 %v6228_v15  ;;  %v6283_v14 = vcombine.low %v496_v3, %v500_v4  ;;  %v6290_v15 = vcombine.high %v503_v9, %v507_v10  ;;  %v6292_v16 = vcombine.high %v504_v11, %v508_v12 }
 0x201   :  { %3336 = vmatpush1.bf16.msra.mxu0 %v6225_v20  ;;  %3508 = vmatpush1.bf16.msra.mxu1 %v6227_v21  ;;  %v516_v20 = vld [vmem:[#allocation5 + $0xc38] sm:$0xff]  ;;  %v6289_v21 = vcombine.low %v503_v9, %v507_v10  ;;  %v559_v9 = vld [vmem:[#allocation5 + $0xd90] sm:$0xff] }
 0x202   :  { %3337 = vmatprep.subr.bf16.mxu0 %v6234_v22  ;;  %3509 = vmatprep.subr.bf16.mxu1 %v6236_v23  ;;  %v6291_v22 = vcombine.low %v504_v11, %v508_v12  ;;  %v6298_v23 = vcombine.high %v511_v17, %v515_v18  ;;  %v6300_v24 = vcombine.high %v512_v19, %v516_v20  ;;  %v563_v10 = vld [vmem:[#allocation5 + $0xdb0] sm:$0xff]  ;;  %v560_v12 = vld [vmem:[#allocation5 + $0xd98] sm:$0xff] }
 0x205   :  { %3338 = vmatpush1.bf16.msra.mxu0 %v6233_v28  ;;  %3510 = vmatpush1.bf16.msra.mxu1 %v6235_v29  ;;  %v524_v28 = vld [vmem:[#allocation5 + $0xc78] sm:$0xff]  ;;  %v6297_v29 = vcombine.low %v511_v17, %v515_v18 }
 0x206   :  { %3339 = vmatprep.subr.bf16.mxu0 %v6242_v30  ;;  %3511 = vmatprep.subr.bf16.mxu1 %v6244_v31  ;;  %v6299_v30 = vcombine.low %v512_v19, %v516_v20  ;;  %v6306_v31 = vcombine.high %v519_v25, %v523_v26  ;;  %v6308_v33 = vcombine.high %v520_v27, %v524_v28 }
 0x207   :  { %v6346_v19 = vcombine.high %v559_v9, %v563_v10 }
 0x209   :  { %3340 = vmatpush1.bf16.msra.mxu0 %v6241_v37  ;;  %3512 = vmatpush1.bf16.msra.mxu1 %v6243_v38  ;;  %v528_v37 = vld [vmem:[#allocation5 + $0xc98] sm:$0xff] }
 0x20a   :  { %3341 = vmatprep.subr.bf16.mxu0 %v6250_v39  ;;  %3513 = vmatprep.subr.bf16.mxu1 %v6252_v40  ;;  %v532_v38 = vld [vmem:[#allocation5 + $0xcb8] sm:$0xff]  ;;  %v6305_v39 = vcombine.low %v519_v25, %v523_v26  ;;  %v6307_v40 = vcombine.low %v520_v27, %v524_v28 }
 0x20b   :  { %v6316_v42 = vcombine.high %v528_v37, %v532_v38  ;;  %v6315_v49 = vcombine.low %v528_v37, %v532_v38  ;;  %v568_v27 = vld [vmem:[#allocation5 + $0xdd8] sm:$0xff] }
 0x20c   :  { %v572_v28 = vld [vmem:[#allocation5 + $0xdf8] sm:$0xff] }
 0x20d   :  { %3342 = vmatpush1.bf16.msra.mxu0 %v6249_v45  ;;  %3514 = vmatpush1.bf16.msra.mxu1 %v6251_v46  ;;  %v536_v45 = vld [vmem:[#allocation5 + $0xcd8] sm:$0xff]  ;;  %v6356_v44 = vcombine.high %v568_v27, %v572_v28 }
 0x20e   :  { %3343 = vmatprep.subr.bf16.mxu0 %v6258_v47  ;;  %3515 = vmatprep.subr.bf16.mxu1 %v6260_v48  ;;  %v540_v46 = vld [vmem:[#allocation5 + $0xcf8] sm:$0xff]  ;;  %v575_v47 = vlaneseq  ;;  %v6313_v48 = vcombine.low %v527_v34, %v531_v35  ;;  %v6345_v34 = vcombine.low %v559_v9, %v563_v10  ;;  %v6831_v9 = vld [vmem:[#allocation8 + $0x28] ss:$16 sps:$4 sm:$0xff]  }
 0x20f   :  { %v6324_v51 = vcombine.high %v536_v45, %v540_v46  ;;  %v6323_v58 = vcombine.low %v536_v45, %v540_v46  ;;  %v6836_v10 = vld [vmem:[#allocation8 + $0x44] ss:$16 sps:$4 sm:$0xff]  }
 0x211   :  { %3344 = vmatpush1.bf16.msra.mxu0 %v6257_v53  ;;  %3516 = vmatpush1.bf16.msra.mxu1 %v6259_v54  ;;  %v547_v53 = vld [vmem:[#allocation5 + $0xd30] sm:$0xff]  ;;  %v544_v54 = vld [vmem:[#allocation5 + $0xd18] sm:$0xff] }
 0x212   :  { %3345 = vmatprep.subr.bf16.mxu0 %v6266_v55  ;;  %3517 = vmatprep.subr.bf16.mxu1 %v6268_v56  ;;  %v548_v55 = vld [vmem:[#allocation5 + $0xd38] sm:$0xff]  ;;  %v7587_v56 = vshrl.u32 %v575_v47, 7  ;;  %v6329_v1 = vcombine.low %v543_v52, %v547_v53 }
 0x213   :  { %v6332_v59 = vcombine.high %v544_v54, %v548_v55 }
 0x214   :  { %v585_v3 = vsub.s32 2, %v7587_v56  ;;  %v581_v4 = vsub.s32 1, %v7587_v56 }
 0x215   :  { %3346 = vmatpush1.bf16.msra.mxu0 %v6265_v61  ;;  %3518 = vmatpush1.bf16.msra.mxu1 %v6267_v62  ;;  %v555_v61 = vld [vmem:[#allocation5 + $0xd70] sm:$0xff]  ;;  %v577_v62 = vsub.s32 0, %v7587_v56 }
 0x216   :  { %3347 = vmatprep.subr.bf16.mxu0 %v6274_v63  ;;  %3519 = vmatprep.subr.bf16.mxu1 %v6276_v0  ;;  %v552_v63 = vld [vmem:[#allocation5 + $0xd58] sm:$0xff] }
 0x217   :  { %v556_v0 = vld [vmem:[#allocation5 + $0xd78] sm:$0xff]  ;;  %v578_v11 = vrot.slane %v7590_v2, %v577_v62 }
 0x218   :  { %v6339_v18 = vcombine.low %v552_v63, %v556_v0 }
 0x219   :  { %3348 = vmatpush1.bf16.msra.mxu0 %v6273_v5  ;;  %3520 = vmatpush1.bf16.msra.mxu1 %v6275_v6  ;;  %v6331_v5 = vcombine.low %v544_v54, %v548_v55  ;;  %v589_v6 = vsub.s32 3, %v7587_v56 }
 0x21a   :  { %3349 = vmatprep.subr.bf16.mxu0 %v6282_v7  ;;  %3521 = vmatprep.subr.bf16.mxu1 %v6284_v8  ;;  %v6338_v7 = vcombine.high %v551_v60, %v555_v61  ;;  %v6340_v8 = vcombine.high %v552_v63, %v556_v0  ;;  %v6822_v63 = vld [vmem:[#allocation8] ss:$16 sps:$4 sm:$0xff]   ;;  %v6825_v0 = vld [vmem:[#allocation8 + $0x8] ss:$16 sps:$4 sm:$0xff]  }
 0x21b   :  { %v590_v17 = vrot.slane %v7590_v2, %v589_v6 }
 0x21d   :  { %3350 = vmatpush1.bf16.msra.mxu0 %v6281_v13  ;;  %3522 = vmatpush1.bf16.msra.mxu1 %v6283_v14  ;;  %v564_v13 = vld [vmem:[#allocation5 + $0xdb8] sm:$0xff]  ;;  %v586_v14 = vrot.slane %v7590_v2, %v585_v3 }
 0x21e   :  { %3351 = vmatprep.subr.bf16.mxu0 %v6290_v15  ;;  %3523 = vmatprep.subr.bf16.mxu1 %v6292_v16  ;;  %v582_v15 = vrot.slane %v7590_v2, %v581_v4  ;;  %v6337_v16 = vcombine.low %v551_v60, %v555_v61  ;;  %v6347_v35 = vcombine.low %v560_v12, %v564_v13  ;;  %v6827_v60 = vld [vmem:[#allocation8 + $0xc] ss:$16 sps:$4 sm:$0xff]  }
 0x221   :  { %3352 = vmatpush1.bf16.msra.mxu0 %v6289_v21  ;;  %3524 = vmatpush1.bf16.msra.mxu1 %v6291_v22  ;;  %v6348_v21 = vcombine.high %v560_v12, %v564_v13  ;;  %v567_v22 = vld [vmem:[#allocation5 + $0xdd0] sm:$0xff]  ;;  %v6834_v12 = vld [vmem:[#allocation8 + $0x40] ss:$16 sps:$4 sm:$0xff]  }
 0x222   :  { %3364 = vmatprep.subr.bf16.mxu0 %v6298_v23  ;;  %3536 = vmatprep.subr.bf16.mxu1 %v6300_v24  ;;  %v571_v23 = vld [vmem:[#allocation5 + $0xdf0] sm:$0xff] }
 0x223   :  { %v6837_v13 = vld [vmem:[#allocation8 + $0x48] ss:$16 sps:$4 sm:$0xff]  }
 0x224   :  { %3354 = vmatmul.mubr.bf16.vlgmr.msra.gmra.mrb[4].mxu0 %v7251_v36  ;;  %3526 = vmatmul.mubr.bf16.vlgmr.msra.gmra.mrb[4].mxu1 %v7251_v36 }
 0x225   :  { %3365 = vmatpush1.bf16.msra.mxu0 %v6297_v29  ;;  %3537 = vmatpush1.bf16.msra.mxu1 %v6299_v30 }
 0x226   :  { %3366 = vmatprep.subr.bf16.mxu0 %v6306_v31  ;;  %3538 = vmatprep.subr.bf16.mxu1 %v6308_v33 }
 0x227   :  { %3396 = vmatprep.mubr.bf16.mxu0 %v7454_v32  ;;  %3568 = vmatprep.mubr.bf16.mxu1 %v7454_v32  ;;  %v6330_v32 = vcombine.high %v543_v52, %v547_v53 }
 0x229   :  { %3367 = vmatpush1.bf16.msra.mxu0 %v6305_v39  ;;  %3539 = vmatpush1.bf16.msra.mxu1 %v6307_v40  ;;  %v6354_v40 = vcombine.high %v567_v22, %v571_v23 }
 0x22a   :  { %3368 = vmatprep.subr.bf16.mxu0 %v6314_v41  ;;  %3540 = vmatprep.subr.bf16.mxu1 %v6316_v42 }
 0x22d   :  { %3369 = vmatpush1.bf16.msra.mxu0 %v6313_v48  ;;  %3541 = vmatpush1.bf16.msra.mxu1 %v6315_v49  ;;  %v6353_v48 = vcombine.low %v567_v22, %v571_v23  ;;  %v6854_v22 = vld [vmem:[#allocation8 + $0xa4] ss:$16 sps:$4 sm:$0xff]   ;;  %v6857_v23 = vld [vmem:[#allocation8 + $0xac] ss:$16 sps:$4 sm:$0xff]  }
 0x22e   :  { %3370 = vmatprep.subr.bf16.mxu0 %v6322_v50  ;;  %3542 = vmatprep.subr.bf16.mxu1 %v6324_v51 }
 0x231   :  { %3371 = vmatpush1.bf16.msra.mxu0 %v6321_v57  ;;  %3543 = vmatpush1.bf16.msra.mxu1 %v6323_v58  ;;  %v6355_v57 = vcombine.low %v568_v27, %v572_v28  ;;  %v6824_v58 = vld [vmem:[#allocation8 + $0x4] ss:$16 sps:$4 sm:$0xff]   ;;  %v6863_v27 = vld [vmem:[#allocation8 + $0xcc] ss:$16 sps:$4 sm:$0xff]   ;;  %v6858_v28 = vld [vmem:[#allocation8 + $0xc0] ss:$16 sps:$4 sm:$0xff]  }
 0x232   :  { %3372 = vmatprep.subr.bf16.mxu0 %v6330_v32  ;;  %3544 = vmatprep.subr.bf16.mxu1 %v6332_v59 }
 0x235   :  { %3373 = vmatpush1.bf16.msra.mxu0 %v6329_v1  ;;  %3545 = vmatpush1.bf16.msra.mxu1 %v6331_v5  ;;  %v6830_v1 = vld [vmem:[#allocation8 + $0x24] ss:$16 sps:$4 sm:$0xff]  }
 0x236   :  { %3374 = vmatprep.subr.bf16.mxu0 %v6338_v7  ;;  %3546 = vmatprep.subr.bf16.mxu1 %v6340_v8  ;;  %v7252_v5 = vld [vmem:[#allocation2 + $0x18] ss:$28 sps:$4 sm:$0xff]   ;;  %v6833_v7 = vld [vmem:[#allocation8 + $0x2c] ss:$16 sps:$4 sm:$0xff]   ;;  %v6828_v8 = vld [vmem:[#allocation8 + $0x20] ss:$16 sps:$4 sm:$0xff]  }
 0x237   :  { %v3054_v20 = vpop.f32.mrb[0].mxu0  ;;  %v3226_v25 = vpop.f32.mrb[0].mxu1 }
 0x238   :  { %v6699_v24 = vadd.f32 %v3054_v20, %v578_v11  ;;  %v3056_v26 = vpop.f32.mrb[1].mxu0  ;;  %v6703_v29 = vadd.f32 %v3226_v25, %v586_v14  ;;  %v3228_v31 = vpop.f32.mrb[1].mxu1  ;;  %v6846_v20 = vld [vmem:[#allocation8 + $0x80] ss:$16 sps:$4 sm:$0xff]   ;;  %v6855_v25 = vld [vmem:[#allocation8 + $0xa8] ss:$16 sps:$4 sm:$0xff]  }
 0x239   :  { %v6700_v30 = vadd.f32 %v3056_v26, %v582_v15  ;;  %v3058_v33 = vpop.f32.mrb[2].mxu0  ;;  %3375 = vmatpush1.bf16.msra.mxu0 %v6337_v16  ;;  %v6704_v36 = vadd.f32 %v3228_v31, %v590_v17  ;;  %v3230_v38 = vpop.f32.mrb[2].mxu1  ;;  %3547 = vmatpush1.bf16.msra.mxu1 %v6339_v18  ;;  %v6840_v16 = vld [vmem:[#allocation8 + $0x60] ss:$16 sps:$4 sm:$0xff]   ;;  %v6848_v18 = vld [vmem:[#allocation8 + $0x84] ss:$16 sps:$4 sm:$0xff]  }
 0x23a   :  { %v6701_v37 = vadd.f32 %v3058_v33, %v578_v11  ;;  %v3060_v39 = vpop.f32.mrb[3].mxu0  ;;  %3376 = vmatprep.subr.bf16.mxu0 %v6346_v19  ;;  %v6705_v41 = vadd.f32 %v3230_v38, %v586_v14  ;;  %v3232_v43 = vpop.f32.mrb[3].mxu1  ;;  %3548 = vmatprep.subr.bf16.mxu1 %v6348_v21  ;;  %v3579_v45 = vmax.f32 %v6699_v24, 0.0  ;;  %v3581_v49 = vmax.f32 %v6703_v29, 0.0  ;;  %v6839_v11 = vld [vmem:[#allocation8 + $0x4c] ss:$16 sps:$4 sm:$0xff]  }
 0x23b   :  { %v6702_v42 = vadd.f32 %v3060_v39, %v582_v15  ;;  %v6706_v47 = vadd.f32 %v3232_v43, %v590_v17  ;;  %v3580_v50 = vmax.f32 %v6700_v30, 0.0  ;;  %v3582_v53 = vmax.f32 %v6704_v36, 0.0  ;;  %v6842_v14 = vld [vmem:[#allocation8 + $0x64] ss:$16 sps:$4 sm:$0xff]   ;;  %v6845_v15 = vld [vmem:[#allocation8 + $0x6c] ss:$16 sps:$4 sm:$0xff]  }
 0x23c   :  { %v3587_v46 = vmax.f32 %v6701_v37, 0.0  ;;  %v3589_v51 = vmax.f32 %v6705_v41, 0.0  ;;  %v6843_v17 = vld [vmem:[#allocation8 + $0x68] ss:$16 sps:$4 sm:$0xff]   ;;  %v6851_v19 = vld [vmem:[#allocation8 + $0x8c] ss:$16 sps:$4 sm:$0xff]  }
 0x23d   :  { %v3588_v52 = vmax.f32 %v6702_v42, 0.0  ;;  %3377 = vmatpush1.bf16.msra.mxu0 %v6345_v34  ;;  %v3590_v55 = vmax.f32 %v6706_v47, 0.0  ;;  %3549 = vmatpush1.bf16.msra.mxu1 %v6347_v35  ;;  %v6849_v21 = vld [vmem:[#allocation8 + $0x88] ss:$16 sps:$4 sm:$0xff]   ;;  %v6852_v24 = vld [vmem:[#allocation8 + $0xa0] ss:$16 sps:$4 sm:$0xff]  }
 0x23e   :  { %v7607_v54 = vpack.c.bf16 %v3587_v46, %v3579_v45  ;;  %3378 = vmatprep.subr.bf16.mxu0 %v6354_v40  ;;  %v7609_v32 = vpack.c.bf16 %v3589_v51, %v3581_v49  ;;  %3550 = vmatprep.subr.bf16.mxu1 %v6356_v44  ;;  %v6860_v26 = vld [vmem:[#allocation8 + $0xc4] ss:$16 sps:$4 sm:$0xff]   ;;  %v6861_v29 = vld [vmem:[#allocation8 + $0xc8] ss:$16 sps:$4 sm:$0xff]   ;;  %v6869_v31 = vld [vmem:[#allocation8 + $0xec] ss:$16 sps:$4 sm:$0xff]  }
 0x23f   :  { %v3596_v59 = vpack.c.bf16 %v3588_v52, %v3580_v50  ;;  %v7611_v61 = vpack.c.bf16 %v3590_v55, %v3582_v53  ;;  %v6866_v30 = vld [vmem:[#allocation8 + $0xe4] ss:$16 sps:$4 sm:$0xff]   ;;  %v6864_v33 = vld [vmem:[#allocation8 + $0xe0] ss:$16 sps:$4 sm:$0xff]   ;;  %v6867_v34 = vld [vmem:[#allocation8 + $0xe8] ss:$16 sps:$4 sm:$0xff]  }
 0x240   :  { %v6872_v35 = vld [vmem:[#allocation8 + $0x104] ss:$16 sps:$4 sm:$0xff]   ;;  %v6875_v36 = vld [vmem:[#allocation8 + $0x10c] ss:$16 sps:$4 sm:$0xff]   ;;  %v6870_v37 = vld [vmem:[#allocation8 + $0x100] ss:$16 sps:$4 sm:$0xff]  }
 0x241   :  { %3379 = vmatpush1.bf16.msra.mxu0 %v6353_v48  ;;  %3551 = vmatpush1.bf16.msra.mxu1 %v6355_v57  ;;  %v6873_v38 = vld [vmem:[#allocation8 + $0x108] ss:$16 sps:$4 sm:$0xff]   ;;  %v6878_v39 = vld [vmem:[#allocation8 + $0x124] ss:$16 sps:$4 sm:$0xff]   ;;  %v6881_v40 = vld [vmem:[#allocation8 + $0x12c] ss:$16 sps:$4 sm:$0xff]  }
 0x242   :  { %5161 = vmatprep.subr.bf16.mxu0 %v6824_v58  ;;  %5333 = vmatprep.subr.bf16.mxu1 %v6827_v60  ;;  %v6876_v41 = vld [vmem:[#allocation8 + $0x120] ss:$16 sps:$4 sm:$0xff]   ;;  %v6879_v42 = vld [vmem:[#allocation8 + $0x128] ss:$16 sps:$4 sm:$0xff]   ;;  %v6884_v43 = vld [vmem:[#allocation8 + $0x144] ss:$16 sps:$4 sm:$0xff]  }
 0x243   :  { %v6887_v44 = vld [vmem:[#allocation8 + $0x14c] ss:$16 sps:$4 sm:$0xff]   ;;  %v6882_v45 = vld [vmem:[#allocation8 + $0x140] ss:$16 sps:$4 sm:$0xff]   ;;  %v6885_v46 = vld [vmem:[#allocation8 + $0x148] ss:$16 sps:$4 sm:$0xff]  }
 0x244   :  { %3397 = vmatmul.mubr.bf16.vlgmr.msra.gmra.mrb[4].mxu0 %v7252_v5  ;;  %3569 = vmatmul.mubr.bf16.vlgmr.msra.gmra.mrb[4].mxu1 %v7252_v5  ;;  %v6890_v47 = vld [vmem:[#allocation8 + $0x164] ss:$16 sps:$4 sm:$0xff]   ;;  %v6893_v48 = vld [vmem:[#allocation8 + $0x16c] ss:$16 sps:$4 sm:$0xff]   ;;  %v6888_v49 = vld [vmem:[#allocation8 + $0x160] ss:$16 sps:$4 sm:$0xff]  }
 0x245   :  { %5162 = vmatpush1.bf16.msra.mxu0 %v6822_v63  ;;  %5193 = vmatprep.mubr.bf16.mxu0 %v3596_v59  ;;  %v6891_v50 = vld [vmem:[#allocation8 + $0x168] ss:$16 sps:$4 sm:$0xff]   ;;  %v6896_v51 = vld [vmem:[#allocation8 + $0x184] ss:$16 sps:$4 sm:$0xff]   ;;  %v6899_v52 = vld [vmem:[#allocation8 + $0x18c] ss:$16 sps:$4 sm:$0xff]  }
 0x246   :  { %5334 = vmatpush1.bf16.msra.mxu1 %v6825_v0  ;;  %5365 = vmatprep.mubr.bf16.mxu1 %v3596_v59  ;;  %v6894_v53 = vld [vmem:[#allocation8 + $0x180] ss:$16 sps:$4 sm:$0xff]   ;;  %v6897_v55 = vld [vmem:[#allocation8 + $0x188] ss:$16 sps:$4 sm:$0xff]   ;;  %v6902_v57 = vld [vmem:[#allocation8 + $0x1a4] ss:$16 sps:$4 sm:$0xff]  }
 0x247   :  { %5163 = vmatprep.subr.bf16.mxu0 %v6830_v1  ;;  %5335 = vmatprep.subr.bf16.mxu1 %v6833_v7  ;;  %v6905_v58 = vld [vmem:[#allocation8 + $0x1ac] ss:$16 sps:$4 sm:$0xff]   ;;  %v6900_v59 = vld [vmem:[#allocation8 + $0x1a0] ss:$16 sps:$4 sm:$0xff]   ;;  %v6903_v60 = vld [vmem:[#allocation8 + $0x1a8] ss:$16 sps:$4 sm:$0xff]  }
 0x248   :  { %v6908_v63 = vld [vmem:[#allocation8 + $0x1c4] ss:$16 sps:$4 sm:$0xff]   ;;  %v6911_v0 = vld [vmem:[#allocation8 + $0x1cc] ss:$16 sps:$4 sm:$0xff]   ;;  %v6906_v1 = vld [vmem:[#allocation8 + $0x1c0] ss:$16 sps:$4 sm:$0xff]  }
 0x249   :  { %5164 = vmatpush1.bf16.msra.mxu0 %v6828_v8  ;;  %v6909_v5 = vld [vmem:[#allocation8 + $0x1c8] ss:$16 sps:$4 sm:$0xff]   ;;  %v6914_v7 = vld [vmem:[#allocation8 + $0x1e4] ss:$16 sps:$4 sm:$0xff]   ;;  %v6917_v8 = vld [vmem:[#allocation8 + $0x1ec] ss:$16 sps:$4 sm:$0xff]  }
 0x24a   :  { %5336 = vmatpush1.bf16.msra.mxu1 %v6831_v9  ;;  %5165 = vmatprep.subr.bf16.mxu0 %v6836_v10  ;;  %v6912_v9 = vld [vmem:[#allocation8 + $0x1e0] ss:$16 sps:$4 sm:$0xff]   ;;  %v6915_v10 = vld [vmem:[#allocation8 + $0x1e8] ss:$16 sps:$4 sm:$0xff]  }
 0x24b   :  { %5337 = vmatprep.subr.bf16.mxu1 %v6839_v11  ;;  %v6920_v11 = vld [vmem:[#allocation8 + $0x204] ss:$16 sps:$4 sm:$0xff]  }
 0x24d   :  { %5166 = vmatpush1.bf16.msra.mxu0 %v6834_v12  ;;  %v6923_v12 = vld [vmem:[#allocation8 + $0x20c] ss:$16 sps:$4 sm:$0xff]  }
 0x24e   :  { %5338 = vmatpush1.bf16.msra.mxu1 %v6837_v13  ;;  %5167 = vmatprep.subr.bf16.mxu0 %v6842_v14  ;;  %v6918_v13 = vld [vmem:[#allocation8 + $0x200] ss:$16 sps:$4 sm:$0xff]   ;;  %v6921_v14 = vld [vmem:[#allocation8 + $0x208] ss:$16 sps:$4 sm:$0xff]  }
 0x24f   :  { %5339 = vmatprep.subr.bf16.mxu1 %v6845_v15  ;;  %v6926_v15 = vld [vmem:[#allocation8 + $0x224] ss:$16 sps:$4 sm:$0xff]  }
 0x251   :  { %5168 = vmatpush1.bf16.msra.mxu0 %v6840_v16  ;;  %v6929_v16 = vld [vmem:[#allocation8 + $0x22c] ss:$16 sps:$4 sm:$0xff]  }
 0x252   :  { %5340 = vmatpush1.bf16.msra.mxu1 %v6843_v17  ;;  %5169 = vmatprep.subr.bf16.mxu0 %v6848_v18  ;;  %v6924_v17 = vld [vmem:[#allocation8 + $0x220] ss:$16 sps:$4 sm:$0xff]   ;;  %v6927_v18 = vld [vmem:[#allocation8 + $0x228] ss:$16 sps:$4 sm:$0xff]  }
 0x253   :  { %5341 = vmatprep.subr.bf16.mxu1 %v6851_v19  ;;  %v6932_v19 = vld [vmem:[#allocation8 + $0x244] ss:$16 sps:$4 sm:$0xff]  }
 0x255   :  { %5170 = vmatpush1.bf16.msra.mxu0 %v6846_v20  ;;  %v6935_v20 = vld [vmem:[#allocation8 + $0x24c] ss:$16 sps:$4 sm:$0xff]  }
 0x256   :  { %5342 = vmatpush1.bf16.msra.mxu1 %v6849_v21  ;;  %5171 = vmatprep.subr.bf16.mxu0 %v6854_v22  ;;  %v6930_v21 = vld [vmem:[#allocation8 + $0x240] ss:$16 sps:$4 sm:$0xff]   ;;  %v6933_v22 = vld [vmem:[#allocation8 + $0x248] ss:$16 sps:$4 sm:$0xff]  }
 0x257   :  { %5343 = vmatprep.subr.bf16.mxu1 %v6857_v23  ;;  %v6938_v23 = vld [vmem:[#allocation8 + $0x264] ss:$16 sps:$4 sm:$0xff]  }
 0x259   :  { %5172 = vmatpush1.bf16.msra.mxu0 %v6852_v24  ;;  %v6936_v24 = vld [vmem:[#allocation8 + $0x260] ss:$16 sps:$4 sm:$0xff]  }
 0x25a   :  { %5344 = vmatpush1.bf16.msra.mxu1 %v6855_v25  ;;  %5173 = vmatprep.subr.bf16.mxu0 %v6860_v26  ;;  %v6939_v25 = vld [vmem:[#allocation8 + $0x268] ss:$16 sps:$4 sm:$0xff]   ;;  %v6944_v26 = vld [vmem:[#allocation8 + $0x284] ss:$16 sps:$4 sm:$0xff]  }
 0x25b   :  { %5345 = vmatprep.subr.bf16.mxu1 %v6863_v27  ;;  %v6947_v27 = vld [vmem:[#allocation8 + $0x28c] ss:$16 sps:$4 sm:$0xff]  }
 0x25d   :  { %5174 = vmatpush1.bf16.msra.mxu0 %v6858_v28  ;;  %v6945_v28 = vld [vmem:[#allocation8 + $0x288] ss:$16 sps:$4 sm:$0xff]  }
 0x25e   :  { %5346 = vmatpush1.bf16.msra.mxu1 %v6861_v29  ;;  %5175 = vmatprep.subr.bf16.mxu0 %v6866_v30  ;;  %v6950_v29 = vld [vmem:[#allocation8 + $0x2a4] ss:$16 sps:$4 sm:$0xff]   ;;  %v6953_v30 = vld [vmem:[#allocation8 + $0x2ac] ss:$16 sps:$4 sm:$0xff]  }
 0x25f   :  { %5347 = vmatprep.subr.bf16.mxu1 %v6869_v31  ;;  %v6948_v31 = vld [vmem:[#allocation8 + $0x2a0] ss:$16 sps:$4 sm:$0xff]  }
 0x261   :  { %5176 = vmatpush1.bf16.msra.mxu0 %v6864_v33  ;;  %v6951_v33 = vld [vmem:[#allocation8 + $0x2a8] ss:$16 sps:$4 sm:$0xff]  }
 0x262   :  { %5348 = vmatpush1.bf16.msra.mxu1 %v6867_v34  ;;  %5177 = vmatprep.subr.bf16.mxu0 %v6872_v35  ;;  %v6956_v34 = vld [vmem:[#allocation8 + $0x2c4] ss:$16 sps:$4 sm:$0xff]   ;;  %v6959_v35 = vld [vmem:[#allocation8 + $0x2cc] ss:$16 sps:$4 sm:$0xff]  }
 0x263   :  { %5349 = vmatprep.subr.bf16.mxu1 %v6875_v36  ;;  %v6954_v36 = vld [vmem:[#allocation8 + $0x2c0] ss:$16 sps:$4 sm:$0xff]  }
 0x265   :  { %5178 = vmatpush1.bf16.msra.mxu0 %v6870_v37  ;;  %v6957_v37 = vld [vmem:[#allocation8 + $0x2c8] ss:$16 sps:$4 sm:$0xff]  }
 0x266   :  { %5350 = vmatpush1.bf16.msra.mxu1 %v6873_v38  ;;  %5179 = vmatprep.subr.bf16.mxu0 %v6878_v39  ;;  %v6962_v38 = vld [vmem:[#allocation8 + $0x2e4] ss:$16 sps:$4 sm:$0xff]   ;;  %v6965_v39 = vld [vmem:[#allocation8 + $0x2ec] ss:$16 sps:$4 sm:$0xff]  }
 0x267   :  { %5351 = vmatprep.subr.bf16.mxu1 %v6881_v40  ;;  %v6960_v40 = vld [vmem:[#allocation8 + $0x2e0] ss:$16 sps:$4 sm:$0xff]  }
 0x269   :  { %5180 = vmatpush1.bf16.msra.mxu0 %v6876_v41  ;;  %v6963_v41 = vld [vmem:[#allocation8 + $0x2e8] ss:$16 sps:$4 sm:$0xff]  }
 0x26a   :  { %5352 = vmatpush1.bf16.msra.mxu1 %v6879_v42  ;;  %5181 = vmatprep.subr.bf16.mxu0 %v6884_v43  ;;  %v6968_v42 = vld [vmem:[#allocation8 + $0x304] ss:$16 sps:$4 sm:$0xff]   ;;  %v6971_v43 = vld [vmem:[#allocation8 + $0x30c] ss:$16 sps:$4 sm:$0xff]  }
 0x26b   :  { %5353 = vmatprep.subr.bf16.mxu1 %v6887_v44  ;;  %v6966_v44 = vld [vmem:[#allocation8 + $0x300] ss:$16 sps:$4 sm:$0xff]  }
 0x26d   :  { %5182 = vmatpush1.bf16.msra.mxu0 %v6882_v45  ;;  %v6969_v45 = vld [vmem:[#allocation8 + $0x308] ss:$16 sps:$4 sm:$0xff]  }
 0x26e   :  { %5354 = vmatpush1.bf16.msra.mxu1 %v6885_v46  ;;  %5183 = vmatprep.subr.bf16.mxu0 %v6890_v47  ;;  %v6974_v46 = vld [vmem:[#allocation8 + $0x324] ss:$16 sps:$4 sm:$0xff]   ;;  %v6977_v47 = vld [vmem:[#allocation8 + $0x32c] ss:$16 sps:$4 sm:$0xff]  }
 0x26f   :  { %5355 = vmatprep.subr.bf16.mxu1 %v6893_v48  ;;  %v6972_v48 = vld [vmem:[#allocation8 + $0x320] ss:$16 sps:$4 sm:$0xff]  }
 0x271   :  { %5184 = vmatpush1.bf16.msra.mxu0 %v6888_v49  ;;  %v6975_v49 = vld [vmem:[#allocation8 + $0x328] ss:$16 sps:$4 sm:$0xff]  }
 0x272   :  { %5356 = vmatpush1.bf16.msra.mxu1 %v6891_v50  ;;  %5185 = vmatprep.subr.bf16.mxu0 %v6896_v51  ;;  %v6980_v50 = vld [vmem:[#allocation8 + $0x344] ss:$16 sps:$4 sm:$0xff]   ;;  %v6983_v51 = vld [vmem:[#allocation8 + $0x34c] ss:$16 sps:$4 sm:$0xff]  }
 0x273   :  { %5357 = vmatprep.subr.bf16.mxu1 %v6899_v52  ;;  %v6978_v52 = vld [vmem:[#allocation8 + $0x340] ss:$16 sps:$4 sm:$0xff]  }
 0x275   :  { %5186 = vmatpush1.bf16.msra.mxu0 %v6894_v53  ;;  %v6981_v53 = vld [vmem:[#allocation8 + $0x348] ss:$16 sps:$4 sm:$0xff]  }
 0x276   :  { %5358 = vmatpush1.bf16.msra.mxu1 %v6897_v55  ;;  %5187 = vmatprep.subr.bf16.mxu0 %v6902_v57  ;;  %v6986_v55 = vld [vmem:[#allocation8 + $0x364] ss:$16 sps:$4 sm:$0xff]   ;;  %v6989_v57 = vld [vmem:[#allocation8 + $0x36c] ss:$16 sps:$4 sm:$0xff]  }
 0x277   :  { %5359 = vmatprep.subr.bf16.mxu1 %v6905_v58  ;;  %v6984_v58 = vld [vmem:[#allocation8 + $0x360] ss:$16 sps:$4 sm:$0xff]  }
 0x279   :  { %5188 = vmatpush1.bf16.msra.mxu0 %v6900_v59  ;;  %v6987_v59 = vld [vmem:[#allocation8 + $0x368] ss:$16 sps:$4 sm:$0xff]  }
 0x27a   :  { %5360 = vmatpush1.bf16.msra.mxu1 %v6903_v60  ;;  %5189 = vmatprep.subr.bf16.mxu0 %v6908_v63  ;;  %v6992_v60 = vld [vmem:[#allocation8 + $0x384] ss:$16 sps:$4 sm:$0xff]   ;;  %v6995_v63 = vld [vmem:[#allocation8 + $0x38c] ss:$16 sps:$4 sm:$0xff]  }
 0x27b   :  { %5361 = vmatprep.subr.bf16.mxu1 %v6911_v0  ;;  %v6990_v0 = vld [vmem:[#allocation8 + $0x380] ss:$16 sps:$4 sm:$0xff]  }
 0x27d   :  { %5190 = vmatpush1.bf16.msra.mxu0 %v6906_v1  ;;  %v6993_v1 = vld [vmem:[#allocation8 + $0x388] ss:$16 sps:$4 sm:$0xff]  }
 0x27e   :  { %5362 = vmatpush1.bf16.msra.mxu1 %v6909_v5  ;;  %5191 = vmatprep.subr.bf16.mxu0 %v6914_v7  ;;  %v6998_v5 = vld [vmem:[#allocation8 + $0x3a4] ss:$16 sps:$4 sm:$0xff]   ;;  %v7001_v7 = vld [vmem:[#allocation8 + $0x3ac] ss:$16 sps:$4 sm:$0xff]  }
 0x27f   :  { %5363 = vmatprep.subr.bf16.mxu1 %v6917_v8  ;;  %v6996_v8 = vld [vmem:[#allocation8 + $0x3a0] ss:$16 sps:$4 sm:$0xff]  }
 0x281   :  { %5192 = vmatpush1.bf16.msra.mxu0 %v6912_v9  ;;  %v6999_v9 = vld [vmem:[#allocation8 + $0x3a8] ss:$16 sps:$4 sm:$0xff]  }
 0x282   :  { %5364 = vmatpush1.bf16.msra.mxu1 %v6915_v10  ;;  %5204 = vmatprep.subr.bf16.mxu0 %v6920_v11  ;;  %v7004_v10 = vld [vmem:[#allocation8 + $0x3c4] ss:$16 sps:$4 sm:$0xff]   ;;  %v7007_v11 = vld [vmem:[#allocation8 + $0x3cc] ss:$16 sps:$4 sm:$0xff]  }
 0x283   :  { %5376 = vmatprep.subr.bf16.mxu1 %v6923_v12  ;;  %v7002_v12 = vld [vmem:[#allocation8 + $0x3c0] ss:$16 sps:$4 sm:$0xff]  }
 0x284   :  { %5194 = vmatmul.mubr.bf16.vlgmr.msra.gmra.mrb[8].mxu0 %v7607_v54 }
 0x285   :  { %5366 = vmatmul.mubr.bf16.vlgmr.msra.gmra.mrb[8].mxu1 %v7607_v54  ;;  %5205 = vmatpush1.bf16.msra.mxu0 %v6918_v13  ;;  %v6941_v54 = vld [vmem:[#allocation8 + $0x26c] ss:$16 sps:$4 sm:$0xff]   ;;  %v7005_v13 = vld [vmem:[#allocation8 + $0x3c8] ss:$16 sps:$4 sm:$0xff]  }
 0x286   :  { %5236 = vmatprep.mubr.bf16.mxu0 %v7611_v61  ;;  %5377 = vmatpush1.bf16.msra.mxu1 %v6921_v14  ;;  %v7010_v14 = vld [vmem:[#allocation8 + $0x3e4] ss:$16 sps:$4 sm:$0xff]  }
 0x287   :  { %5408 = vmatprep.mubr.bf16.mxu1 %v7611_v61  ;;  %5206 = vmatprep.subr.bf16.mxu0 %v6926_v15  ;;  %v6942_v61 = vld [vmem:[#allocation8 + $0x280] ss:$16 sps:$4 sm:$0xff]   ;;  %v7013_v15 = vld [vmem:[#allocation8 + $0x3ec] ss:$16 sps:$4 sm:$0xff]  }
 0x288   :  { %5378 = vmatprep.subr.bf16.mxu1 %v6929_v16  ;;  %v7008_v16 = vld [vmem:[#allocation8 + $0x3e0] ss:$16 sps:$4 sm:$0xff]  }
 0x289   :  { %5207 = vmatpush1.bf16.msra.mxu0 %v6924_v17  ;;  %v7011_v17 = vld [vmem:[#allocation8 + $0x3e8] ss:$16 sps:$4 sm:$0xff]  }
 0x28a   :  { %5379 = vmatpush1.bf16.msra.mxu1 %v6927_v18  ;;  %5208 = vmatprep.subr.bf16.mxu0 %v6932_v19  ;;  %v7016_v18 = vld [vmem:[#allocation8 + $0x404] ss:$16 sps:$4 sm:$0xff]   ;;  %v7019_v19 = vld [vmem:[#allocation8 + $0x40c] ss:$16 sps:$4 sm:$0xff]  }
 0x28b   :  { %5380 = vmatprep.subr.bf16.mxu1 %v6935_v20  ;;  %v7014_v20 = vld [vmem:[#allocation8 + $0x400] ss:$16 sps:$4 sm:$0xff]  }
 0x28d   :  { %5209 = vmatpush1.bf16.msra.mxu0 %v6930_v21  ;;  %v7017_v21 = vld [vmem:[#allocation8 + $0x408] ss:$16 sps:$4 sm:$0xff]  }
 0x28e   :  { %5381 = vmatpush1.bf16.msra.mxu1 %v6933_v22  ;;  %5210 = vmatprep.subr.bf16.mxu0 %v6938_v23  ;;  %v7022_v22 = vld [vmem:[#allocation8 + $0x424] ss:$16 sps:$4 sm:$0xff]   ;;  %v7025_v23 = vld [vmem:[#allocation8 + $0x42c] ss:$16 sps:$4 sm:$0xff]  }
 0x28f   :  { %5382 = vmatprep.subr.bf16.mxu1 %v6941_v54  ;;  %v7020_v54 = vld [vmem:[#allocation8 + $0x420] ss:$16 sps:$4 sm:$0xff]  }
 0x291   :  { %5211 = vmatpush1.bf16.msra.mxu0 %v6936_v24  ;;  %v7023_v24 = vld [vmem:[#allocation8 + $0x428] ss:$16 sps:$4 sm:$0xff]  }
 0x292   :  { %5383 = vmatpush1.bf16.msra.mxu1 %v6939_v25  ;;  %5212 = vmatprep.subr.bf16.mxu0 %v6944_v26  ;;  %v7028_v25 = vld [vmem:[#allocation8 + $0x444] ss:$16 sps:$4 sm:$0xff]   ;;  %v7031_v26 = vld [vmem:[#allocation8 + $0x44c] ss:$16 sps:$4 sm:$0xff]  }
 0x293   :  { %5384 = vmatprep.subr.bf16.mxu1 %v6947_v27  ;;  %v7026_v27 = vld [vmem:[#allocation8 + $0x440] ss:$16 sps:$4 sm:$0xff]  }
 0x295   :  { %5213 = vmatpush1.bf16.msra.mxu0 %v6942_v61  ;;  %v7029_v61 = vld [vmem:[#allocation8 + $0x448] ss:$16 sps:$4 sm:$0xff]  }
 0x296   :  { %5385 = vmatpush1.bf16.msra.mxu1 %v6945_v28  ;;  %5214 = vmatprep.subr.bf16.mxu0 %v6950_v29  ;;  %v7034_v28 = vld [vmem:[#allocation8 + $0x464] ss:$16 sps:$4 sm:$0xff]   ;;  %v7037_v29 = vld [vmem:[#allocation8 + $0x46c] ss:$16 sps:$4 sm:$0xff]  }
 0x297   :  { %5386 = vmatprep.subr.bf16.mxu1 %v6953_v30  ;;  %v7032_v30 = vld [vmem:[#allocation8 + $0x460] ss:$16 sps:$4 sm:$0xff]  }
 0x299   :  { %5215 = vmatpush1.bf16.msra.mxu0 %v6948_v31  ;;  %v7040_v31 = vld [vmem:[#allocation8 + $0x484] ss:$16 sps:$4 sm:$0xff]  }
 0x29a   :  { %5387 = vmatpush1.bf16.msra.mxu1 %v6951_v33  ;;  %5216 = vmatprep.subr.bf16.mxu0 %v6956_v34  ;;  %v7043_v33 = vld [vmem:[#allocation8 + $0x48c] ss:$16 sps:$4 sm:$0xff]   ;;  %v7038_v34 = vld [vmem:[#allocation8 + $0x480] ss:$16 sps:$4 sm:$0xff]  }
 0x29b   :  { %5388 = vmatprep.subr.bf16.mxu1 %v6959_v35  ;;  %v7041_v35 = vld [vmem:[#allocation8 + $0x488] ss:$16 sps:$4 sm:$0xff]  }
 0x29d   :  { %5217 = vmatpush1.bf16.msra.mxu0 %v6954_v36  ;;  %v7046_v36 = vld [vmem:[#allocation8 + $0x4a4] ss:$16 sps:$4 sm:$0xff]  }
 0x29e   :  { %5389 = vmatpush1.bf16.msra.mxu1 %v6957_v37  ;;  %5218 = vmatprep.subr.bf16.mxu0 %v6962_v38  ;;  %v7049_v37 = vld [vmem:[#allocation8 + $0x4ac] ss:$16 sps:$4 sm:$0xff]   ;;  %v7044_v38 = vld [vmem:[#allocation8 + $0x4a0] ss:$16 sps:$4 sm:$0xff]  }
 0x29f   :  { %5390 = vmatprep.subr.bf16.mxu1 %v6965_v39  ;;  %v7047_v39 = vld [vmem:[#allocation8 + $0x4a8] ss:$16 sps:$4 sm:$0xff]  }
 0x2a1   :  { %5219 = vmatpush1.bf16.msra.mxu0 %v6960_v40  ;;  %v7052_v40 = vld [vmem:[#allocation8 + $0x4c4] ss:$16 sps:$4 sm:$0xff]  }
 0x2a2   :  { %5391 = vmatpush1.bf16.msra.mxu1 %v6963_v41  ;;  %5220 = vmatprep.subr.bf16.mxu0 %v6968_v42  ;;  %v7055_v41 = vld [vmem:[#allocation8 + $0x4cc] ss:$16 sps:$4 sm:$0xff]   ;;  %v7050_v42 = vld [vmem:[#allocation8 + $0x4c0] ss:$16 sps:$4 sm:$0xff]  }
 0x2a3   :  { %5392 = vmatprep.subr.bf16.mxu1 %v6971_v43  ;;  %v7053_v43 = vld [vmem:[#allocation8 + $0x4c8] ss:$16 sps:$4 sm:$0xff]  }
 0x2a5   :  { %5221 = vmatpush1.bf16.msra.mxu0 %v6966_v44  ;;  %v7058_v44 = vld [vmem:[#allocation8 + $0x4e4] ss:$16 sps:$4 sm:$0xff]  }
 0x2a6   :  { %5393 = vmatpush1.bf16.msra.mxu1 %v6969_v45  ;;  %5222 = vmatprep.subr.bf16.mxu0 %v6974_v46  ;;  %v7061_v45 = vld [vmem:[#allocation8 + $0x4ec] ss:$16 sps:$4 sm:$0xff]   ;;  %v7056_v46 = vld [vmem:[#allocation8 + $0x4e0] ss:$16 sps:$4 sm:$0xff]  }
 0x2a7   :  { %5394 = vmatprep.subr.bf16.mxu1 %v6977_v47  ;;  %v7059_v47 = vld [vmem:[#allocation8 + $0x4e8] ss:$16 sps:$4 sm:$0xff]  }
 0x2a9   :  { %5223 = vmatpush1.bf16.msra.mxu0 %v6972_v48  ;;  %v7064_v48 = vld [vmem:[#allocation8 + $0x504] ss:$16 sps:$4 sm:$0xff]  }
 0x2aa   :  { %5395 = vmatpush1.bf16.msra.mxu1 %v6975_v49  ;;  %5224 = vmatprep.subr.bf16.mxu0 %v6980_v50  ;;  %v7067_v49 = vld [vmem:[#allocation8 + $0x50c] ss:$16 sps:$4 sm:$0xff]   ;;  %v7062_v50 = vld [vmem:[#allocation8 + $0x500] ss:$16 sps:$4 sm:$0xff]  }
 0x2ab   :  { %5396 = vmatprep.subr.bf16.mxu1 %v6983_v51  ;;  %v7065_v51 = vld [vmem:[#allocation8 + $0x508] ss:$16 sps:$4 sm:$0xff]  }
 0x2ad   :  { %5225 = vmatpush1.bf16.msra.mxu0 %v6978_v52  ;;  %v7070_v52 = vld [vmem:[#allocation8 + $0x524] ss:$16 sps:$4 sm:$0xff]  }
 0x2ae   :  { %5397 = vmatpush1.bf16.msra.mxu1 %v6981_v53  ;;  %5226 = vmatprep.subr.bf16.mxu0 %v6986_v55  ;;  %v7073_v53 = vld [vmem:[#allocation8 + $0x52c] ss:$16 sps:$4 sm:$0xff]   ;;  %v7068_v55 = vld [vmem:[#allocation8 + $0x520] ss:$16 sps:$4 sm:$0xff]  }
 0x2af   :  { %5398 = vmatprep.subr.bf16.mxu1 %v6989_v57  ;;  %v7071_v57 = vld [vmem:[#allocation8 + $0x528] ss:$16 sps:$4 sm:$0xff]  }
 0x2b1   :  { %5227 = vmatpush1.bf16.msra.mxu0 %v6984_v58  ;;  %v7076_v58 = vld [vmem:[#allocation8 + $0x544] ss:$16 sps:$4 sm:$0xff]  }
 0x2b2   :  { %5399 = vmatpush1.bf16.msra.mxu1 %v6987_v59  ;;  %5228 = vmatprep.subr.bf16.mxu0 %v6992_v60  ;;  %v7079_v59 = vld [vmem:[#allocation8 + $0x54c] ss:$16 sps:$4 sm:$0xff]   ;;  %v7074_v60 = vld [vmem:[#allocation8 + $0x540] ss:$16 sps:$4 sm:$0xff]  }
 0x2b3   :  { %5400 = vmatprep.subr.bf16.mxu1 %v6995_v63  ;;  %v7077_v63 = vld [vmem:[#allocation8 + $0x548] ss:$16 sps:$4 sm:$0xff]  }
 0x2b5   :  { %5229 = vmatpush1.bf16.msra.mxu0 %v6990_v0  ;;  %v7082_v0 = vld [vmem:[#allocation8 + $0x564] ss:$16 sps:$4 sm:$0xff]  }
 0x2b6   :  { %5401 = vmatpush1.bf16.msra.mxu1 %v6993_v1  ;;  %5230 = vmatprep.subr.bf16.mxu0 %v6998_v5  ;;  %v7085_v1 = vld [vmem:[#allocation8 + $0x56c] ss:$16 sps:$4 sm:$0xff]   ;;  %v7080_v5 = vld [vmem:[#allocation8 + $0x560] ss:$16 sps:$4 sm:$0xff]  }
 0x2b7   :  { %5402 = vmatprep.subr.bf16.mxu1 %v7001_v7  ;;  %v7083_v7 = vld [vmem:[#allocation8 + $0x568] ss:$16 sps:$4 sm:$0xff]  }
 0x2b9   :  { %5231 = vmatpush1.bf16.msra.mxu0 %v6996_v8  ;;  %v7088_v8 = vld [vmem:[#allocation8 + $0x584] ss:$16 sps:$4 sm:$0xff]  }
 0x2ba   :  { %5403 = vmatpush1.bf16.msra.mxu1 %v6999_v9  ;;  %5232 = vmatprep.subr.bf16.mxu0 %v7004_v10  ;;  %v7091_v9 = vld [vmem:[#allocation8 + $0x58c] ss:$16 sps:$4 sm:$0xff]   ;;  %v7086_v10 = vld [vmem:[#allocation8 + $0x580] ss:$16 sps:$4 sm:$0xff]  }
 0x2bb   :  { %5404 = vmatprep.subr.bf16.mxu1 %v7007_v11  ;;  %v7089_v11 = vld [vmem:[#allocation8 + $0x588] ss:$16 sps:$4 sm:$0xff]  }
 0x2bd   :  { %5233 = vmatpush1.bf16.msra.mxu0 %v7002_v12  ;;  %v7094_v12 = vld [vmem:[#allocation8 + $0x5a4] ss:$16 sps:$4 sm:$0xff]  }
 0x2be   :  { %5405 = vmatpush1.bf16.msra.mxu1 %v7005_v13  ;;  %5234 = vmatprep.subr.bf16.mxu0 %v7010_v14  ;;  %v7097_v13 = vld [vmem:[#allocation8 + $0x5ac] ss:$16 sps:$4 sm:$0xff]   ;;  %v7092_v14 = vld [vmem:[#allocation8 + $0x5a0] ss:$16 sps:$4 sm:$0xff]  }
 0x2bf   :  { %5406 = vmatprep.subr.bf16.mxu1 %v7013_v15  ;;  %v7095_v15 = vld [vmem:[#allocation8 + $0x5a8] ss:$16 sps:$4 sm:$0xff]  }
 0x2c1   :  { %5235 = vmatpush1.bf16.msra.mxu0 %v7008_v16  ;;  %v7100_v16 = vld [vmem:[#allocation8 + $0x5c4] ss:$16 sps:$4 sm:$0xff]  }
 0x2c2   :  { %5407 = vmatpush1.bf16.msra.mxu1 %v7011_v17  ;;  %5247 = vmatprep.subr.bf16.mxu0 %v7016_v18  ;;  %v7103_v17 = vld [vmem:[#allocation8 + $0x5cc] ss:$16 sps:$4 sm:$0xff]   ;;  %v7098_v18 = vld [vmem:[#allocation8 + $0x5c0] ss:$16 sps:$4 sm:$0xff]  }
 0x2c3   :  { %5419 = vmatprep.subr.bf16.mxu1 %v7019_v19  ;;  %v7101_v19 = vld [vmem:[#allocation8 + $0x5c8] ss:$16 sps:$4 sm:$0xff]  }
 0x2c4   :  { %5237 = vmatmul.mubr.bf16.vlgmr.msra.gmra.mrb[8].mxu0 %v7609_v32 }
 0x2c5   :  { %5409 = vmatmul.mubr.bf16.vlgmr.msra.gmra.mrb[8].mxu1 %v7609_v32  ;;  %5248 = vmatpush1.bf16.msra.mxu0 %v7014_v20  ;;  %v7035_v32 = vld [vmem:[#allocation8 + $0x468] ss:$16 sps:$4 sm:$0xff]   ;;  %v7106_v20 = vld [vmem:[#allocation8 + $0x5e4] ss:$16 sps:$4 sm:$0xff]  }
 0x2c6   :  { %5420 = vmatpush1.bf16.msra.mxu1 %v7017_v21  ;;  %5249 = vmatprep.subr.bf16.mxu0 %v7022_v22  ;;  %v7109_v21 = vld [vmem:[#allocation8 + $0x5ec] ss:$16 sps:$4 sm:$0xff]   ;;  %v7104_v22 = vld [vmem:[#allocation8 + $0x5e0] ss:$16 sps:$4 sm:$0xff]  }
 0x2c7   :  { %5421 = vmatprep.subr.bf16.mxu1 %v7025_v23  ;;  %v7107_v23 = vld [vmem:[#allocation8 + $0x5e8] ss:$16 sps:$4 sm:$0xff]  }
 0x2c9   :  { %5250 = vmatpush1.bf16.msra.mxu0 %v7020_v54  ;;  %v7112_v54 = vld [vmem:[#allocation8 + $0x604] ss:$16 sps:$4 sm:$0xff]  }
 0x2ca   :  { %5422 = vmatpush1.bf16.msra.mxu1 %v7023_v24  ;;  %5251 = vmatprep.subr.bf16.mxu0 %v7028_v25  ;;  %v7115_v24 = vld [vmem:[#allocation8 + $0x60c] ss:$16 sps:$4 sm:$0xff]   ;;  %v593_v25 = vsub.s32 4, %v7587_v56 }
 0x2cb   :  { %5423 = vmatprep.subr.bf16.mxu1 %v7031_v26  ;;  %v601_v26 = vsub.s32 6, %v7587_v56 }
 0x2cd   :  { %5252 = vmatpush1.bf16.msra.mxu0 %v7026_v27  ;;  %v597_v27 = vsub.s32 5, %v7587_v56 }
 0x2ce   :  { %5424 = vmatpush1.bf16.msra.mxu1 %v7029_v61  ;;  %5253 = vmatprep.subr.bf16.mxu0 %v7034_v28  ;;  %v605_v61 = vsub.s32 7, %v7587_v56  ;;  %v594_v28 = vrot.slane %v7590_v2, %v593_v25  ;;  %v7151_v25 = vld [vmem:[#allocation8 + $0x6cc] ss:$16 sps:$4 sm:$0xff]  }
 0x2cf   :  { %5425 = vmatprep.subr.bf16.mxu1 %v7037_v29  ;;  %v602_v29 = vrot.slane %v7590_v2, %v601_v26  ;;  %v7146_v26 = vld [vmem:[#allocation8 + $0x6c0] ss:$16 sps:$4 sm:$0xff]  }
 0x2d1   :  { %5254 = vmatpush1.bf16.msra.mxu0 %v7032_v30  ;;  %v598_v30 = vrot.slane %v7590_v2, %v597_v27  ;;  %v7149_v27 = vld [vmem:[#allocation8 + $0x6c8] ss:$16 sps:$4 sm:$0xff]  }
 0x2d2   :  { %5426 = vmatpush1.bf16.msra.mxu1 %v7035_v32  ;;  %5255 = vmatprep.subr.bf16.mxu0 %v7040_v31  ;;  %v606_v32 = vrot.slane %v7590_v2, %v605_v61  ;;  %v7154_v61 = vld [vmem:[#allocation8 + $0x6e4] ss:$16 sps:$4 sm:$0xff]  }
 0x2d3   :  { %5427 = vmatprep.subr.bf16.mxu1 %v7043_v33 }
 0x2d5   :  { %5256 = vmatpush1.bf16.msra.mxu0 %v7038_v34 }
 0x2d6   :  { %5428 = vmatpush1.bf16.msra.mxu1 %v7041_v35  ;;  %5257 = vmatprep.subr.bf16.mxu0 %v7046_v36 }
 0x2d7   :  { %5429 = vmatprep.subr.bf16.mxu1 %v7049_v37 }
 0x2d9   :  { %5258 = vmatpush1.bf16.msra.mxu0 %v7044_v38 }
 0x2da   :  { %5430 = vmatpush1.bf16.msra.mxu1 %v7047_v39  ;;  %5259 = vmatprep.subr.bf16.mxu0 %v7052_v40 }
 0x2db   :  { %5431 = vmatprep.subr.bf16.mxu1 %v7055_v41 }
 0x2dd   :  { %5260 = vmatpush1.bf16.msra.mxu0 %v7050_v42 }
 0x2de   :  { %5432 = vmatpush1.bf16.msra.mxu1 %v7053_v43  ;;  %5261 = vmatprep.subr.bf16.mxu0 %v7058_v44 }
 0x2df   :  { %5433 = vmatprep.subr.bf16.mxu1 %v7061_v45 }
 0x2e1   :  { %5262 = vmatpush1.bf16.msra.mxu0 %v7056_v46 }
 0x2e2   :  { %5434 = vmatpush1.bf16.msra.mxu1 %v7059_v47  ;;  %5263 = vmatprep.subr.bf16.mxu0 %v7064_v48 }
 0x2e3   :  { %5435 = vmatprep.subr.bf16.mxu1 %v7067_v49 }
 0x2e5   :  { %5264 = vmatpush1.bf16.msra.mxu0 %v7062_v50 }
 0x2e6   :  { %5436 = vmatpush1.bf16.msra.mxu1 %v7065_v51  ;;  %5265 = vmatprep.subr.bf16.mxu0 %v7070_v52 }
 0x2e7   :  { %5437 = vmatprep.subr.bf16.mxu1 %v7073_v53 }
 0x2e9   :  { %5266 = vmatpush1.bf16.msra.mxu0 %v7068_v55 }
 0x2ea   :  { %5438 = vmatpush1.bf16.msra.mxu1 %v7071_v57  ;;  %5267 = vmatprep.subr.bf16.mxu0 %v7076_v58 }
 0x2eb   :  { %5439 = vmatprep.subr.bf16.mxu1 %v7079_v59 }
 0x2ed   :  { %5268 = vmatpush1.bf16.msra.mxu0 %v7074_v60  ;;  %v7110_v60 = vld [vmem:[#allocation8 + $0x600] ss:$16 sps:$4 sm:$0xff]  }
 0x2ee   :  { %5440 = vmatpush1.bf16.msra.mxu1 %v7077_v63  ;;  %5269 = vmatprep.subr.bf16.mxu0 %v7082_v0  ;;  %v7113_v63 = vld [vmem:[#allocation8 + $0x608] ss:$16 sps:$4 sm:$0xff]  }
 0x2ef   :  { %5441 = vmatprep.subr.bf16.mxu1 %v7085_v1  ;;  %v7118_v1 = vld [vmem:[#allocation8 + $0x624] ss:$16 sps:$4 sm:$0xff]  }
 0x2f1   :  { %5270 = vmatpush1.bf16.msra.mxu0 %v7080_v5  ;;  %v7121_v5 = vld [vmem:[#allocation8 + $0x62c] ss:$16 sps:$4 sm:$0xff]  }
 0x2f2   :  { %5442 = vmatpush1.bf16.msra.mxu1 %v7083_v7  ;;  %5271 = vmatprep.subr.bf16.mxu0 %v7088_v8  ;;  %v7116_v7 = vld [vmem:[#allocation8 + $0x620] ss:$16 sps:$4 sm:$0xff]   ;;  %v7119_v8 = vld [vmem:[#allocation8 + $0x628] ss:$16 sps:$4 sm:$0xff]  }
 0x2f3   :  { %5443 = vmatprep.subr.bf16.mxu1 %v7091_v9  ;;  %v7124_v9 = vld [vmem:[#allocation8 + $0x644] ss:$16 sps:$4 sm:$0xff]  }
 0x2f5   :  { %5272 = vmatpush1.bf16.msra.mxu0 %v7086_v10  ;;  %v7127_v10 = vld [vmem:[#allocation8 + $0x64c] ss:$16 sps:$4 sm:$0xff]  }
 0x2f6   :  { %5444 = vmatpush1.bf16.msra.mxu1 %v7089_v11  ;;  %5273 = vmatprep.subr.bf16.mxu0 %v7094_v12  ;;  %v7122_v11 = vld [vmem:[#allocation8 + $0x640] ss:$16 sps:$4 sm:$0xff]   ;;  %v7125_v12 = vld [vmem:[#allocation8 + $0x648] ss:$16 sps:$4 sm:$0xff]  }
 0x2f7   :  { %5445 = vmatprep.subr.bf16.mxu1 %v7097_v13  ;;  %v7130_v13 = vld [vmem:[#allocation8 + $0x664] ss:$16 sps:$4 sm:$0xff]  }
 0x2f9   :  { %5274 = vmatpush1.bf16.msra.mxu0 %v7092_v14  ;;  %v7133_v14 = vld [vmem:[#allocation8 + $0x66c] ss:$16 sps:$4 sm:$0xff]  }
 0x2fa   :  { %5446 = vmatpush1.bf16.msra.mxu1 %v7095_v15  ;;  %5275 = vmatprep.subr.bf16.mxu0 %v7100_v16  ;;  %v7128_v15 = vld [vmem:[#allocation8 + $0x660] ss:$16 sps:$4 sm:$0xff]   ;;  %v7131_v16 = vld [vmem:[#allocation8 + $0x668] ss:$16 sps:$4 sm:$0xff]  }
 0x2fb   :  { %5447 = vmatprep.subr.bf16.mxu1 %v7103_v17  ;;  %v7136_v17 = vld [vmem:[#allocation8 + $0x684] ss:$16 sps:$4 sm:$0xff]  }
 0x2fd   :  { %5276 = vmatpush1.bf16.msra.mxu0 %v7098_v18  ;;  %v7139_v18 = vld [vmem:[#allocation8 + $0x68c] ss:$16 sps:$4 sm:$0xff]  }
 0x2fe   :  { %5448 = vmatpush1.bf16.msra.mxu1 %v7101_v19  ;;  %5277 = vmatprep.subr.bf16.mxu0 %v7106_v20  ;;  %v7134_v19 = vld [vmem:[#allocation8 + $0x680] ss:$16 sps:$4 sm:$0xff]   ;;  %v7137_v20 = vld [vmem:[#allocation8 + $0x688] ss:$16 sps:$4 sm:$0xff]  }
 0x2ff   :  { %5449 = vmatprep.subr.bf16.mxu1 %v7109_v21  ;;  %v7142_v21 = vld [vmem:[#allocation8 + $0x6a4] ss:$16 sps:$4 sm:$0xff]  }
 0x301   :  { %5278 = vmatpush1.bf16.msra.mxu0 %v7104_v22  ;;  %v7145_v22 = vld [vmem:[#allocation8 + $0x6ac] ss:$16 sps:$4 sm:$0xff]  }
 0x302   :  { %5450 = vmatpush1.bf16.msra.mxu1 %v7107_v23  ;;  %5290 = vmatprep.subr.bf16.mxu0 %v7112_v54  ;;  %v7140_v23 = vld [vmem:[#allocation8 + $0x6a0] ss:$16 sps:$4 sm:$0xff]   ;;  %v7143_v54 = vld [vmem:[#allocation8 + $0x6a8] ss:$16 sps:$4 sm:$0xff]  }
 0x303   :  { %5462 = vmatprep.subr.bf16.mxu1 %v7115_v24  ;;  %v7148_v24 = vld [vmem:[#allocation8 + $0x6c4] ss:$16 sps:$4 sm:$0xff]  }
 0x317   :  { %v3398_v31 = vpop.f32.mrb[4].mxu0  ;;  %v3570_v34 = vpop.f32.mrb[4].mxu1 }
 0x318   :  { %v6707_v33 = vadd.f32 %v3398_v31, %v594_v28  ;;  %v3400_v35 = vpop.f32.mrb[5].mxu0  ;;  %v6711_v36 = vadd.f32 %v3570_v34, %v602_v29  ;;  %v3572_v38 = vpop.f32.mrb[5].mxu1  ;;  %v7163_v31 = vld [vmem:[#allocation8 + $0x70c] ss:$16 sps:$4 sm:$0xff]   ;;  %v7161_v34 = vld [vmem:[#allocation8 + $0x708] ss:$16 sps:$4 sm:$0xff]  }
 0x319   :  { %v6708_v37 = vadd.f32 %v3400_v35, %v598_v30  ;;  %v3402_v39 = vpop.f32.mrb[6].mxu0  ;;  %v6712_v40 = vadd.f32 %v3572_v38, %v606_v32  ;;  %v3574_v42 = vpop.f32.mrb[6].mxu1  ;;  %v7166_v35 = vld [vmem:[#allocation8 + $0x724] ss:$16 sps:$4 sm:$0xff]   ;;  %v7167_v38 = vld [vmem:[#allocation8 + $0x728] ss:$16 sps:$4 sm:$0xff]  }
 0x31a   :  { %v6709_v41 = vadd.f32 %v3402_v39, %v594_v28  ;;  %v3404_v43 = vpop.f32.mrb[7].mxu0  ;;  %v6713_v44 = vadd.f32 %v3574_v42, %v602_v29  ;;  %v3576_v46 = vpop.f32.mrb[7].mxu1  ;;  %v3583_v47 = vmax.f32 %v6707_v33, 0.0  ;;  %v3585_v50 = vmax.f32 %v6711_v36, 0.0  ;;  %v7157_v28 = vld [vmem:[#allocation8 + $0x6ec] ss:$16 sps:$4 sm:$0xff]  }
 0x31b   :  { %v6710_v45 = vadd.f32 %v3404_v43, %v598_v30  ;;  %v6714_v49 = vadd.f32 %v3576_v46, %v606_v32  ;;  %v3584_v2 = vmax.f32 %v6708_v37, 0.0  ;;  %v3586_v53 = vmax.f32 %v6712_v40, 0.0  ;;  %v7152_v29 = vld [vmem:[#allocation8 + $0x6e0] ss:$16 sps:$4 sm:$0xff]   ;;  %v7155_v30 = vld [vmem:[#allocation8 + $0x6e8] ss:$16 sps:$4 sm:$0xff]  }
 0x31c   :  { %v3591_v48 = vmax.f32 %v6709_v41, 0.0  ;;  %v3593_v51 = vmax.f32 %v6713_v44, 0.0  ;;  %v7160_v32 = vld [vmem:[#allocation8 + $0x704] ss:$16 sps:$4 sm:$0xff]   ;;  %v7158_v33 = vld [vmem:[#allocation8 + $0x700] ss:$16 sps:$4 sm:$0xff]  }
 0x31d   :  { %v3592_v52 = vmax.f32 %v6710_v45, 0.0  ;;  %v3594_v57 = vmax.f32 %v6714_v49, 0.0  ;;  %v7169_v36 = vld [vmem:[#allocation8 + $0x72c] ss:$16 sps:$4 sm:$0xff]   ;;  %v7164_v37 = vld [vmem:[#allocation8 + $0x720] ss:$16 sps:$4 sm:$0xff]  }
 0x31e   :  { %v3599_v55 = vpack.c.bf16 %v3591_v48, %v3583_v47  ;;  %v7627_v58 = vpack.c.bf16 %v3593_v51, %v3585_v50  ;;  %v7172_v39 = vld [vmem:[#allocation8 + $0x744] ss:$16 sps:$4 sm:$0xff]   ;;  %v7175_v40 = vld [vmem:[#allocation8 + $0x74c] ss:$16 sps:$4 sm:$0xff]   ;;  %v7170_v41 = vld [vmem:[#allocation8 + $0x740] ss:$16 sps:$4 sm:$0xff]  }
 0x31f   :  { %v3600_v59 = vpack.c.bf16 %v3592_v52, %v3584_v2  ;;  %v3602_v0 = vpack.c.bf16 %v3594_v57, %v3586_v53  ;;  %v7173_v42 = vld [vmem:[#allocation8 + $0x748] ss:$16 sps:$4 sm:$0xff]   ;;  %v7178_v43 = vld [vmem:[#allocation8 + $0x764] ss:$16 sps:$4 sm:$0xff]   ;;  %v7181_v44 = vld [vmem:[#allocation8 + $0x76c] ss:$16 sps:$4 sm:$0xff]  }
 0x320   :  { %v7176_v45 = vld [vmem:[#allocation8 + $0x760] ss:$16 sps:$4 sm:$0xff]   ;;  %v7179_v46 = vld [vmem:[#allocation8 + $0x768] ss:$16 sps:$4 sm:$0xff]   ;;  %v7184_v47 = vld [vmem:[#allocation8 + $0x784] ss:$16 sps:$4 sm:$0xff]  }
 0x321   :  { %5279 = vmatprep.mubr.bf16.mxu0 %v3600_v59  ;;  %5451 = vmatprep.mubr.bf16.mxu1 %v3600_v59  ;;  %v7187_v48 = vld [vmem:[#allocation8 + $0x78c] ss:$16 sps:$4 sm:$0xff]   ;;  %v7182_v49 = vld [vmem:[#allocation8 + $0x780] ss:$16 sps:$4 sm:$0xff]   ;;  %v7185_v50 = vld [vmem:[#allocation8 + $0x788] ss:$16 sps:$4 sm:$0xff]  }
 0x322   :  { %5280 = vmatmul.mubr.bf16.vlgmr.msra.gmra.mrb[8].mxu0 %v3599_v55  ;;  %5452 = vmatmul.mubr.bf16.vlgmr.msra.gmra.mrb[8].mxu1 %v3599_v55  ;;  %v7190_v2 = vld [vmem:[#allocation8 + $0x7a4] ss:$16 sps:$4 sm:$0xff]   ;;  %v7193_v51 = vld [vmem:[#allocation8 + $0x7ac] ss:$16 sps:$4 sm:$0xff]   ;;  %v7188_v52 = vld [vmem:[#allocation8 + $0x7a0] ss:$16 sps:$4 sm:$0xff]  }
 0x323   :  { %5291 = vmatpush1.bf16.msra.mxu0 %v7110_v60  ;;  %5463 = vmatpush1.bf16.msra.mxu1 %v7113_v63  ;;  %v7191_v53 = vld [vmem:[#allocation8 + $0x7a8] ss:$16 sps:$4 sm:$0xff]   ;;  %v7196_v55 = vld [vmem:[#allocation8 + $0x7c4] ss:$16 sps:$4 sm:$0xff]   ;;  %v7199_v57 = vld [vmem:[#allocation8 + $0x7cc] ss:$16 sps:$4 sm:$0xff]  }
 0x324   :  { %5322 = vmatprep.mubr.bf16.mxu0 %v3602_v0  ;;  %5494 = vmatprep.mubr.bf16.mxu1 %v3602_v0  ;;  %v7194_v59 = vld [vmem:[#allocation8 + $0x7c0] ss:$16 sps:$4 sm:$0xff]   ;;  %v7197_v60 = vld [vmem:[#allocation8 + $0x7c8] ss:$16 sps:$4 sm:$0xff]   ;;  %v7202_v63 = vld [vmem:[#allocation8 + $0x7e4] ss:$16 sps:$4 sm:$0xff]  }
 0x325   :  { %5292 = vmatprep.subr.bf16.mxu0 %v7118_v1  ;;  %5464 = vmatprep.subr.bf16.mxu1 %v7121_v5  ;;  %v7205_v0 = vld [vmem:[#allocation8 + $0x7ec] ss:$16 sps:$4 sm:$0xff]   ;;  %v7200_v1 = vld [vmem:[#allocation8 + $0x7e0] ss:$16 sps:$4 sm:$0xff]   ;;  %v7203_v5 = vld [vmem:[#allocation8 + $0x7e8] ss:$16 sps:$4 sm:$0xff]  }
 0x327   :  { %5293 = vmatpush1.bf16.msra.mxu0 %v7116_v7  ;;  %5465 = vmatpush1.bf16.msra.mxu1 %v7119_v8  ;;  %v7206_v7 = vld [vmem:[#allocation11 + $0x40] sm:$0xff]  }
 0x328   :  { %5294 = vmatprep.subr.bf16.mxu0 %v7124_v9  ;;  %5466 = vmatprep.subr.bf16.mxu1 %v7127_v10  ;;  %v7207_v8 = vld [vmem:[#allocation11 + $0xc0] sm:$0xff]  }
 0x329   :  { %v7208_v9 = vld [vmem:[#allocation11] sm:$0xff]  }
 0x32a   :  { %v7209_v10 = vld [vmem:[#allocation11 + $0x80] sm:$0xff]  }
 0x32b   :  { %5295 = vmatpush1.bf16.msra.mxu0 %v7122_v11  ;;  %5467 = vmatpush1.bf16.msra.mxu1 %v7125_v12  ;;  %v7210_v11 = vld [vmem:[#allocation11 + $0x48] sm:$0xff]  }
 0x32c   :  { %5296 = vmatprep.subr.bf16.mxu0 %v7130_v13  ;;  %5468 = vmatprep.subr.bf16.mxu1 %v7133_v14  ;;  %v7211_v12 = vld [vmem:[#allocation11 + $0xc8] sm:$0xff]  }
 0x32d   :  { %v7212_v13 = vld [vmem:[#allocation11 + $0x8] sm:$0xff]  }
 0x32e   :  { %v7213_v14 = vld [vmem:[#allocation11 + $0x88] sm:$0xff]  }
 0x32f   :  { %5297 = vmatpush1.bf16.msra.mxu0 %v7128_v15  ;;  %5469 = vmatpush1.bf16.msra.mxu1 %v7131_v16  ;;  %v7214_v15 = vld [vmem:[#allocation11 + $0x50] sm:$0xff]  }
 0x330   :  { %5298 = vmatprep.subr.bf16.mxu0 %v7136_v17  ;;  %5470 = vmatprep.subr.bf16.mxu1 %v7139_v18  ;;  %v7215_v16 = vld [vmem:[#allocation11 + $0xd0] sm:$0xff]  }
 0x331   :  { %v7216_v17 = vld [vmem:[#allocation11 + $0x10] sm:$0xff]  }
 0x332   :  { %v7217_v18 = vld [vmem:[#allocation11 + $0x90] sm:$0xff]  }
 0x333   :  { %5299 = vmatpush1.bf16.msra.mxu0 %v7134_v19  ;;  %5471 = vmatpush1.bf16.msra.mxu1 %v7137_v20  ;;  %v7218_v19 = vld [vmem:[#allocation11 + $0x58] sm:$0xff]  }
 0x334   :  { %5300 = vmatprep.subr.bf16.mxu0 %v7142_v21  ;;  %5472 = vmatprep.subr.bf16.mxu1 %v7145_v22  ;;  %v7219_v20 = vld [vmem:[#allocation11 + $0xd8] sm:$0xff]   ;;  %v7222_v22 = vld [vmem:[#allocation11 + $0x60] sm:$0xff]  }
 0x335   :  { %v7220_v21 = vld [vmem:[#allocation11 + $0x18] sm:$0xff]  }
 0x337   :  { %5301 = vmatpush1.bf16.msra.mxu0 %v7140_v23  ;;  %5473 = vmatpush1.bf16.msra.mxu1 %v7143_v54  ;;  %v7223_v23 = vld [vmem:[#allocation11 + $0xe0] sm:$0xff]  }
 0x338   :  { %5302 = vmatprep.subr.bf16.mxu0 %v7148_v24  ;;  %5474 = vmatprep.subr.bf16.mxu1 %v7151_v25  ;;  %v7224_v54 = vld [vmem:[#allocation11 + $0x20] sm:$0xff]   ;;  %v7226_v25 = vld [vmem:[#allocation11 + $0x68] sm:$0xff]  }
 0x339   :  { %v7225_v24 = vld [vmem:[#allocation11 + $0xa0] sm:$0xff]  }
 0x33b   :  { %5303 = vmatpush1.bf16.msra.mxu0 %v7146_v26  ;;  %5475 = vmatpush1.bf16.msra.mxu1 %v7149_v27  ;;  %v7227_v26 = vld [vmem:[#allocation11 + $0xe8] sm:$0xff]  }
 0x33c   :  { %5304 = vmatprep.subr.bf16.mxu0 %v7154_v61  ;;  %5476 = vmatprep.subr.bf16.mxu1 %v7157_v28  ;;  %v7228_v27 = vld [vmem:[#allocation11 + $0x28] sm:$0xff]   ;;  %v7230_v28 = vld [vmem:[#allocation11 + $0x70] sm:$0xff]  }
 0x33d   :  { %v7229_v61 = vld [vmem:[#allocation11 + $0xa8] sm:$0xff]  }
 0x33f   :  { %5305 = vmatpush1.bf16.msra.mxu0 %v7152_v29  ;;  %5477 = vmatpush1.bf16.msra.mxu1 %v7155_v30  ;;  %v7231_v29 = vld [vmem:[#allocation11 + $0xf0] sm:$0xff]  }
 0x340   :  { %5306 = vmatprep.subr.bf16.mxu0 %v7160_v32  ;;  %5478 = vmatprep.subr.bf16.mxu1 %v7163_v31  ;;  %v7232_v30 = vld [vmem:[#allocation11 + $0x30] sm:$0xff]   ;;  %v7234_v31 = vld [vmem:[#allocation11 + $0x78] sm:$0xff]  }
 0x341   :  { %v7233_v32 = vld [vmem:[#allocation11 + $0xb0] sm:$0xff]  }
 0x343   :  { %5307 = vmatpush1.bf16.msra.mxu0 %v7158_v33  ;;  %5479 = vmatpush1.bf16.msra.mxu1 %v7161_v34  ;;  %v7235_v33 = vld [vmem:[#allocation11 + $0xf8] sm:$0xff]  }
 0x344   :  { %5308 = vmatprep.subr.bf16.mxu0 %v7166_v35  ;;  %5480 = vmatprep.subr.bf16.mxu1 %v7169_v36  ;;  %v7236_v34 = vld [vmem:[#allocation11 + $0x38] sm:$0xff]  }
 0x345   :  { %v7237_v35 = vld [vmem:[#allocation11 + $0xb8] sm:$0xff]  }
 0x346   :  { %v3859_v36 = vld [vmem:[#allocation10] sm:$0xf] }
 0x347   :  { %5309 = vmatpush1.bf16.msra.mxu0 %v7164_v37  ;;  %5481 = vmatpush1.bf16.msra.mxu1 %v7167_v38  ;;  %v3864_v37 = vrot.slane %v3859_v36, %v577_v62  ;;  %v3872_v38 = vrot.slane %v3859_v36, %v585_v3 }
 0x348   :  { %5310 = vmatprep.subr.bf16.mxu0 %v7172_v39  ;;  %5482 = vmatprep.subr.bf16.mxu1 %v7175_v40  ;;  %v3868_v39 = vrot.slane %v3859_v36, %v581_v4  ;;  %v3876_v40 = vrot.slane %v3859_v36, %v589_v6 }
 0x34b   :  { %5311 = vmatpush1.bf16.msra.mxu0 %v7170_v41  ;;  %5483 = vmatpush1.bf16.msra.mxu1 %v7173_v42 }
 0x34c   :  { %5312 = vmatprep.subr.bf16.mxu0 %v7178_v43  ;;  %5484 = vmatprep.subr.bf16.mxu1 %v7181_v44 }
 0x34f   :  { %5313 = vmatpush1.bf16.msra.mxu0 %v7176_v45  ;;  %5485 = vmatpush1.bf16.msra.mxu1 %v7179_v46 }
 0x350   :  { %5314 = vmatprep.subr.bf16.mxu0 %v7184_v47  ;;  %5486 = vmatprep.subr.bf16.mxu1 %v7187_v48 }
 0x353   :  { %5315 = vmatpush1.bf16.msra.mxu0 %v7182_v49  ;;  %5487 = vmatpush1.bf16.msra.mxu1 %v7185_v50 }
 0x354   :  { %5316 = vmatprep.subr.bf16.mxu0 %v7190_v2  ;;  %5488 = vmatprep.subr.bf16.mxu1 %v7193_v51 }
 0x357   :  { %5317 = vmatpush1.bf16.msra.mxu0 %v7188_v52  ;;  %5489 = vmatpush1.bf16.msra.mxu1 %v7191_v53 }
 0x358   :  { %5318 = vmatprep.subr.bf16.mxu0 %v7196_v55  ;;  %5490 = vmatprep.subr.bf16.mxu1 %v7199_v57 }
 0x35b   :  { %5319 = vmatpush1.bf16.msra.mxu0 %v7194_v59  ;;  %5491 = vmatpush1.bf16.msra.mxu1 %v7197_v60 }
 0x35c   :  { %5320 = vmatprep.subr.bf16.mxu0 %v7202_v63  ;;  %5492 = vmatprep.subr.bf16.mxu1 %v7205_v0 }
 0x35f   :  { %5321 = vmatpush1.bf16.msra.mxu0 %v7200_v1  ;;  %5493 = vmatpush1.bf16.msra.mxu1 %v7203_v5 }
 0x360   :  { %6655 = vmatprep.subr.bf16.mxu0 %v7206_v7  ;;  %6677 = vmatprep.subr.bf16.mxu1 %v7207_v8 }
 0x362   :  { %5323 = vmatmul.mubr.bf16.vlgmr.msra.gmra.mrb[8].mxu0 %v7627_v58  ;;  %5495 = vmatmul.mubr.bf16.vlgmr.msra.gmra.mrb[8].mxu1 %v7627_v58  ;;  %v7221_v58 = vld [vmem:[#allocation11 + $0x98] sm:$0xff]  }
 0x363   :  { %6656 = vmatpush3.bf16.msra.mxu0 %v7208_v9  ;;  %6678 = vmatpush3.bf16.msra.mxu1 %v7209_v10  ;;  %v6613_v10 = vld [vmem:[#allocation13] ss:$0 sm:$0xff] }
 0x364   :  { %6657 = vmatprep.subr.bf16.mxu0 %v7210_v11  ;;  %6679 = vmatprep.subr.bf16.mxu1 %v7211_v12 }
 0x367   :  { %6658 = vmatpush3.bf16.msra.mxu0 %v7212_v13  ;;  %6680 = vmatpush3.bf16.msra.mxu1 %v7213_v14 }
 0x368   :  { %6659 = vmatprep.subr.bf16.mxu0 %v7214_v15  ;;  %6681 = vmatprep.subr.bf16.mxu1 %v7215_v16 }
 0x36b   :  { %6660 = vmatpush3.bf16.msra.mxu0 %v7216_v17  ;;  %6682 = vmatpush3.bf16.msra.mxu1 %v7217_v18 }
 0x36c   :  { %6661 = vmatprep.subr.bf16.mxu0 %v7218_v19  ;;  %6683 = vmatprep.subr.bf16.mxu1 %v7219_v20 }
 0x36f   :  { %6662 = vmatpush3.bf16.msra.mxu0 %v7220_v21  ;;  %6684 = vmatpush3.bf16.msra.mxu1 %v7221_v58 }
 0x370   :  { %6663 = vmatprep.subr.bf16.mxu0 %v7222_v22  ;;  %6685 = vmatprep.subr.bf16.mxu1 %v7223_v23 }
 0x373   :  { %6664 = vmatpush3.bf16.msra.mxu0 %v7224_v54  ;;  %6686 = vmatpush3.bf16.msra.mxu1 %v7225_v24 }
 0x374   :  { %6665 = vmatprep.subr.bf16.mxu0 %v7226_v25  ;;  %6687 = vmatprep.subr.bf16.mxu1 %v7227_v26 }
 0x377   :  { %6666 = vmatpush3.bf16.msra.mxu0 %v7228_v27  ;;  %6688 = vmatpush3.bf16.msra.mxu1 %v7229_v61 }
 0x378   :  { %6667 = vmatprep.subr.bf16.mxu0 %v7230_v28  ;;  %6689 = vmatprep.subr.bf16.mxu1 %v7231_v29 }
 0x37b   :  { %6668 = vmatpush3.bf16.msra.mxu0 %v7232_v30  ;;  %6690 = vmatpush3.bf16.msra.mxu1 %v7233_v32 }
 0x37c   :  { %6669 = vmatprep.subr.bf16.mxu0 %v7234_v31  ;;  %6691 = vmatprep.subr.bf16.mxu1 %v7235_v33 }
 0x37f   :  { %6670 = vmatpush3.bf16.msra.mxu0 %v7236_v34  ;;  %6692 = vmatpush3.bf16.msra.mxu1 %v7237_v35 }
 0x435   :  { %v5324_v41 = vpop.f32.mrb[8].mxu0  ;;  %v5496_v42 = vpop.f32.mrb[8].mxu1 }
 0x436   :  { %v6715_v43 = vadd.f32 %v5324_v41, %v3864_v37  ;;  %v6719_v44 = vadd.f32 %v5496_v42, %v3872_v38  ;;  %v5326_v45 = vpop.f32.mrb[9].mxu0  ;;  %v5498_v46 = vpop.f32.mrb[9].mxu1 }
 0x437   :  { %v6716_v47 = vadd.f32 %v5326_v45, %v3868_v39  ;;  %v6720_v48 = vadd.f32 %v5498_v46, %v3876_v40  ;;  %v5328_v49 = vpop.f32.mrb[10].mxu0  ;;  %v5500_v50 = vpop.f32.mrb[10].mxu1 }
 0x438   :  { %v6717_v62 = vadd.f32 %v5328_v49, %v3864_v37  ;;  %v6721_v2 = vadd.f32 %v5500_v50, %v3872_v38  ;;  %v5330_v51 = vpop.f32.mrb[11].mxu0  ;;  %v5502_v3 = vpop.f32.mrb[11].mxu1  ;;  %v5505_v4 = vmax.f32 %v6715_v43, 0.0  ;;  %v5507_v55 = vmax.f32 %v6719_v44, 0.0 }
 0x439   :  { %v6718_v52 = vadd.f32 %v5330_v51, %v3868_v39  ;;  %v6722_v53 = vadd.f32 %v5502_v3, %v3876_v40  ;;  %v5506_v57 = vmax.f32 %v6716_v47, 0.0  ;;  %v5508_v59 = vmax.f32 %v6720_v48, 0.0 }
 0x43a   :  { %v5509_v56 = vmax.f32 %v6717_v62, 0.0  ;;  %v5511_v6 = vmax.f32 %v6721_v2, 0.0 }
 0x43b   :  { %v5510_v60 = vmax.f32 %v6718_v52, 0.0  ;;  %v5512_v63 = vmax.f32 %v6722_v53, 0.0 }
 0x43c   :  { %v5513_v0 = vpack.c.bf16 %v5509_v56, %v5505_v4  ;;  %v5515_v1 = vpack.c.bf16 %v5511_v6, %v5507_v55 }
 0x43d   :  { %v5514_v5 = vpack.c.bf16 %v5510_v60, %v5506_v57  ;;  %v5516_v7 = vpack.c.bf16 %v5512_v63, %v5508_v59 }
 0x43f   :  { %5812 = vmatprep.mubr.bf16.mxu0 %v5514_v5  ;;  %5853 = vmatprep.mubr.bf16.mxu1 %v5516_v7 }
 0x440   :  { %5813 = vmatmul.mubr.bf16.vlgmr.msra.gmra.mrb[12].mxu0 %v5513_v0  ;;  %5854 = vmatmul.mubr.bf16.vlgmr.msra.gmra.mrb[12].mxu1 %v5515_v1 }
 0x513   :  { %v6671_v8 = vpop.f32.mrb[12].mxu0  ;;  %v6693_v9 = vpop.f32.mrb[12].mxu1 }
 0x514   :  { %v6672_v11 = vpop.f32.mrb[13].mxu0  ;;  %v6694_v12 = vpop.f32.mrb[13].mxu1 }
 0x515   :  { %v6673_v13 = vadd.f32 %v6672_v11, %v6671_v8  ;;  %v6695_v14 = vadd.f32 %v6694_v12, %v6693_v9  ;;  %v6674_v15 = vpop.f32.mrb[14].mxu0  ;;  %v6696_v16 = vpop.f32.mrb[14].mxu1 }
 0x516   :  { %v6675_v17 = vpop.f32.mrb[15].mxu0  ;;  %v6697_v18 = vpop.f32.mrb[15].mxu1 }
 0x517   :  { %v5815_v19 = vadd.f32 %v6673_v13, %v6613_v10  ;;  %v6676_v20 = vadd.f32 %v6675_v17, %v6674_v15  ;;  %v6698_v21 = vadd.f32 %v6697_v18, %v6696_v16 }
 0x519   :  { %v5856_v58 = vadd.f32 %v6695_v14, %v5815_v19  ;;  %v5818_v22 = vadd.f32 %v6676_v20, %v6613_v10 }
 0x51b   :  { %v5862_v23 = vsub.f32 0.0, %v5856_v58  ;;  %v5859_v54 = vadd.f32 %v6698_v21, %v5818_v22 }
 0x51d   :  { %v5864_v24 = vmul.f32 1.442695, %v5862_v23  ;;  %v5863_v25 = vsub.f32 0.0, %v5859_v54 }
 0x51f   :  { %7238 = vpow2.f32 %v5864_v24  ;;  %v5866_v26 = vmul.f32 1.442695, %v5863_v25 }
 0x521   :  { %7240 = vpow2.f32 %v5866_v26 }
 0x529   :  { %v7239_v27 = vpop.eup %7238 }
 0x52a   :  { %v5868_v61 = vadd.f32 1.0, %v7239_v27 }
 0x52b   :  { %v7241_v28 = vpop.eup %7240 }
 0x52c   :  { %v5869_v29 = vadd.f32 1.0, %v7241_v28  ;;  %7242 = vrcp.f32 %v5868_v61 }
 0x52e   :  { %7244 = vrcp.f32 %v5869_v29 }
 0x536   :  { %v7243_v30 = vpop.eup %7242 }
 0x538   :  { %v7245_v32 = vpop.eup %7244 }
 0x539   :  { %v6653_v31 = vpack.c.bf16 %v7245_v32, %v7243_v30 }
 0x53b   :  { %6654 = vst [vmem:[#allocation14] sm:$0xff] %v6653_v31  }
 0x53c   :  { %7418 = shalt.err (!%p7415_p4)
}
 0x53d   :  { %s7419_s21 = scalar_lea.hbm %s7661_s7, 128 }
 0x53e   :  { %p7420_p5 = scmp.ne.s32.totalorder %s7661_s7, %s7419_s21  ;;  %p7423_p6 = scmp.lt.u32.totalorder %s7419_s21, %s7661_s7 }
 0x540   :  { %p7425_p7 = pnand %p7423_p6, %p7420_p5 }
 0x542   :  { %7428 = shalt.err (!%p7425_p7)
}
 0x543   :  { %5893 = dma.vmem_to_hbm [thread:$0]  %s5888_s18, 128, %s7661_s7, [#allocation4], %s7446_s3, %s7446_s3, %s7447_s15  }
 0x544   :  { %7437 = dma.done.wait [#allocation4], 128  }
 0x545   :  { %7438 = vsyncadd [#allocation4], 4294967168 }
 0x546   :  { %5897 = vsyncpa [#allocation3], 1 }
 0x547   :  { %5898 = vsyncpa [#allocation6], 1 }
 0x548   :  { %5899 = vsyncpa [#allocation9], 1 }
 0x549   :  { %5900 = vsyncpa [#allocation12], 1 }
 0x54a   :  { %5901 = vsyncpa [#allocation4], 1 }

// kernel: tpu_custom_call.1
= control target key start
LH: loop header
LB: loop body
LE: loop exit
PB: predicated region body
PF: predicated region fallthrough
CT: control target
= control target key end

     0   :  { %12 = vsyncpa [#allocation3], 0  ;;  %s7654_s0 = inlined_call_operand.hbm [shape: bf16[16,896], index: 0, kind: input, shape index: {}]   ;;  %s7655_s1 = inlined_call_operand.hbm [shape: bf16[896,1024], index: 1, kind: input, shape index: {}]   ;;  %s7656_s2 = inlined_call_operand.hbm [shape: f32[1,1024], index: 2, kind: input, shape index: {}]   ;;  %s7657_s3 = inlined_call_operand.hbm [shape: bf16[1024,512], index: 3, kind: input, shape index: {}]   ;;  %s7658_s4 = inlined_call_operand.hbm [shape: f32[1,512], index: 4, kind: input, shape index: {}]   ;;  %s7659_s5 = inlined_call_operand.hbm [shape: bf16[512,128], index: 5, kind: input, shape index: {}]   ;;  %s7660_s6 = inlined_call_operand.hbm [shape: f32[1,128], index: 6, kind: input, shape index: {}]   ;;  %s7661_s7 = inlined_call_operand.hbm [shape: bf16[16,128], index: 7, kind: output, shape index: {}]  }
   0x1   :  { %13 = vsyncpa [#allocation6], 0 }
   0x2   :  { %14 = vsyncpa [#allocation9], 0 }
   0x3   :  { %15 = vsyncpa [#allocation12], 0 }
   0x4   :  { %16 = vsyncpa [#allocation4], 0  ;;  %s7439_s24 = smov [#allocation5]   ;;  %s7253_s28 = scalar_lea.hbm %s7655_s1, 57344 }
   0x5   :  { %s34_s25 = sshll.u32 %s7439_s24, 4  ;;  %p7254_p0 = scmp.ne.s32.totalorder %s7655_s1, %s7253_s28  ;;  %s35_s25 = int_to_ptr.vmem [resolvable:$true] %s34_s25 }
   0x6   :  { %p7257_p1 = scmp.lt.u32.totalorder %s7253_s28, %s7655_s1 }
   0x8   :  { %p7259_p2 = pnand %p7257_p1, %p7254_p0 }
   0xa   :  { %7262 = shalt.err (!%p7259_p2)
}
   0xb   :  { %s7263_s10 = scalar_lea.vmem %s35_s25, 57344  ;;  %p7268_p4 = scmp.lt.s32.totalorder %s35_s25, %s35_s25 }
   0xc   :  { %p7264_p3 = scmp.ne.s32.totalorder %s35_s25, %s7263_s10  ;;  %p7269_p5 = scmp.lt.s32.totalorder %s7263_s10, %s7263_s10 }
   0xe   :  { %p7270_p6 = por %p7269_p5, %p7268_p4 }
  0x10   :  { %p7271_p7 = pnand %p7270_p6, %p7264_p3 }
  0x12   :  { %7274 = shalt.err (!%p7271_p7)
}
  0x13   :  { %s7440_s11 = smov 512   ;;  %s7441_s12 = smov 32  }
  0x14   :  { %40 = dma.hbm_to_vmem [thread:$0]  %s7655_s1, 57344, %s35_s25, [#allocation6], %s7440_s11, %s7440_s11, %s7441_s12  }
  0x15   :  { %s7442_s15 = smov [#allocation8]   ;;  %s7275_s19 = scalar_lea.hbm %s7657_s3, 32768 }
  0x16   :  { %s56_s16 = sshll.u32 %s7442_s15, 4  ;;  %p7276_p8 = scmp.ne.s32.totalorder %s7657_s3, %s7275_s19  ;;  %s57_s16 = int_to_ptr.vmem [resolvable:$true] %s56_s16 }
  0x17   :  { %p7279_p9 = scmp.lt.u32.totalorder %s7275_s19, %s7657_s3 }
  0x19   :  { %p7281_p10 = pnand %p7279_p9, %p7276_p8 }
  0x1b   :  { %7284 = shalt.err (!%p7281_p10)
}
  0x1c   :  { %s7285_s24 = scalar_lea.vmem %s57_s16, 32768  ;;  %p7290_p12 = scmp.lt.s32.totalorder %s57_s16, %s57_s16 }
  0x1d   :  { %p7286_p11 = scmp.ne.s32.totalorder %s57_s16, %s7285_s24  ;;  %p7291_p13 = scmp.lt.s32.totalorder %s7285_s24, %s7285_s24 }
  0x1f   :  { %p7292_p0 = por %p7291_p13, %p7290_p12 }
  0x21   :  { %p7293_p1 = pnand %p7292_p0, %p7286_p11 }
  0x23   :  { %7296 = shalt.err (!%p7293_p1)
}
  0x24   :  { %s7443_s1 = smov 256   ;;  %s7444_s25 = smov 16  }
  0x25   :  { %62 = dma.hbm_to_vmem [thread:$0]  %s7657_s3, 32768, %s57_s16, [#allocation9], %s7443_s1, %s7443_s1, %s7444_s25  }
  0x26   :  { %s7445_s28 = smov [#allocation11]   ;;  %s7297_s9 = scalar_lea.hbm %s7659_s5, 4096 }
  0x27   :  { %s78_s29 = sshll.u32 %s7445_s28, 4  ;;  %p7298_p2 = scmp.ne.s32.totalorder %s7659_s5, %s7297_s9  ;;  %s79_s29 = int_to_ptr.vmem [resolvable:$true] %s78_s29 }
  0x28   :  { %p7301_p3 = scmp.lt.u32.totalorder %s7297_s9, %s7659_s5 }
  0x2a   :  { %p7303_p4 = pnand %p7301_p3, %p7298_p2 }
  0x2c   :  { %7306 = shalt.err (!%p7303_p4)
}
  0x2d   :  { %s7307_s14 = scalar_lea.vmem %s79_s29, 4096  ;;  %p7312_p6 = scmp.lt.s32.totalorder %s79_s29, %s79_s29 }
  0x2e   :  { %p7308_p5 = scmp.ne.s32.totalorder %s79_s29, %s7307_s14  ;;  %p7313_p7 = scmp.lt.s32.totalorder %s7307_s14, %s7307_s14 }
  0x30   :  { %p7314_p8 = por %p7313_p7, %p7312_p6 }
  0x32   :  { %p7315_p9 = pnand %p7314_p8, %p7308_p5 }
  0x34   :  { %7318 = shalt.err (!%p7315_p9)
}
  0x35   :  { %s7446_s3 = smov 64   ;;  %s7447_s15 = smov 4  }
  0x36   :  { %84 = dma.hbm_to_vmem [thread:$0]  %s7659_s5, 4096, %s79_s29, [#allocation12], %s7446_s3, %s7446_s3, %s7447_s15  }
  0x37   :  { %s7448_s18 = smov [#allocation2]   ;;  %s7319_s22 = scalar_lea.hbm %s7654_s0, 896 }
  0x38   :  { %s22_s19 = sshll.u32 %s7448_s18, 4  ;;  %p7320_p10 = scmp.ne.s32.totalorder %s7654_s0, %s7319_s22  ;;  %s23_s19 = int_to_ptr.vmem [resolvable:$true] %s22_s19 }
  0x39   :  { %p7323_p11 = scmp.lt.u32.totalorder %s7319_s22, %s7654_s0 }
  0x3b   :  { %p7325_p12 = pnand %p7323_p11, %p7320_p10 }
  0x3d   :  { %7328 = shalt.err (!%p7325_p12)
}
  0x3e   :  { %s7329_s26 = scalar_lea.vmem %s23_s19, 896  ;;  %p7334_p0 = scmp.lt.s32.totalorder %s23_s19, %s23_s19 }
  0x3f   :  { %p7330_p13 = scmp.ne.s32.totalorder %s23_s19, %s7329_s26  ;;  %p7335_p1 = scmp.lt.s32.totalorder %s7329_s26, %s7329_s26 }
  0x41   :  { %p7336_p2 = por %p7335_p1, %p7334_p0 }
  0x43   :  { %p7337_p3 = pnand %p7336_p2, %p7330_p13 }
  0x45   :  { %7340 = shalt.err (!%p7337_p3)
}
  0x46   :  { %s7449_s5 = smov 448   ;;  %s7450_s27 = smov 28  }
  0x47   :  { %28 = dma.hbm_to_vmem [thread:$0]  %s7654_s0, 896, %s23_s19, [#allocation3], %s7449_s5, %s7449_s5, %s7450_s27  }
  0x48   :  { %s7451_s30 = smov [#allocation7]   ;;  %s7452_s9 = smov [#allocation10]  }
  0x49   :  { %s47_s8 = sshll.u32 %s7451_s30, 4  ;;  %s69_s10 = sshll.u32 %s7452_s9, 4  ;;  %s48_s8 = int_to_ptr.vmem [resolvable:$true] %s47_s8  ;;  %s70_s10 = int_to_ptr.vmem [resolvable:$true] %s69_s10 }
  0x4a   :  { %s7341_s13 = scalar_lea.hbm %s7656_s2, 128 }
  0x4b   :  { %p7342_p4 = scmp.ne.s32.totalorder %s7656_s2, %s7341_s13  ;;  %p7345_p5 = scmp.lt.u32.totalorder %s7341_s13, %s7656_s2 }
  0x4d   :  { %p7347_p6 = pnand %p7345_p5, %p7342_p4 }
  0x4f   :  { %7350 = shalt.err (!%p7347_p6)
}
  0x50   :  { %s7351_s0 = scalar_lea.vmem %s48_s8, 128  ;;  %p7356_p8 = scmp.lt.s32.totalorder %s48_s8, %s48_s8 }
  0x51   :  { %p7352_p7 = scmp.ne.s32.totalorder %s48_s8, %s7351_s0  ;;  %p7357_p9 = scmp.lt.s32.totalorder %s7351_s0, %s7351_s0 }
  0x53   :  { %p7358_p10 = por %p7357_p9, %p7356_p8 }
  0x55   :  { %p7359_p11 = pnand %p7358_p10, %p7352_p7 }
  0x57   :  { %7362 = shalt.err (!%p7359_p11)
}
  0x58   :  { %50 = dma.hbm_to_vmem [thread:$0]  %s7656_s2, 128, %s48_s8, [#allocation6]  }
  0x59   :  { %s7363_s23 = scalar_lea.hbm %s7658_s4, 64 }
  0x5a   :  { %p7364_p12 = scmp.ne.s32.totalorder %s7658_s4, %s7363_s23  ;;  %p7367_p13 = scmp.lt.u32.totalorder %s7363_s23, %s7658_s4 }
  0x5c   :  { %p7369_p0 = pnand %p7367_p13, %p7364_p12 }
  0x5e   :  { %7372 = shalt.err (!%p7369_p0)
}
  0x5f   :  { %s7373_s5 = scalar_lea.vmem %s70_s10, 64  ;;  %p7378_p2 = scmp.lt.s32.totalorder %s70_s10, %s70_s10 }
  0x60   :  { %p7374_p1 = scmp.ne.s32.totalorder %s70_s10, %s7373_s5  ;;  %p7379_p3 = scmp.lt.s32.totalorder %s7373_s5, %s7373_s5 }
  0x62   :  { %p7380_p4 = por %p7379_p3, %p7378_p2 }
  0x64   :  { %p7381_p5 = pnand %p7380_p4, %p7374_p1 }
  0x66   :  { %7384 = shalt.err (!%p7381_p5)
}
  0x67   :  { %72 = dma.hbm_to_vmem [thread:$0]  %s7658_s4, 64, %s70_s10, [#allocation9]  }
  0x68   :  { %s7453_s28 = smov [#allocation13]   ;;  %s7385_s9 = scalar_lea.hbm %s7660_s6, 16 }
  0x69   :  { %s91_s29 = sshll.u32 %s7453_s28, 4  ;;  %p7386_p6 = scmp.ne.s32.totalorder %s7660_s6, %s7385_s9  ;;  %s92_s29 = int_to_ptr.vmem [resolvable:$true] %s91_s29 }
  0x6a   :  { %p7389_p7 = scmp.lt.u32.totalorder %s7385_s9, %s7660_s6 }
  0x6c   :  { %p7391_p8 = pnand %p7389_p7, %p7386_p6 }
  0x6e   :  { %7394 = shalt.err (!%p7391_p8)
}
  0x6f   :  { %s7395_s16 = scalar_lea.vmem %s92_s29, 16  ;;  %s7399_s4 = scalar_lea.vmem %s92_s29, 32 }
  0x70   :  { %p7396_p9 = scmp.ne.s32.totalorder %s92_s29, %s7395_s16  ;;  %p7400_p10 = scmp.lt.s32.totalorder %s92_s29, %s92_s29 }
  0x71   :  { %p7401_p11 = scmp.lt.s32.totalorder %s7399_s4, %s7395_s16 }
  0x73   :  { %p7402_p12 = por %p7401_p11, %p7400_p10 }
  0x75   :  { %p7403_p13 = pnand %p7402_p12, %p7396_p9 }
  0x77   :  { %7406 = shalt.err (!%p7403_p13)
}
  0x78   :  { %94 = dma.hbm_to_vmem [thread:$0]  %s7660_s6, 16, %s92_s29, [#allocation12]  }
  0x79   :  { %7429 = dma.done.wait [#allocation3], 896  }
  0x7a   :  { %7430 = vsyncadd [#allocation3], 4294966400 }
  0x7b   :  { %7431 = dma.done.wait [#allocation6], 57472  }
  0x7c   :  { %7432 = vsyncadd [#allocation6], 4294909824 }
  0x7d   :  { %7433 = dma.done.wait [#allocation9], 32832  }
  0x7e   :  { %7434 = vsyncadd [#allocation9], 4294934464 }
  0x7f   :  { %7435 = dma.done.wait [#allocation12], 4112  }
  0x80   :  { %7436 = vsyncadd [#allocation12], 4294963184  ;;  %v125_v0 = vld [vmem:[#allocation5] sm:$0xff]  ;;  %v126_v2 = vld [vmem:[#allocation5 + $0x8] sm:$0xff]  ;;  %s7455_s6 = smov [#allocation14]  }
  0x81   :  { %v129_v1 = vld [vmem:[#allocation5 + $0x20] sm:$0xff]  ;;  %v130_v4 = vld [vmem:[#allocation5 + $0x28] sm:$0xff]  ;;  %s5887_s18 = sshll.u32 %s7455_s6, 4  ;;  %s5888_s18 = int_to_ptr.vmem [resolvable:$true] %s5887_s18 }
  0x82   :  { %v5910_v3 = vcombine.high %v125_v0, %v129_v1  ;;  %v5909_v5 = vcombine.low %v125_v0, %v129_v1  ;;  %v133_v6 = vld [vmem:[#allocation5 + $0x40] sm:$0xff]  ;;  %v5912_v8 = vcombine.high %v126_v2, %v130_v4  ;;  %v5911_v9 = vcombine.low %v126_v2, %v130_v4  ;;  %v134_v11 = vld [vmem:[#allocation5 + $0x48] sm:$0xff]  ;;  %s7407_s0 = scalar_lea.vmem %s5888_s18, 128  ;;  %p7412_p1 = scmp.lt.s32.totalorder %s5888_s18, %s5888_s18 }
  0x83   :  { %v137_v7 = vld [vmem:[#allocation5 + $0x60] sm:$0xff]  ;;  %v138_v12 = vld [vmem:[#allocation5 + $0x68] sm:$0xff]  ;;  %p7408_p0 = scmp.ne.s32.totalorder %s5888_s18, %s7407_s0  ;;  %p7413_p2 = scmp.lt.s32.totalorder %s7407_s0, %s7407_s0 }
  0x84   :  { %v5918_v10 = vcombine.high %v133_v6, %v137_v7  ;;  %v141_v13 = vld [vmem:[#allocation5 + $0x80] sm:$0xff]  ;;  %2891 = vmatprep.subr.bf16.mxu0 %v5910_v3  ;;  %v5920_v14 = vcombine.high %v134_v11, %v138_v12  ;;  %v142_v16 = vld [vmem:[#allocation5 + $0x88] sm:$0xff]  ;;  %3063 = vmatprep.subr.bf16.mxu1 %v5912_v8  ;;  %v5917_v18 = vcombine.low %v133_v6, %v137_v7 }
  0x85   :  { %v145_v15 = vld [vmem:[#allocation5 + $0xa0] sm:$0xff]  ;;  %v146_v17 = vld [vmem:[#allocation5 + $0xa8] sm:$0xff]  ;;  %2892 = vmatpush1.bf16.msra.mxu0 %v5909_v5  ;;  %3064 = vmatpush1.bf16.msra.mxu1 %v5911_v9  ;;  %v5919_v19 = vcombine.low %v134_v11, %v138_v12  ;;  %p7414_p3 = por %p7413_p2, %p7412_p1 }
  0x86   :  { %2893 = vmatprep.subr.bf16.mxu0 %v5918_v10  ;;  %v5926_v20 = vcombine.high %v141_v13, %v145_v15  ;;  %3065 = vmatprep.subr.bf16.mxu1 %v5920_v14  ;;  %v5928_v21 = vcombine.high %v142_v16, %v146_v17  ;;  %v149_v22 = vld [vmem:[#allocation5 + $0xc0] sm:$0xff]  ;;  %v150_v24 = vld [vmem:[#allocation5 + $0xc8] sm:$0xff]  ;;  %v5925_v26 = vcombine.low %v141_v13, %v145_v15 }
  0x87   :  { %v153_v23 = vld [vmem:[#allocation5 + $0xe0] sm:$0xff]  ;;  %v154_v25 = vld [vmem:[#allocation5 + $0xe8] sm:$0xff]  ;;  %v5927_v27 = vcombine.low %v142_v16, %v146_v17  ;;  %p7415_p4 = pnand %p7414_p3, %p7408_p0 }
  0x88   :  { %v5934_v28 = vcombine.high %v149_v22, %v153_v23  ;;  %v5936_v29 = vcombine.high %v150_v24, %v154_v25  ;;  %v157_v30 = vld [vmem:[#allocation5 + $0x100] sm:$0xff]  ;;  %v158_v32 = vld [vmem:[#allocation5 + $0x108] sm:$0xff]  ;;  %v5933_v34 = vcombine.low %v149_v22, %v153_v23  ;;  %v5935_v35 = vcombine.low %v150_v24, %v154_v25 }
  0x89   :  { %2894 = vmatpush1.bf16.msra.mxu0 %v5917_v18  ;;  %3066 = vmatpush1.bf16.msra.mxu1 %v5919_v19  ;;  %v161_v31 = vld [vmem:[#allocation5 + $0x120] sm:$0xff]  ;;  %v162_v33 = vld [vmem:[#allocation5 + $0x128] sm:$0xff] }
  0x8a   :  { %2895 = vmatprep.subr.bf16.mxu0 %v5926_v20  ;;  %3067 = vmatprep.subr.bf16.mxu1 %v5928_v21  ;;  %v5942_v36 = vcombine.high %v157_v30, %v161_v31  ;;  %v5944_v37 = vcombine.high %v158_v32, %v162_v33  ;;  %v165_v38 = vld [vmem:[#allocation5 + $0x140] sm:$0xff]  ;;  %v166_v40 = vld [vmem:[#allocation5 + $0x148] sm:$0xff]  ;;  %v5941_v42 = vcombine.low %v157_v30, %v161_v31 }
  0x8b   :  { %v169_v39 = vld [vmem:[#allocation5 + $0x160] sm:$0xff]  ;;  %v170_v41 = vld [vmem:[#allocation5 + $0x168] sm:$0xff]  ;;  %v5943_v43 = vcombine.low %v158_v32, %v162_v33 }
  0x8c   :  { %v5950_v44 = vcombine.high %v165_v38, %v169_v39  ;;  %v5952_v45 = vcombine.high %v166_v40, %v170_v41  ;;  %v173_v46 = vld [vmem:[#allocation5 + $0x180] sm:$0xff]  ;;  %v174_v48 = vld [vmem:[#allocation5 + $0x188] sm:$0xff]  ;;  %v5949_v50 = vcombine.low %v165_v38, %v169_v39  ;;  %v5951_v51 = vcombine.low %v166_v40, %v170_v41 }
  0x8d   :  { %2896 = vmatpush1.bf16.msra.mxu0 %v5925_v26  ;;  %3068 = vmatpush1.bf16.msra.mxu1 %v5927_v27  ;;  %v177_v47 = vld [vmem:[#allocation5 + $0x1a0] sm:$0xff]  ;;  %v178_v49 = vld [vmem:[#allocation5 + $0x1a8] sm:$0xff] }
  0x8e   :  { %2897 = vmatprep.subr.bf16.mxu0 %v5934_v28  ;;  %3069 = vmatprep.subr.bf16.mxu1 %v5936_v29  ;;  %v5958_v52 = vcombine.high %v173_v46, %v177_v47  ;;  %v5960_v53 = vcombine.high %v174_v48, %v178_v49  ;;  %v181_v54 = vld [vmem:[#allocation5 + $0x1c0] sm:$0xff]  ;;  %v6812_v56 = vld [vmem:[#allocation2 + $0x4] ss:$28 sps:$4 sm:$0xff]   ;;  %v5957_v59 = vcombine.low %v173_v46, %v177_v47 }
  0x8f   :  { %v185_v55 = vld [vmem:[#allocation5 + $0x1e0] sm:$0xff]  ;;  %v182_v57 = vld [vmem:[#allocation5 + $0x1c8] sm:$0xff]  ;;  %2923 = vmatprep.mubr.bf16.mxu0 %v6812_v56  ;;  %v5959_v60 = vcombine.low %v174_v48, %v178_v49  ;;  %3095 = vmatprep.mubr.bf16.mxu1 %v6812_v56 }
  0x90   :  { %v186_v58 = vld [vmem:[#allocation5 + $0x1e8] sm:$0xff]  ;;  %v5966_v61 = vcombine.high %v181_v54, %v185_v55  ;;  %v189_v63 = vld [vmem:[#allocation5 + $0x200] sm:$0xff]  ;;  %v5965_v3 = vcombine.low %v181_v54, %v185_v55 }
  0x91   :  { %2898 = vmatpush1.bf16.msra.mxu0 %v5933_v34  ;;  %3070 = vmatpush1.bf16.msra.mxu1 %v5935_v35  ;;  %v5968_v62 = vcombine.high %v182_v57, %v186_v58  ;;  %v193_v0 = vld [vmem:[#allocation5 + $0x220] sm:$0xff]  ;;  %v190_v1 = vld [vmem:[#allocation5 + $0x208] sm:$0xff]  ;;  %v5967_v4 = vcombine.low %v182_v57, %v186_v58 }
  0x92   :  { %2899 = vmatprep.subr.bf16.mxu0 %v5942_v36  ;;  %3071 = vmatprep.subr.bf16.mxu1 %v5944_v37  ;;  %v194_v2 = vld [vmem:[#allocation5 + $0x228] sm:$0xff]  ;;  %v5974_v5 = vcombine.high %v189_v63, %v193_v0  ;;  %v197_v7 = vld [vmem:[#allocation5 + $0x240] sm:$0xff]  ;;  %v5973_v11 = vcombine.low %v189_v63, %v193_v0 }
  0x93   :  { %v5976_v6 = vcombine.high %v190_v1, %v194_v2  ;;  %v201_v8 = vld [vmem:[#allocation5 + $0x260] sm:$0xff]  ;;  %v198_v9 = vld [vmem:[#allocation5 + $0x248] sm:$0xff]  ;;  %v5975_v12 = vcombine.low %v190_v1, %v194_v2 }
  0x94   :  { %v202_v10 = vld [vmem:[#allocation5 + $0x268] sm:$0xff]  ;;  %v5982_v13 = vcombine.high %v197_v7, %v201_v8  ;;  %v205_v15 = vld [vmem:[#allocation5 + $0x280] sm:$0xff]  ;;  %v5981_v19 = vcombine.low %v197_v7, %v201_v8 }
  0x95   :  { %2900 = vmatpush1.bf16.msra.mxu0 %v5941_v42  ;;  %3072 = vmatpush1.bf16.msra.mxu1 %v5943_v43  ;;  %v5984_v14 = vcombine.high %v198_v9, %v202_v10  ;;  %v209_v16 = vld [vmem:[#allocation5 + $0x2a0] sm:$0xff]  ;;  %v206_v17 = vld [vmem:[#allocation5 + $0x288] sm:$0xff]  ;;  %v5983_v20 = vcombine.low %v198_v9, %v202_v10 }
  0x96   :  { %2901 = vmatprep.subr.bf16.mxu0 %v5950_v44  ;;  %3073 = vmatprep.subr.bf16.mxu1 %v5952_v45  ;;  %v210_v18 = vld [vmem:[#allocation5 + $0x2a8] sm:$0xff]  ;;  %v5990_v21 = vcombine.high %v205_v15, %v209_v16  ;;  %v213_v23 = vld [vmem:[#allocation5 + $0x2c0] sm:$0xff]  ;;  %v5989_v27 = vcombine.low %v205_v15, %v209_v16 }
  0x97   :  { %v5992_v22 = vcombine.high %v206_v17, %v210_v18  ;;  %v217_v24 = vld [vmem:[#allocation5 + $0x2e0] sm:$0xff]  ;;  %v214_v25 = vld [vmem:[#allocation5 + $0x2c8] sm:$0xff]  ;;  %v5991_v28 = vcombine.low %v206_v17, %v210_v18  ;;  %v6815_v18 = vld [vmem:[#allocation2 + $0xc] ss:$28 sps:$4 sm:$0xff]  }
  0x98   :  { %v218_v26 = vld [vmem:[#allocation5 + $0x2e8] sm:$0xff]  ;;  %v5998_v29 = vcombine.high %v213_v23, %v217_v24  ;;  %v221_v31 = vld [vmem:[#allocation5 + $0x300] sm:$0xff]  ;;  %v5997_v35 = vcombine.low %v213_v23, %v217_v24 }
  0x99   :  { %2902 = vmatpush1.bf16.msra.mxu0 %v5949_v50  ;;  %3074 = vmatpush1.bf16.msra.mxu1 %v5951_v51  ;;  %v6000_v30 = vcombine.high %v214_v25, %v218_v26  ;;  %v225_v32 = vld [vmem:[#allocation5 + $0x320] sm:$0xff]  ;;  %v222_v33 = vld [vmem:[#allocation5 + $0x308] sm:$0xff]  ;;  %v5999_v36 = vcombine.low %v214_v25, %v218_v26 }
  0x9a   :  { %2903 = vmatprep.subr.bf16.mxu0 %v5958_v52  ;;  %3075 = vmatprep.subr.bf16.mxu1 %v5960_v53  ;;  %v226_v34 = vld [vmem:[#allocation5 + $0x328] sm:$0xff]  ;;  %v6006_v37 = vcombine.high %v221_v31, %v225_v32  ;;  %v229_v39 = vld [vmem:[#allocation5 + $0x340] sm:$0xff]  ;;  %v6005_v43 = vcombine.low %v221_v31, %v225_v32 }
  0x9b   :  { %v6008_v38 = vcombine.high %v222_v33, %v226_v34  ;;  %v233_v40 = vld [vmem:[#allocation5 + $0x360] sm:$0xff]  ;;  %v230_v41 = vld [vmem:[#allocation5 + $0x348] sm:$0xff]  ;;  %v6007_v44 = vcombine.low %v222_v33, %v226_v34 }
  0x9c   :  { %v234_v42 = vld [vmem:[#allocation5 + $0x368] sm:$0xff]  ;;  %v6014_v45 = vcombine.high %v229_v39, %v233_v40  ;;  %v237_v47 = vld [vmem:[#allocation5 + $0x380] sm:$0xff]  ;;  %v6013_v51 = vcombine.low %v229_v39, %v233_v40 }
  0x9d   :  { %2904 = vmatpush1.bf16.msra.mxu0 %v5957_v59  ;;  %3076 = vmatpush1.bf16.msra.mxu1 %v5959_v60  ;;  %v6016_v46 = vcombine.high %v230_v41, %v234_v42  ;;  %v241_v48 = vld [vmem:[#allocation5 + $0x3a0] sm:$0xff]  ;;  %v238_v49 = vld [vmem:[#allocation5 + $0x388] sm:$0xff]  ;;  %v6015_v52 = vcombine.low %v230_v41, %v234_v42 }
  0x9e   :  { %2905 = vmatprep.subr.bf16.mxu0 %v5966_v61  ;;  %3077 = vmatprep.subr.bf16.mxu1 %v5968_v62  ;;  %v242_v50 = vld [vmem:[#allocation5 + $0x3a8] sm:$0xff]  ;;  %v6022_v53 = vcombine.high %v237_v47, %v241_v48  ;;  %v245_v55 = vld [vmem:[#allocation5 + $0x3c0] sm:$0xff]  ;;  %v6021_v59 = vcombine.low %v237_v47, %v241_v48 }
  0x9f   :  { %v6024_v54 = vcombine.high %v238_v49, %v242_v50  ;;  %v249_v56 = vld [vmem:[#allocation5 + $0x3e0] sm:$0xff]  ;;  %v246_v57 = vld [vmem:[#allocation5 + $0x3c8] sm:$0xff]  ;;  %v6023_v60 = vcombine.low %v238_v49, %v242_v50 }
  0xa0   :  { %v250_v58 = vld [vmem:[#allocation5 + $0x3e8] sm:$0xff]  ;;  %v6030_v61 = vcombine.high %v245_v55, %v249_v56  ;;  %v253_v63 = vld [vmem:[#allocation5 + $0x400] sm:$0xff] }
  0xa1   :  { %2906 = vmatpush1.bf16.msra.mxu0 %v5965_v3  ;;  %3078 = vmatpush1.bf16.msra.mxu1 %v5967_v4  ;;  %v6032_v62 = vcombine.high %v246_v57, %v250_v58  ;;  %v257_v0 = vld [vmem:[#allocation5 + $0x420] sm:$0xff]  ;;  %v254_v1 = vld [vmem:[#allocation5 + $0x408] sm:$0xff]  ;;  %v6029_v3 = vcombine.low %v245_v55, %v249_v56  ;;  %v6031_v4 = vcombine.low %v246_v57, %v250_v58 }
  0xa2   :  { %2907 = vmatprep.subr.bf16.mxu0 %v5974_v5  ;;  %3079 = vmatprep.subr.bf16.mxu1 %v5976_v6  ;;  %v258_v2 = vld [vmem:[#allocation5 + $0x428] sm:$0xff]  ;;  %v6038_v5 = vcombine.high %v253_v63, %v257_v0  ;;  %v261_v7 = vld [vmem:[#allocation5 + $0x440] sm:$0xff] }
  0xa3   :  { %v6040_v6 = vcombine.high %v254_v1, %v258_v2  ;;  %v265_v8 = vld [vmem:[#allocation5 + $0x460] sm:$0xff]  ;;  %v262_v10 = vld [vmem:[#allocation5 + $0x448] sm:$0xff] }
  0xa4   :  { %v6814_v9 = vld [vmem:[#allocation2] ss:$28 sps:$4 sm:$0xff]  }
  0xa5   :  { %2908 = vmatpush1.bf16.msra.mxu0 %v5973_v11  ;;  %3080 = vmatpush1.bf16.msra.mxu1 %v5975_v12  ;;  %v266_v11 = vld [vmem:[#allocation5 + $0x468] sm:$0xff]  ;;  %v6037_v12 = vcombine.low %v253_v63, %v257_v0  ;;  %v269_v15 = vld [vmem:[#allocation5 + $0x480] sm:$0xff] }
  0xa6   :  { %2909 = vmatprep.subr.bf16.mxu0 %v5982_v13  ;;  %3081 = vmatprep.subr.bf16.mxu1 %v5984_v14  ;;  %v6039_v13 = vcombine.low %v254_v1, %v258_v2  ;;  %v6046_v14 = vcombine.high %v261_v7, %v265_v8  ;;  %v6048_v16 = vcombine.high %v262_v10, %v266_v11  ;;  %v273_v17 = vld [vmem:[#allocation5 + $0x4a0] sm:$0xff]  ;;  %v286_v34 = vld [vmem:[#allocation5 + $0x508] sm:$0xff] }
  0xa7   :  { %v6054_v23 = vcombine.high %v269_v15, %v273_v17  ;;  %v277_v24 = vld [vmem:[#allocation5 + $0x4c0] sm:$0xff]  ;;  %v294_v42 = vld [vmem:[#allocation5 + $0x548] sm:$0xff] }
  0xa8   :  { %v281_v25 = vld [vmem:[#allocation5 + $0x4e0] sm:$0xff]  ;;  %v302_v50 = vld [vmem:[#allocation5 + $0x588] sm:$0xff] }
  0xa9   :  { %2910 = vmatpush1.bf16.msra.mxu0 %v5981_v19  ;;  %3082 = vmatpush1.bf16.msra.mxu1 %v5983_v20  ;;  %v270_v19 = vld [vmem:[#allocation5 + $0x488] sm:$0xff]  ;;  %v6062_v31 = vcombine.high %v277_v24, %v281_v25  ;;  %v285_v32 = vld [vmem:[#allocation5 + $0x500] sm:$0xff] }
  0xaa   :  { %2911 = vmatprep.subr.bf16.mxu0 %v5990_v21  ;;  %3083 = vmatprep.subr.bf16.mxu1 %v5992_v22  ;;  %v274_v20 = vld [vmem:[#allocation5 + $0x4a8] sm:$0xff]  ;;  %v6045_v21 = vcombine.low %v261_v7, %v265_v8  ;;  %v6047_v22 = vcombine.low %v262_v10, %v266_v11  ;;  %v289_v33 = vld [vmem:[#allocation5 + $0x520] sm:$0xff] }
  0xab   :  { %v6056_v26 = vcombine.high %v270_v19, %v274_v20  ;;  %v6070_v39 = vcombine.high %v285_v32, %v289_v33  ;;  %v293_v40 = vld [vmem:[#allocation5 + $0x540] sm:$0xff]  ;;  %v310_v58 = vld [vmem:[#allocation5 + $0x5c8] sm:$0xff] }
  0xac   :  { %v297_v41 = vld [vmem:[#allocation5 + $0x560] sm:$0xff]  ;;  %v318_v2 = vld [vmem:[#allocation5 + $0x608] sm:$0xff] }
  0xad   :  { %2912 = vmatpush1.bf16.msra.mxu0 %v5989_v27  ;;  %3084 = vmatpush1.bf16.msra.mxu1 %v5991_v28  ;;  %v278_v27 = vld [vmem:[#allocation5 + $0x4c8] sm:$0xff]  ;;  %v6078_v47 = vcombine.high %v293_v40, %v297_v41  ;;  %v301_v48 = vld [vmem:[#allocation5 + $0x580] sm:$0xff] }
  0xae   :  { %2913 = vmatprep.subr.bf16.mxu0 %v5998_v29  ;;  %3085 = vmatprep.subr.bf16.mxu1 %v6000_v30  ;;  %v282_v28 = vld [vmem:[#allocation5 + $0x4e8] sm:$0xff]  ;;  %v6053_v29 = vcombine.low %v269_v15, %v273_v17  ;;  %v6055_v30 = vcombine.low %v270_v19, %v274_v20  ;;  %v305_v49 = vld [vmem:[#allocation5 + $0x5a0] sm:$0xff] }
  0xaf   :  { %v6086_v55 = vcombine.high %v301_v48, %v305_v49  ;;  %v309_v56 = vld [vmem:[#allocation5 + $0x5c0] sm:$0xff]  ;;  %v326_v10 = vld [vmem:[#allocation5 + $0x648] sm:$0xff] }
  0xb0   :  { %v313_v57 = vld [vmem:[#allocation5 + $0x5e0] sm:$0xff]  ;;  %v334_v19 = vld [vmem:[#allocation5 + $0x688] sm:$0xff] }
  0xb1   :  { %2914 = vmatpush1.bf16.msra.mxu0 %v5997_v35  ;;  %3086 = vmatpush1.bf16.msra.mxu1 %v5999_v36  ;;  %v6064_v35 = vcombine.high %v278_v27, %v282_v28  ;;  %v290_v36 = vld [vmem:[#allocation5 + $0x528] sm:$0xff]  ;;  %v6094_v63 = vcombine.high %v309_v56, %v313_v57  ;;  %v317_v0 = vld [vmem:[#allocation5 + $0x600] sm:$0xff] }
  0xb2   :  { %2915 = vmatprep.subr.bf16.mxu0 %v6006_v37  ;;  %3087 = vmatprep.subr.bf16.mxu1 %v6008_v38  ;;  %v6061_v37 = vcombine.low %v277_v24, %v281_v25  ;;  %v6063_v38 = vcombine.low %v278_v27, %v282_v28  ;;  %v321_v1 = vld [vmem:[#allocation5 + $0x620] sm:$0xff]  ;;  %v338_v20 = vld [vmem:[#allocation5 + $0x6a8] sm:$0xff] }
  0xb3   :  { %v6102_v7 = vcombine.high %v317_v0, %v321_v1  ;;  %v325_v8 = vld [vmem:[#allocation5 + $0x640] sm:$0xff]  ;;  %v6120_v27 = vcombine.high %v334_v19, %v338_v20  ;;  %v346_v28 = vld [vmem:[#allocation5 + $0x6e8] sm:$0xff] }
  0xb4   :  { %v337_v17 = vld [vmem:[#allocation5 + $0x6a0] sm:$0xff] }
  0xb5   :  { %2916 = vmatpush1.bf16.msra.mxu0 %v6005_v43  ;;  %3088 = vmatpush1.bf16.msra.mxu1 %v6007_v44  ;;  %v6072_v43 = vcombine.high %v286_v34, %v290_v36  ;;  %v298_v44 = vld [vmem:[#allocation5 + $0x568] sm:$0xff]  ;;  %v341_v24 = vld [vmem:[#allocation5 + $0x6c0] sm:$0xff] }
  0xb6   :  { %2917 = vmatprep.subr.bf16.mxu0 %v6014_v45  ;;  %3089 = vmatprep.subr.bf16.mxu1 %v6016_v46  ;;  %v6069_v45 = vcombine.low %v285_v32, %v289_v33  ;;  %v6071_v46 = vcombine.low %v286_v34, %v290_v36  ;;  %v345_v25 = vld [vmem:[#allocation5 + $0x6e0] sm:$0xff]  ;;  %v350_v34 = vld [vmem:[#allocation5 + $0x708] sm:$0xff] }
  0xb7   :  { %v349_v32 = vld [vmem:[#allocation5 + $0x700] sm:$0xff]  ;;  %v354_v36 = vld [vmem:[#allocation5 + $0x728] sm:$0xff] }
  0xb8   :  { %v353_v33 = vld [vmem:[#allocation5 + $0x720] sm:$0xff] }
  0xb9   :  { %2918 = vmatpush1.bf16.msra.mxu0 %v6013_v51  ;;  %3090 = vmatpush1.bf16.msra.mxu1 %v6015_v52  ;;  %v6080_v51 = vcombine.high %v294_v42, %v298_v44  ;;  %v306_v52 = vld [vmem:[#allocation5 + $0x5a8] sm:$0xff] }
  0xba   :  { %2919 = vmatprep.subr.bf16.mxu0 %v6022_v53  ;;  %3091 = vmatprep.subr.bf16.mxu1 %v6024_v54  ;;  %v6077_v53 = vcombine.low %v293_v40, %v297_v41  ;;  %v6079_v54 = vcombine.low %v294_v42, %v298_v44  ;;  %v357_v40 = vld [vmem:[#allocation5 + $0x740] sm:$0xff]  ;;  %v358_v42 = vld [vmem:[#allocation5 + $0x748] sm:$0xff] }
  0xbb   :  { %v361_v41 = vld [vmem:[#allocation5 + $0x760] sm:$0xff]  ;;  %v362_v44 = vld [vmem:[#allocation5 + $0x768] sm:$0xff] }
  0xbd   :  { %2920 = vmatpush1.bf16.msra.mxu0 %v6021_v59  ;;  %3092 = vmatpush1.bf16.msra.mxu1 %v6023_v60  ;;  %v6088_v59 = vcombine.high %v302_v50, %v306_v52  ;;  %v314_v60 = vld [vmem:[#allocation5 + $0x5e8] sm:$0xff] }
  0xbe   :  { %2921 = vmatprep.subr.bf16.mxu0 %v6030_v61  ;;  %3093 = vmatprep.subr.bf16.mxu1 %v6032_v62  ;;  %v6085_v61 = vcombine.low %v301_v48, %v305_v49  ;;  %v6087_v62 = vcombine.low %v302_v50, %v306_v52  ;;  %v365_v48 = vld [vmem:[#allocation5 + $0x780] sm:$0xff]  ;;  %v366_v50 = vld [vmem:[#allocation5 + $0x788] sm:$0xff] }
  0xbf   :  { %v369_v49 = vld [vmem:[#allocation5 + $0x7a0] sm:$0xff]  ;;  %v370_v52 = vld [vmem:[#allocation5 + $0x7a8] sm:$0xff] }
  0xc1   :  { %2922 = vmatpush1.bf16.msra.mxu0 %v6029_v3  ;;  %3094 = vmatpush1.bf16.msra.mxu1 %v6031_v4  ;;  %v6096_v3 = vcombine.high %v310_v58, %v314_v60  ;;  %v322_v4 = vld [vmem:[#allocation5 + $0x628] sm:$0xff] }
  0xc2   :  { %2934 = vmatprep.subr.bf16.mxu0 %v6038_v5  ;;  %3106 = vmatprep.subr.bf16.mxu1 %v6040_v6  ;;  %v6093_v5 = vcombine.low %v309_v56, %v313_v57  ;;  %v6095_v6 = vcombine.low %v310_v58, %v314_v60  ;;  %v6104_v11 = vcombine.high %v318_v2, %v322_v4  ;;  %v373_v56 = vld [vmem:[#allocation5 + $0x7c0] sm:$0xff]  ;;  %v374_v58 = vld [vmem:[#allocation5 + $0x7c8] sm:$0xff] }
  0xc3   :  { %v377_v57 = vld [vmem:[#allocation5 + $0x7e0] sm:$0xff]  ;;  %v378_v60 = vld [vmem:[#allocation5 + $0x7e8] sm:$0xff] }
  0xc4   :  { %2924 = vmatmul.mubr.bf16.vlgmr.msra.gmra.mrb[0].mxu0 %v6814_v9  ;;  %3096 = vmatmul.mubr.bf16.vlgmr.msra.gmra.mrb[0].mxu1 %v6814_v9  ;;  %v329_v9 = vld [vmem:[#allocation5 + $0x660] sm:$0xff] }
  0xc5   :  { %2935 = vmatpush1.bf16.msra.mxu0 %v6037_v12  ;;  %3107 = vmatpush1.bf16.msra.mxu1 %v6039_v13  ;;  %v330_v12 = vld [vmem:[#allocation5 + $0x668] sm:$0xff]  ;;  %v6101_v13 = vcombine.low %v317_v0, %v321_v1  ;;  %v6110_v15 = vcombine.high %v325_v8, %v329_v9  ;;  %v381_v0 = vld [vmem:[#allocation5 + $0x800] sm:$0xff] }
  0xc6   :  { %2936 = vmatprep.subr.bf16.mxu0 %v6046_v14  ;;  %3108 = vmatprep.subr.bf16.mxu1 %v6048_v16  ;;  %v6103_v14 = vcombine.low %v318_v2, %v322_v4  ;;  %v333_v16 = vld [vmem:[#allocation5 + $0x680] sm:$0xff]  ;;  %v382_v2 = vld [vmem:[#allocation5 + $0x808] sm:$0xff] }
  0xc7   :  { %2966 = vmatprep.mubr.bf16.mxu0 %v6815_v18  ;;  %3138 = vmatprep.mubr.bf16.mxu1 %v6815_v18  ;;  %v6112_v18 = vcombine.high %v326_v10, %v330_v12  ;;  %v385_v1 = vld [vmem:[#allocation5 + $0x820] sm:$0xff]  ;;  %v386_v4 = vld [vmem:[#allocation5 + $0x828] sm:$0xff] }
  0xc9   :  { %2937 = vmatpush1.bf16.msra.mxu0 %v6045_v21  ;;  %3109 = vmatpush1.bf16.msra.mxu1 %v6047_v22  ;;  %v6109_v21 = vcombine.low %v325_v8, %v329_v9  ;;  %v6111_v22 = vcombine.low %v326_v10, %v330_v12  ;;  %v6817_v8 = vld [vmem:[#allocation2 + $0x8] ss:$28 sps:$4 sm:$0xff]   ;;  %v389_v9 = vld [vmem:[#allocation5 + $0x840] sm:$0xff]  ;;  %v6168_v12 = vcombine.high %v382_v2, %v386_v4 }
  0xca   :  { %2938 = vmatprep.subr.bf16.mxu0 %v6054_v23  ;;  %3110 = vmatprep.subr.bf16.mxu1 %v6056_v26  ;;  %v6118_v23 = vcombine.high %v333_v16, %v337_v17  ;;  %v342_v26 = vld [vmem:[#allocation5 + $0x6c8] sm:$0xff]  ;;  %v393_v10 = vld [vmem:[#allocation5 + $0x860] sm:$0xff] }
  0xcd   :  { %2939 = vmatpush1.bf16.msra.mxu0 %v6053_v29  ;;  %3111 = vmatpush1.bf16.msra.mxu1 %v6055_v30  ;;  %v6117_v29 = vcombine.low %v333_v16, %v337_v17  ;;  %v6119_v30 = vcombine.low %v334_v19, %v338_v20  ;;  %v6167_v16 = vcombine.low %v382_v2, %v386_v4  ;;  %v398_v19 = vld [vmem:[#allocation5 + $0x888] sm:$0xff]  ;;  %v445_v2 = vld [vmem:[#allocation5 + $0xa00] sm:$0xff] }
  0xce   :  { %2940 = vmatprep.subr.bf16.mxu0 %v6062_v31  ;;  %3112 = vmatprep.subr.bf16.mxu1 %v6064_v35  ;;  %v6126_v31 = vcombine.high %v341_v24, %v345_v25  ;;  %v6128_v35 = vcombine.high %v342_v26, %v346_v28  ;;  %v6174_v17 = vcombine.high %v389_v9, %v393_v10  ;;  %v402_v20 = vld [vmem:[#allocation5 + $0x8a8] sm:$0xff] }
  0xcf   :  { %v446_v4 = vld [vmem:[#allocation5 + $0xa08] sm:$0xff] }
  0xd1   :  { %2941 = vmatpush1.bf16.msra.mxu0 %v6061_v37  ;;  %3113 = vmatpush1.bf16.msra.mxu1 %v6063_v38  ;;  %v6125_v37 = vcombine.low %v341_v24, %v345_v25  ;;  %v6127_v38 = vcombine.low %v342_v26, %v346_v28  ;;  %v405_v26 = vld [vmem:[#allocation5 + $0x8c0] sm:$0xff]  ;;  %v406_v28 = vld [vmem:[#allocation5 + $0x8c8] sm:$0xff] }
  0xd2   :  { %2942 = vmatprep.subr.bf16.mxu0 %v6070_v39  ;;  %3114 = vmatprep.subr.bf16.mxu1 %v6072_v43  ;;  %v6134_v39 = vcombine.high %v349_v32, %v353_v33  ;;  %v6136_v43 = vcombine.high %v350_v34, %v354_v36 }
  0xd5   :  { %2943 = vmatpush1.bf16.msra.mxu0 %v6069_v45  ;;  %3115 = vmatpush1.bf16.msra.mxu1 %v6071_v46  ;;  %v6133_v45 = vcombine.low %v349_v32, %v353_v33  ;;  %v6135_v46 = vcombine.low %v350_v34, %v354_v36  ;;  %v6183_v32 = vcombine.low %v398_v19, %v402_v20  ;;  %v413_v34 = vld [vmem:[#allocation5 + $0x900] sm:$0xff]  ;;  %v414_v36 = vld [vmem:[#allocation5 + $0x908] sm:$0xff] }
  0xd6   :  { %2944 = vmatprep.subr.bf16.mxu0 %v6078_v47  ;;  %3116 = vmatprep.subr.bf16.mxu1 %v6080_v51  ;;  %v6142_v47 = vcombine.high %v357_v40, %v361_v41  ;;  %v6144_v51 = vcombine.high %v358_v42, %v362_v44 }
  0xd9   :  { %2945 = vmatpush1.bf16.msra.mxu0 %v6077_v53  ;;  %3117 = vmatpush1.bf16.msra.mxu1 %v6079_v54  ;;  %v6141_v53 = vcombine.low %v357_v40, %v361_v41  ;;  %v6143_v54 = vcombine.low %v358_v42, %v362_v44  ;;  %v421_v42 = vld [vmem:[#allocation5 + $0x940] sm:$0xff]  ;;  %v422_v44 = vld [vmem:[#allocation5 + $0x948] sm:$0xff] }
  0xda   :  { %2946 = vmatprep.subr.bf16.mxu0 %v6086_v55  ;;  %3118 = vmatprep.subr.bf16.mxu1 %v6088_v59  ;;  %v6150_v55 = vcombine.high %v365_v48, %v369_v49  ;;  %v6152_v59 = vcombine.high %v366_v50, %v370_v52 }
  0xdd   :  { %2947 = vmatpush1.bf16.msra.mxu0 %v6085_v61  ;;  %3119 = vmatpush1.bf16.msra.mxu1 %v6087_v62  ;;  %v6149_v61 = vcombine.low %v365_v48, %v369_v49  ;;  %v6151_v62 = vcombine.low %v366_v50, %v370_v52  ;;  %v429_v50 = vld [vmem:[#allocation5 + $0x980] sm:$0xff]  ;;  %v430_v52 = vld [vmem:[#allocation5 + $0x988] sm:$0xff] }
  0xde   :  { %2948 = vmatprep.subr.bf16.mxu0 %v6094_v63  ;;  %3120 = vmatprep.subr.bf16.mxu1 %v6096_v3  ;;  %v6158_v63 = vcombine.high %v373_v56, %v377_v57  ;;  %v6160_v3 = vcombine.high %v374_v58, %v378_v60 }
  0xe1   :  { %2949 = vmatpush1.bf16.msra.mxu0 %v6093_v5  ;;  %3121 = vmatpush1.bf16.msra.mxu1 %v6095_v6  ;;  %v6157_v5 = vcombine.low %v373_v56, %v377_v57  ;;  %v6159_v6 = vcombine.low %v374_v58, %v378_v60  ;;  %v437_v58 = vld [vmem:[#allocation5 + $0x9c0] sm:$0xff]  ;;  %v438_v60 = vld [vmem:[#allocation5 + $0x9c8] sm:$0xff] }
  0xe2   :  { %2950 = vmatprep.subr.bf16.mxu0 %v6102_v7  ;;  %3122 = vmatprep.subr.bf16.mxu1 %v6104_v11  ;;  %v6166_v7 = vcombine.high %v381_v0, %v385_v1  ;;  %v390_v11 = vld [vmem:[#allocation5 + $0x848] sm:$0xff] }
  0xe5   :  { %2951 = vmatpush1.bf16.msra.mxu0 %v6101_v13  ;;  %3123 = vmatpush1.bf16.msra.mxu1 %v6103_v14  ;;  %v394_v13 = vld [vmem:[#allocation5 + $0x868] sm:$0xff]  ;;  %v6165_v14 = vcombine.low %v381_v0, %v385_v1 }
  0xe6   :  { %2952 = vmatprep.subr.bf16.mxu0 %v6110_v15  ;;  %3124 = vmatprep.subr.bf16.mxu1 %v6112_v18  ;;  %v397_v15 = vld [vmem:[#allocation5 + $0x880] sm:$0xff]  ;;  %v6175_v24 = vcombine.low %v390_v11, %v394_v13 }
  0xe7   :  { %v401_v18 = vld [vmem:[#allocation5 + $0x8a0] sm:$0xff] }
  0xe8   :  { %v6182_v25 = vcombine.high %v397_v15, %v401_v18 }
  0xe9   :  { %2953 = vmatpush1.bf16.msra.mxu0 %v6109_v21  ;;  %3125 = vmatpush1.bf16.msra.mxu1 %v6111_v22  ;;  %v6176_v21 = vcombine.high %v390_v11, %v394_v13  ;;  %v6818_v22 = vld [vmem:[#allocation2 + $0x14] ss:$28 sps:$4 sm:$0xff]   ;;  %v457_v11 = vld [vmem:[#allocation5 + $0xa60] sm:$0xff] }
  0xea   :  { %2954 = vmatprep.subr.bf16.mxu0 %v6118_v23  ;;  %3126 = vmatprep.subr.bf16.mxu1 %v6120_v27  ;;  %v6173_v23 = vcombine.low %v389_v9, %v393_v10  ;;  %v409_v27 = vld [vmem:[#allocation5 + $0x8e0] sm:$0xff] }
  0xeb   :  { %v6190_v33 = vcombine.high %v405_v26, %v409_v27  ;;  %v453_v10 = vld [vmem:[#allocation5 + $0xa40] sm:$0xff] }
  0xed   :  { %2955 = vmatpush1.bf16.msra.mxu0 %v6117_v29  ;;  %3127 = vmatpush1.bf16.msra.mxu1 %v6119_v30  ;;  %v6184_v29 = vcombine.high %v398_v19, %v402_v20  ;;  %v410_v30 = vld [vmem:[#allocation5 + $0x8e8] sm:$0xff]  ;;  %v465_v19 = vld [vmem:[#allocation5 + $0xaa0] sm:$0xff] }
  0xee   :  { %2956 = vmatprep.subr.bf16.mxu0 %v6126_v31  ;;  %3128 = vmatprep.subr.bf16.mxu1 %v6128_v35  ;;  %v6181_v31 = vcombine.low %v397_v15, %v401_v18  ;;  %v417_v35 = vld [vmem:[#allocation5 + $0x920] sm:$0xff]  ;;  %v6191_v40 = vcombine.low %v406_v28, %v410_v30  ;;  %v462_v20 = vld [vmem:[#allocation5 + $0xa88] sm:$0xff] }
  0xef   :  { %v6198_v41 = vcombine.high %v413_v34, %v417_v35  ;;  %v461_v18 = vld [vmem:[#allocation5 + $0xa80] sm:$0xff] }
  0xf1   :  { %2957 = vmatpush1.bf16.msra.mxu0 %v6125_v37  ;;  %3129 = vmatpush1.bf16.msra.mxu1 %v6127_v38  ;;  %v6192_v37 = vcombine.high %v406_v28, %v410_v30  ;;  %v418_v38 = vld [vmem:[#allocation5 + $0x928] sm:$0xff] }
  0xf2   :  { %2958 = vmatprep.subr.bf16.mxu0 %v6134_v39  ;;  %3130 = vmatprep.subr.bf16.mxu1 %v6136_v43  ;;  %v6189_v39 = vcombine.low %v405_v26, %v409_v27  ;;  %v425_v43 = vld [vmem:[#allocation5 + $0x960] sm:$0xff]  ;;  %v6199_v48 = vcombine.low %v414_v36, %v418_v38  ;;  %v470_v28 = vld [vmem:[#allocation5 + $0xac8] sm:$0xff] }
  0xf3   :  { %v6206_v49 = vcombine.high %v421_v42, %v425_v43  ;;  %v469_v26 = vld [vmem:[#allocation5 + $0xac0] sm:$0xff]  ;;  %v474_v30 = vld [vmem:[#allocation5 + $0xae8] sm:$0xff] }
  0xf4   :  { %v473_v27 = vld [vmem:[#allocation5 + $0xae0] sm:$0xff] }
  0xf5   :  { %2959 = vmatpush1.bf16.msra.mxu0 %v6133_v45  ;;  %3131 = vmatpush1.bf16.msra.mxu1 %v6135_v46  ;;  %v6200_v45 = vcombine.high %v414_v36, %v418_v38  ;;  %v426_v46 = vld [vmem:[#allocation5 + $0x968] sm:$0xff] }
  0xf6   :  { %2960 = vmatprep.subr.bf16.mxu0 %v6142_v47  ;;  %3132 = vmatprep.subr.bf16.mxu1 %v6144_v51  ;;  %v6197_v47 = vcombine.low %v413_v34, %v417_v35  ;;  %v433_v51 = vld [vmem:[#allocation5 + $0x9a0] sm:$0xff]  ;;  %v6207_v56 = vcombine.low %v422_v44, %v426_v46  ;;  %v478_v36 = vld [vmem:[#allocation5 + $0xb08] sm:$0xff] }
  0xf7   :  { %v6214_v57 = vcombine.high %v429_v50, %v433_v51  ;;  %v477_v34 = vld [vmem:[#allocation5 + $0xb00] sm:$0xff]  ;;  %v482_v38 = vld [vmem:[#allocation5 + $0xb28] sm:$0xff] }
  0xf8   :  { %v481_v35 = vld [vmem:[#allocation5 + $0xb20] sm:$0xff] }
  0xf9   :  { %2961 = vmatpush1.bf16.msra.mxu0 %v6141_v53  ;;  %3133 = vmatpush1.bf16.msra.mxu1 %v6143_v54  ;;  %v6208_v53 = vcombine.high %v422_v44, %v426_v46  ;;  %v434_v54 = vld [vmem:[#allocation5 + $0x9a8] sm:$0xff] }
  0xfa   :  { %2962 = vmatprep.subr.bf16.mxu0 %v6150_v55  ;;  %3134 = vmatprep.subr.bf16.mxu1 %v6152_v59  ;;  %v6205_v55 = vcombine.low %v421_v42, %v425_v43  ;;  %v441_v59 = vld [vmem:[#allocation5 + $0x9e0] sm:$0xff]  ;;  %v6215_v0 = vcombine.low %v430_v52, %v434_v54  ;;  %v486_v44 = vld [vmem:[#allocation5 + $0xb48] sm:$0xff] }
  0xfb   :  { %v6222_v1 = vcombine.high %v437_v58, %v441_v59  ;;  %v485_v42 = vld [vmem:[#allocation5 + $0xb40] sm:$0xff]  ;;  %v490_v46 = vld [vmem:[#allocation5 + $0xb68] sm:$0xff] }
  0xfc   :  { %v489_v43 = vld [vmem:[#allocation5 + $0xb60] sm:$0xff] }
  0xfd   :  { %2963 = vmatpush1.bf16.msra.mxu0 %v6149_v61  ;;  %3135 = vmatpush1.bf16.msra.mxu1 %v6151_v62  ;;  %v6216_v61 = vcombine.high %v430_v52, %v434_v54  ;;  %v442_v62 = vld [vmem:[#allocation5 + $0x9e8] sm:$0xff] }
  0xfe   :  { %2964 = vmatprep.subr.bf16.mxu0 %v6158_v63  ;;  %3136 = vmatprep.subr.bf16.mxu1 %v6160_v3  ;;  %v6213_v63 = vcombine.low %v429_v50, %v433_v51  ;;  %v449_v3 = vld [vmem:[#allocation5 + $0xa20] sm:$0xff]  ;;  %v494_v52 = vld [vmem:[#allocation5 + $0xb88] sm:$0xff] }
  0xff   :  { %v6230_v9 = vcombine.high %v445_v2, %v449_v3  ;;  %v6229_v15 = vcombine.low %v445_v2, %v449_v3  ;;  %v493_v50 = vld [vmem:[#allocation5 + $0xb80] sm:$0xff]  ;;  %v498_v54 = vld [vmem:[#allocation5 + $0xba8] sm:$0xff] }
 0x100   :  { %v497_v51 = vld [vmem:[#allocation5 + $0xba0] sm:$0xff] }
 0x101   :  { %2965 = vmatpush1.bf16.msra.mxu0 %v6157_v5  ;;  %3137 = vmatpush1.bf16.msra.mxu1 %v6159_v6  ;;  %v6224_v5 = vcombine.high %v438_v60, %v442_v62  ;;  %v450_v6 = vld [vmem:[#allocation5 + $0xa28] sm:$0xff]  ;;  %v509_v2 = vld [vmem:[#allocation5 + $0xc00] sm:$0xff] }
 0x102   :  { %2977 = vmatprep.subr.bf16.mxu0 %v6166_v7  ;;  %3149 = vmatprep.subr.bf16.mxu1 %v6168_v12  ;;  %v6221_v7 = vcombine.low %v437_v58, %v441_v59  ;;  %v454_v12 = vld [vmem:[#allocation5 + $0xa48] sm:$0xff]  ;;  %v6232_v13 = vcombine.high %v446_v4, %v450_v6  ;;  %v501_v58 = vld [vmem:[#allocation5 + $0xbc0] sm:$0xff] }
 0x103   :  { %v505_v59 = vld [vmem:[#allocation5 + $0xbe0] sm:$0xff] }
 0x104   :  { %2967 = vmatmul.mubr.bf16.vlgmr.msra.gmra.mrb[0].mxu0 %v6817_v8  ;;  %3139 = vmatmul.mubr.bf16.vlgmr.msra.gmra.mrb[0].mxu1 %v6817_v8  ;;  %v6223_v8 = vcombine.low %v438_v60, %v442_v62  ;;  %v502_v60 = vld [vmem:[#allocation5 + $0xbc8] sm:$0xff]  ;;  %v513_v3 = vld [vmem:[#allocation5 + $0xc20] sm:$0xff] }
 0x105   :  { %2978 = vmatpush1.bf16.msra.mxu0 %v6165_v14  ;;  %3150 = vmatpush1.bf16.msra.mxu1 %v6167_v16  ;;  %v458_v14 = vld [vmem:[#allocation5 + $0xa68] sm:$0xff]  ;;  %v6231_v16 = vcombine.low %v446_v4, %v450_v6 }
 0x106   :  { %2979 = vmatprep.subr.bf16.mxu0 %v6174_v17  ;;  %3151 = vmatprep.subr.bf16.mxu1 %v6176_v21  ;;  %v6238_v17 = vcombine.high %v453_v10, %v457_v11  ;;  %v6240_v21 = vcombine.high %v454_v12, %v458_v14  ;;  %v506_v62 = vld [vmem:[#allocation5 + $0xbe8] sm:$0xff] }
 0x107   :  { %3009 = vmatprep.mubr.bf16.mxu0 %v6818_v22  ;;  %3181 = vmatprep.mubr.bf16.mxu1 %v6818_v22  ;;  %v466_v22 = vld [vmem:[#allocation5 + $0xaa8] sm:$0xff] }
 0x108   :  { %v510_v4 = vld [vmem:[#allocation5 + $0xc08] sm:$0xff] }
 0x109   :  { %2980 = vmatpush1.bf16.msra.mxu0 %v6173_v23  ;;  %3152 = vmatpush1.bf16.msra.mxu1 %v6175_v24  ;;  %v6237_v23 = vcombine.low %v453_v10, %v457_v11  ;;  %v6239_v24 = vcombine.low %v454_v12, %v458_v14  ;;  %v514_v6 = vld [vmem:[#allocation5 + $0xc28] sm:$0xff]  ;;  %v6820_v10 = vld [vmem:[#allocation2 + $0x10] ss:$28 sps:$4 sm:$0xff]   ;;  %v517_v11 = vld [vmem:[#allocation5 + $0xc40] sm:$0xff] }
 0x10a   :  { %2981 = vmatprep.subr.bf16.mxu0 %v6182_v25  ;;  %3153 = vmatprep.subr.bf16.mxu1 %v6184_v29  ;;  %v6246_v25 = vcombine.high %v461_v18, %v465_v19  ;;  %v6248_v29 = vcombine.high %v462_v20, %v466_v22  ;;  %v521_v12 = vld [vmem:[#allocation5 + $0xc60] sm:$0xff]  ;;  %v6296_v14 = vcombine.high %v510_v4, %v514_v6 }
 0x10d   :  { %2982 = vmatpush1.bf16.msra.mxu0 %v6181_v31  ;;  %3154 = vmatpush1.bf16.msra.mxu1 %v6183_v32  ;;  %v6245_v31 = vcombine.low %v461_v18, %v465_v19  ;;  %v6247_v32 = vcombine.low %v462_v20, %v466_v22  ;;  %v6302_v18 = vcombine.high %v517_v11, %v521_v12  ;;  %v525_v19 = vld [vmem:[#allocation5 + $0xc80] sm:$0xff] }
 0x10e   :  { %2983 = vmatprep.subr.bf16.mxu0 %v6190_v33  ;;  %3155 = vmatprep.subr.bf16.mxu1 %v6192_v37  ;;  %v6254_v33 = vcombine.high %v469_v26, %v473_v27  ;;  %v6256_v37 = vcombine.high %v470_v28, %v474_v30  ;;  %v529_v20 = vld [vmem:[#allocation5 + $0xca0] sm:$0xff] }
 0x111   :  { %2984 = vmatpush1.bf16.msra.mxu0 %v6189_v39  ;;  %3156 = vmatpush1.bf16.msra.mxu1 %v6191_v40  ;;  %v6253_v39 = vcombine.low %v469_v26, %v473_v27  ;;  %v6255_v40 = vcombine.low %v470_v28, %v474_v30  ;;  %v6310_v26 = vcombine.high %v525_v19, %v529_v20  ;;  %v533_v27 = vld [vmem:[#allocation5 + $0xcc0] sm:$0xff] }
 0x112   :  { %2985 = vmatprep.subr.bf16.mxu0 %v6198_v41  ;;  %3157 = vmatprep.subr.bf16.mxu1 %v6200_v45  ;;  %v6262_v41 = vcombine.high %v477_v34, %v481_v35  ;;  %v6264_v45 = vcombine.high %v478_v36, %v482_v38  ;;  %v537_v28 = vld [vmem:[#allocation5 + $0xce0] sm:$0xff] }
 0x115   :  { %2986 = vmatpush1.bf16.msra.mxu0 %v6197_v47  ;;  %3158 = vmatpush1.bf16.msra.mxu1 %v6199_v48  ;;  %v6261_v47 = vcombine.low %v477_v34, %v481_v35  ;;  %v6263_v48 = vcombine.low %v478_v36, %v482_v38  ;;  %v6318_v35 = vcombine.high %v533_v27, %v537_v28  ;;  %v541_v36 = vld [vmem:[#allocation5 + $0xd00] sm:$0xff]  ;;  %v542_v38 = vld [vmem:[#allocation5 + $0xd08] sm:$0xff] }
 0x116   :  { %2987 = vmatprep.subr.bf16.mxu0 %v6206_v49  ;;  %3159 = vmatprep.subr.bf16.mxu1 %v6208_v53  ;;  %v6270_v49 = vcombine.high %v485_v42, %v489_v43  ;;  %v6272_v53 = vcombine.high %v486_v44, %v490_v46 }
 0x119   :  { %2988 = vmatpush1.bf16.msra.mxu0 %v6205_v55  ;;  %3160 = vmatpush1.bf16.msra.mxu1 %v6207_v56  ;;  %v6269_v55 = vcombine.low %v485_v42, %v489_v43  ;;  %v6271_v56 = vcombine.low %v486_v44, %v490_v46  ;;  %v549_v44 = vld [vmem:[#allocation5 + $0xd40] sm:$0xff]  ;;  %v550_v46 = vld [vmem:[#allocation5 + $0xd48] sm:$0xff] }
 0x11a   :  { %2989 = vmatprep.subr.bf16.mxu0 %v6214_v57  ;;  %3161 = vmatprep.subr.bf16.mxu1 %v6216_v61  ;;  %v6278_v57 = vcombine.high %v493_v50, %v497_v51  ;;  %v6280_v61 = vcombine.high %v494_v52, %v498_v54 }
 0x11d   :  { %2990 = vmatpush1.bf16.msra.mxu0 %v6213_v63  ;;  %3162 = vmatpush1.bf16.msra.mxu1 %v6215_v0  ;;  %v6277_v63 = vcombine.low %v493_v50, %v497_v51  ;;  %v6279_v0 = vcombine.low %v494_v52, %v498_v54  ;;  %v557_v52 = vld [vmem:[#allocation5 + $0xd80] sm:$0xff]  ;;  %v558_v54 = vld [vmem:[#allocation5 + $0xd88] sm:$0xff] }
 0x11e   :  { %2991 = vmatprep.subr.bf16.mxu0 %v6222_v1  ;;  %3163 = vmatprep.subr.bf16.mxu1 %v6224_v5  ;;  %v6286_v1 = vcombine.high %v501_v58, %v505_v59  ;;  %v6288_v5 = vcombine.high %v502_v60, %v506_v62 }
 0x121   :  { %2992 = vmatpush1.bf16.msra.mxu0 %v6221_v7  ;;  %3164 = vmatpush1.bf16.msra.mxu1 %v6223_v8  ;;  %v6285_v7 = vcombine.low %v501_v58, %v505_v59  ;;  %v6287_v8 = vcombine.low %v502_v60, %v506_v62  ;;  %v565_v60 = vld [vmem:[#allocation5 + $0xdc0] sm:$0xff]  ;;  %v566_v62 = vld [vmem:[#allocation5 + $0xdc8] sm:$0xff] }
 0x122   :  { %2993 = vmatprep.subr.bf16.mxu0 %v6230_v9  ;;  %3165 = vmatprep.subr.bf16.mxu1 %v6232_v13  ;;  %v6294_v9 = vcombine.high %v509_v2, %v513_v3  ;;  %v518_v13 = vld [vmem:[#allocation5 + $0xc48] sm:$0xff] }
 0x125   :  { %2994 = vmatpush1.bf16.msra.mxu0 %v6229_v15  ;;  %3166 = vmatpush1.bf16.msra.mxu1 %v6231_v16  ;;  %v522_v15 = vld [vmem:[#allocation5 + $0xc68] sm:$0xff]  ;;  %v6293_v16 = vcombine.low %v509_v2, %v513_v3 }
 0x126   :  { %2995 = vmatprep.subr.bf16.mxu0 %v6238_v17  ;;  %3167 = vmatprep.subr.bf16.mxu1 %v6240_v21  ;;  %v6295_v17 = vcombine.low %v510_v4, %v514_v6  ;;  %v526_v21 = vld [vmem:[#allocation5 + $0xc88] sm:$0xff]  ;;  %v6304_v22 = vcombine.high %v518_v13, %v522_v15  ;;  %v127_v4 = vld [vmem:[#allocation5 + $0x10] sm:$0xff]  ;;  %v128_v6 = vld [vmem:[#allocation5 + $0x18] sm:$0xff] }
 0x129   :  { %2996 = vmatpush1.bf16.msra.mxu0 %v6237_v23  ;;  %3168 = vmatpush1.bf16.msra.mxu1 %v6239_v24  ;;  %v530_v23 = vld [vmem:[#allocation5 + $0xca8] sm:$0xff]  ;;  %v6301_v24 = vcombine.low %v517_v11, %v521_v12  ;;  %v6821_v11 = vld [vmem:[#allocation2 + $0x18] ss:$28 sps:$4 sm:$0xff]  }
 0x12a   :  { %2997 = vmatprep.subr.bf16.mxu0 %v6246_v25  ;;  %3169 = vmatprep.subr.bf16.mxu1 %v6248_v29  ;;  %v6303_v25 = vcombine.low %v518_v13, %v522_v15  ;;  %v534_v29 = vld [vmem:[#allocation5 + $0xcc8] sm:$0xff]  ;;  %v6312_v30 = vcombine.high %v526_v21, %v530_v23  ;;  %v6311_v34 = vcombine.low %v526_v21, %v530_v23  ;;  %v135_v13 = vld [vmem:[#allocation5 + $0x50] sm:$0xff]  ;;  %v136_v15 = vld [vmem:[#allocation5 + $0x58] sm:$0xff] }
 0x12b   :  { %v143_v21 = vld [vmem:[#allocation5 + $0x90] sm:$0xff]  ;;  %v144_v23 = vld [vmem:[#allocation5 + $0x98] sm:$0xff] }
 0x12d   :  { %2998 = vmatpush1.bf16.msra.mxu0 %v6245_v31  ;;  %3170 = vmatpush1.bf16.msra.mxu1 %v6247_v32  ;;  %v538_v31 = vld [vmem:[#allocation5 + $0xce8] sm:$0xff]  ;;  %v7454_v32 = vmov 0  }
 0x12e   :  { %2999 = vmatprep.subr.bf16.mxu0 %v6254_v33  ;;  %3171 = vmatprep.subr.bf16.mxu1 %v6256_v37  ;;  %v6309_v33 = vcombine.low %v525_v19, %v529_v20  ;;  %v545_v37 = vld [vmem:[#allocation5 + $0xd20] sm:$0xff]  ;;  %v6319_v42 = vcombine.low %v534_v29, %v538_v31 }
 0x12f   :  { %v6326_v43 = vcombine.high %v541_v36, %v545_v37 }
 0x131   :  { %3000 = vmatpush1.bf16.msra.mxu0 %v6253_v39  ;;  %3172 = vmatpush1.bf16.msra.mxu1 %v6255_v40  ;;  %v6320_v39 = vcombine.high %v534_v29, %v538_v31  ;;  %v546_v40 = vld [vmem:[#allocation5 + $0xd28] sm:$0xff]  ;;  %v151_v29 = vld [vmem:[#allocation5 + $0xd0] sm:$0xff] }
 0x132   :  { %3001 = vmatprep.subr.bf16.mxu0 %v6262_v41  ;;  %3173 = vmatprep.subr.bf16.mxu1 %v6264_v45  ;;  %v6317_v41 = vcombine.low %v533_v27, %v537_v28  ;;  %v553_v45 = vld [vmem:[#allocation5 + $0xd60] sm:$0xff]  ;;  %v6327_v50 = vcombine.low %v542_v38, %v546_v40 }
 0x133   :  { %v6334_v51 = vcombine.high %v549_v44, %v553_v45 }
 0x135   :  { %3002 = vmatpush1.bf16.msra.mxu0 %v6261_v47  ;;  %3174 = vmatpush1.bf16.msra.mxu1 %v6263_v48  ;;  %v6328_v47 = vcombine.high %v542_v38, %v546_v40  ;;  %v554_v48 = vld [vmem:[#allocation5 + $0xd68] sm:$0xff]  ;;  %v159_v40 = vld [vmem:[#allocation5 + $0x110] sm:$0xff] }
 0x136   :  { %3003 = vmatprep.subr.bf16.mxu0 %v6270_v49  ;;  %3175 = vmatprep.subr.bf16.mxu1 %v6272_v53  ;;  %v6325_v49 = vcombine.low %v541_v36, %v545_v37  ;;  %v561_v53 = vld [vmem:[#allocation5 + $0xda0] sm:$0xff]  ;;  %v6335_v58 = vcombine.low %v550_v46, %v554_v48 }
 0x137   :  { %v6342_v59 = vcombine.high %v557_v52, %v561_v53 }
 0x139   :  { %3004 = vmatpush1.bf16.msra.mxu0 %v6269_v55  ;;  %3176 = vmatpush1.bf16.msra.mxu1 %v6271_v56  ;;  %v6336_v55 = vcombine.high %v550_v46, %v554_v48  ;;  %v562_v56 = vld [vmem:[#allocation5 + $0xda8] sm:$0xff]  ;;  %v167_v48 = vld [vmem:[#allocation5 + $0x150] sm:$0xff] }
 0x13a   :  { %3005 = vmatprep.subr.bf16.mxu0 %v6278_v57  ;;  %3177 = vmatprep.subr.bf16.mxu1 %v6280_v61  ;;  %v6333_v57 = vcombine.low %v549_v44, %v553_v45  ;;  %v569_v61 = vld [vmem:[#allocation5 + $0xde0] sm:$0xff]  ;;  %v6343_v2 = vcombine.low %v558_v54, %v562_v56 }
 0x13b   :  { %v6350_v3 = vcombine.high %v565_v60, %v569_v61 }
 0x13d   :  { %3006 = vmatpush1.bf16.msra.mxu0 %v6277_v63  ;;  %3178 = vmatpush1.bf16.msra.mxu1 %v6279_v0  ;;  %v6344_v63 = vcombine.high %v558_v54, %v562_v56  ;;  %v570_v0 = vld [vmem:[#allocation5 + $0xde8] sm:$0xff]  ;;  %v175_v56 = vld [vmem:[#allocation5 + $0x190] sm:$0xff] }
 0x13e   :  { %3007 = vmatprep.subr.bf16.mxu0 %v6286_v1  ;;  %3179 = vmatprep.subr.bf16.mxu1 %v6288_v5  ;;  %v6341_v1 = vcombine.low %v557_v52, %v561_v53  ;;  %v131_v5 = vld [vmem:[#allocation5 + $0x30] sm:$0xff] }
 0x13f   :  { %v5914_v12 = vcombine.high %v127_v4, %v131_v5 }
 0x141   :  { %3008 = vmatpush1.bf16.msra.mxu0 %v6285_v7  ;;  %3180 = vmatpush1.bf16.msra.mxu1 %v6287_v8  ;;  %v6352_v7 = vcombine.high %v566_v62, %v570_v0  ;;  %v132_v8 = vld [vmem:[#allocation5 + $0x38] sm:$0xff] }
 0x142   :  { %3020 = vmatprep.subr.bf16.mxu0 %v6294_v9  ;;  %3192 = vmatprep.subr.bf16.mxu1 %v6296_v14  ;;  %v6349_v9 = vcombine.low %v565_v60, %v569_v61  ;;  %v139_v14 = vld [vmem:[#allocation5 + $0x70] sm:$0xff]  ;;  %v5915_v19 = vcombine.low %v128_v6, %v132_v8 }
 0x143   :  { %v5922_v20 = vcombine.high %v135_v13, %v139_v14 }
 0x144   :  { %3010 = vmatmul.mubr.bf16.vlgmr.msra.gmra.mrb[0].mxu0 %v6820_v10  ;;  %3182 = vmatmul.mubr.bf16.vlgmr.msra.gmra.mrb[0].mxu1 %v6820_v10  ;;  %v6351_v10 = vcombine.low %v566_v62, %v570_v0  ;;  %v183_v0 = vld [vmem:[#allocation5 + $0x1d0] sm:$0xff] }
 0x145   :  { %3021 = vmatpush1.bf16.msra.mxu0 %v6293_v16  ;;  %3193 = vmatpush1.bf16.msra.mxu1 %v6295_v17  ;;  %v5916_v16 = vcombine.high %v128_v6, %v132_v8  ;;  %v140_v17 = vld [vmem:[#allocation5 + $0x78] sm:$0xff]  ;;  %v191_v8 = vld [vmem:[#allocation5 + $0x210] sm:$0xff] }
 0x146   :  { %3022 = vmatprep.subr.bf16.mxu0 %v6302_v18  ;;  %3194 = vmatprep.subr.bf16.mxu1 %v6304_v22  ;;  %v5913_v18 = vcombine.low %v127_v4, %v131_v5  ;;  %v147_v22 = vld [vmem:[#allocation5 + $0xb0] sm:$0xff]  ;;  %v5923_v27 = vcombine.low %v136_v15, %v140_v17 }
 0x147   :  { %3052 = vmatprep.mubr.bf16.mxu0 %v7454_v32  ;;  %3224 = vmatprep.mubr.bf16.mxu1 %v7454_v32  ;;  %v5930_v28 = vcombine.high %v143_v21, %v147_v22  ;;  %v5929_v36 = vcombine.low %v143_v21, %v147_v22 }
 0x149   :  { %3023 = vmatpush1.bf16.msra.mxu0 %v6301_v24  ;;  %3195 = vmatpush1.bf16.msra.mxu1 %v6303_v25  ;;  %v5924_v24 = vcombine.high %v136_v15, %v140_v17  ;;  %v148_v25 = vld [vmem:[#allocation5 + $0xb8] sm:$0xff]  ;;  %v203_v17 = vld [vmem:[#allocation5 + $0x270] sm:$0xff] }
 0x14a   :  { %3024 = vmatprep.subr.bf16.mxu0 %v6310_v26  ;;  %3196 = vmatprep.subr.bf16.mxu1 %v6312_v30  ;;  %v5921_v26 = vcombine.low %v135_v13, %v139_v14  ;;  %v155_v30 = vld [vmem:[#allocation5 + $0xf0] sm:$0xff]  ;;  %v5932_v31 = vcombine.high %v144_v23, %v148_v25  ;;  %v5931_v37 = vcombine.low %v144_v23, %v148_v25 }
 0x14b   :  { %v5938_v38 = vcombine.high %v151_v29, %v155_v30  ;;  %v5937_v44 = vcombine.low %v151_v29, %v155_v30  ;;  %v211_v25 = vld [vmem:[#allocation5 + $0x2b0] sm:$0xff] }
 0x14d   :  { %3025 = vmatpush1.bf16.msra.mxu0 %v6309_v33  ;;  %3197 = vmatpush1.bf16.msra.mxu1 %v6311_v34  ;;  %v152_v33 = vld [vmem:[#allocation5 + $0xd8] sm:$0xff]  ;;  %v7246_v34 = vld [vmem:[#allocation2 + $0x4] ss:$28 sps:$4 sm:$0xff]  }
 0x14e   :  { %3026 = vmatprep.subr.bf16.mxu0 %v6318_v35  ;;  %3198 = vmatprep.subr.bf16.mxu1 %v6320_v39  ;;  %v156_v35 = vld [vmem:[#allocation5 + $0xf8] sm:$0xff] }
 0x14f   :  { %v5940_v39 = vcombine.high %v152_v33, %v156_v35  ;;  %v5939_v45 = vcombine.low %v152_v33, %v156_v35  ;;  %v215_v33 = vld [vmem:[#allocation5 + $0x2d0] sm:$0xff]  ;;  %v216_v35 = vld [vmem:[#allocation5 + $0x2d8] sm:$0xff] }
 0x151   :  { %3027 = vmatpush1.bf16.msra.mxu0 %v6317_v41  ;;  %3199 = vmatpush1.bf16.msra.mxu1 %v6319_v42  ;;  %v163_v41 = vld [vmem:[#allocation5 + $0x130] sm:$0xff]  ;;  %v160_v42 = vld [vmem:[#allocation5 + $0x118] sm:$0xff] }
 0x152   :  { %3028 = vmatprep.subr.bf16.mxu0 %v6326_v43  ;;  %3200 = vmatprep.subr.bf16.mxu1 %v6328_v47  ;;  %v164_v43 = vld [vmem:[#allocation5 + $0x138] sm:$0xff]  ;;  %v5946_v46 = vcombine.high %v159_v40, %v163_v41  ;;  %v5945_v52 = vcombine.low %v159_v40, %v163_v41  ;;  %v223_v41 = vld [vmem:[#allocation5 + $0x310] sm:$0xff] }
 0x153   :  { %v5948_v47 = vcombine.high %v160_v42, %v164_v43  ;;  %v5947_v53 = vcombine.low %v160_v42, %v164_v43  ;;  %v227_v42 = vld [vmem:[#allocation5 + $0x330] sm:$0xff]  ;;  %v224_v43 = vld [vmem:[#allocation5 + $0x318] sm:$0xff] }
 0x155   :  { %3029 = vmatpush1.bf16.msra.mxu0 %v6325_v49  ;;  %3201 = vmatpush1.bf16.msra.mxu1 %v6327_v50  ;;  %v171_v49 = vld [vmem:[#allocation5 + $0x170] sm:$0xff]  ;;  %v168_v50 = vld [vmem:[#allocation5 + $0x158] sm:$0xff] }
 0x156   :  { %3030 = vmatprep.subr.bf16.mxu0 %v6334_v51  ;;  %3202 = vmatprep.subr.bf16.mxu1 %v6336_v55  ;;  %v172_v51 = vld [vmem:[#allocation5 + $0x178] sm:$0xff]  ;;  %v5954_v54 = vcombine.high %v167_v48, %v171_v49  ;;  %v5953_v60 = vcombine.low %v167_v48, %v171_v49  ;;  %v231_v49 = vld [vmem:[#allocation5 + $0x350] sm:$0xff] }
 0x157   :  { %v5956_v55 = vcombine.high %v168_v50, %v172_v51  ;;  %v5955_v61 = vcombine.low %v168_v50, %v172_v51  ;;  %v235_v50 = vld [vmem:[#allocation5 + $0x370] sm:$0xff]  ;;  %v232_v51 = vld [vmem:[#allocation5 + $0x358] sm:$0xff] }
 0x159   :  { %3031 = vmatpush1.bf16.msra.mxu0 %v6333_v57  ;;  %3203 = vmatpush1.bf16.msra.mxu1 %v6335_v58  ;;  %v179_v57 = vld [vmem:[#allocation5 + $0x1b0] sm:$0xff]  ;;  %v176_v58 = vld [vmem:[#allocation5 + $0x198] sm:$0xff] }
 0x15a   :  { %3032 = vmatprep.subr.bf16.mxu0 %v6342_v59  ;;  %3204 = vmatprep.subr.bf16.mxu1 %v6344_v63  ;;  %v180_v59 = vld [vmem:[#allocation5 + $0x1b8] sm:$0xff]  ;;  %v5962_v62 = vcombine.high %v175_v56, %v179_v57  ;;  %v5961_v4 = vcombine.low %v175_v56, %v179_v57  ;;  %v239_v57 = vld [vmem:[#allocation5 + $0x390] sm:$0xff] }
 0x15b   :  { %v5964_v63 = vcombine.high %v176_v58, %v180_v59  ;;  %v5963_v5 = vcombine.low %v176_v58, %v180_v59  ;;  %v243_v58 = vld [vmem:[#allocation5 + $0x3b0] sm:$0xff]  ;;  %v240_v59 = vld [vmem:[#allocation5 + $0x398] sm:$0xff] }
 0x15d   :  { %3033 = vmatpush1.bf16.msra.mxu0 %v6341_v1  ;;  %3205 = vmatpush1.bf16.msra.mxu1 %v6343_v2  ;;  %v187_v1 = vld [vmem:[#allocation5 + $0x1f0] sm:$0xff]  ;;  %v184_v2 = vld [vmem:[#allocation5 + $0x1d8] sm:$0xff] }
 0x15e   :  { %3034 = vmatprep.subr.bf16.mxu0 %v6350_v3  ;;  %3206 = vmatprep.subr.bf16.mxu1 %v6352_v7  ;;  %v188_v3 = vld [vmem:[#allocation5 + $0x1f8] sm:$0xff]  ;;  %v5970_v6 = vcombine.high %v183_v0, %v187_v1 }
 0x15f   :  { %v5972_v7 = vcombine.high %v184_v2, %v188_v3  ;;  %v5971_v13 = vcombine.low %v184_v2, %v188_v3  ;;  %v251_v2 = vld [vmem:[#allocation5 + $0x3f0] sm:$0xff]  ;;  %v248_v3 = vld [vmem:[#allocation5 + $0x3d8] sm:$0xff] }
 0x161   :  { %3035 = vmatpush1.bf16.msra.mxu0 %v6349_v9  ;;  %3207 = vmatpush1.bf16.msra.mxu1 %v6351_v10  ;;  %v195_v9 = vld [vmem:[#allocation5 + $0x230] sm:$0xff]  ;;  %v192_v10 = vld [vmem:[#allocation5 + $0x218] sm:$0xff] }
 0x162   :  { %3235 = vmatprep.subr.bf16.mxu0 %v5914_v12  ;;  %3407 = vmatprep.subr.bf16.mxu1 %v5916_v16  ;;  %v5969_v12 = vcombine.low %v183_v0, %v187_v1  ;;  %v5978_v14 = vcombine.high %v191_v8, %v195_v9  ;;  %v199_v16 = vld [vmem:[#allocation5 + $0x250] sm:$0xff] }
 0x163   :  { %v5986_v22 = vcombine.high %v199_v16, %v203_v17  ;;  %v247_v1 = vld [vmem:[#allocation5 + $0x3d0] sm:$0xff] }
 0x164   :  { %3053 = vmatmul.mubr.bf16.vlgmr.msra.gmra.mrb[0].mxu0 %v6821_v11  ;;  %3225 = vmatmul.mubr.bf16.vlgmr.msra.gmra.mrb[0].mxu1 %v6821_v11  ;;  %v196_v11 = vld [vmem:[#allocation5 + $0x238] sm:$0xff] }
 0x165   :  { %3236 = vmatpush1.bf16.msra.mxu0 %v5913_v18  ;;  %3408 = vmatpush1.bf16.msra.mxu1 %v5915_v19  ;;  %v5980_v15 = vcombine.high %v192_v10, %v196_v11  ;;  %v200_v18 = vld [vmem:[#allocation5 + $0x258] sm:$0xff]  ;;  %v5979_v21 = vcombine.low %v192_v10, %v196_v11  ;;  %v259_v10 = vld [vmem:[#allocation5 + $0x430] sm:$0xff] }
 0x166   :  { %3237 = vmatprep.subr.bf16.mxu0 %v5922_v20  ;;  %3409 = vmatprep.subr.bf16.mxu1 %v5924_v24  ;;  %v204_v19 = vld [vmem:[#allocation5 + $0x278] sm:$0xff]  ;;  %v5977_v20 = vcombine.low %v191_v8, %v195_v9  ;;  %v207_v24 = vld [vmem:[#allocation5 + $0x290] sm:$0xff] }
 0x167   :  { %3267 = vmatprep.mubr.bf16.mxu0 %v7246_v34  ;;  %3439 = vmatprep.mubr.bf16.mxu1 %v7246_v34  ;;  %v5988_v23 = vcombine.high %v200_v18, %v204_v19  ;;  %v5987_v29 = vcombine.low %v200_v18, %v204_v19  ;;  %v5994_v30 = vcombine.high %v207_v24, %v211_v25  ;;  %v219_v34 = vld [vmem:[#allocation5 + $0x2f0] sm:$0xff]  ;;  %v256_v11 = vld [vmem:[#allocation5 + $0x418] sm:$0xff] }
 0x168   :  { %v255_v9 = vld [vmem:[#allocation5 + $0x410] sm:$0xff]  ;;  %v264_v19 = vld [vmem:[#allocation5 + $0x458] sm:$0xff] }
 0x169   :  { %3238 = vmatpush1.bf16.msra.mxu0 %v5921_v26  ;;  %3410 = vmatpush1.bf16.msra.mxu1 %v5923_v27  ;;  %v208_v26 = vld [vmem:[#allocation5 + $0x298] sm:$0xff]  ;;  %v267_v18 = vld [vmem:[#allocation5 + $0x470] sm:$0xff] }
 0x16a   :  { %3239 = vmatprep.subr.bf16.mxu0 %v5930_v28  ;;  %3411 = vmatprep.subr.bf16.mxu1 %v5932_v31  ;;  %v212_v27 = vld [vmem:[#allocation5 + $0x2b8] sm:$0xff]  ;;  %v5985_v28 = vcombine.low %v199_v16, %v203_v17  ;;  %v263_v17 = vld [vmem:[#allocation5 + $0x450] sm:$0xff] }
 0x16b   :  { %v5996_v31 = vcombine.high %v208_v26, %v212_v27 }
 0x16d   :  { %3240 = vmatpush1.bf16.msra.mxu0 %v5929_v36  ;;  %3412 = vmatpush1.bf16.msra.mxu1 %v5931_v37  ;;  %v220_v36 = vld [vmem:[#allocation5 + $0x2f8] sm:$0xff]  ;;  %v5993_v37 = vcombine.low %v207_v24, %v211_v25  ;;  %v271_v25 = vld [vmem:[#allocation5 + $0x490] sm:$0xff] }
 0x16e   :  { %3241 = vmatprep.subr.bf16.mxu0 %v5938_v38  ;;  %3413 = vmatprep.subr.bf16.mxu1 %v5940_v39  ;;  %v5995_v38 = vcombine.low %v208_v26, %v212_v27  ;;  %v6002_v39 = vcombine.high %v215_v33, %v219_v34  ;;  %v6004_v40 = vcombine.high %v216_v35, %v220_v36  ;;  %v275_v26 = vld [vmem:[#allocation5 + $0x4b0] sm:$0xff]  ;;  %v7247_v27 = vld [vmem:[#allocation2] ss:$28 sps:$4 sm:$0xff]  }
 0x171   :  { %3242 = vmatpush1.bf16.msra.mxu0 %v5937_v44  ;;  %3414 = vmatpush1.bf16.msra.mxu1 %v5939_v45  ;;  %v228_v44 = vld [vmem:[#allocation5 + $0x338] sm:$0xff]  ;;  %v6001_v45 = vcombine.low %v215_v33, %v219_v34  ;;  %v6058_v33 = vcombine.high %v271_v25, %v275_v26 }
 0x172   :  { %3243 = vmatprep.subr.bf16.mxu0 %v5946_v46  ;;  %3415 = vmatprep.subr.bf16.mxu1 %v5948_v47  ;;  %v6003_v46 = vcombine.low %v216_v35, %v220_v36  ;;  %v6010_v47 = vcombine.high %v223_v41, %v227_v42  ;;  %v6012_v48 = vcombine.high %v224_v43, %v228_v44  ;;  %v279_v35 = vld [vmem:[#allocation5 + $0x4d0] sm:$0xff] }
 0x173   :  { %v283_v36 = vld [vmem:[#allocation5 + $0x4f0] sm:$0xff] }
 0x175   :  { %3244 = vmatpush1.bf16.msra.mxu0 %v5945_v52  ;;  %3416 = vmatpush1.bf16.msra.mxu1 %v5947_v53  ;;  %v236_v52 = vld [vmem:[#allocation5 + $0x378] sm:$0xff]  ;;  %v6009_v53 = vcombine.low %v223_v41, %v227_v42  ;;  %v6066_v42 = vcombine.high %v279_v35, %v283_v36 }
 0x176   :  { %3245 = vmatprep.subr.bf16.mxu0 %v5954_v54  ;;  %3417 = vmatprep.subr.bf16.mxu1 %v5956_v55  ;;  %v6011_v54 = vcombine.low %v224_v43, %v228_v44  ;;  %v6018_v55 = vcombine.high %v231_v49, %v235_v50  ;;  %v6020_v56 = vcombine.high %v232_v51, %v236_v52  ;;  %v287_v44 = vld [vmem:[#allocation5 + $0x510] sm:$0xff] }
 0x179   :  { %3246 = vmatpush1.bf16.msra.mxu0 %v5953_v60  ;;  %3418 = vmatpush1.bf16.msra.mxu1 %v5955_v61  ;;  %v244_v60 = vld [vmem:[#allocation5 + $0x3b8] sm:$0xff]  ;;  %v6017_v61 = vcombine.low %v231_v49, %v235_v50 }
 0x17a   :  { %3247 = vmatprep.subr.bf16.mxu0 %v5962_v62  ;;  %3419 = vmatprep.subr.bf16.mxu1 %v5964_v63  ;;  %v6019_v62 = vcombine.low %v232_v51, %v236_v52  ;;  %v6026_v63 = vcombine.high %v239_v57, %v243_v58  ;;  %v6028_v0 = vcombine.high %v240_v59, %v244_v60  ;;  %v295_v52 = vld [vmem:[#allocation5 + $0x550] sm:$0xff] }
 0x17d   :  { %3248 = vmatpush1.bf16.msra.mxu0 %v5961_v4  ;;  %3420 = vmatpush1.bf16.msra.mxu1 %v5963_v5  ;;  %v252_v4 = vld [vmem:[#allocation5 + $0x3f8] sm:$0xff]  ;;  %v6025_v5 = vcombine.low %v239_v57, %v243_v58 }
 0x17e   :  { %3249 = vmatprep.subr.bf16.mxu0 %v5970_v6  ;;  %3421 = vmatprep.subr.bf16.mxu1 %v5972_v7  ;;  %v6027_v6 = vcombine.low %v240_v59, %v244_v60  ;;  %v6034_v7 = vcombine.high %v247_v1, %v251_v2  ;;  %v6036_v8 = vcombine.high %v248_v3, %v252_v4  ;;  %v303_v60 = vld [vmem:[#allocation5 + $0x590] sm:$0xff] }
 0x181   :  { %3250 = vmatpush1.bf16.msra.mxu0 %v5969_v12  ;;  %3422 = vmatpush1.bf16.msra.mxu1 %v5971_v13  ;;  %v260_v12 = vld [vmem:[#allocation5 + $0x438] sm:$0xff]  ;;  %v6033_v13 = vcombine.low %v247_v1, %v251_v2 }
 0x182   :  { %3251 = vmatprep.subr.bf16.mxu0 %v5978_v14  ;;  %3423 = vmatprep.subr.bf16.mxu1 %v5980_v15  ;;  %v6035_v14 = vcombine.low %v248_v3, %v252_v4  ;;  %v6042_v15 = vcombine.high %v255_v9, %v259_v10  ;;  %v6044_v16 = vcombine.high %v256_v11, %v260_v12  ;;  %v311_v4 = vld [vmem:[#allocation5 + $0x5d0] sm:$0xff] }
 0x185   :  { %3252 = vmatpush1.bf16.msra.mxu0 %v5977_v20  ;;  %3424 = vmatpush1.bf16.msra.mxu1 %v5979_v21  ;;  %v268_v20 = vld [vmem:[#allocation5 + $0x478] sm:$0xff]  ;;  %v6041_v21 = vcombine.low %v255_v9, %v259_v10 }
 0x186   :  { %3253 = vmatprep.subr.bf16.mxu0 %v5986_v22  ;;  %3425 = vmatprep.subr.bf16.mxu1 %v5988_v23  ;;  %v6043_v22 = vcombine.low %v256_v11, %v260_v12  ;;  %v6050_v23 = vcombine.high %v263_v17, %v267_v18  ;;  %v6052_v24 = vcombine.high %v264_v19, %v268_v20  ;;  %v319_v12 = vld [vmem:[#allocation5 + $0x610] sm:$0xff] }
 0x189   :  { %3254 = vmatpush1.bf16.msra.mxu0 %v5985_v28  ;;  %3426 = vmatpush1.bf16.msra.mxu1 %v5987_v29  ;;  %v272_v28 = vld [vmem:[#allocation5 + $0x498] sm:$0xff] }
 0x18a   :  { %3255 = vmatprep.subr.bf16.mxu0 %v5994_v30  ;;  %3427 = vmatprep.subr.bf16.mxu1 %v5996_v31  ;;  %v276_v29 = vld [vmem:[#allocation5 + $0x4b8] sm:$0xff]  ;;  %v6049_v30 = vcombine.low %v263_v17, %v267_v18  ;;  %v6051_v31 = vcombine.low %v264_v19, %v268_v20  ;;  %v327_v20 = vld [vmem:[#allocation5 + $0x650] sm:$0xff] }
 0x18b   :  { %v6060_v34 = vcombine.high %v272_v28, %v276_v29  ;;  %v6059_v41 = vcombine.low %v272_v28, %v276_v29  ;;  %v335_v28 = vld [vmem:[#allocation5 + $0x690] sm:$0xff] }
 0x18c   :  { %v339_v29 = vld [vmem:[#allocation5 + $0x6b0] sm:$0xff] }
 0x18d   :  { %3256 = vmatpush1.bf16.msra.mxu0 %v5993_v37  ;;  %3428 = vmatpush1.bf16.msra.mxu1 %v5995_v38  ;;  %v7248_v37 = vld [vmem:[#allocation2 + $0xc] ss:$28 sps:$4 sm:$0xff]   ;;  %v280_v38 = vld [vmem:[#allocation5 + $0x4d8] sm:$0xff] }
 0x18e   :  { %3257 = vmatprep.subr.bf16.mxu0 %v6002_v39  ;;  %3429 = vmatprep.subr.bf16.mxu1 %v6004_v40  ;;  %v284_v39 = vld [vmem:[#allocation5 + $0x4f8] sm:$0xff]  ;;  %v6057_v40 = vcombine.low %v271_v25, %v275_v26 }
 0x18f   :  { %v6068_v43 = vcombine.high %v280_v38, %v284_v39  ;;  %v6067_v49 = vcombine.low %v280_v38, %v284_v39  ;;  %v347_v38 = vld [vmem:[#allocation5 + $0x6f0] sm:$0xff]  ;;  %v344_v39 = vld [vmem:[#allocation5 + $0x6d8] sm:$0xff] }
 0x191   :  { %3258 = vmatpush1.bf16.msra.mxu0 %v6001_v45  ;;  %3430 = vmatpush1.bf16.msra.mxu1 %v6003_v46  ;;  %v291_v45 = vld [vmem:[#allocation5 + $0x530] sm:$0xff]  ;;  %v288_v46 = vld [vmem:[#allocation5 + $0x518] sm:$0xff] }
 0x192   :  { %3259 = vmatprep.subr.bf16.mxu0 %v6010_v47  ;;  %3431 = vmatprep.subr.bf16.mxu1 %v6012_v48  ;;  %v292_v47 = vld [vmem:[#allocation5 + $0x538] sm:$0xff]  ;;  %v6065_v48 = vcombine.low %v279_v35, %v283_v36  ;;  %v6074_v50 = vcombine.high %v287_v44, %v291_v45  ;;  %v6122_v35 = vcombine.high %v335_v28, %v339_v29 }
 0x193   :  { %v6076_v51 = vcombine.high %v288_v46, %v292_v47  ;;  %v6075_v57 = vcombine.low %v288_v46, %v292_v47  ;;  %v355_v46 = vld [vmem:[#allocation5 + $0x730] sm:$0xff]  ;;  %v352_v47 = vld [vmem:[#allocation5 + $0x718] sm:$0xff] }
 0x195   :  { %3260 = vmatpush1.bf16.msra.mxu0 %v6009_v53  ;;  %3432 = vmatpush1.bf16.msra.mxu1 %v6011_v54  ;;  %v299_v53 = vld [vmem:[#allocation5 + $0x570] sm:$0xff]  ;;  %v296_v54 = vld [vmem:[#allocation5 + $0x558] sm:$0xff] }
 0x196   :  { %3261 = vmatprep.subr.bf16.mxu0 %v6018_v55  ;;  %3433 = vmatprep.subr.bf16.mxu1 %v6020_v56  ;;  %v300_v55 = vld [vmem:[#allocation5 + $0x578] sm:$0xff]  ;;  %v6073_v56 = vcombine.low %v287_v44, %v291_v45  ;;  %v6082_v58 = vcombine.high %v295_v52, %v299_v53  ;;  %v351_v45 = vld [vmem:[#allocation5 + $0x710] sm:$0xff] }
 0x197   :  { %v6084_v59 = vcombine.high %v296_v54, %v300_v55  ;;  %v6083_v1 = vcombine.low %v296_v54, %v300_v55  ;;  %v363_v54 = vld [vmem:[#allocation5 + $0x770] sm:$0xff]  ;;  %v360_v55 = vld [vmem:[#allocation5 + $0x758] sm:$0xff] }
 0x199   :  { %3262 = vmatpush1.bf16.msra.mxu0 %v6017_v61  ;;  %3434 = vmatpush1.bf16.msra.mxu1 %v6019_v62  ;;  %v307_v61 = vld [vmem:[#allocation5 + $0x5b0] sm:$0xff]  ;;  %v304_v62 = vld [vmem:[#allocation5 + $0x598] sm:$0xff] }
 0x19a   :  { %3263 = vmatprep.subr.bf16.mxu0 %v6026_v63  ;;  %3435 = vmatprep.subr.bf16.mxu1 %v6028_v0  ;;  %v308_v63 = vld [vmem:[#allocation5 + $0x5b8] sm:$0xff]  ;;  %v6081_v0 = vcombine.low %v295_v52, %v299_v53  ;;  %v6090_v2 = vcombine.high %v303_v60, %v307_v61  ;;  %v359_v53 = vld [vmem:[#allocation5 + $0x750] sm:$0xff] }
 0x19b   :  { %v6092_v3 = vcombine.high %v304_v62, %v308_v63  ;;  %v6091_v9 = vcombine.low %v304_v62, %v308_v63  ;;  %v371_v62 = vld [vmem:[#allocation5 + $0x7b0] sm:$0xff]  ;;  %v368_v63 = vld [vmem:[#allocation5 + $0x798] sm:$0xff] }
 0x19d   :  { %3264 = vmatpush1.bf16.msra.mxu0 %v6025_v5  ;;  %3436 = vmatpush1.bf16.msra.mxu1 %v6027_v6  ;;  %v315_v5 = vld [vmem:[#allocation5 + $0x5f0] sm:$0xff]  ;;  %v312_v6 = vld [vmem:[#allocation5 + $0x5d8] sm:$0xff] }
 0x19e   :  { %3265 = vmatprep.subr.bf16.mxu0 %v6034_v7  ;;  %3437 = vmatprep.subr.bf16.mxu1 %v6036_v8  ;;  %v316_v7 = vld [vmem:[#allocation5 + $0x5f8] sm:$0xff]  ;;  %v6089_v8 = vcombine.low %v303_v60, %v307_v61  ;;  %v6098_v10 = vcombine.high %v311_v4, %v315_v5  ;;  %v367_v61 = vld [vmem:[#allocation5 + $0x790] sm:$0xff] }
 0x19f   :  { %v6100_v11 = vcombine.high %v312_v6, %v316_v7  ;;  %v6099_v17 = vcombine.low %v312_v6, %v316_v7  ;;  %v379_v6 = vld [vmem:[#allocation5 + $0x7f0] sm:$0xff]  ;;  %v376_v7 = vld [vmem:[#allocation5 + $0x7d8] sm:$0xff] }
 0x1a1   :  { %3266 = vmatpush1.bf16.msra.mxu0 %v6033_v13  ;;  %3438 = vmatpush1.bf16.msra.mxu1 %v6035_v14  ;;  %v323_v13 = vld [vmem:[#allocation5 + $0x630] sm:$0xff]  ;;  %v320_v14 = vld [vmem:[#allocation5 + $0x618] sm:$0xff] }
 0x1a2   :  { %3278 = vmatprep.subr.bf16.mxu0 %v6042_v15  ;;  %3450 = vmatprep.subr.bf16.mxu1 %v6044_v16  ;;  %v324_v15 = vld [vmem:[#allocation5 + $0x638] sm:$0xff]  ;;  %v6097_v16 = vcombine.low %v311_v4, %v315_v5  ;;  %v6106_v18 = vcombine.high %v319_v12, %v323_v13  ;;  %v375_v5 = vld [vmem:[#allocation5 + $0x7d0] sm:$0xff] }
 0x1a3   :  { %v6108_v19 = vcombine.high %v320_v14, %v324_v15  ;;  %v6107_v25 = vcombine.low %v320_v14, %v324_v15  ;;  %v387_v14 = vld [vmem:[#allocation5 + $0x830] sm:$0xff]  ;;  %v384_v15 = vld [vmem:[#allocation5 + $0x818] sm:$0xff] }
 0x1a4   :  { %3268 = vmatmul.mubr.bf16.vlgmr.msra.gmra.mrb[4].mxu0 %v7247_v27  ;;  %3440 = vmatmul.mubr.bf16.vlgmr.msra.gmra.mrb[4].mxu1 %v7247_v27 }
 0x1a5   :  { %3279 = vmatpush1.bf16.msra.mxu0 %v6041_v21  ;;  %3451 = vmatpush1.bf16.msra.mxu1 %v6043_v22  ;;  %v331_v21 = vld [vmem:[#allocation5 + $0x670] sm:$0xff]  ;;  %v328_v22 = vld [vmem:[#allocation5 + $0x658] sm:$0xff] }
 0x1a6   :  { %3280 = vmatprep.subr.bf16.mxu0 %v6050_v23  ;;  %3452 = vmatprep.subr.bf16.mxu1 %v6052_v24  ;;  %v332_v23 = vld [vmem:[#allocation5 + $0x678] sm:$0xff]  ;;  %v6105_v24 = vcombine.low %v319_v12, %v323_v13  ;;  %v6114_v26 = vcombine.high %v327_v20, %v331_v21  ;;  %v383_v13 = vld [vmem:[#allocation5 + $0x810] sm:$0xff] }
 0x1a7   :  { %3310 = vmatprep.mubr.bf16.mxu0 %v7248_v37  ;;  %3482 = vmatprep.mubr.bf16.mxu1 %v7248_v37  ;;  %v6116_v27 = vcombine.high %v328_v22, %v332_v23  ;;  %v343_v37 = vld [vmem:[#allocation5 + $0x6d0] sm:$0xff] }
 0x1a9   :  { %3281 = vmatpush1.bf16.msra.mxu0 %v6049_v30  ;;  %3453 = vmatpush1.bf16.msra.mxu1 %v6051_v31  ;;  %v336_v30 = vld [vmem:[#allocation5 + $0x698] sm:$0xff] }
 0x1aa   :  { %3282 = vmatprep.subr.bf16.mxu0 %v6058_v33  ;;  %3454 = vmatprep.subr.bf16.mxu1 %v6060_v34  ;;  %v340_v31 = vld [vmem:[#allocation5 + $0x6b8] sm:$0xff]  ;;  %v6113_v33 = vcombine.low %v327_v20, %v331_v21  ;;  %v6115_v34 = vcombine.low %v328_v22, %v332_v23  ;;  %v391_v21 = vld [vmem:[#allocation5 + $0x850] sm:$0xff] }
 0x1ab   :  { %v6124_v36 = vcombine.high %v336_v30, %v340_v31  ;;  %v395_v22 = vld [vmem:[#allocation5 + $0x870] sm:$0xff]  ;;  %v392_v23 = vld [vmem:[#allocation5 + $0x858] sm:$0xff] }
 0x1ad   :  { %3283 = vmatpush1.bf16.msra.mxu0 %v6057_v40  ;;  %3455 = vmatpush1.bf16.msra.mxu1 %v6059_v41  ;;  %v348_v40 = vld [vmem:[#allocation5 + $0x6f8] sm:$0xff]  ;;  %v6121_v41 = vcombine.low %v335_v28, %v339_v29  ;;  %v399_v29 = vld [vmem:[#allocation5 + $0x890] sm:$0xff] }
 0x1ae   :  { %3284 = vmatprep.subr.bf16.mxu0 %v6066_v42  ;;  %3456 = vmatprep.subr.bf16.mxu1 %v6068_v43  ;;  %v6123_v42 = vcombine.low %v336_v30, %v340_v31  ;;  %v6130_v43 = vcombine.high %v343_v37, %v347_v38  ;;  %v6132_v44 = vcombine.high %v344_v39, %v348_v40  ;;  %v403_v30 = vld [vmem:[#allocation5 + $0x8b0] sm:$0xff] }
 0x1af   :  { %v7249_v31 = vld [vmem:[#allocation2 + $0x8] ss:$28 sps:$4 sm:$0xff]  }
 0x1b1   :  { %3285 = vmatpush1.bf16.msra.mxu0 %v6065_v48  ;;  %3457 = vmatpush1.bf16.msra.mxu1 %v6067_v49  ;;  %v356_v48 = vld [vmem:[#allocation5 + $0x738] sm:$0xff]  ;;  %v6129_v49 = vcombine.low %v343_v37, %v347_v38  ;;  %v6186_v37 = vcombine.high %v399_v29, %v403_v30 }
 0x1b2   :  { %3286 = vmatprep.subr.bf16.mxu0 %v6074_v50  ;;  %3458 = vmatprep.subr.bf16.mxu1 %v6076_v51  ;;  %v6131_v50 = vcombine.low %v344_v39, %v348_v40  ;;  %v6138_v51 = vcombine.high %v351_v45, %v355_v46  ;;  %v6140_v52 = vcombine.high %v352_v47, %v356_v48  ;;  %v407_v39 = vld [vmem:[#allocation5 + $0x8d0] sm:$0xff] }
 0x1b3   :  { %v411_v40 = vld [vmem:[#allocation5 + $0x8f0] sm:$0xff] }
 0x1b5   :  { %3287 = vmatpush1.bf16.msra.mxu0 %v6073_v56  ;;  %3459 = vmatpush1.bf16.msra.mxu1 %v6075_v57  ;;  %v364_v56 = vld [vmem:[#allocation5 + $0x778] sm:$0xff]  ;;  %v6137_v57 = vcombine.low %v351_v45, %v355_v46  ;;  %v6194_v46 = vcombine.high %v407_v39, %v411_v40 }
 0x1b6   :  { %3288 = vmatprep.subr.bf16.mxu0 %v6082_v58  ;;  %3460 = vmatprep.subr.bf16.mxu1 %v6084_v59  ;;  %v6139_v58 = vcombine.low %v352_v47, %v356_v48  ;;  %v6146_v59 = vcombine.high %v359_v53, %v363_v54  ;;  %v6148_v60 = vcombine.high %v360_v55, %v364_v56  ;;  %v415_v48 = vld [vmem:[#allocation5 + $0x910] sm:$0xff] }
 0x1b9   :  { %3289 = vmatpush1.bf16.msra.mxu0 %v6081_v0  ;;  %3461 = vmatpush1.bf16.msra.mxu1 %v6083_v1  ;;  %v372_v0 = vld [vmem:[#allocation5 + $0x7b8] sm:$0xff]  ;;  %v6145_v1 = vcombine.low %v359_v53, %v363_v54 }
 0x1ba   :  { %3290 = vmatprep.subr.bf16.mxu0 %v6090_v2  ;;  %3462 = vmatprep.subr.bf16.mxu1 %v6092_v3  ;;  %v6147_v2 = vcombine.low %v360_v55, %v364_v56  ;;  %v6154_v3 = vcombine.high %v367_v61, %v371_v62  ;;  %v6156_v4 = vcombine.high %v368_v63, %v372_v0  ;;  %v423_v56 = vld [vmem:[#allocation5 + $0x950] sm:$0xff] }
 0x1bd   :  { %3291 = vmatpush1.bf16.msra.mxu0 %v6089_v8  ;;  %3463 = vmatpush1.bf16.msra.mxu1 %v6091_v9  ;;  %v380_v8 = vld [vmem:[#allocation5 + $0x7f8] sm:$0xff]  ;;  %v6153_v9 = vcombine.low %v367_v61, %v371_v62 }
 0x1be   :  { %3292 = vmatprep.subr.bf16.mxu0 %v6098_v10  ;;  %3464 = vmatprep.subr.bf16.mxu1 %v6100_v11  ;;  %v6155_v10 = vcombine.low %v368_v63, %v372_v0  ;;  %v6162_v11 = vcombine.high %v375_v5, %v379_v6  ;;  %v6164_v12 = vcombine.high %v376_v7, %v380_v8  ;;  %v431_v0 = vld [vmem:[#allocation5 + $0x990] sm:$0xff] }
 0x1c1   :  { %3293 = vmatpush1.bf16.msra.mxu0 %v6097_v16  ;;  %3465 = vmatpush1.bf16.msra.mxu1 %v6099_v17  ;;  %v388_v16 = vld [vmem:[#allocation5 + $0x838] sm:$0xff]  ;;  %v6161_v17 = vcombine.low %v375_v5, %v379_v6 }
 0x1c2   :  { %3294 = vmatprep.subr.bf16.mxu0 %v6106_v18  ;;  %3466 = vmatprep.subr.bf16.mxu1 %v6108_v19  ;;  %v6163_v18 = vcombine.low %v376_v7, %v380_v8  ;;  %v6170_v19 = vcombine.high %v383_v13, %v387_v14  ;;  %v6172_v20 = vcombine.high %v384_v15, %v388_v16  ;;  %v439_v8 = vld [vmem:[#allocation5 + $0x9d0] sm:$0xff] }
 0x1c5   :  { %3295 = vmatpush1.bf16.msra.mxu0 %v6105_v24  ;;  %3467 = vmatpush1.bf16.msra.mxu1 %v6107_v25  ;;  %v396_v24 = vld [vmem:[#allocation5 + $0x878] sm:$0xff]  ;;  %v6169_v25 = vcombine.low %v383_v13, %v387_v14 }
 0x1c6   :  { %3296 = vmatprep.subr.bf16.mxu0 %v6114_v26  ;;  %3468 = vmatprep.subr.bf16.mxu1 %v6116_v27  ;;  %v6171_v26 = vcombine.low %v384_v15, %v388_v16  ;;  %v6178_v27 = vcombine.high %v391_v21, %v395_v22  ;;  %v6180_v28 = vcombine.high %v392_v23, %v396_v24  ;;  %v447_v16 = vld [vmem:[#allocation5 + $0xa10] sm:$0xff] }
 0x1c9   :  { %3297 = vmatpush1.bf16.msra.mxu0 %v6113_v33  ;;  %3469 = vmatpush1.bf16.msra.mxu1 %v6115_v34  ;;  %v400_v33 = vld [vmem:[#allocation5 + $0x898] sm:$0xff] }
 0x1ca   :  { %3298 = vmatprep.subr.bf16.mxu0 %v6122_v35  ;;  %3470 = vmatprep.subr.bf16.mxu1 %v6124_v36  ;;  %v404_v34 = vld [vmem:[#allocation5 + $0x8b8] sm:$0xff]  ;;  %v6177_v35 = vcombine.low %v391_v21, %v395_v22  ;;  %v6179_v36 = vcombine.low %v392_v23, %v396_v24  ;;  %v455_v24 = vld [vmem:[#allocation5 + $0xa50] sm:$0xff] }
 0x1cb   :  { %v6188_v38 = vcombine.high %v400_v33, %v404_v34  ;;  %v6187_v45 = vcombine.low %v400_v33, %v404_v34  ;;  %v463_v33 = vld [vmem:[#allocation5 + $0xa90] sm:$0xff] }
 0x1cc   :  { %v467_v34 = vld [vmem:[#allocation5 + $0xab0] sm:$0xff] }
 0x1cd   :  { %3299 = vmatpush1.bf16.msra.mxu0 %v6121_v41  ;;  %3471 = vmatpush1.bf16.msra.mxu1 %v6123_v42  ;;  %v7250_v41 = vld [vmem:[#allocation2 + $0x14] ss:$28 sps:$4 sm:$0xff]  }
 0x1ce   :  { %3300 = vmatprep.subr.bf16.mxu0 %v6130_v43  ;;  %3472 = vmatprep.subr.bf16.mxu1 %v6132_v44  ;;  %v408_v42 = vld [vmem:[#allocation5 + $0x8d8] sm:$0xff]  ;;  %v6185_v44 = vcombine.low %v399_v29, %v403_v30 }
 0x1cf   :  { %v412_v43 = vld [vmem:[#allocation5 + $0x8f8] sm:$0xff] }
 0x1d0   :  { %v6196_v47 = vcombine.high %v408_v42, %v412_v43  ;;  %v6195_v53 = vcombine.low %v408_v42, %v412_v43  ;;  %v475_v42 = vld [vmem:[#allocation5 + $0xaf0] sm:$0xff]  ;;  %v472_v43 = vld [vmem:[#allocation5 + $0xad8] sm:$0xff] }
 0x1d1   :  { %3301 = vmatpush1.bf16.msra.mxu0 %v6129_v49  ;;  %3473 = vmatpush1.bf16.msra.mxu1 %v6131_v50  ;;  %v419_v49 = vld [vmem:[#allocation5 + $0x930] sm:$0xff]  ;;  %v416_v50 = vld [vmem:[#allocation5 + $0x918] sm:$0xff] }
 0x1d2   :  { %3302 = vmatprep.subr.bf16.mxu0 %v6138_v51  ;;  %3474 = vmatprep.subr.bf16.mxu1 %v6140_v52  ;;  %v420_v51 = vld [vmem:[#allocation5 + $0x938] sm:$0xff]  ;;  %v6193_v52 = vcombine.low %v407_v39, %v411_v40  ;;  %v6202_v54 = vcombine.high %v415_v48, %v419_v49  ;;  %v6250_v39 = vcombine.high %v463_v33, %v467_v34 }
 0x1d3   :  { %v6204_v55 = vcombine.high %v416_v50, %v420_v51  ;;  %v6203_v61 = vcombine.low %v416_v50, %v420_v51  ;;  %v483_v50 = vld [vmem:[#allocation5 + $0xb30] sm:$0xff]  ;;  %v480_v51 = vld [vmem:[#allocation5 + $0xb18] sm:$0xff] }
 0x1d5   :  { %3303 = vmatpush1.bf16.msra.mxu0 %v6137_v57  ;;  %3475 = vmatpush1.bf16.msra.mxu1 %v6139_v58  ;;  %v427_v57 = vld [vmem:[#allocation5 + $0x970] sm:$0xff]  ;;  %v424_v58 = vld [vmem:[#allocation5 + $0x958] sm:$0xff] }
 0x1d6   :  { %3304 = vmatprep.subr.bf16.mxu0 %v6146_v59  ;;  %3476 = vmatprep.subr.bf16.mxu1 %v6148_v60  ;;  %v428_v59 = vld [vmem:[#allocation5 + $0x978] sm:$0xff]  ;;  %v6201_v60 = vcombine.low %v415_v48, %v419_v49  ;;  %v6210_v62 = vcombine.high %v423_v56, %v427_v57  ;;  %v479_v49 = vld [vmem:[#allocation5 + $0xb10] sm:$0xff] }
 0x1d7   :  { %v6212_v63 = vcombine.high %v424_v58, %v428_v59  ;;  %v6211_v5 = vcombine.low %v424_v58, %v428_v59  ;;  %v491_v58 = vld [vmem:[#allocation5 + $0xb70] sm:$0xff]  ;;  %v488_v59 = vld [vmem:[#allocation5 + $0xb58] sm:$0xff] }
 0x1d9   :  { %3305 = vmatpush1.bf16.msra.mxu0 %v6145_v1  ;;  %3477 = vmatpush1.bf16.msra.mxu1 %v6147_v2  ;;  %v435_v1 = vld [vmem:[#allocation5 + $0x9b0] sm:$0xff]  ;;  %v432_v2 = vld [vmem:[#allocation5 + $0x998] sm:$0xff] }
 0x1da   :  { %3306 = vmatprep.subr.bf16.mxu0 %v6154_v3  ;;  %3478 = vmatprep.subr.bf16.mxu1 %v6156_v4  ;;  %v436_v3 = vld [vmem:[#allocation5 + $0x9b8] sm:$0xff]  ;;  %v6209_v4 = vcombine.low %v423_v56, %v427_v57  ;;  %v6218_v6 = vcombine.high %v431_v0, %v435_v1  ;;  %v487_v57 = vld [vmem:[#allocation5 + $0xb50] sm:$0xff] }
 0x1db   :  { %v6220_v7 = vcombine.high %v432_v2, %v436_v3  ;;  %v6219_v13 = vcombine.low %v432_v2, %v436_v3  ;;  %v499_v2 = vld [vmem:[#allocation5 + $0xbb0] sm:$0xff]  ;;  %v496_v3 = vld [vmem:[#allocation5 + $0xb98] sm:$0xff] }
 0x1dd   :  { %3307 = vmatpush1.bf16.msra.mxu0 %v6153_v9  ;;  %3479 = vmatpush1.bf16.msra.mxu1 %v6155_v10  ;;  %v443_v9 = vld [vmem:[#allocation5 + $0x9f0] sm:$0xff]  ;;  %v440_v10 = vld [vmem:[#allocation5 + $0x9d8] sm:$0xff] }
 0x1de   :  { %3308 = vmatprep.subr.bf16.mxu0 %v6162_v11  ;;  %3480 = vmatprep.subr.bf16.mxu1 %v6164_v12  ;;  %v444_v11 = vld [vmem:[#allocation5 + $0x9f8] sm:$0xff]  ;;  %v6217_v12 = vcombine.low %v431_v0, %v435_v1  ;;  %v6226_v14 = vcombine.high %v439_v8, %v443_v9  ;;  %v495_v1 = vld [vmem:[#allocation5 + $0xb90] sm:$0xff] }
 0x1df   :  { %v6228_v15 = vcombine.high %v440_v10, %v444_v11  ;;  %v6227_v21 = vcombine.low %v440_v10, %v444_v11  ;;  %v507_v10 = vld [vmem:[#allocation5 + $0xbf0] sm:$0xff]  ;;  %v504_v11 = vld [vmem:[#allocation5 + $0xbd8] sm:$0xff] }
 0x1e1   :  { %3309 = vmatpush1.bf16.msra.mxu0 %v6161_v17  ;;  %3481 = vmatpush1.bf16.msra.mxu1 %v6163_v18  ;;  %v451_v17 = vld [vmem:[#allocation5 + $0xa30] sm:$0xff]  ;;  %v448_v18 = vld [vmem:[#allocation5 + $0xa18] sm:$0xff] }
 0x1e2   :  { %3321 = vmatprep.subr.bf16.mxu0 %v6170_v19  ;;  %3493 = vmatprep.subr.bf16.mxu1 %v6172_v20  ;;  %v452_v19 = vld [vmem:[#allocation5 + $0xa38] sm:$0xff]  ;;  %v6225_v20 = vcombine.low %v439_v8, %v443_v9  ;;  %v6234_v22 = vcombine.high %v447_v16, %v451_v17  ;;  %v503_v9 = vld [vmem:[#allocation5 + $0xbd0] sm:$0xff] }
 0x1e3   :  { %v6236_v23 = vcombine.high %v448_v18, %v452_v19  ;;  %v6235_v29 = vcombine.low %v448_v18, %v452_v19  ;;  %v515_v18 = vld [vmem:[#allocation5 + $0xc30] sm:$0xff]  ;;  %v512_v19 = vld [vmem:[#allocation5 + $0xc18] sm:$0xff] }
 0x1e4   :  { %3311 = vmatmul.mubr.bf16.vlgmr.msra.gmra.mrb[4].mxu0 %v7249_v31  ;;  %3483 = vmatmul.mubr.bf16.vlgmr.msra.gmra.mrb[4].mxu1 %v7249_v31 }
 0x1e5   :  { %3322 = vmatpush1.bf16.msra.mxu0 %v6169_v25  ;;  %3494 = vmatpush1.bf16.msra.mxu1 %v6171_v26  ;;  %v459_v25 = vld [vmem:[#allocation5 + $0xa70] sm:$0xff]  ;;  %v456_v26 = vld [vmem:[#allocation5 + $0xa58] sm:$0xff] }
 0x1e6   :  { %3323 = vmatprep.subr.bf16.mxu0 %v6178_v27  ;;  %3495 = vmatprep.subr.bf16.mxu1 %v6180_v28  ;;  %v460_v27 = vld [vmem:[#allocation5 + $0xa78] sm:$0xff]  ;;  %v6233_v28 = vcombine.low %v447_v16, %v451_v17  ;;  %v6242_v30 = vcombine.high %v455_v24, %v459_v25  ;;  %v511_v17 = vld [vmem:[#allocation5 + $0xc10] sm:$0xff] }
 0x1e7   :  { %3353 = vmatprep.mubr.bf16.mxu0 %v7250_v41  ;;  %3525 = vmatprep.mubr.bf16.mxu1 %v7250_v41  ;;  %v6244_v31 = vcombine.high %v456_v26, %v460_v27  ;;  %v471_v41 = vld [vmem:[#allocation5 + $0xad0] sm:$0xff] }
 0x1e9   :  { %3324 = vmatpush1.bf16.msra.mxu0 %v6177_v35  ;;  %3496 = vmatpush1.bf16.msra.mxu1 %v6179_v36  ;;  %v464_v35 = vld [vmem:[#allocation5 + $0xa98] sm:$0xff] }
 0x1ea   :  { %3325 = vmatprep.subr.bf16.mxu0 %v6186_v37  ;;  %3497 = vmatprep.subr.bf16.mxu1 %v6188_v38  ;;  %v468_v36 = vld [vmem:[#allocation5 + $0xab8] sm:$0xff]  ;;  %v6241_v37 = vcombine.low %v455_v24, %v459_v25  ;;  %v6243_v38 = vcombine.low %v456_v26, %v460_v27  ;;  %v519_v25 = vld [vmem:[#allocation5 + $0xc50] sm:$0xff] }
 0x1eb   :  { %v6252_v40 = vcombine.high %v464_v35, %v468_v36  ;;  %v523_v26 = vld [vmem:[#allocation5 + $0xc70] sm:$0xff]  ;;  %v520_v27 = vld [vmem:[#allocation5 + $0xc58] sm:$0xff] }
 0x1ed   :  { %3326 = vmatpush1.bf16.msra.mxu0 %v6185_v44  ;;  %3498 = vmatpush1.bf16.msra.mxu1 %v6187_v45  ;;  %v476_v44 = vld [vmem:[#allocation5 + $0xaf8] sm:$0xff]  ;;  %v6249_v45 = vcombine.low %v463_v33, %v467_v34  ;;  %v527_v34 = vld [vmem:[#allocation5 + $0xc90] sm:$0xff] }
 0x1ee   :  { %3327 = vmatprep.subr.bf16.mxu0 %v6194_v46  ;;  %3499 = vmatprep.subr.bf16.mxu1 %v6196_v47  ;;  %v6251_v46 = vcombine.low %v464_v35, %v468_v36  ;;  %v6258_v47 = vcombine.high %v471_v41, %v475_v42  ;;  %v6260_v48 = vcombine.high %v472_v43, %v476_v44  ;;  %v531_v35 = vld [vmem:[#allocation5 + $0xcb0] sm:$0xff] }
 0x1ef   :  { %v7251_v36 = vld [vmem:[#allocation2 + $0x10] ss:$28 sps:$4 sm:$0xff]  }
 0x1f1   :  { %3328 = vmatpush1.bf16.msra.mxu0 %v6193_v52  ;;  %3500 = vmatpush1.bf16.msra.mxu1 %v6195_v53  ;;  %v484_v52 = vld [vmem:[#allocation5 + $0xb38] sm:$0xff]  ;;  %v6257_v53 = vcombine.low %v471_v41, %v475_v42  ;;  %v6314_v41 = vcombine.high %v527_v34, %v531_v35 }
 0x1f2   :  { %3329 = vmatprep.subr.bf16.mxu0 %v6202_v54  ;;  %3501 = vmatprep.subr.bf16.mxu1 %v6204_v55  ;;  %v6259_v54 = vcombine.low %v472_v43, %v476_v44  ;;  %v6266_v55 = vcombine.high %v479_v49, %v483_v50  ;;  %v6268_v56 = vcombine.high %v480_v51, %v484_v52  ;;  %v535_v43 = vld [vmem:[#allocation5 + $0xcd0] sm:$0xff] }
 0x1f3   :  { %v539_v44 = vld [vmem:[#allocation5 + $0xcf0] sm:$0xff] }
 0x1f5   :  { %3330 = vmatpush1.bf16.msra.mxu0 %v6201_v60  ;;  %3502 = vmatpush1.bf16.msra.mxu1 %v6203_v61  ;;  %v492_v60 = vld [vmem:[#allocation5 + $0xb78] sm:$0xff]  ;;  %v6265_v61 = vcombine.low %v479_v49, %v483_v50  ;;  %v6322_v50 = vcombine.high %v535_v43, %v539_v44 }
 0x1f6   :  { %3331 = vmatprep.subr.bf16.mxu0 %v6210_v62  ;;  %3503 = vmatprep.subr.bf16.mxu1 %v6212_v63  ;;  %v6267_v62 = vcombine.low %v480_v51, %v484_v52  ;;  %v6274_v63 = vcombine.high %v487_v57, %v491_v58  ;;  %v6276_v0 = vcombine.high %v488_v59, %v492_v60  ;;  %v543_v52 = vld [vmem:[#allocation5 + $0xd10] sm:$0xff] }
 0x1f9   :  { %3332 = vmatpush1.bf16.msra.mxu0 %v6209_v4  ;;  %3504 = vmatpush1.bf16.msra.mxu1 %v6211_v5  ;;  %v500_v4 = vld [vmem:[#allocation5 + $0xbb8] sm:$0xff]  ;;  %v6273_v5 = vcombine.low %v487_v57, %v491_v58  ;;  %v6321_v57 = vcombine.low %v535_v43, %v539_v44 }
 0x1fa   :  { %3333 = vmatprep.subr.bf16.mxu0 %v6218_v6  ;;  %3505 = vmatprep.subr.bf16.mxu1 %v6220_v7  ;;  %v6275_v6 = vcombine.low %v488_v59, %v492_v60  ;;  %v6282_v7 = vcombine.high %v495_v1, %v499_v2  ;;  %v6284_v8 = vcombine.high %v496_v3, %v500_v4  ;;  %v551_v60 = vld [vmem:[#allocation5 + $0xd50] sm:$0xff] }
 0x1fd   :  { %3334 = vmatpush1.bf16.msra.mxu0 %v6217_v12  ;;  %3506 = vmatpush1.bf16.msra.mxu1 %v6219_v13  ;;  %v508_v12 = vld [vmem:[#allocation5 + $0xbf8] sm:$0xff]  ;;  %v6281_v13 = vcombine.low %v495_v1, %v499_v2  ;;  %v7590_v2 = vld [vmem:[#allocation7] sm:$0xff] }
 0x1fe   :  { %3335 = vmatprep.subr.bf16.mxu0 %v6226_v14  ;;  %3507 = vmatprep.subr.bf16.mxu1 %v6228_v15  ;;  %v6283_v14 = vcombine.low %v496_v3, %v500_v4  ;;  %v6290_v15 = vcombine.high %v503_v9, %v507_v10  ;;  %v6292_v16 = vcombine.high %v504_v11, %v508_v12 }
 0x201   :  { %3336 = vmatpush1.bf16.msra.mxu0 %v6225_v20  ;;  %3508 = vmatpush1.bf16.msra.mxu1 %v6227_v21  ;;  %v516_v20 = vld [vmem:[#allocation5 + $0xc38] sm:$0xff]  ;;  %v6289_v21 = vcombine.low %v503_v9, %v507_v10  ;;  %v559_v9 = vld [vmem:[#allocation5 + $0xd90] sm:$0xff] }
 0x202   :  { %3337 = vmatprep.subr.bf16.mxu0 %v6234_v22  ;;  %3509 = vmatprep.subr.bf16.mxu1 %v6236_v23  ;;  %v6291_v22 = vcombine.low %v504_v11, %v508_v12  ;;  %v6298_v23 = vcombine.high %v511_v17, %v515_v18  ;;  %v6300_v24 = vcombine.high %v512_v19, %v516_v20  ;;  %v563_v10 = vld [vmem:[#allocation5 + $0xdb0] sm:$0xff]  ;;  %v560_v12 = vld [vmem:[#allocation5 + $0xd98] sm:$0xff] }
 0x205   :  { %3338 = vmatpush1.bf16.msra.mxu0 %v6233_v28  ;;  %3510 = vmatpush1.bf16.msra.mxu1 %v6235_v29  ;;  %v524_v28 = vld [vmem:[#allocation5 + $0xc78] sm:$0xff]  ;;  %v6297_v29 = vcombine.low %v511_v17, %v515_v18 }
 0x206   :  { %3339 = vmatprep.subr.bf16.mxu0 %v6242_v30  ;;  %3511 = vmatprep.subr.bf16.mxu1 %v6244_v31  ;;  %v6299_v30 = vcombine.low %v512_v19, %v516_v20  ;;  %v6306_v31 = vcombine.high %v519_v25, %v523_v26  ;;  %v6308_v33 = vcombine.high %v520_v27, %v524_v28 }
 0x207   :  { %v6346_v19 = vcombine.high %v559_v9, %v563_v10 }
 0x209   :  { %3340 = vmatpush1.bf16.msra.mxu0 %v6241_v37  ;;  %3512 = vmatpush1.bf16.msra.mxu1 %v6243_v38  ;;  %v528_v37 = vld [vmem:[#allocation5 + $0xc98] sm:$0xff] }
 0x20a   :  { %3341 = vmatprep.subr.bf16.mxu0 %v6250_v39  ;;  %3513 = vmatprep.subr.bf16.mxu1 %v6252_v40  ;;  %v532_v38 = vld [vmem:[#allocation5 + $0xcb8] sm:$0xff]  ;;  %v6305_v39 = vcombine.low %v519_v25, %v523_v26  ;;  %v6307_v40 = vcombine.low %v520_v27, %v524_v28 }
 0x20b   :  { %v6316_v42 = vcombine.high %v528_v37, %v532_v38  ;;  %v6315_v49 = vcombine.low %v528_v37, %v532_v38  ;;  %v568_v27 = vld [vmem:[#allocation5 + $0xdd8] sm:$0xff] }
 0x20c   :  { %v572_v28 = vld [vmem:[#allocation5 + $0xdf8] sm:$0xff] }
 0x20d   :  { %3342 = vmatpush1.bf16.msra.mxu0 %v6249_v45  ;;  %3514 = vmatpush1.bf16.msra.mxu1 %v6251_v46  ;;  %v536_v45 = vld [vmem:[#allocation5 + $0xcd8] sm:$0xff]  ;;  %v6356_v44 = vcombine.high %v568_v27, %v572_v28 }
 0x20e   :  { %3343 = vmatprep.subr.bf16.mxu0 %v6258_v47  ;;  %3515 = vmatprep.subr.bf16.mxu1 %v6260_v48  ;;  %v540_v46 = vld [vmem:[#allocation5 + $0xcf8] sm:$0xff]  ;;  %v575_v47 = vlaneseq  ;;  %v6313_v48 = vcombine.low %v527_v34, %v531_v35  ;;  %v6345_v34 = vcombine.low %v559_v9, %v563_v10  ;;  %v6831_v9 = vld [vmem:[#allocation8 + $0x28] ss:$16 sps:$4 sm:$0xff]  }
 0x20f   :  { %v6324_v51 = vcombine.high %v536_v45, %v540_v46  ;;  %v6323_v58 = vcombine.low %v536_v45, %v540_v46  ;;  %v6836_v10 = vld [vmem:[#allocation8 + $0x44] ss:$16 sps:$4 sm:$0xff]  }
 0x211   :  { %3344 = vmatpush1.bf16.msra.mxu0 %v6257_v53  ;;  %3516 = vmatpush1.bf16.msra.mxu1 %v6259_v54  ;;  %v547_v53 = vld [vmem:[#allocation5 + $0xd30] sm:$0xff]  ;;  %v544_v54 = vld [vmem:[#allocation5 + $0xd18] sm:$0xff] }
 0x212   :  { %3345 = vmatprep.subr.bf16.mxu0 %v6266_v55  ;;  %3517 = vmatprep.subr.bf16.mxu1 %v6268_v56  ;;  %v548_v55 = vld [vmem:[#allocation5 + $0xd38] sm:$0xff]  ;;  %v7587_v56 = vshrl.u32 %v575_v47, 7  ;;  %v6329_v1 = vcombine.low %v543_v52, %v547_v53 }
 0x213   :  { %v6332_v59 = vcombine.high %v544_v54, %v548_v55 }
 0x214   :  { %v585_v3 = vsub.s32 2, %v7587_v56  ;;  %v581_v4 = vsub.s32 1, %v7587_v56 }
 0x215   :  { %3346 = vmatpush1.bf16.msra.mxu0 %v6265_v61  ;;  %3518 = vmatpush1.bf16.msra.mxu1 %v6267_v62  ;;  %v555_v61 = vld [vmem:[#allocation5 + $0xd70] sm:$0xff]  ;;  %v577_v62 = vsub.s32 0, %v7587_v56 }
 0x216   :  { %3347 = vmatprep.subr.bf16.mxu0 %v6274_v63  ;;  %3519 = vmatprep.subr.bf16.mxu1 %v6276_v0  ;;  %v552_v63 = vld [vmem:[#allocation5 + $0xd58] sm:$0xff] }
 0x217   :  { %v556_v0 = vld [vmem:[#allocation5 + $0xd78] sm:$0xff]  ;;  %v578_v11 = vrot.slane %v7590_v2, %v577_v62 }
 0x218   :  { %v6339_v18 = vcombine.low %v552_v63, %v556_v0 }
 0x219   :  { %3348 = vmatpush1.bf16.msra.mxu0 %v6273_v5  ;;  %3520 = vmatpush1.bf16.msra.mxu1 %v6275_v6  ;;  %v6331_v5 = vcombine.low %v544_v54, %v548_v55  ;;  %v589_v6 = vsub.s32 3, %v7587_v56 }
 0x21a   :  { %3349 = vmatprep.subr.bf16.mxu0 %v6282_v7  ;;  %3521 = vmatprep.subr.bf16.mxu1 %v6284_v8  ;;  %v6338_v7 = vcombine.high %v551_v60, %v555_v61  ;;  %v6340_v8 = vcombine.high %v552_v63, %v556_v0  ;;  %v6822_v63 = vld [vmem:[#allocation8] ss:$16 sps:$4 sm:$0xff]   ;;  %v6825_v0 = vld [vmem:[#allocation8 + $0x8] ss:$16 sps:$4 sm:$0xff]  }
 0x21b   :  { %v590_v17 = vrot.slane %v7590_v2, %v589_v6 }
 0x21d   :  { %3350 = vmatpush1.bf16.msra.mxu0 %v6281_v13  ;;  %3522 = vmatpush1.bf16.msra.mxu1 %v6283_v14  ;;  %v564_v13 = vld [vmem:[#allocation5 + $0xdb8] sm:$0xff]  ;;  %v586_v14 = vrot.slane %v7590_v2, %v585_v3 }
 0x21e   :  { %3351 = vmatprep.subr.bf16.mxu0 %v6290_v15  ;;  %3523 = vmatprep.subr.bf16.mxu1 %v6292_v16  ;;  %v582_v15 = vrot.slane %v7590_v2, %v581_v4  ;;  %v6337_v16 = vcombine.low %v551_v60, %v555_v61  ;;  %v6347_v35 = vcombine.low %v560_v12, %v564_v13  ;;  %v6827_v60 = vld [vmem:[#allocation8 + $0xc] ss:$16 sps:$4 sm:$0xff]  }
 0x221   :  { %3352 = vmatpush1.bf16.msra.mxu0 %v6289_v21  ;;  %3524 = vmatpush1.bf16.msra.mxu1 %v6291_v22  ;;  %v6348_v21 = vcombine.high %v560_v12, %v564_v13  ;;  %v567_v22 = vld [vmem:[#allocation5 + $0xdd0] sm:$0xff]  ;;  %v6834_v12 = vld [vmem:[#allocation8 + $0x40] ss:$16 sps:$4 sm:$0xff]  }
 0x222   :  { %3364 = vmatprep.subr.bf16.mxu0 %v6298_v23  ;;  %3536 = vmatprep.subr.bf16.mxu1 %v6300_v24  ;;  %v571_v23 = vld [vmem:[#allocation5 + $0xdf0] sm:$0xff] }
 0x223   :  { %v6837_v13 = vld [vmem:[#allocation8 + $0x48] ss:$16 sps:$4 sm:$0xff]  }
 0x224   :  { %3354 = vmatmul.mubr.bf16.vlgmr.msra.gmra.mrb[4].mxu0 %v7251_v36  ;;  %3526 = vmatmul.mubr.bf16.vlgmr.msra.gmra.mrb[4].mxu1 %v7251_v36 }
 0x225   :  { %3365 = vmatpush1.bf16.msra.mxu0 %v6297_v29  ;;  %3537 = vmatpush1.bf16.msra.mxu1 %v6299_v30 }
 0x226   :  { %3366 = vmatprep.subr.bf16.mxu0 %v6306_v31  ;;  %3538 = vmatprep.subr.bf16.mxu1 %v6308_v33 }
 0x227   :  { %3396 = vmatprep.mubr.bf16.mxu0 %v7454_v32  ;;  %3568 = vmatprep.mubr.bf16.mxu1 %v7454_v32  ;;  %v6330_v32 = vcombine.high %v543_v52, %v547_v53 }
 0x229   :  { %3367 = vmatpush1.bf16.msra.mxu0 %v6305_v39  ;;  %3539 = vmatpush1.bf16.msra.mxu1 %v6307_v40  ;;  %v6354_v40 = vcombine.high %v567_v22, %v571_v23 }
 0x22a   :  { %3368 = vmatprep.subr.bf16.mxu0 %v6314_v41  ;;  %3540 = vmatprep.subr.bf16.mxu1 %v6316_v42 }
 0x22d   :  { %3369 = vmatpush1.bf16.msra.mxu0 %v6313_v48  ;;  %3541 = vmatpush1.bf16.msra.mxu1 %v6315_v49  ;;  %v6353_v48 = vcombine.low %v567_v22, %v571_v23  ;;  %v6854_v22 = vld [vmem:[#allocation8 + $0xa4] ss:$16 sps:$4 sm:$0xff]   ;;  %v6857_v23 = vld [vmem:[#allocation8 + $0xac] ss:$16 sps:$4 sm:$0xff]  }
 0x22e   :  { %3370 = vmatprep.subr.bf16.mxu0 %v6322_v50  ;;  %3542 = vmatprep.subr.bf16.mxu1 %v6324_v51 }
 0x231   :  { %3371 = vmatpush1.bf16.msra.mxu0 %v6321_v57  ;;  %3543 = vmatpush1.bf16.msra.mxu1 %v6323_v58  ;;  %v6355_v57 = vcombine.low %v568_v27, %v572_v28  ;;  %v6824_v58 = vld [vmem:[#allocation8 + $0x4] ss:$16 sps:$4 sm:$0xff]   ;;  %v6863_v27 = vld [vmem:[#allocation8 + $0xcc] ss:$16 sps:$4 sm:$0xff]   ;;  %v6858_v28 = vld [vmem:[#allocation8 + $0xc0] ss:$16 sps:$4 sm:$0xff]  }
 0x232   :  { %3372 = vmatprep.subr.bf16.mxu0 %v6330_v32  ;;  %3544 = vmatprep.subr.bf16.mxu1 %v6332_v59 }
 0x235   :  { %3373 = vmatpush1.bf16.msra.mxu0 %v6329_v1  ;;  %3545 = vmatpush1.bf16.msra.mxu1 %v6331_v5  ;;  %v6830_v1 = vld [vmem:[#allocation8 + $0x24] ss:$16 sps:$4 sm:$0xff]  }
 0x236   :  { %3374 = vmatprep.subr.bf16.mxu0 %v6338_v7  ;;  %3546 = vmatprep.subr.bf16.mxu1 %v6340_v8  ;;  %v7252_v5 = vld [vmem:[#allocation2 + $0x18] ss:$28 sps:$4 sm:$0xff]   ;;  %v6833_v7 = vld [vmem:[#allocation8 + $0x2c] ss:$16 sps:$4 sm:$0xff]   ;;  %v6828_v8 = vld [vmem:[#allocation8 + $0x20] ss:$16 sps:$4 sm:$0xff]  }
 0x237   :  { %v3054_v20 = vpop.f32.mrb[0].mxu0  ;;  %v3226_v25 = vpop.f32.mrb[0].mxu1 }
 0x238   :  { %v6699_v24 = vadd.f32 %v3054_v20, %v578_v11  ;;  %v3056_v26 = vpop.f32.mrb[1].mxu0  ;;  %v6703_v29 = vadd.f32 %v3226_v25, %v586_v14  ;;  %v3228_v31 = vpop.f32.mrb[1].mxu1  ;;  %v6846_v20 = vld [vmem:[#allocation8 + $0x80] ss:$16 sps:$4 sm:$0xff]   ;;  %v6855_v25 = vld [vmem:[#allocation8 + $0xa8] ss:$16 sps:$4 sm:$0xff]  }
 0x239   :  { %v6700_v30 = vadd.f32 %v3056_v26, %v582_v15  ;;  %v3058_v33 = vpop.f32.mrb[2].mxu0  ;;  %3375 = vmatpush1.bf16.msra.mxu0 %v6337_v16  ;;  %v6704_v36 = vadd.f32 %v3228_v31, %v590_v17  ;;  %v3230_v38 = vpop.f32.mrb[2].mxu1  ;;  %3547 = vmatpush1.bf16.msra.mxu1 %v6339_v18  ;;  %v6840_v16 = vld [vmem:[#allocation8 + $0x60] ss:$16 sps:$4 sm:$0xff]   ;;  %v6848_v18 = vld [vmem:[#allocation8 + $0x84] ss:$16 sps:$4 sm:$0xff]  }
 0x23a   :  { %v6701_v37 = vadd.f32 %v3058_v33, %v578_v11  ;;  %v3060_v39 = vpop.f32.mrb[3].mxu0  ;;  %3376 = vmatprep.subr.bf16.mxu0 %v6346_v19  ;;  %v6705_v41 = vadd.f32 %v3230_v38, %v586_v14  ;;  %v3232_v43 = vpop.f32.mrb[3].mxu1  ;;  %3548 = vmatprep.subr.bf16.mxu1 %v6348_v21  ;;  %v3579_v45 = vmax.f32 %v6699_v24, 0.0  ;;  %v3581_v49 = vmax.f32 %v6703_v29, 0.0  ;;  %v6839_v11 = vld [vmem:[#allocation8 + $0x4c] ss:$16 sps:$4 sm:$0xff]  }
 0x23b   :  { %v6702_v42 = vadd.f32 %v3060_v39, %v582_v15  ;;  %v6706_v47 = vadd.f32 %v3232_v43, %v590_v17  ;;  %v3580_v50 = vmax.f32 %v6700_v30, 0.0  ;;  %v3582_v53 = vmax.f32 %v6704_v36, 0.0  ;;  %v6842_v14 = vld [vmem:[#allocation8 + $0x64] ss:$16 sps:$4 sm:$0xff]   ;;  %v6845_v15 = vld [vmem:[#allocation8 + $0x6c] ss:$16 sps:$4 sm:$0xff]  }
 0x23c   :  { %v3587_v46 = vmax.f32 %v6701_v37, 0.0  ;;  %v3589_v51 = vmax.f32 %v6705_v41, 0.0  ;;  %v6843_v17 = vld [vmem:[#allocation8 + $0x68] ss:$16 sps:$4 sm:$0xff]   ;;  %v6851_v19 = vld [vmem:[#allocation8 + $0x8c] ss:$16 sps:$4 sm:$0xff]  }
 0x23d   :  { %v3588_v52 = vmax.f32 %v6702_v42, 0.0  ;;  %3377 = vmatpush1.bf16.msra.mxu0 %v6345_v34  ;;  %v3590_v55 = vmax.f32 %v6706_v47, 0.0  ;;  %3549 = vmatpush1.bf16.msra.mxu1 %v6347_v35  ;;  %v6849_v21 = vld [vmem:[#allocation8 + $0x88] ss:$16 sps:$4 sm:$0xff]   ;;  %v6852_v24 = vld [vmem:[#allocation8 + $0xa0] ss:$16 sps:$4 sm:$0xff]  }
 0x23e   :  { %v7607_v54 = vpack.c.bf16 %v3587_v46, %v3579_v45  ;;  %3378 = vmatprep.subr.bf16.mxu0 %v6354_v40  ;;  %v7609_v32 = vpack.c.bf16 %v3589_v51, %v3581_v49  ;;  %3550 = vmatprep.subr.bf16.mxu1 %v6356_v44  ;;  %v6860_v26 = vld [vmem:[#allocation8 + $0xc4] ss:$16 sps:$4 sm:$0xff]   ;;  %v6861_v29 = vld [vmem:[#allocation8 + $0xc8] ss:$16 sps:$4 sm:$0xff]   ;;  %v6869_v31 = vld [vmem:[#allocation8 + $0xec] ss:$16 sps:$4 sm:$0xff]  }
 0x23f   :  { %v3596_v59 = vpack.c.bf16 %v3588_v52, %v3580_v50  ;;  %v7611_v61 = vpack.c.bf16 %v3590_v55, %v3582_v53  ;;  %v6866_v30 = vld [vmem:[#allocation8 + $0xe4] ss:$16 sps:$4 sm:$0xff]   ;;  %v6864_v33 = vld [vmem:[#allocation8 + $0xe0] ss:$16 sps:$4 sm:$0xff]   ;;  %v6867_v34 = vld [vmem:[#allocation8 + $0xe8] ss:$16 sps:$4 sm:$0xff]  }
 0x240   :  { %v6872_v35 = vld [vmem:[#allocation8 + $0x104] ss:$16 sps:$4 sm:$0xff]   ;;  %v6875_v36 = vld [vmem:[#allocation8 + $0x10c] ss:$16 sps:$4 sm:$0xff]   ;;  %v6870_v37 = vld [vmem:[#allocation8 + $0x100] ss:$16 sps:$4 sm:$0xff]  }
 0x241   :  { %3379 = vmatpush1.bf16.msra.mxu0 %v6353_v48  ;;  %3551 = vmatpush1.bf16.msra.mxu1 %v6355_v57  ;;  %v6873_v38 = vld [vmem:[#allocation8 + $0x108] ss:$16 sps:$4 sm:$0xff]   ;;  %v6878_v39 = vld [vmem:[#allocation8 + $0x124] ss:$16 sps:$4 sm:$0xff]   ;;  %v6881_v40 = vld [vmem:[#allocation8 + $0x12c] ss:$16 sps:$4 sm:$0xff]  }
 0x242   :  { %5161 = vmatprep.subr.bf16.mxu0 %v6824_v58  ;;  %5333 = vmatprep.subr.bf16.mxu1 %v6827_v60  ;;  %v6876_v41 = vld [vmem:[#allocation8 + $0x120] ss:$16 sps:$4 sm:$0xff]   ;;  %v6879_v42 = vld [vmem:[#allocation8 + $0x128] ss:$16 sps:$4 sm:$0xff]   ;;  %v6884_v43 = vld [vmem:[#allocation8 + $0x144] ss:$16 sps:$4 sm:$0xff]  }
 0x243   :  { %v6887_v44 = vld [vmem:[#allocation8 + $0x14c] ss:$16 sps:$4 sm:$0xff]   ;;  %v6882_v45 = vld [vmem:[#allocation8 + $0x140] ss:$16 sps:$4 sm:$0xff]   ;;  %v6885_v46 = vld [vmem:[#allocation8 + $0x148] ss:$16 sps:$4 sm:$0xff]  }
 0x244   :  { %3397 = vmatmul.mubr.bf16.vlgmr.msra.gmra.mrb[4].mxu0 %v7252_v5  ;;  %3569 = vmatmul.mubr.bf16.vlgmr.msra.gmra.mrb[4].mxu1 %v7252_v5  ;;  %v6890_v47 = vld [vmem:[#allocation8 + $0x164] ss:$16 sps:$4 sm:$0xff]   ;;  %v6893_v48 = vld [vmem:[#allocation8 + $0x16c] ss:$16 sps:$4 sm:$0xff]   ;;  %v6888_v49 = vld [vmem:[#allocation8 + $0x160] ss:$16 sps:$4 sm:$0xff]  }
 0x245   :  { %5162 = vmatpush1.bf16.msra.mxu0 %v6822_v63  ;;  %5193 = vmatprep.mubr.bf16.mxu0 %v3596_v59  ;;  %v6891_v50 = vld [vmem:[#allocation8 + $0x168] ss:$16 sps:$4 sm:$0xff]   ;;  %v6896_v51 = vld [vmem:[#allocation8 + $0x184] ss:$16 sps:$4 sm:$0xff]   ;;  %v6899_v52 = vld [vmem:[#allocation8 + $0x18c] ss:$16 sps:$4 sm:$0xff]  }
 0x246   :  { %5334 = vmatpush1.bf16.msra.mxu1 %v6825_v0  ;;  %5365 = vmatprep.mubr.bf16.mxu1 %v3596_v59  ;;  %v6894_v53 = vld [vmem:[#allocation8 + $0x180] ss:$16 sps:$4 sm:$0xff]   ;;  %v6897_v55 = vld [vmem:[#allocation8 + $0x188] ss:$16 sps:$4 sm:$0xff]   ;;  %v6902_v57 = vld [vmem:[#allocation8 + $0x1a4] ss:$16 sps:$4 sm:$0xff]  }
 0x247   :  { %5163 = vmatprep.subr.bf16.mxu0 %v6830_v1  ;;  %5335 = vmatprep.subr.bf16.mxu1 %v6833_v7  ;;  %v6905_v58 = vld [vmem:[#allocation8 + $0x1ac] ss:$16 sps:$4 sm:$0xff]   ;;  %v6900_v59 = vld [vmem:[#allocation8 + $0x1a0] ss:$16 sps:$4 sm:$0xff]   ;;  %v6903_v60 = vld [vmem:[#allocation8 + $0x1a8] ss:$16 sps:$4 sm:$0xff]  }
 0x248   :  { %v6908_v63 = vld [vmem:[#allocation8 + $0x1c4] ss:$16 sps:$4 sm:$0xff]   ;;  %v6911_v0 = vld [vmem:[#allocation8 + $0x1cc] ss:$16 sps:$4 sm:$0xff]   ;;  %v6906_v1 = vld [vmem:[#allocation8 + $0x1c0] ss:$16 sps:$4 sm:$0xff]  }
 0x249   :  { %5164 = vmatpush1.bf16.msra.mxu0 %v6828_v8  ;;  %v6909_v5 = vld [vmem:[#allocation8 + $0x1c8] ss:$16 sps:$4 sm:$0xff]   ;;  %v6914_v7 = vld [vmem:[#allocation8 + $0x1e4] ss:$16 sps:$4 sm:$0xff]   ;;  %v6917_v8 = vld [vmem:[#allocation8 + $0x1ec] ss:$16 sps:$4 sm:$0xff]  }
 0x24a   :  { %5336 = vmatpush1.bf16.msra.mxu1 %v6831_v9  ;;  %5165 = vmatprep.subr.bf16.mxu0 %v6836_v10  ;;  %v6912_v9 = vld [vmem:[#allocation8 + $0x1e0] ss:$16 sps:$4 sm:$0xff]   ;;  %v6915_v10 = vld [vmem:[#allocation8 + $0x1e8] ss:$16 sps:$4 sm:$0xff]  }
 0x24b   :  { %5337 = vmatprep.subr.bf16.mxu1 %v6839_v11  ;;  %v6920_v11 = vld [vmem:[#allocation8 + $0x204] ss:$16 sps:$4 sm:$0xff]  }
 0x24d   :  { %5166 = vmatpush1.bf16.msra.mxu0 %v6834_v12  ;;  %v6923_v12 = vld [vmem:[#allocation8 + $0x20c] ss:$16 sps:$4 sm:$0xff]  }
 0x24e   :  { %5338 = vmatpush1.bf16.msra.mxu1 %v6837_v13  ;;  %5167 = vmatprep.subr.bf16.mxu0 %v6842_v14  ;;  %v6918_v13 = vld [vmem:[#allocation8 + $0x200] ss:$16 sps:$4 sm:$0xff]   ;;  %v6921_v14 = vld [vmem:[#allocation8 + $0x208] ss:$16 sps:$4 sm:$0xff]  }
 0x24f   :  { %5339 = vmatprep.subr.bf16.mxu1 %v6845_v15  ;;  %v6926_v15 = vld [vmem:[#allocation8 + $0x224] ss:$16 sps:$4 sm:$0xff]  }
 0x251   :  { %5168 = vmatpush1.bf16.msra.mxu0 %v6840_v16  ;;  %v6929_v16 = vld [vmem:[#allocation8 + $0x22c] ss:$16 sps:$4 sm:$0xff]  }
 0x252   :  { %5340 = vmatpush1.bf16.msra.mxu1 %v6843_v17  ;;  %5169 = vmatprep.subr.bf16.mxu0 %v6848_v18  ;;  %v6924_v17 = vld [vmem:[#allocation8 + $0x220] ss:$16 sps:$4 sm:$0xff]   ;;  %v6927_v18 = vld [vmem:[#allocation8 + $0x228] ss:$16 sps:$4 sm:$0xff]  }
 0x253   :  { %5341 = vmatprep.subr.bf16.mxu1 %v6851_v19  ;;  %v6932_v19 = vld [vmem:[#allocation8 + $0x244] ss:$16 sps:$4 sm:$0xff]  }
 0x255   :  { %5170 = vmatpush1.bf16.msra.mxu0 %v6846_v20  ;;  %v6935_v20 = vld [vmem:[#allocation8 + $0x24c] ss:$16 sps:$4 sm:$0xff]  }
 0x256   :  { %5342 = vmatpush1.bf16.msra.mxu1 %v6849_v21  ;;  %5171 = vmatprep.subr.bf16.mxu0 %v6854_v22  ;;  %v6930_v21 = vld [vmem:[#allocation8 + $0x240] ss:$16 sps:$4 sm:$0xff]   ;;  %v6933_v22 = vld [vmem:[#allocation8 + $0x248] ss:$16 sps:$4 sm:$0xff]  }
 0x257   :  { %5343 = vmatprep.subr.bf16.mxu1 %v6857_v23  ;;  %v6938_v23 = vld [vmem:[#allocation8 + $0x264] ss:$16 sps:$4 sm:$0xff]  }
 0x259   :  { %5172 = vmatpush1.bf16.msra.mxu0 %v6852_v24  ;;  %v6936_v24 = vld [vmem:[#allocation8 + $0x260] ss:$16 sps:$4 sm:$0xff]  }
 0x25a   :  { %5344 = vmatpush1.bf16.msra.mxu1 %v6855_v25  ;;  %5173 = vmatprep.subr.bf16.mxu0 %v6860_v26  ;;  %v6939_v25 = vld [vmem:[#allocation8 + $0x268] ss:$16 sps:$4 sm:$0xff]   ;;  %v6944_v26 = vld [vmem:[#allocation8 + $0x284] ss:$16 sps:$4 sm:$0xff]  }
 0x25b   :  { %5345 = vmatprep.subr.bf16.mxu1 %v6863_v27  ;;  %v6947_v27 = vld [vmem:[#allocation8 + $0x28c] ss:$16 sps:$4 sm:$0xff]  }
 0x25d   :  { %5174 = vmatpush1.bf16.msra.mxu0 %v6858_v28  ;;  %v6945_v28 = vld [vmem:[#allocation8 + $0x288] ss:$16 sps:$4 sm:$0xff]  }
 0x25e   :  { %5346 = vmatpush1.bf16.msra.mxu1 %v6861_v29  ;;  %5175 = vmatprep.subr.bf16.mxu0 %v6866_v30  ;;  %v6950_v29 = vld [vmem:[#allocation8 + $0x2a4] ss:$16 sps:$4 sm:$0xff]   ;;  %v6953_v30 = vld [vmem:[#allocation8 + $0x2ac] ss:$16 sps:$4 sm:$0xff]  }
 0x25f   :  { %5347 = vmatprep.subr.bf16.mxu1 %v6869_v31  ;;  %v6948_v31 = vld [vmem:[#allocation8 + $0x2a0] ss:$16 sps:$4 sm:$0xff]  }
 0x261   :  { %5176 = vmatpush1.bf16.msra.mxu0 %v6864_v33  ;;  %v6951_v33 = vld [vmem:[#allocation8 + $0x2a8] ss:$16 sps:$4 sm:$0xff]  }
 0x262   :  { %5348 = vmatpush1.bf16.msra.mxu1 %v6867_v34  ;;  %5177 = vmatprep.subr.bf16.mxu0 %v6872_v35  ;;  %v6956_v34 = vld [vmem:[#allocation8 + $0x2c4] ss:$16 sps:$4 sm:$0xff]   ;;  %v6959_v35 = vld [vmem:[#allocation8 + $0x2cc] ss:$16 sps:$4 sm:$0xff]  }
 0x263   :  { %5349 = vmatprep.subr.bf16.mxu1 %v6875_v36  ;;  %v6954_v36 = vld [vmem:[#allocation8 + $0x2c0] ss:$16 sps:$4 sm:$0xff]  }
 0x265   :  { %5178 = vmatpush1.bf16.msra.mxu0 %v6870_v37  ;;  %v6957_v37 = vld [vmem:[#allocation8 + $0x2c8] ss:$16 sps:$4 sm:$0xff]  }
 0x266   :  { %5350 = vmatpush1.bf16.msra.mxu1 %v6873_v38  ;;  %5179 = vmatprep.subr.bf16.mxu0 %v6878_v39  ;;  %v6962_v38 = vld [vmem:[#allocation8 + $0x2e4] ss:$16 sps:$4 sm:$0xff]   ;;  %v6965_v39 = vld [vmem:[#allocation8 + $0x2ec] ss:$16 sps:$4 sm:$0xff]  }
 0x267   :  { %5351 = vmatprep.subr.bf16.mxu1 %v6881_v40  ;;  %v6960_v40 = vld [vmem:[#allocation8 + $0x2e0] ss:$16 sps:$4 sm:$0xff]  }
 0x269   :  { %5180 = vmatpush1.bf16.msra.mxu0 %v6876_v41  ;;  %v6963_v41 = vld [vmem:[#allocation8 + $0x2e8] ss:$16 sps:$4 sm:$0xff]  }
 0x26a   :  { %5352 = vmatpush1.bf16.msra.mxu1 %v6879_v42  ;;  %5181 = vmatprep.subr.bf16.mxu0 %v6884_v43  ;;  %v6968_v42 = vld [vmem:[#allocation8 + $0x304] ss:$16 sps:$4 sm:$0xff]   ;;  %v6971_v43 = vld [vmem:[#allocation8 + $0x30c] ss:$16 sps:$4 sm:$0xff]  }
 0x26b   :  { %5353 = vmatprep.subr.bf16.mxu1 %v6887_v44  ;;  %v6966_v44 = vld [vmem:[#allocation8 + $0x300] ss:$16 sps:$4 sm:$0xff]  }
 0x26d   :  { %5182 = vmatpush1.bf16.msra.mxu0 %v6882_v45  ;;  %v6969_v45 = vld [vmem:[#allocation8 + $0x308] ss:$16 sps:$4 sm:$0xff]  }
 0x26e   :  { %5354 = vmatpush1.bf16.msra.mxu1 %v6885_v46  ;;  %5183 = vmatprep.subr.bf16.mxu0 %v6890_v47  ;;  %v6974_v46 = vld [vmem:[#allocation8 + $0x324] ss:$16 sps:$4 sm:$0xff]   ;;  %v6977_v47 = vld [vmem:[#allocation8 + $0x32c] ss:$16 sps:$4 sm:$0xff]  }
 0x26f   :  { %5355 = vmatprep.subr.bf16.mxu1 %v6893_v48  ;;  %v6972_v48 = vld [vmem:[#allocation8 + $0x320] ss:$16 sps:$4 sm:$0xff]  }
 0x271   :  { %5184 = vmatpush1.bf16.msra.mxu0 %v6888_v49  ;;  %v6975_v49 = vld [vmem:[#allocation8 + $0x328] ss:$16 sps:$4 sm:$0xff]  }
 0x272   :  { %5356 = vmatpush1.bf16.msra.mxu1 %v6891_v50  ;;  %5185 = vmatprep.subr.bf16.mxu0 %v6896_v51  ;;  %v6980_v50 = vld [vmem:[#allocation8 + $0x344] ss:$16 sps:$4 sm:$0xff]   ;;  %v6983_v51 = vld [vmem:[#allocation8 + $0x34c] ss:$16 sps:$4 sm:$0xff]  }
 0x273   :  { %5357 = vmatprep.subr.bf16.mxu1 %v6899_v52  ;;  %v6978_v52 = vld [vmem:[#allocation8 + $0x340] ss:$16 sps:$4 sm:$0xff]  }
 0x275   :  { %5186 = vmatpush1.bf16.msra.mxu0 %v6894_v53  ;;  %v6981_v53 = vld [vmem:[#allocation8 + $0x348] ss:$16 sps:$4 sm:$0xff]  }
 0x276   :  { %5358 = vmatpush1.bf16.msra.mxu1 %v6897_v55  ;;  %5187 = vmatprep.subr.bf16.mxu0 %v6902_v57  ;;  %v6986_v55 = vld [vmem:[#allocation8 + $0x364] ss:$16 sps:$4 sm:$0xff]   ;;  %v6989_v57 = vld [vmem:[#allocation8 + $0x36c] ss:$16 sps:$4 sm:$0xff]  }
 0x277   :  { %5359 = vmatprep.subr.bf16.mxu1 %v6905_v58  ;;  %v6984_v58 = vld [vmem:[#allocation8 + $0x360] ss:$16 sps:$4 sm:$0xff]  }
 0x279   :  { %5188 = vmatpush1.bf16.msra.mxu0 %v6900_v59  ;;  %v6987_v59 = vld [vmem:[#allocation8 + $0x368] ss:$16 sps:$4 sm:$0xff]  }
 0x27a   :  { %5360 = vmatpush1.bf16.msra.mxu1 %v6903_v60  ;;  %5189 = vmatprep.subr.bf16.mxu0 %v6908_v63  ;;  %v6992_v60 = vld [vmem:[#allocation8 + $0x384] ss:$16 sps:$4 sm:$0xff]   ;;  %v6995_v63 = vld [vmem:[#allocation8 + $0x38c] ss:$16 sps:$4 sm:$0xff]  }
 0x27b   :  { %5361 = vmatprep.subr.bf16.mxu1 %v6911_v0  ;;  %v6990_v0 = vld [vmem:[#allocation8 + $0x380] ss:$16 sps:$4 sm:$0xff]  }
 0x27d   :  { %5190 = vmatpush1.bf16.msra.mxu0 %v6906_v1  ;;  %v6993_v1 = vld [vmem:[#allocation8 + $0x388] ss:$16 sps:$4 sm:$0xff]  }
 0x27e   :  { %5362 = vmatpush1.bf16.msra.mxu1 %v6909_v5  ;;  %5191 = vmatprep.subr.bf16.mxu0 %v6914_v7  ;;  %v6998_v5 = vld [vmem:[#allocation8 + $0x3a4] ss:$16 sps:$4 sm:$0xff]   ;;  %v7001_v7 = vld [vmem:[#allocation8 + $0x3ac] ss:$16 sps:$4 sm:$0xff]  }
 0x27f   :  { %5363 = vmatprep.subr.bf16.mxu1 %v6917_v8  ;;  %v6996_v8 = vld [vmem:[#allocation8 + $0x3a0] ss:$16 sps:$4 sm:$0xff]  }
 0x281   :  { %5192 = vmatpush1.bf16.msra.mxu0 %v6912_v9  ;;  %v6999_v9 = vld [vmem:[#allocation8 + $0x3a8] ss:$16 sps:$4 sm:$0xff]  }
 0x282   :  { %5364 = vmatpush1.bf16.msra.mxu1 %v6915_v10  ;;  %5204 = vmatprep.subr.bf16.mxu0 %v6920_v11  ;;  %v7004_v10 = vld [vmem:[#allocation8 + $0x3c4] ss:$16 sps:$4 sm:$0xff]   ;;  %v7007_v11 = vld [vmem:[#allocation8 + $0x3cc] ss:$16 sps:$4 sm:$0xff]  }
 0x283   :  { %5376 = vmatprep.subr.bf16.mxu1 %v6923_v12  ;;  %v7002_v12 = vld [vmem:[#allocation8 + $0x3c0] ss:$16 sps:$4 sm:$0xff]  }
 0x284   :  { %5194 = vmatmul.mubr.bf16.vlgmr.msra.gmra.mrb[8].mxu0 %v7607_v54 }
 0x285   :  { %5366 = vmatmul.mubr.bf16.vlgmr.msra.gmra.mrb[8].mxu1 %v7607_v54  ;;  %5205 = vmatpush1.bf16.msra.mxu0 %v6918_v13  ;;  %v6941_v54 = vld [vmem:[#allocation8 + $0x26c] ss:$16 sps:$4 sm:$0xff]   ;;  %v7005_v13 = vld [vmem:[#allocation8 + $0x3c8] ss:$16 sps:$4 sm:$0xff]  }
 0x286   :  { %5236 = vmatprep.mubr.bf16.mxu0 %v7611_v61  ;;  %5377 = vmatpush1.bf16.msra.mxu1 %v6921_v14  ;;  %v7010_v14 = vld [vmem:[#allocation8 + $0x3e4] ss:$16 sps:$4 sm:$0xff]  }
 0x287   :  { %5408 = vmatprep.mubr.bf16.mxu1 %v7611_v61  ;;  %5206 = vmatprep.subr.bf16.mxu0 %v6926_v15  ;;  %v6942_v61 = vld [vmem:[#allocation8 + $0x280] ss:$16 sps:$4 sm:$0xff]   ;;  %v7013_v15 = vld [vmem:[#allocation8 + $0x3ec] ss:$16 sps:$4 sm:$0xff]  }
 0x288   :  { %5378 = vmatprep.subr.bf16.mxu1 %v6929_v16  ;;  %v7008_v16 = vld [vmem:[#allocation8 + $0x3e0] ss:$16 sps:$4 sm:$0xff]  }
 0x289   :  { %5207 = vmatpush1.bf16.msra.mxu0 %v6924_v17  ;;  %v7011_v17 = vld [vmem:[#allocation8 + $0x3e8] ss:$16 sps:$4 sm:$0xff]  }
 0x28a   :  { %5379 = vmatpush1.bf16.msra.mxu1 %v6927_v18  ;;  %5208 = vmatprep.subr.bf16.mxu0 %v6932_v19  ;;  %v7016_v18 = vld [vmem:[#allocation8 + $0x404] ss:$16 sps:$4 sm:$0xff]   ;;  %v7019_v19 = vld [vmem:[#allocation8 + $0x40c] ss:$16 sps:$4 sm:$0xff]  }
 0x28b   :  { %5380 = vmatprep.subr.bf16.mxu1 %v6935_v20  ;;  %v7014_v20 = vld [vmem:[#allocation8 + $0x400] ss:$16 sps:$4 sm:$0xff]  }
 0x28d   :  { %5209 = vmatpush1.bf16.msra.mxu0 %v6930_v21  ;;  %v7017_v21 = vld [vmem:[#allocation8 + $0x408] ss:$16 sps:$4 sm:$0xff]  }
 0x28e   :  { %5381 = vmatpush1.bf16.msra.mxu1 %v6933_v22  ;;  %5210 = vmatprep.subr.bf16.mxu0 %v6938_v23  ;;  %v7022_v22 = vld [vmem:[#allocation8 + $0x424] ss:$16 sps:$4 sm:$0xff]   ;;  %v7025_v23 = vld [vmem:[#allocation8 + $0x42c] ss:$16 sps:$4 sm:$0xff]  }
 0x28f   :  { %5382 = vmatprep.subr.bf16.mxu1 %v6941_v54  ;;  %v7020_v54 = vld [vmem:[#allocation8 + $0x420] ss:$16 sps:$4 sm:$0xff]  }
 0x291   :  { %5211 = vmatpush1.bf16.msra.mxu0 %v6936_v24  ;;  %v7023_v24 = vld [vmem:[#allocation8 + $0x428] ss:$16 sps:$4 sm:$0xff]  }
 0x292   :  { %5383 = vmatpush1.bf16.msra.mxu1 %v6939_v25  ;;  %5212 = vmatprep.subr.bf16.mxu0 %v6944_v26  ;;  %v7028_v25 = vld [vmem:[#allocation8 + $0x444] ss:$16 sps:$4 sm:$0xff]   ;;  %v7031_v26 = vld [vmem:[#allocation8 + $0x44c] ss:$16 sps:$4 sm:$0xff]  }
 0x293   :  { %5384 = vmatprep.subr.bf16.mxu1 %v6947_v27  ;;  %v7026_v27 = vld [vmem:[#allocation8 + $0x440] ss:$16 sps:$4 sm:$0xff]  }
 0x295   :  { %5213 = vmatpush1.bf16.msra.mxu0 %v6942_v61  ;;  %v7029_v61 = vld [vmem:[#allocation8 + $0x448] ss:$16 sps:$4 sm:$0xff]  }
 0x296   :  { %5385 = vmatpush1.bf16.msra.mxu1 %v6945_v28  ;;  %5214 = vmatprep.subr.bf16.mxu0 %v6950_v29  ;;  %v7034_v28 = vld [vmem:[#allocation8 + $0x464] ss:$16 sps:$4 sm:$0xff]   ;;  %v7037_v29 = vld [vmem:[#allocation8 + $0x46c] ss:$16 sps:$4 sm:$0xff]  }
 0x297   :  { %5386 = vmatprep.subr.bf16.mxu1 %v6953_v30  ;;  %v7032_v30 = vld [vmem:[#allocation8 + $0x460] ss:$16 sps:$4 sm:$0xff]  }
 0x299   :  { %5215 = vmatpush1.bf16.msra.mxu0 %v6948_v31  ;;  %v7040_v31 = vld [vmem:[#allocation8 + $0x484] ss:$16 sps:$4 sm:$0xff]  }
 0x29a   :  { %5387 = vmatpush1.bf16.msra.mxu1 %v6951_v33  ;;  %5216 = vmatprep.subr.bf16.mxu0 %v6956_v34  ;;  %v7043_v33 = vld [vmem:[#allocation8 + $0x48c] ss:$16 sps:$4 sm:$0xff]   ;;  %v7038_v34 = vld [vmem:[#allocation8 + $0x480] ss:$16 sps:$4 sm:$0xff]  }
 0x29b   :  { %5388 = vmatprep.subr.bf16.mxu1 %v6959_v35  ;;  %v7041_v35 = vld [vmem:[#allocation8 + $0x488] ss:$16 sps:$4 sm:$0xff]  }
 0x29d   :  { %5217 = vmatpush1.bf16.msra.mxu0 %v6954_v36  ;;  %v7046_v36 = vld [vmem:[#allocation8 + $0x4a4] ss:$16 sps:$4 sm:$0xff]  }
 0x29e   :  { %5389 = vmatpush1.bf16.msra.mxu1 %v6957_v37  ;;  %5218 = vmatprep.subr.bf16.mxu0 %v6962_v38  ;;  %v7049_v37 = vld [vmem:[#allocation8 + $0x4ac] ss:$16 sps:$4 sm:$0xff]   ;;  %v7044_v38 = vld [vmem:[#allocation8 + $0x4a0] ss:$16 sps:$4 sm:$0xff]  }
 0x29f   :  { %5390 = vmatprep.subr.bf16.mxu1 %v6965_v39  ;;  %v7047_v39 = vld [vmem:[#allocation8 + $0x4a8] ss:$16 sps:$4 sm:$0xff]  }
 0x2a1   :  { %5219 = vmatpush1.bf16.msra.mxu0 %v6960_v40  ;;  %v7052_v40 = vld [vmem:[#allocation8 + $0x4c4] ss:$16 sps:$4 sm:$0xff]  }
 0x2a2   :  { %5391 = vmatpush1.bf16.msra.mxu1 %v6963_v41  ;;  %5220 = vmatprep.subr.bf16.mxu0 %v6968_v42  ;;  %v7055_v41 = vld [vmem:[#allocation8 + $0x4cc] ss:$16 sps:$4 sm:$0xff]   ;;  %v7050_v42 = vld [vmem:[#allocation8 + $0x4c0] ss:$16 sps:$4 sm:$0xff]  }
 0x2a3   :  { %5392 = vmatprep.subr.bf16.mxu1 %v6971_v43  ;;  %v7053_v43 = vld [vmem:[#allocation8 + $0x4c8] ss:$16 sps:$4 sm:$0xff]  }
 0x2a5   :  { %5221 = vmatpush1.bf16.msra.mxu0 %v6966_v44  ;;  %v7058_v44 = vld [vmem:[#allocation8 + $0x4e4] ss:$16 sps:$4 sm:$0xff]  }
 0x2a6   :  { %5393 = vmatpush1.bf16.msra.mxu1 %v6969_v45  ;;  %5222 = vmatprep.subr.bf16.mxu0 %v6974_v46  ;;  %v7061_v45 = vld [vmem:[#allocation8 + $0x4ec] ss:$16 sps:$4 sm:$0xff]   ;;  %v7056_v46 = vld [vmem:[#allocation8 + $0x4e0] ss:$16 sps:$4 sm:$0xff]  }
 0x2a7   :  { %5394 = vmatprep.subr.bf16.mxu1 %v6977_v47  ;;  %v7059_v47 = vld [vmem:[#allocation8 + $0x4e8] ss:$16 sps:$4 sm:$0xff]  }
 0x2a9   :  { %5223 = vmatpush1.bf16.msra.mxu0 %v6972_v48  ;;  %v7064_v48 = vld [vmem:[#allocation8 + $0x504] ss:$16 sps:$4 sm:$0xff]  }
 0x2aa   :  { %5395 = vmatpush1.bf16.msra.mxu1 %v6975_v49  ;;  %5224 = vmatprep.subr.bf16.mxu0 %v6980_v50  ;;  %v7067_v49 = vld [vmem:[#allocation8 + $0x50c] ss:$16 sps:$4 sm:$0xff]   ;;  %v7062_v50 = vld [vmem:[#allocation8 + $0x500] ss:$16 sps:$4 sm:$0xff]  }
 0x2ab   :  { %5396 = vmatprep.subr.bf16.mxu1 %v6983_v51  ;;  %v7065_v51 = vld [vmem:[#allocation8 + $0x508] ss:$16 sps:$4 sm:$0xff]  }
 0x2ad   :  { %5225 = vmatpush1.bf16.msra.mxu0 %v6978_v52  ;;  %v7070_v52 = vld [vmem:[#allocation8 + $0x524] ss:$16 sps:$4 sm:$0xff]  }
 0x2ae   :  { %5397 = vmatpush1.bf16.msra.mxu1 %v6981_v53  ;;  %5226 = vmatprep.subr.bf16.mxu0 %v6986_v55  ;;  %v7073_v53 = vld [vmem:[#allocation8 + $0x52c] ss:$16 sps:$4 sm:$0xff]   ;;  %v7068_v55 = vld [vmem:[#allocation8 + $0x520] ss:$16 sps:$4 sm:$0xff]  }
 0x2af   :  { %5398 = vmatprep.subr.bf16.mxu1 %v6989_v57  ;;  %v7071_v57 = vld [vmem:[#allocation8 + $0x528] ss:$16 sps:$4 sm:$0xff]  }
 0x2b1   :  { %5227 = vmatpush1.bf16.msra.mxu0 %v6984_v58  ;;  %v7076_v58 = vld [vmem:[#allocation8 + $0x544] ss:$16 sps:$4 sm:$0xff]  }
 0x2b2   :  { %5399 = vmatpush1.bf16.msra.mxu1 %v6987_v59  ;;  %5228 = vmatprep.subr.bf16.mxu0 %v6992_v60  ;;  %v7079_v59 = vld [vmem:[#allocation8 + $0x54c] ss:$16 sps:$4 sm:$0xff]   ;;  %v7074_v60 = vld [vmem:[#allocation8 + $0x540] ss:$16 sps:$4 sm:$0xff]  }
 0x2b3   :  { %5400 = vmatprep.subr.bf16.mxu1 %v6995_v63  ;;  %v7077_v63 = vld [vmem:[#allocation8 + $0x548] ss:$16 sps:$4 sm:$0xff]  }
 0x2b5   :  { %5229 = vmatpush1.bf16.msra.mxu0 %v6990_v0  ;;  %v7082_v0 = vld [vmem:[#allocation8 + $0x564] ss:$16 sps:$4 sm:$0xff]  }
 0x2b6   :  { %5401 = vmatpush1.bf16.msra.mxu1 %v6993_v1  ;;  %5230 = vmatprep.subr.bf16.mxu0 %v6998_v5  ;;  %v7085_v1 = vld [vmem:[#allocation8 + $0x56c] ss:$16 sps:$4 sm:$0xff]   ;;  %v7080_v5 = vld [vmem:[#allocation8 + $0x560] ss:$16 sps:$4 sm:$0xff]  }
 0x2b7   :  { %5402 = vmatprep.subr.bf16.mxu1 %v7001_v7  ;;  %v7083_v7 = vld [vmem:[#allocation8 + $0x568] ss:$16 sps:$4 sm:$0xff]  }
 0x2b9   :  { %5231 = vmatpush1.bf16.msra.mxu0 %v6996_v8  ;;  %v7088_v8 = vld [vmem:[#allocation8 + $0x584] ss:$16 sps:$4 sm:$0xff]  }
 0x2ba   :  { %5403 = vmatpush1.bf16.msra.mxu1 %v6999_v9  ;;  %5232 = vmatprep.subr.bf16.mxu0 %v7004_v10  ;;  %v7091_v9 = vld [vmem:[#allocation8 + $0x58c] ss:$16 sps:$4 sm:$0xff]   ;;  %v7086_v10 = vld [vmem:[#allocation8 + $0x580] ss:$16 sps:$4 sm:$0xff]  }
 0x2bb   :  { %5404 = vmatprep.subr.bf16.mxu1 %v7007_v11  ;;  %v7089_v11 = vld [vmem:[#allocation8 + $0x588] ss:$16 sps:$4 sm:$0xff]  }
 0x2bd   :  { %5233 = vmatpush1.bf16.msra.mxu0 %v7002_v12  ;;  %v7094_v12 = vld [vmem:[#allocation8 + $0x5a4] ss:$16 sps:$4 sm:$0xff]  }
 0x2be   :  { %5405 = vmatpush1.bf16.msra.mxu1 %v7005_v13  ;;  %5234 = vmatprep.subr.bf16.mxu0 %v7010_v14  ;;  %v7097_v13 = vld [vmem:[#allocation8 + $0x5ac] ss:$16 sps:$4 sm:$0xff]   ;;  %v7092_v14 = vld [vmem:[#allocation8 + $0x5a0] ss:$16 sps:$4 sm:$0xff]  }
 0x2bf   :  { %5406 = vmatprep.subr.bf16.mxu1 %v7013_v15  ;;  %v7095_v15 = vld [vmem:[#allocation8 + $0x5a8] ss:$16 sps:$4 sm:$0xff]  }
 0x2c1   :  { %5235 = vmatpush1.bf16.msra.mxu0 %v7008_v16  ;;  %v7100_v16 = vld [vmem:[#allocation8 + $0x5c4] ss:$16 sps:$4 sm:$0xff]  }
 0x2c2   :  { %5407 = vmatpush1.bf16.msra.mxu1 %v7011_v17  ;;  %5247 = vmatprep.subr.bf16.mxu0 %v7016_v18  ;;  %v7103_v17 = vld [vmem:[#allocation8 + $0x5cc] ss:$16 sps:$4 sm:$0xff]   ;;  %v7098_v18 = vld [vmem:[#allocation8 + $0x5c0] ss:$16 sps:$4 sm:$0xff]  }
 0x2c3   :  { %5419 = vmatprep.subr.bf16.mxu1 %v7019_v19  ;;  %v7101_v19 = vld [vmem:[#allocation8 + $0x5c8] ss:$16 sps:$4 sm:$0xff]  }
 0x2c4   :  { %5237 = vmatmul.mubr.bf16.vlgmr.msra.gmra.mrb[8].mxu0 %v7609_v32 }
 0x2c5   :  { %5409 = vmatmul.mubr.bf16.vlgmr.msra.gmra.mrb[8].mxu1 %v7609_v32  ;;  %5248 = vmatpush1.bf16.msra.mxu0 %v7014_v20  ;;  %v7035_v32 = vld [vmem:[#allocation8 + $0x468] ss:$16 sps:$4 sm:$0xff]   ;;  %v7106_v20 = vld [vmem:[#allocation8 + $0x5e4] ss:$16 sps:$4 sm:$0xff]  }
 0x2c6   :  { %5420 = vmatpush1.bf16.msra.mxu1 %v7017_v21  ;;  %5249 = vmatprep.subr.bf16.mxu0 %v7022_v22  ;;  %v7109_v21 = vld [vmem:[#allocation8 + $0x5ec] ss:$16 sps:$4 sm:$0xff]   ;;  %v7104_v22 = vld [vmem:[#allocation8 + $0x5e0] ss:$16 sps:$4 sm:$0xff]  }
 0x2c7   :  { %5421 = vmatprep.subr.bf16.mxu1 %v7025_v23  ;;  %v7107_v23 = vld [vmem:[#allocation8 + $0x5e8] ss:$16 sps:$4 sm:$0xff]  }
 0x2c9   :  { %5250 = vmatpush1.bf16.msra.mxu0 %v7020_v54  ;;  %v7112_v54 = vld [vmem:[#allocation8 + $0x604] ss:$16 sps:$4 sm:$0xff]  }
 0x2ca   :  { %5422 = vmatpush1.bf16.msra.mxu1 %v7023_v24  ;;  %5251 = vmatprep.subr.bf16.mxu0 %v7028_v25  ;;  %v7115_v24 = vld [vmem:[#allocation8 + $0x60c] ss:$16 sps:$4 sm:$0xff]   ;;  %v593_v25 = vsub.s32 4, %v7587_v56 }
 0x2cb   :  { %5423 = vmatprep.subr.bf16.mxu1 %v7031_v26  ;;  %v601_v26 = vsub.s32 6, %v7587_v56 }
 0x2cd   :  { %5252 = vmatpush1.bf16.msra.mxu0 %v7026_v27  ;;  %v597_v27 = vsub.s32 5, %v7587_v56 }
 0x2ce   :  { %5424 = vmatpush1.bf16.msra.mxu1 %v7029_v61  ;;  %5253 = vmatprep.subr.bf16.mxu0 %v7034_v28  ;;  %v605_v61 = vsub.s32 7, %v7587_v56  ;;  %v594_v28 = vrot.slane %v7590_v2, %v593_v25  ;;  %v7151_v25 = vld [vmem:[#allocation8 + $0x6cc] ss:$16 sps:$4 sm:$0xff]  }
 0x2cf   :  { %5425 = vmatprep.subr.bf16.mxu1 %v7037_v29  ;;  %v602_v29 = vrot.slane %v7590_v2, %v601_v26  ;;  %v7146_v26 = vld [vmem:[#allocation8 + $0x6c0] ss:$16 sps:$4 sm:$0xff]  }
 0x2d1   :  { %5254 = vmatpush1.bf16.msra.mxu0 %v7032_v30  ;;  %v598_v30 = vrot.slane %v7590_v2, %v597_v27  ;;  %v7149_v27 = vld [vmem:[#allocation8 + $0x6c8] ss:$16 sps:$4 sm:$0xff]  }
 0x2d2   :  { %5426 = vmatpush1.bf16.msra.mxu1 %v7035_v32  ;;  %5255 = vmatprep.subr.bf16.mxu0 %v7040_v31  ;;  %v606_v32 = vrot.slane %v7590_v2, %v605_v61  ;;  %v7154_v61 = vld [vmem:[#allocation8 + $0x6e4] ss:$16 sps:$4 sm:$0xff]  }
 0x2d3   :  { %5427 = vmatprep.subr.bf16.mxu1 %v7043_v33 }
 0x2d5   :  { %5256 = vmatpush1.bf16.msra.mxu0 %v7038_v34 }
 0x2d6   :  { %5428 = vmatpush1.bf16.msra.mxu1 %v7041_v35  ;;  %5257 = vmatprep.subr.bf16.mxu0 %v7046_v36 }
 0x2d7   :  { %5429 = vmatprep.subr.bf16.mxu1 %v7049_v37 }
 0x2d9   :  { %5258 = vmatpush1.bf16.msra.mxu0 %v7044_v38 }
 0x2da   :  { %5430 = vmatpush1.bf16.msra.mxu1 %v7047_v39  ;;  %5259 = vmatprep.subr.bf16.mxu0 %v7052_v40 }
 0x2db   :  { %5431 = vmatprep.subr.bf16.mxu1 %v7055_v41 }
 0x2dd   :  { %5260 = vmatpush1.bf16.msra.mxu0 %v7050_v42 }
 0x2de   :  { %5432 = vmatpush1.bf16.msra.mxu1 %v7053_v43  ;;  %5261 = vmatprep.subr.bf16.mxu0 %v7058_v44 }
 0x2df   :  { %5433 = vmatprep.subr.bf16.mxu1 %v7061_v45 }
 0x2e1   :  { %5262 = vmatpush1.bf16.msra.mxu0 %v7056_v46 }
 0x2e2   :  { %5434 = vmatpush1.bf16.msra.mxu1 %v7059_v47  ;;  %5263 = vmatprep.subr.bf16.mxu0 %v7064_v48 }
 0x2e3   :  { %5435 = vmatprep.subr.bf16.mxu1 %v7067_v49 }
 0x2e5   :  { %5264 = vmatpush1.bf16.msra.mxu0 %v7062_v50 }
 0x2e6   :  { %5436 = vmatpush1.bf16.msra.mxu1 %v7065_v51  ;;  %5265 = vmatprep.subr.bf16.mxu0 %v7070_v52 }
 0x2e7   :  { %5437 = vmatprep.subr.bf16.mxu1 %v7073_v53 }
 0x2e9   :  { %5266 = vmatpush1.bf16.msra.mxu0 %v7068_v55 }
 0x2ea   :  { %5438 = vmatpush1.bf16.msra.mxu1 %v7071_v57  ;;  %5267 = vmatprep.subr.bf16.mxu0 %v7076_v58 }
 0x2eb   :  { %5439 = vmatprep.subr.bf16.mxu1 %v7079_v59 }
 0x2ed   :  { %5268 = vmatpush1.bf16.msra.mxu0 %v7074_v60  ;;  %v7110_v60 = vld [vmem:[#allocation8 + $0x600] ss:$16 sps:$4 sm:$0xff]  }
 0x2ee   :  { %5440 = vmatpush1.bf16.msra.mxu1 %v7077_v63  ;;  %5269 = vmatprep.subr.bf16.mxu0 %v7082_v0  ;;  %v7113_v63 = vld [vmem:[#allocation8 + $0x608] ss:$16 sps:$4 sm:$0xff]  }
 0x2ef   :  { %5441 = vmatprep.subr.bf16.mxu1 %v7085_v1  ;;  %v7118_v1 = vld [vmem:[#allocation8 + $0x624] ss:$16 sps:$4 sm:$0xff]  }
 0x2f1   :  { %5270 = vmatpush1.bf16.msra.mxu0 %v7080_v5  ;;  %v7121_v5 = vld [vmem:[#allocation8 + $0x62c] ss:$16 sps:$4 sm:$0xff]  }
 0x2f2   :  { %5442 = vmatpush1.bf16.msra.mxu1 %v7083_v7  ;;  %5271 = vmatprep.subr.bf16.mxu0 %v7088_v8  ;;  %v7116_v7 = vld [vmem:[#allocation8 + $0x620] ss:$16 sps:$4 sm:$0xff]   ;;  %v7119_v8 = vld [vmem:[#allocation8 + $0x628] ss:$16 sps:$4 sm:$0xff]  }
 0x2f3   :  { %5443 = vmatprep.subr.bf16.mxu1 %v7091_v9  ;;  %v7124_v9 = vld [vmem:[#allocation8 + $0x644] ss:$16 sps:$4 sm:$0xff]  }
 0x2f5   :  { %5272 = vmatpush1.bf16.msra.mxu0 %v7086_v10  ;;  %v7127_v10 = vld [vmem:[#allocation8 + $0x64c] ss:$16 sps:$4 sm:$0xff]  }
 0x2f6   :  { %5444 = vmatpush1.bf16.msra.mxu1 %v7089_v11  ;;  %5273 = vmatprep.subr.bf16.mxu0 %v7094_v12  ;;  %v7122_v11 = vld [vmem:[#allocation8 + $0x640] ss:$16 sps:$4 sm:$0xff]   ;;  %v7125_v12 = vld [vmem:[#allocation8 + $0x648] ss:$16 sps:$4 sm:$0xff]  }
 0x2f7   :  { %5445 = vmatprep.subr.bf16.mxu1 %v7097_v13  ;;  %v7130_v13 = vld [vmem:[#allocation8 + $0x664] ss:$16 sps:$4 sm:$0xff]  }
 0x2f9   :  { %5274 = vmatpush1.bf16.msra.mxu0 %v7092_v14  ;;  %v7133_v14 = vld [vmem:[#allocation8 + $0x66c] ss:$16 sps:$4 sm:$0xff]  }
 0x2fa   :  { %5446 = vmatpush1.bf16.msra.mxu1 %v7095_v15  ;;  %5275 = vmatprep.subr.bf16.mxu0 %v7100_v16  ;;  %v7128_v15 = vld [vmem:[#allocation8 + $0x660] ss:$16 sps:$4 sm:$0xff]   ;;  %v7131_v16 = vld [vmem:[#allocation8 + $0x668] ss:$16 sps:$4 sm:$0xff]  }
 0x2fb   :  { %5447 = vmatprep.subr.bf16.mxu1 %v7103_v17  ;;  %v7136_v17 = vld [vmem:[#allocation8 + $0x684] ss:$16 sps:$4 sm:$0xff]  }
 0x2fd   :  { %5276 = vmatpush1.bf16.msra.mxu0 %v7098_v18  ;;  %v7139_v18 = vld [vmem:[#allocation8 + $0x68c] ss:$16 sps:$4 sm:$0xff]  }
 0x2fe   :  { %5448 = vmatpush1.bf16.msra.mxu1 %v7101_v19  ;;  %5277 = vmatprep.subr.bf16.mxu0 %v7106_v20  ;;  %v7134_v19 = vld [vmem:[#allocation8 + $0x680] ss:$16 sps:$4 sm:$0xff]   ;;  %v7137_v20 = vld [vmem:[#allocation8 + $0x688] ss:$16 sps:$4 sm:$0xff]  }
 0x2ff   :  { %5449 = vmatprep.subr.bf16.mxu1 %v7109_v21  ;;  %v7142_v21 = vld [vmem:[#allocation8 + $0x6a4] ss:$16 sps:$4 sm:$0xff]  }
 0x301   :  { %5278 = vmatpush1.bf16.msra.mxu0 %v7104_v22  ;;  %v7145_v22 = vld [vmem:[#allocation8 + $0x6ac] ss:$16 sps:$4 sm:$0xff]  }
 0x302   :  { %5450 = vmatpush1.bf16.msra.mxu1 %v7107_v23  ;;  %5290 = vmatprep.subr.bf16.mxu0 %v7112_v54  ;;  %v7140_v23 = vld [vmem:[#allocation8 + $0x6a0] ss:$16 sps:$4 sm:$0xff]   ;;  %v7143_v54 = vld [vmem:[#allocation8 + $0x6a8] ss:$16 sps:$4 sm:$0xff]  }
 0x303   :  { %5462 = vmatprep.subr.bf16.mxu1 %v7115_v24  ;;  %v7148_v24 = vld [vmem:[#allocation8 + $0x6c4] ss:$16 sps:$4 sm:$0xff]  }
 0x317   :  { %v3398_v31 = vpop.f32.mrb[4].mxu0  ;;  %v3570_v34 = vpop.f32.mrb[4].mxu1 }
 0x318   :  { %v6707_v33 = vadd.f32 %v3398_v31, %v594_v28  ;;  %v3400_v35 = vpop.f32.mrb[5].mxu0  ;;  %v6711_v36 = vadd.f32 %v3570_v34, %v602_v29  ;;  %v3572_v38 = vpop.f32.mrb[5].mxu1  ;;  %v7163_v31 = vld [vmem:[#allocation8 + $0x70c] ss:$16 sps:$4 sm:$0xff]   ;;  %v7161_v34 = vld [vmem:[#allocation8 + $0x708] ss:$16 sps:$4 sm:$0xff]  }
 0x319   :  { %v6708_v37 = vadd.f32 %v3400_v35, %v598_v30  ;;  %v3402_v39 = vpop.f32.mrb[6].mxu0  ;;  %v6712_v40 = vadd.f32 %v3572_v38, %v606_v32  ;;  %v3574_v42 = vpop.f32.mrb[6].mxu1  ;;  %v7166_v35 = vld [vmem:[#allocation8 + $0x724] ss:$16 sps:$4 sm:$0xff]   ;;  %v7167_v38 = vld [vmem:[#allocation8 + $0x728] ss:$16 sps:$4 sm:$0xff]  }
 0x31a   :  { %v6709_v41 = vadd.f32 %v3402_v39, %v594_v28  ;;  %v3404_v43 = vpop.f32.mrb[7].mxu0  ;;  %v6713_v44 = vadd.f32 %v3574_v42, %v602_v29  ;;  %v3576_v46 = vpop.f32.mrb[7].mxu1  ;;  %v3583_v47 = vmax.f32 %v6707_v33, 0.0  ;;  %v3585_v50 = vmax.f32 %v6711_v36, 0.0  ;;  %v7157_v28 = vld [vmem:[#allocation8 + $0x6ec] ss:$16 sps:$4 sm:$0xff]  }
 0x31b   :  { %v6710_v45 = vadd.f32 %v3404_v43, %v598_v30  ;;  %v6714_v49 = vadd.f32 %v3576_v46, %v606_v32  ;;  %v3584_v2 = vmax.f32 %v6708_v37, 0.0  ;;  %v3586_v53 = vmax.f32 %v6712_v40, 0.0  ;;  %v7152_v29 = vld [vmem:[#allocation8 + $0x6e0] ss:$16 sps:$4 sm:$0xff]   ;;  %v7155_v30 = vld [vmem:[#allocation8 + $0x6e8] ss:$16 sps:$4 sm:$0xff]  }
 0x31c   :  { %v3591_v48 = vmax.f32 %v6709_v41, 0.0  ;;  %v3593_v51 = vmax.f32 %v6713_v44, 0.0  ;;  %v7160_v32 = vld [vmem:[#allocation8 + $0x704] ss:$16 sps:$4 sm:$0xff]   ;;  %v7158_v33 = vld [vmem:[#allocation8 + $0x700] ss:$16 sps:$4 sm:$0xff]  }
 0x31d   :  { %v3592_v52 = vmax.f32 %v6710_v45, 0.0  ;;  %v3594_v57 = vmax.f32 %v6714_v49, 0.0  ;;  %v7169_v36 = vld [vmem:[#allocation8 + $0x72c] ss:$16 sps:$4 sm:$0xff]   ;;  %v7164_v37 = vld [vmem:[#allocation8 + $0x720] ss:$16 sps:$4 sm:$0xff]  }
 0x31e   :  { %v3599_v55 = vpack.c.bf16 %v3591_v48, %v3583_v47  ;;  %v7627_v58 = vpack.c.bf16 %v3593_v51, %v3585_v50  ;;  %v7172_v39 = vld [vmem:[#allocation8 + $0x744] ss:$16 sps:$4 sm:$0xff]   ;;  %v7175_v40 = vld [vmem:[#allocation8 + $0x74c] ss:$16 sps:$4 sm:$0xff]   ;;  %v7170_v41 = vld [vmem:[#allocation8 + $0x740] ss:$16 sps:$4 sm:$0xff]  }
 0x31f   :  { %v3600_v59 = vpack.c.bf16 %v3592_v52, %v3584_v2  ;;  %v3602_v0 = vpack.c.bf16 %v3594_v57, %v3586_v53  ;;  %v7173_v42 = vld [vmem:[#allocation8 + $0x748] ss:$16 sps:$4 sm:$0xff]   ;;  %v7178_v43 = vld [vmem:[#allocation8 + $0x764] ss:$16 sps:$4 sm:$0xff]   ;;  %v7181_v44 = vld [vmem:[#allocation8 + $0x76c] ss:$16 sps:$4 sm:$0xff]  }
 0x320   :  { %v7176_v45 = vld [vmem:[#allocation8 + $0x760] ss:$16 sps:$4 sm:$0xff]   ;;  %v7179_v46 = vld [vmem:[#allocation8 + $0x768] ss:$16 sps:$4 sm:$0xff]   ;;  %v7184_v47 = vld [vmem:[#allocation8 + $0x784] ss:$16 sps:$4 sm:$0xff]  }
 0x321   :  { %5279 = vmatprep.mubr.bf16.mxu0 %v3600_v59  ;;  %5451 = vmatprep.mubr.bf16.mxu1 %v3600_v59  ;;  %v7187_v48 = vld [vmem:[#allocation8 + $0x78c] ss:$16 sps:$4 sm:$0xff]   ;;  %v7182_v49 = vld [vmem:[#allocation8 + $0x780] ss:$16 sps:$4 sm:$0xff]   ;;  %v7185_v50 = vld [vmem:[#allocation8 + $0x788] ss:$16 sps:$4 sm:$0xff]  }
 0x322   :  { %5280 = vmatmul.mubr.bf16.vlgmr.msra.gmra.mrb[8].mxu0 %v3599_v55  ;;  %5452 = vmatmul.mubr.bf16.vlgmr.msra.gmra.mrb[8].mxu1 %v3599_v55  ;;  %v7190_v2 = vld [vmem:[#allocation8 + $0x7a4] ss:$16 sps:$4 sm:$0xff]   ;;  %v7193_v51 = vld [vmem:[#allocation8 + $0x7ac] ss:$16 sps:$4 sm:$0xff]   ;;  %v7188_v52 = vld [vmem:[#allocation8 + $0x7a0] ss:$16 sps:$4 sm:$0xff]  }
 0x323   :  { %5291 = vmatpush1.bf16.msra.mxu0 %v7110_v60  ;;  %5463 = vmatpush1.bf16.msra.mxu1 %v7113_v63  ;;  %v7191_v53 = vld [vmem:[#allocation8 + $0x7a8] ss:$16 sps:$4 sm:$0xff]   ;;  %v7196_v55 = vld [vmem:[#allocation8 + $0x7c4] ss:$16 sps:$4 sm:$0xff]   ;;  %v7199_v57 = vld [vmem:[#allocation8 + $0x7cc] ss:$16 sps:$4 sm:$0xff]  }
 0x324   :  { %5322 = vmatprep.mubr.bf16.mxu0 %v3602_v0  ;;  %5494 = vmatprep.mubr.bf16.mxu1 %v3602_v0  ;;  %v7194_v59 = vld [vmem:[#allocation8 + $0x7c0] ss:$16 sps:$4 sm:$0xff]   ;;  %v7197_v60 = vld [vmem:[#allocation8 + $0x7c8] ss:$16 sps:$4 sm:$0xff]   ;;  %v7202_v63 = vld [vmem:[#allocation8 + $0x7e4] ss:$16 sps:$4 sm:$0xff]  }
 0x325   :  { %5292 = vmatprep.subr.bf16.mxu0 %v7118_v1  ;;  %5464 = vmatprep.subr.bf16.mxu1 %v7121_v5  ;;  %v7205_v0 = vld [vmem:[#allocation8 + $0x7ec] ss:$16 sps:$4 sm:$0xff]   ;;  %v7200_v1 = vld [vmem:[#allocation8 + $0x7e0] ss:$16 sps:$4 sm:$0xff]   ;;  %v7203_v5 = vld [vmem:[#allocation8 + $0x7e8] ss:$16 sps:$4 sm:$0xff]  }
 0x327   :  { %5293 = vmatpush1.bf16.msra.mxu0 %v7116_v7  ;;  %5465 = vmatpush1.bf16.msra.mxu1 %v7119_v8  ;;  %v7206_v7 = vld [vmem:[#allocation11 + $0x40] sm:$0xff]  }
 0x328   :  { %5294 = vmatprep.subr.bf16.mxu0 %v7124_v9  ;;  %5466 = vmatprep.subr.bf16.mxu1 %v7127_v10  ;;  %v7207_v8 = vld [vmem:[#allocation11 + $0xc0] sm:$0xff]  }
 0x329   :  { %v7208_v9 = vld [vmem:[#allocation11] sm:$0xff]  }
 0x32a   :  { %v7209_v10 = vld [vmem:[#allocation11 + $0x80] sm:$0xff]  }
 0x32b   :  { %5295 = vmatpush1.bf16.msra.mxu0 %v7122_v11  ;;  %5467 = vmatpush1.bf16.msra.mxu1 %v7125_v12  ;;  %v7210_v11 = vld [vmem:[#allocation11 + $0x48] sm:$0xff]  }
 0x32c   :  { %5296 = vmatprep.subr.bf16.mxu0 %v7130_v13  ;;  %5468 = vmatprep.subr.bf16.mxu1 %v7133_v14  ;;  %v7211_v12 = vld [vmem:[#allocation11 + $0xc8] sm:$0xff]  }
 0x32d   :  { %v7212_v13 = vld [vmem:[#allocation11 + $0x8] sm:$0xff]  }
 0x32e   :  { %v7213_v14 = vld [vmem:[#allocation11 + $0x88] sm:$0xff]  }
 0x32f   :  { %5297 = vmatpush1.bf16.msra.mxu0 %v7128_v15  ;;  %5469 = vmatpush1.bf16.msra.mxu1 %v7131_v16  ;;  %v7214_v15 = vld [vmem:[#allocation11 + $0x50] sm:$0xff]  }
 0x330   :  { %5298 = vmatprep.subr.bf16.mxu0 %v7136_v17  ;;  %5470 = vmatprep.subr.bf16.mxu1 %v7139_v18  ;;  %v7215_v16 = vld [vmem:[#allocation11 + $0xd0] sm:$0xff]  }
 0x331   :  { %v7216_v17 = vld [vmem:[#allocation11 + $0x10] sm:$0xff]  }
 0x332   :  { %v7217_v18 = vld [vmem:[#allocation11 + $0x90] sm:$0xff]  }
 0x333   :  { %5299 = vmatpush1.bf16.msra.mxu0 %v7134_v19  ;;  %5471 = vmatpush1.bf16.msra.mxu1 %v7137_v20  ;;  %v7218_v19 = vld [vmem:[#allocation11 + $0x58] sm:$0xff]  }
 0x334   :  { %5300 = vmatprep.subr.bf16.mxu0 %v7142_v21  ;;  %5472 = vmatprep.subr.bf16.mxu1 %v7145_v22  ;;  %v7219_v20 = vld [vmem:[#allocation11 + $0xd8] sm:$0xff]   ;;  %v7222_v22 = vld [vmem:[#allocation11 + $0x60] sm:$0xff]  }
 0x335   :  { %v7220_v21 = vld [vmem:[#allocation11 + $0x18] sm:$0xff]  }
 0x337   :  { %5301 = vmatpush1.bf16.msra.mxu0 %v7140_v23  ;;  %5473 = vmatpush1.bf16.msra.mxu1 %v7143_v54  ;;  %v7223_v23 = vld [vmem:[#allocation11 + $0xe0] sm:$0xff]  }
 0x338   :  { %5302 = vmatprep.subr.bf16.mxu0 %v7148_v24  ;;  %5474 = vmatprep.subr.bf16.mxu1 %v7151_v25  ;;  %v7224_v54 = vld [vmem:[#allocation11 + $0x20] sm:$0xff]   ;;  %v7226_v25 = vld [vmem:[#allocation11 + $0x68] sm:$0xff]  }
 0x339   :  { %v7225_v24 = vld [vmem:[#allocation11 + $0xa0] sm:$0xff]  }
 0x33b   :  { %5303 = vmatpush1.bf16.msra.mxu0 %v7146_v26  ;;  %5475 = vmatpush1.bf16.msra.mxu1 %v7149_v27  ;;  %v7227_v26 = vld [vmem:[#allocation11 + $0xe8] sm:$0xff]  }
 0x33c   :  { %5304 = vmatprep.subr.bf16.mxu0 %v7154_v61  ;;  %5476 = vmatprep.subr.bf16.mxu1 %v7157_v28  ;;  %v7228_v27 = vld [vmem:[#allocation11 + $0x28] sm:$0xff]   ;;  %v7230_v28 = vld [vmem:[#allocation11 + $0x70] sm:$0xff]  }
 0x33d   :  { %v7229_v61 = vld [vmem:[#allocation11 + $0xa8] sm:$0xff]  }
 0x33f   :  { %5305 = vmatpush1.bf16.msra.mxu0 %v7152_v29  ;;  %5477 = vmatpush1.bf16.msra.mxu1 %v7155_v30  ;;  %v7231_v29 = vld [vmem:[#allocation11 + $0xf0] sm:$0xff]  }
 0x340   :  { %5306 = vmatprep.subr.bf16.mxu0 %v7160_v32  ;;  %5478 = vmatprep.subr.bf16.mxu1 %v7163_v31  ;;  %v7232_v30 = vld [vmem:[#allocation11 + $0x30] sm:$0xff]   ;;  %v7234_v31 = vld [vmem:[#allocation11 + $0x78] sm:$0xff]  }
 0x341   :  { %v7233_v32 = vld [vmem:[#allocation11 + $0xb0] sm:$0xff]  }
 0x343   :  { %5307 = vmatpush1.bf16.msra.mxu0 %v7158_v33  ;;  %5479 = vmatpush1.bf16.msra.mxu1 %v7161_v34  ;;  %v7235_v33 = vld [vmem:[#allocation11 + $0xf8] sm:$0xff]  }
 0x344   :  { %5308 = vmatprep.subr.bf16.mxu0 %v7166_v35  ;;  %5480 = vmatprep.subr.bf16.mxu1 %v7169_v36  ;;  %v7236_v34 = vld [vmem:[#allocation11 + $0x38] sm:$0xff]  }
 0x345   :  { %v7237_v35 = vld [vmem:[#allocation11 + $0xb8] sm:$0xff]  }
 0x346   :  { %v3859_v36 = vld [vmem:[#allocation10] sm:$0xf] }
 0x347   :  { %5309 = vmatpush1.bf16.msra.mxu0 %v7164_v37  ;;  %5481 = vmatpush1.bf16.msra.mxu1 %v7167_v38  ;;  %v3864_v37 = vrot.slane %v3859_v36, %v577_v62  ;;  %v3872_v38 = vrot.slane %v3859_v36, %v585_v3 }
 0x348   :  { %5310 = vmatprep.subr.bf16.mxu0 %v7172_v39  ;;  %5482 = vmatprep.subr.bf16.mxu1 %v7175_v40  ;;  %v3868_v39 = vrot.slane %v3859_v36, %v581_v4  ;;  %v3876_v40 = vrot.slane %v3859_v36, %v589_v6 }
 0x34b   :  { %5311 = vmatpush1.bf16.msra.mxu0 %v7170_v41  ;;  %5483 = vmatpush1.bf16.msra.mxu1 %v7173_v42 }
 0x34c   :  { %5312 = vmatprep.subr.bf16.mxu0 %v7178_v43  ;;  %5484 = vmatprep.subr.bf16.mxu1 %v7181_v44 }
 0x34f   :  { %5313 = vmatpush1.bf16.msra.mxu0 %v7176_v45  ;;  %5485 = vmatpush1.bf16.msra.mxu1 %v7179_v46 }
 0x350   :  { %5314 = vmatprep.subr.bf16.mxu0 %v7184_v47  ;;  %5486 = vmatprep.subr.bf16.mxu1 %v7187_v48 }
 0x353   :  { %5315 = vmatpush1.bf16.msra.mxu0 %v7182_v49  ;;  %5487 = vmatpush1.bf16.msra.mxu1 %v7185_v50 }
 0x354   :  { %5316 = vmatprep.subr.bf16.mxu0 %v7190_v2  ;;  %5488 = vmatprep.subr.bf16.mxu1 %v7193_v51 }
 0x357   :  { %5317 = vmatpush1.bf16.msra.mxu0 %v7188_v52  ;;  %5489 = vmatpush1.bf16.msra.mxu1 %v7191_v53 }
 0x358   :  { %5318 = vmatprep.subr.bf16.mxu0 %v7196_v55  ;;  %5490 = vmatprep.subr.bf16.mxu1 %v7199_v57 }
 0x35b   :  { %5319 = vmatpush1.bf16.msra.mxu0 %v7194_v59  ;;  %5491 = vmatpush1.bf16.msra.mxu1 %v7197_v60 }
 0x35c   :  { %5320 = vmatprep.subr.bf16.mxu0 %v7202_v63  ;;  %5492 = vmatprep.subr.bf16.mxu1 %v7205_v0 }
 0x35f   :  { %5321 = vmatpush1.bf16.msra.mxu0 %v7200_v1  ;;  %5493 = vmatpush1.bf16.msra.mxu1 %v7203_v5 }
 0x360   :  { %6655 = vmatprep.subr.bf16.mxu0 %v7206_v7  ;;  %6677 = vmatprep.subr.bf16.mxu1 %v7207_v8 }
 0x362   :  { %5323 = vmatmul.mubr.bf16.vlgmr.msra.gmra.mrb[8].mxu0 %v7627_v58  ;;  %5495 = vmatmul.mubr.bf16.vlgmr.msra.gmra.mrb[8].mxu1 %v7627_v58  ;;  %v7221_v58 = vld [vmem:[#allocation11 + $0x98] sm:$0xff]  }
 0x363   :  { %6656 = vmatpush3.bf16.msra.mxu0 %v7208_v9  ;;  %6678 = vmatpush3.bf16.msra.mxu1 %v7209_v10  ;;  %v6613_v10 = vld [vmem:[#allocation13] ss:$0 sm:$0xff] }
 0x364   :  { %6657 = vmatprep.subr.bf16.mxu0 %v7210_v11  ;;  %6679 = vmatprep.subr.bf16.mxu1 %v7211_v12 }
 0x367   :  { %6658 = vmatpush3.bf16.msra.mxu0 %v7212_v13  ;;  %6680 = vmatpush3.bf16.msra.mxu1 %v7213_v14 }
 0x368   :  { %6659 = vmatprep.subr.bf16.mxu0 %v7214_v15  ;;  %6681 = vmatprep.subr.bf16.mxu1 %v7215_v16 }
 0x36b   :  { %6660 = vmatpush3.bf16.msra.mxu0 %v7216_v17  ;;  %6682 = vmatpush3.bf16.msra.mxu1 %v7217_v18 }
 0x36c   :  { %6661 = vmatprep.subr.bf16.mxu0 %v7218_v19  ;;  %6683 = vmatprep.subr.bf16.mxu1 %v7219_v20 }
 0x36f   :  { %6662 = vmatpush3.bf16.msra.mxu0 %v7220_v21  ;;  %6684 = vmatpush3.bf16.msra.mxu1 %v7221_v58 }
 0x370   :  { %6663 = vmatprep.subr.bf16.mxu0 %v7222_v22  ;;  %6685 = vmatprep.subr.bf16.mxu1 %v7223_v23 }
 0x373   :  { %6664 = vmatpush3.bf16.msra.mxu0 %v7224_v54  ;;  %6686 = vmatpush3.bf16.msra.mxu1 %v7225_v24 }
 0x374   :  { %6665 = vmatprep.subr.bf16.mxu0 %v7226_v25  ;;  %6687 = vmatprep.subr.bf16.mxu1 %v7227_v26 }
 0x377   :  { %6666 = vmatpush3.bf16.msra.mxu0 %v7228_v27  ;;  %6688 = vmatpush3.bf16.msra.mxu1 %v7229_v61 }
 0x378   :  { %6667 = vmatprep.subr.bf16.mxu0 %v7230_v28  ;;  %6689 = vmatprep.subr.bf16.mxu1 %v7231_v29 }
 0x37b   :  { %6668 = vmatpush3.bf16.msra.mxu0 %v7232_v30  ;;  %6690 = vmatpush3.bf16.msra.mxu1 %v7233_v32 }
 0x37c   :  { %6669 = vmatprep.subr.bf16.mxu0 %v7234_v31  ;;  %6691 = vmatprep.subr.bf16.mxu1 %v7235_v33 }
 0x37f   :  { %6670 = vmatpush3.bf16.msra.mxu0 %v7236_v34  ;;  %6692 = vmatpush3.bf16.msra.mxu1 %v7237_v35 }
 0x435   :  { %v5324_v41 = vpop.f32.mrb[8].mxu0  ;;  %v5496_v42 = vpop.f32.mrb[8].mxu1 }
 0x436   :  { %v6715_v43 = vadd.f32 %v5324_v41, %v3864_v37  ;;  %v6719_v44 = vadd.f32 %v5496_v42, %v3872_v38  ;;  %v5326_v45 = vpop.f32.mrb[9].mxu0  ;;  %v5498_v46 = vpop.f32.mrb[9].mxu1 }
 0x437   :  { %v6716_v47 = vadd.f32 %v5326_v45, %v3868_v39  ;;  %v6720_v48 = vadd.f32 %v5498_v46, %v3876_v40  ;;  %v5328_v49 = vpop.f32.mrb[10].mxu0  ;;  %v5500_v50 = vpop.f32.mrb[10].mxu1 }
 0x438   :  { %v6717_v62 = vadd.f32 %v5328_v49, %v3864_v37  ;;  %v6721_v2 = vadd.f32 %v5500_v50, %v3872_v38  ;;  %v5330_v51 = vpop.f32.mrb[11].mxu0  ;;  %v5502_v3 = vpop.f32.mrb[11].mxu1  ;;  %v5505_v4 = vmax.f32 %v6715_v43, 0.0  ;;  %v5507_v55 = vmax.f32 %v6719_v44, 0.0 }
 0x439   :  { %v6718_v52 = vadd.f32 %v5330_v51, %v3868_v39  ;;  %v6722_v53 = vadd.f32 %v5502_v3, %v3876_v40  ;;  %v5506_v57 = vmax.f32 %v6716_v47, 0.0  ;;  %v5508_v59 = vmax.f32 %v6720_v48, 0.0 }
 0x43a   :  { %v5509_v56 = vmax.f32 %v6717_v62, 0.0  ;;  %v5511_v6 = vmax.f32 %v6721_v2, 0.0 }
 0x43b   :  { %v5510_v60 = vmax.f32 %v6718_v52, 0.0  ;;  %v5512_v63 = vmax.f32 %v6722_v53, 0.0 }
 0x43c   :  { %v5513_v0 = vpack.c.bf16 %v5509_v56, %v5505_v4  ;;  %v5515_v1 = vpack.c.bf16 %v5511_v6, %v5507_v55 }
 0x43d   :  { %v5514_v5 = vpack.c.bf16 %v5510_v60, %v5506_v57  ;;  %v5516_v7 = vpack.c.bf16 %v5512_v63, %v5508_v59 }
 0x43f   :  { %5812 = vmatprep.mubr.bf16.mxu0 %v5514_v5  ;;  %5853 = vmatprep.mubr.bf16.mxu1 %v5516_v7 }
 0x440   :  { %5813 = vmatmul.mubr.bf16.vlgmr.msra.gmra.mrb[12].mxu0 %v5513_v0  ;;  %5854 = vmatmul.mubr.bf16.vlgmr.msra.gmra.mrb[12].mxu1 %v5515_v1 }
 0x513   :  { %v6671_v8 = vpop.f32.mrb[12].mxu0  ;;  %v6693_v9 = vpop.f32.mrb[12].mxu1 }
 0x514   :  { %v6672_v11 = vpop.f32.mrb[13].mxu0  ;;  %v6694_v12 = vpop.f32.mrb[13].mxu1 }
 0x515   :  { %v6673_v13 = vadd.f32 %v6672_v11, %v6671_v8  ;;  %v6695_v14 = vadd.f32 %v6694_v12, %v6693_v9  ;;  %v6674_v15 = vpop.f32.mrb[14].mxu0  ;;  %v6696_v16 = vpop.f32.mrb[14].mxu1 }
 0x516   :  { %v6675_v17 = vpop.f32.mrb[15].mxu0  ;;  %v6697_v18 = vpop.f32.mrb[15].mxu1 }
 0x517   :  { %v5815_v19 = vadd.f32 %v6673_v13, %v6613_v10  ;;  %v6676_v20 = vadd.f32 %v6675_v17, %v6674_v15  ;;  %v6698_v21 = vadd.f32 %v6697_v18, %v6696_v16 }
 0x519   :  { %v5856_v58 = vadd.f32 %v6695_v14, %v5815_v19  ;;  %v5818_v22 = vadd.f32 %v6676_v20, %v6613_v10 }
 0x51b   :  { %v5862_v23 = vsub.f32 0.0, %v5856_v58  ;;  %v5859_v54 = vadd.f32 %v6698_v21, %v5818_v22 }
 0x51d   :  { %v5864_v24 = vmul.f32 1.442695, %v5862_v23  ;;  %v5863_v25 = vsub.f32 0.0, %v5859_v54 }
 0x51f   :  { %7238 = vpow2.f32 %v5864_v24  ;;  %v5866_v26 = vmul.f32 1.442695, %v5863_v25 }
 0x521   :  { %7240 = vpow2.f32 %v5866_v26 }
 0x529   :  { %v7239_v27 = vpop.eup %7238 }
 0x52a   :  { %v5868_v61 = vadd.f32 1.0, %v7239_v27 }
 0x52b   :  { %v7241_v28 = vpop.eup %7240 }
 0x52c   :  { %v5869_v29 = vadd.f32 1.0, %v7241_v28  ;;  %7242 = vrcp.f32 %v5868_v61 }
 0x52e   :  { %7244 = vrcp.f32 %v5869_v29 }
 0x536   :  { %v7243_v30 = vpop.eup %7242 }
 0x538   :  { %v7245_v32 = vpop.eup %7244 }
 0x539   :  { %v6653_v31 = vpack.c.bf16 %v7245_v32, %v7243_v30 }
 0x53b   :  { %6654 = vst [vmem:[#allocation14] sm:$0xff] %v6653_v31  }
 0x53c   :  { %7418 = shalt.err (!%p7415_p4)
}
 0x53d   :  { %s7419_s21 = scalar_lea.hbm %s7661_s7, 128 }
 0x53e   :  { %p7420_p5 = scmp.ne.s32.totalorder %s7661_s7, %s7419_s21  ;;  %p7423_p6 = scmp.lt.u32.totalorder %s7419_s21, %s7661_s7 }
 0x540   :  { %p7425_p7 = pnand %p7423_p6, %p7420_p5 }
 0x542   :  { %7428 = shalt.err (!%p7425_p7)
}
 0x543   :  { %5893 = dma.vmem_to_hbm [thread:$0]  %s5888_s18, 128, %s7661_s7, [#allocation4], %s7446_s3, %s7446_s3, %s7447_s15  }
 0x544   :  { %7437 = dma.done.wait [#allocation4], 128  }
 0x545   :  { %7438 = vsyncadd [#allocation4], 4294967168 }
 0x546   :  { %5897 = vsyncpa [#allocation3], 1 }
 0x547   :  { %5898 = vsyncpa [#allocation6], 1 }
 0x548   :  { %5899 = vsyncpa [#allocation9], 1 }
 0x549   :  { %5900 = vsyncpa [#allocation12], 1 }
 0x54a   :  { %5901 = vsyncpa [#allocation4], 1 }

</bundles_post_ra>
